<compile_context>
chip_gen: v5e
topology: v5e:2x2
jax: 0.10.0
libtpu: 0.0.40
codegen_flags: <defaults>
</compile_context>

<pallas_src>
import functools

import jax
import jax.numpy as jnp
from jax.experimental import pallas as pl
from jax.experimental.pallas import tpu as pltpu


TILE_M_MAX = 256  # rows per grid step (multiple of 256 keeps 256-wide MXUs full)


def _round_up(x, m):
    return ((x + m - 1) // m) * m


@functools.lru_cache(maxsize=None)
def _vmem_limit_bytes():
    # Generation-aware scoped-VMEM limit: v7x has 64 MiB physical (2 TCs share
    # the chip), v5e/v6e have 128 MiB.  Blocks here are tiny, so the fallback
    # (safe on every generation) is plenty.
    try:
        phys = int(pltpu.get_tpu_info().vmem_capacity_bytes)
        return max(min(phys // 2, 64 * 1024 * 1024), 32 * 1024 * 1024)
    except Exception:
        return 32 * 1024 * 1024


# ----------------------------------------------------------------------------
# Fused kernel: conv (patch matmul, bf16 -> f32 acc) + pool-as-max + ReLU
#               + batch-stats accumulation + BN affine (+ sigmoid) apply,
#               with the pre-BN activations held in a persistent VMEM slab.
# ----------------------------------------------------------------------------
def fused_conv_bn_kernel(p_ref, w_ref, b_ref, g_ref, bt_ref, o_ref,
                         y_slab, sum_sc, sq_sc,
                         *, relu, sigmoid, m_true, tile_m, num_tiles,
                         cout, mask_rows, eps):
    i = pl.program_id(0)

    @pl.when(i == 0)
    def _():
        sum_sc[...] = jnp.zeros_like(sum_sc)
        sq_sc[...] = jnp.zeros_like(sq_sc)

    # ---- Conv (+ 2x2 max-pool) as ONE MXU matmul: pooling candidates folded
    #      into the M dimension, reduced with a max afterwards. ----
    p = p_ref[...]                                    # (p_cand, tile_m, kp) bf16
    p_cand = p.shape[0]
    acc = jnp.dot(p.reshape(p_cand * tile_m, p.shape[2]), w_ref[...],
                  preferred_element_type=jnp.float32)  # (p_cand*tile_m, cp) f32
    y = acc[:tile_m]
    for c in range(1, p_cand):                        # static: 4 (pooled) or 1
        y = jnp.maximum(y, acc[c * tile_m:(c + 1) * tile_m])
    y = y + b_ref[...]   # bias hoisted out of the max: max(a+c, b+c)=max(a,b)+c
    if relu:
        y = jnp.maximum(y, 0.0)

    # ---- Persist pre-BN activations in VMEM (no HBM round trip). ----
    y_slab[i] = y

    # ---- Batch statistics (exclude padded rows). ----
    if mask_rows:
        row = jax.lax.broadcasted_iota(jnp.int32, (tile_m, 1), 0) + i * tile_m
        yv = jnp.where(row < m_true, y, 0.0)
    else:
        yv = y
    sum_sc[...] += jnp.sum(yv, axis=0, keepdims=True)
    sq_sc[...] += jnp.sum(yv * yv, axis=0, keepdims=True)

    # ---- Last grid step: finalize BN and apply (+ sigmoid) to the slab.
    #      Only the true cout channels are stored (lane-sliced masked vst). ----
    @pl.when(i == num_tiles - 1)
    def _():
        inv_m = 1.0 / m_true
        mean = sum_sc[...] * inv_m
        var = jnp.maximum(sq_sc[...] * inv_m - mean * mean, 0.0)
        scale = g_ref[...] * jax.lax.rsqrt(var + eps)
        shift = bt_ref[...] - mean * scale
        for t in range(num_tiles):            # static, <= 2 at these shapes
            yt = y_slab[t] * scale + shift
            if sigmoid:
                yt = jnp.clip(
                    pl.reciprocal(1.0 + jnp.exp(-yt), approx=True), 0.0, 1.0)
            o_ref[pl.ds(t * tile_m, tile_m), :] = yt[:, :cout]


# ----------------------------------------------------------------------------
# Plain-JAX glue: im2col patches and bilinear upsample (align_corners=True)
# ----------------------------------------------------------------------------
def _im2col(x, k, pad):
    # x: (N, H, W, Cin) -> (N, H, W, k*k*Cin), feature order = (kh, kw, ci)
    n, h, w, _ = x.shape
    xp = jnp.pad(x, ((0, 0), (pad, pad), (pad, pad), (0, 0)))
    patches = []
    for i in range(k):
        for j in range(k):
            patches.append(xp[:, i:i + h, j:j + w, :])
    return jnp.concatenate(patches, axis=-1)


def _upsample_bilinear_ac(x, factor=2):
    # torch.nn.Upsample(scale_factor=2, mode='bilinear', align_corners=True)
    n, h, w, c = x.shape
    ho, wo = h * factor, w * factor

    def coords(in_size, out_size):
        scale = (in_size - 1) / (out_size - 1) if out_size > 1 else 0.0
        s = jnp.arange(out_size, dtype=jnp.float32) * scale
        lo = jnp.floor(s).astype(jnp.int32)
        hi = jnp.minimum(lo + 1, in_size - 1)
        frac = (s - lo.astype(jnp.float32)).astype(x.dtype)
        return lo, hi, frac

    hl, hh, hf = coords(h, ho)
    wl, wh, wf = coords(w, wo)
    rows = (x[:, hl, :, :] * (1.0 - hf)[None, :, None, None]
            + x[:, hh, :, :] * hf[None, :, None, None])
    out = (rows[:, :, wl, :] * (1.0 - wf)[None, None, :, None]
           + rows[:, :, wh, :] * wf[None, None, :, None])
    return out


# ----------------------------------------------------------------------------
# One fused conv block (Conv -> [MaxPool] -> [ReLU] -> BN -> [Sigmoid])
# ----------------------------------------------------------------------------
def conv_block(x, prep, *, k, pad, cout, pool, relu, sigmoid=False, eps=1e-5):
    """x: (N, H, W, Cin) NHWC float32.  Returns (N, Ho, Wo, cout) float32."""
    w_mat, b2, g2, bt2 = prep["w"], prep["b"], prep["gamma"], prep["beta"]
    kp, cp = w_mat.shape
    n, h, wd, cin = x.shape
    kdim = k * k * cin

    # im2col in bf16 (data feeds the bf16 MXU anyway) -> halves glue traffic.
    # TODO(synk): fuse halo-tile DMA + in-kernel patch construction to remove
    # this XLA im2col / pad round trip entirely.
    pf = _im2col(x.astype(jnp.bfloat16), k, pad)          # (N, H, W, kdim)
    if pool:
        ho, wo = h // 2, wd // 2
        cands = [pf[:, di::2, dj::2, :].reshape(n * ho * wo, kdim)
                 for di in (0, 1) for dj in (0, 1)]
        patches = jnp.stack(cands, axis=0)                # (4, M, kdim)
    else:
        ho, wo = h, wd
        patches = pf.reshape(1, n * ho * wo, kdim)        # (1, M, kdim)
    m = n * ho * wo
    p_cand = patches.shape[0]

    # Alignment: lane-dense 128-aligned contraction dim, 8-aligned rows.
    tile_m = min(TILE_M_MAX, _round_up(m, 8))
    mp = _round_up(m, tile_m)
    num_tiles = mp // tile_m
    patches = jnp.pad(patches, ((0, 0), (0, mp - m), (0, kp - kdim)))

    kernel = functools.partial(
        fused_conv_bn_kernel, relu=relu, sigmoid=sigmoid, m_true=m,
        tile_m=tile_m, num_tiles=num_tiles, cout=cout,
        mask_rows=(mp != m), eps=eps)

    out = pl.pallas_call(
        kernel,
        grid=(num_tiles,),
        in_specs=[
            pl.BlockSpec((p_cand, tile_m, kp), lambda i: (0, i, 0)),
            pl.BlockSpec((kp, cp), lambda i: (0, 0)),   # weights stay resident
            pl.BlockSpec((1, cp), lambda i: (0, 0)),    # bias
            pl.BlockSpec((1, cp), lambda i: (0, 0)),    # gamma
            pl.BlockSpec((1, cp), lambda i: (0, 0)),    # beta
        ],
        # Resident output block, unpadded channel width (no padded-lane HBM
        # traffic, no follow-up channel-slice copy); written on the last step.
        out_specs=pl.BlockSpec((mp, cout), lambda i: (0, 0)),
        out_shape=jax.ShapeDtypeStruct((mp, cout), jnp.float32),
        scratch_shapes=[
            pltpu.VMEM((num_tiles, tile_m, cp), jnp.float32),  # pre-BN slab
            pltpu.VMEM((1, cp), jnp.float32),                  # sum
            pltpu.VMEM((1, cp), jnp.float32),                  # sum of squares
        ],
        compiler_params=pltpu.CompilerParams(
            # Stats + the VMEM slab carry state across M tiles, so the single
            # grid axis must stay serial ("arbitrary"); grids are 1-2 steps.
            dimension_semantics=("arbitrary",),
            vmem_limit_bytes=_vmem_limit_bytes()),
    )(patches, w_mat, b2, g2, bt2)

    if mp != m:
        out = out[:m]           # rows-only slice; channels are already exact
    return out.reshape(n, ho, wo, cout)


# ----------------------------------------------------------------------------
# Layer table, parameter init, and one-time parameter prep
# ----------------------------------------------------------------------------
LAYER_SPECS = {
    "conv1":   dict(k=5, cin=3,   cout=8),
    "conv2":   dict(k=3, cin=8,   cout=16),
    "conv3":   dict(k=3, cin=16,  cout=32),
    "conv4":   dict(k=3, cin=32,  cout=64),
    "bneck_a": dict(k=1, cin=64,  cout=128),
    "bneck_b": dict(k=1, cin=128, cout=64),
    "deconv4": dict(k=3, cin=128, cout=32),
    "deconv3": dict(k=3, cin=64,  cout=16),
    "deconv2": dict(k=3, cin=32,  cout=8),
    "deconv1": dict(k=3, cin=16,  cout=4),
    "heatmap": dict(k=3, cin=4,   cout=1),
}


def _init_conv(key, k, cin, cout):
    kw, kb = jax.random.split(key)
    fan_in = k * k * cin
    w = jax.random.normal(kw, (k, k, cin, cout), jnp.float32) / jnp.sqrt(fan_in)
    b = 0.01 * jax.random.normal(kb, (cout,), jnp.float32)
    gamma = jnp.ones((cout,), jnp.float32)   # BatchNorm2d default init
    beta = jnp.zeros((cout,), jnp.float32)
    return (w, b, gamma, beta)


def init_params(key):
    keys = jax.random.split(key, len(LAYER_SPECS))
    return {name: _init_conv(kk, s["k"], s["cin"], s["cout"])
            for kk, (name, s) in zip(keys, LAYER_SPECS.items())}


def prepare_params(params):
    """One-time pad / reshape / bf16-cast of every layer's parameters."""
    prepped = {}
    for name, (w, b, gamma, beta) in params.items():
        kh, kw_, cin, cout = w.shape
        kdim = kh * kw_ * cin
        kp = _round_up(kdim, 128)
        cp = _round_up(cout, 128)
        prepped[name] = dict(
            w=jnp.pad(w.reshape(kdim, cout),
                      ((0, kp - kdim), (0, cp - cout))).astype(jnp.bfloat16),
            b=jnp.pad(b.reshape(1, cout),
                      ((0, 0), (0, cp - cout))).astype(jnp.float32),
            gamma=jnp.pad(gamma.reshape(1, cout),
                          ((0, 0), (0, cp - cout))).astype(jnp.float32),
            beta=jnp.pad(beta.reshape(1, cout),
                         ((0, 0), (0, cp - cout))).astype(jnp.float32),
        )
    return prepped


# ----------------------------------------------------------------------------
# Full Unet_like forward (takes NCHW like the PyTorch module)
# ----------------------------------------------------------------------------
def unet_like_forward(x_nchw, prepped):
    x = jnp.transpose(x_nchw, (0, 2, 3, 1)).astype(jnp.float32)  # -> NHWC

    def block(name, xin, *, pool, relu, sigmoid=False):
        s = LAYER_SPECS[name]
        return conv_block(xin, prepped[name], k=s["k"], pad=s["k"] // 2,
                          cout=s["cout"], pool=pool, relu=relu, sigmoid=sigmoid)

    # Encoder: Conv -> MaxPool(2) -> ReLU -> BN
    z1 = block("conv1", x, pool=True, relu=True)
    z2 = block("conv2", z1, pool=True, relu=True)
    z3 = block("conv3", z2, pool=True, relu=True)
    z4 = block("conv4", z3, pool=True, relu=True)

    # Bottleneck: (1x1 Conv -> ReLU -> BN) x 2
    c = block("bneck_a", z4, pool=False, relu=True)
    code = block("bneck_b", c, pool=False, relu=True)

    # Decoder: concat -> Upsample(bilinear, align_corners=True) -> Conv -> ReLU -> BN
    # TODO(synk): the bilinear upsample is still plain-JAX/XLA glue.
    x5 = jnp.concatenate((code, z4), axis=-1)            # torch.cat dim=1
    x4 = block("deconv4", _upsample_bilinear_ac(x5), pool=False, relu=True)
    x4 = jnp.concatenate((x4, z3), axis=-1)
    x3 = block("deconv3", _upsample_bilinear_ac(x4), pool=False, relu=True)
    x3 = jnp.concatenate((x3, z2), axis=-1)
    x2 = block("deconv2", _upsample_bilinear_ac(x3), pool=False, relu=True)
    x2 = jnp.concatenate((x2, z1), axis=-1)
    x1 = block("deconv1", _upsample_bilinear_ac(x2), pool=False, relu=True)

    # Heatmap head: Conv -> BN -> Sigmoid
    out = block("heatmap", x1, pool=False, relu=False, sigmoid=True)

    return jnp.transpose(out, (0, 3, 1, 2))  # NHWC -> NCHW  (N, 1, H, W)


if __name__ == "__main__":
    key = jax.random.PRNGKey(0)
    k_x, k_p = jax.random.split(key)
    x = jax.random.normal(k_x, (2, 3, 16, 16), jnp.float32)  # NCHW like torch
    params = init_params(k_p)
    prepped = prepare_params(params)   # one-time pad / reshape / bf16 cast

    fwd = jax.jit(unet_like_forward)
    y = fwd(x, prepped)
    jax.block_until_ready(y)

    assert y.shape == (2, 1, 16, 16), y.shape
    assert bool(jnp.all(jnp.isfinite(y)))
    assert bool(jnp.all((y >= 0.0) & (y <= 1.0)))  # sigmoid output range
    print("KERNEL_OK")
</pallas_src>

<mosaic_0001>
module attributes {stable_mosaic.version = 11 : i64} {
  func.func @fused_conv_bn_kernel(%arg0: i32, %arg1: memref<4x128x128xbf16, #tpu.memory_space<vmem>>, %arg2: memref<128x128xbf16, #tpu.memory_space<vmem>>, %arg3: memref<1x128xf32, #tpu.memory_space<vmem>>, %arg4: memref<1x128xf32, #tpu.memory_space<vmem>>, %arg5: memref<1x128xf32, #tpu.memory_space<vmem>>, %arg6: memref<128x8xf32, #tpu.memory_space<vmem>>, %arg7: memref<1x128x128xf32, #tpu.memory_space<vmem>>, %arg8: memref<1x128xf32, #tpu.memory_space<vmem>>, %arg9: memref<1x128xf32, #tpu.memory_space<vmem>>) attributes {dimension_semantics = [#tpu.dimension_semantics<arbitrary>], iteration_bounds = array<i64: 1>, scalar_prefetch = 0 : i64, scratch_operands = 3 : i64, tpu.core_type = #tpu.core_type<tc>, window_params = [{transform_indices = @transform_0, window_bounds = array<i64: 4, 128, 128>}, {pipeline_mode = #tpu.pipeline_mode<synchronous>, transform_indices = @transform_1, window_bounds = array<i64: 128, 128>}, {pipeline_mode = #tpu.pipeline_mode<synchronous>, transform_indices = @transform_2, window_bounds = array<i64: 1, 128>}, {pipeline_mode = #tpu.pipeline_mode<synchronous>, transform_indices = @transform_3, window_bounds = array<i64: 1, 128>}, {pipeline_mode = #tpu.pipeline_mode<synchronous>, transform_indices = @transform_4, window_bounds = array<i64: 1, 128>}, {pipeline_mode = #tpu.pipeline_mode<synchronous>, transform_indices = @transform_5, window_bounds = array<i64: 128, 8>}]} {
    %c0_i32 = arith.constant 0 : i32
    %0 = arith.cmpi eq, %arg0, %c0_i32 : i32
    %1 = arith.extui %0 : i1 to i32
    %c0_i32_0 = arith.constant 0 : i32
    %2 = arith.cmpi ne, %1, %c0_i32_0 : i32
    scf.if %2 {
      %cst_22 = arith.constant 0.000000e+00 : f32
      %37 = vector.broadcast %cst_22 : f32 to vector<1x128xf32>
      %c0_23 = arith.constant 0 : index
      %c0_24 = arith.constant 0 : index
      %38 = vector.load %arg8[%c0_23, %c0_24] : memref<1x128xf32, #tpu.memory_space<vmem>>, vector<1x128xf32>
      tpu.vector_store %arg8[%c0_23, %c0_24], %37 {strides = array<i32>} : memref<1x128xf32, #tpu.memory_space<vmem>>, vector<1x128xf32>,
      %cst_25 = arith.constant 0.000000e+00 : f32
      %39 = vector.broadcast %cst_25 : f32 to vector<1x128xf32>
      %c0_26 = arith.constant 0 : index
      %c0_27 = arith.constant 0 : index
      %40 = vector.load %arg9[%c0_26, %c0_27] : memref<1x128xf32, #tpu.memory_space<vmem>>, vector<1x128xf32>
      tpu.vector_store %arg9[%c0_26, %c0_27], %39 {strides = array<i32>} : memref<1x128xf32, #tpu.memory_space<vmem>>, vector<1x128xf32>,
    } else {
    }
    %c0 = arith.constant 0 : index
    %c0_1 = arith.constant 0 : index
    %c0_2 = arith.constant 0 : index
    %3 = vector.load %arg1[%c0, %c0_1, %c0_2] : memref<4x128x128xbf16, #tpu.memory_space<vmem>>, vector<4x128x128xbf16>
    %4 = vector.shape_cast %3 : vector<4x128x128xbf16> to vector<512x128xbf16>
    %c0_3 = arith.constant 0 : index
    %c0_4 = arith.constant 0 : index
    %5 = vector.load %arg2[%c0_3, %c0_4] : memref<128x128xbf16, #tpu.memory_space<vmem>>, vector<128x128xbf16>
    %cst = arith.constant dense<0.000000e+00> : vector<512x128xf32>
    %6 = tpu.matmul %4, %5, %cst {dimension_numbers = #tpu.dot_dimension_numbers<[1], [0], [0], [1], [0, 0, 1, 1], [], []>} : vector<512x128xbf16>, vector<128x128xbf16>, vector<512x128xf32> -> vector<512x128xf32>
    %7 = vector.extract_strided_slice %6 {offsets = [0, 0], sizes = [128, 128], strides = [1, 1]} : vector<512x128xf32> to vector<128x128xf32>
    %8 = vector.extract_strided_slice %6 {offsets = [128, 0], sizes = [128, 128], strides = [1, 1]} : vector<512x128xf32> to vector<128x128xf32>
    %9 = arith.maximumf %7, %8 : vector<128x128xf32>
    %10 = vector.extract_strided_slice %6 {offsets = [256, 0], sizes = [128, 128], strides = [1, 1]} : vector<512x128xf32> to vector<128x128xf32>
    %11 = arith.maximumf %9, %10 : vector<128x128xf32>
    %12 = vector.extract_strided_slice %6 {offsets = [384, 0], sizes = [128, 128], strides = [1, 1]} : vector<512x128xf32> to vector<128x128xf32>
    %13 = arith.maximumf %11, %12 : vector<128x128xf32>
    %c0_5 = arith.constant 0 : index
    %c0_6 = arith.constant 0 : index
    %14 = vector.load %arg3[%c0_5, %c0_6] : memref<1x128xf32, #tpu.memory_space<vmem>>, vector<1x128xf32>
    %15 = vector.broadcast %14 : vector<1x128xf32> to vector<128x128xf32>
    %16 = arith.addf %13, %15 : vector<128x128xf32>
    %cst_7 = arith.constant 0.000000e+00 : f32
    %17 = vector.broadcast %cst_7 : f32 to vector<128x128xf32>
    %18 = arith.maximumf %16, %17 : vector<128x128xf32>
    %19 = arith.index_cast %arg0 : i32 to index
    %c0_8 = arith.constant 0 : index
    %c0_9 = arith.constant 0 : index
    %20 = vector.load %arg7[%19, %c0_8, %c0_9] : memref<1x128x128xf32, #tpu.memory_space<vmem>>, vector<1x128x128xf32>
    %21 = vector.shape_cast %20 : vector<1x128x128xf32> to vector<128x128xf32>
    %22 = vector.shape_cast %18 : vector<128x128xf32> to vector<1x128x128xf32>
    tpu.vector_store %arg7[%19, %c0_8, %c0_9], %22 {strides = array<i32>} : memref<1x128x128xf32, #tpu.memory_space<vmem>>, vector<1x128x128xf32>,
    %c0_10 = arith.constant 0 : index
    %c0_11 = arith.constant 0 : index
    %23 = vector.load %arg8[%c0_10, %c0_11] : memref<1x128xf32, #tpu.memory_space<vmem>>, vector<1x128xf32>
    %cst_12 = arith.constant dense<0.000000e+00> : vector<128xf32>
    %24 = vector.multi_reduction <add>, %18, %cst_12 [0] : vector<128x128xf32> to vector<128xf32>
    %25 = vector.shape_cast %24 : vector<128xf32> to vector<1x128xf32>
    %26 = arith.addf %23, %25 : vector<1x128xf32>
    %c0_13 = arith.constant 0 : index
    %c0_14 = arith.constant 0 : index
    %27 = vector.load %arg8[%c0_13, %c0_14] : memref<1x128xf32, #tpu.memory_space<vmem>>, vector<1x128xf32>
    tpu.vector_store %arg8[%c0_13, %c0_14], %26 {strides = array<i32>} : memref<1x128xf32, #tpu.memory_space<vmem>>, vector<1x128xf32>,
    %c0_15 = arith.constant 0 : index
    %c0_16 = arith.constant 0 : index
    %28 = vector.load %arg9[%c0_15, %c0_16] : memref<1x128xf32, #tpu.memory_space<vmem>>, vector<1x128xf32>
    %29 = arith.mulf %18, %18 : vector<128x128xf32>
    %cst_17 = arith.constant dense<0.000000e+00> : vector<128xf32>
    %30 = vector.multi_reduction <add>, %29, %cst_17 [0] : vector<128x128xf32> to vector<128xf32>
    %31 = vector.shape_cast %30 : vector<128xf32> to vector<1x128xf32>
    %32 = arith.addf %28, %31 : vector<1x128xf32>
    %c0_18 = arith.constant 0 : index
    %c0_19 = arith.constant 0 : index
    %33 = vector.load %arg9[%c0_18, %c0_19] : memref<1x128xf32, #tpu.memory_space<vmem>>, vector<1x128xf32>
    tpu.vector_store %arg9[%c0_18, %c0_19], %32 {strides = array<i32>} : memref<1x128xf32, #tpu.memory_space<vmem>>, vector<1x128xf32>,
    %c0_i32_20 = arith.constant 0 : i32
    %34 = arith.cmpi eq, %arg0, %c0_i32_20 : i32
    %35 = arith.extui %34 : i1 to i32
    %c0_i32_21 = arith.constant 0 : i32
    %36 = arith.cmpi ne, %35, %c0_i32_21 : i32
    scf.if %36 {
      %c0_22 = arith.constant 0 : index
      %c0_23 = arith.constant 0 : index
      %37 = vector.load %arg8[%c0_22, %c0_23] : memref<1x128xf32, #tpu.memory_space<vmem>>, vector<1x128xf32>
      %cst_24 = arith.constant 7.812500e-03 : f32
      %38 = vector.broadcast %cst_24 : f32 to vector<1x128xf32>
      %39 = arith.mulf %37, %38 : vector<1x128xf32>
      %c0_25 = arith.constant 0 : index
      %c0_26 = arith.constant 0 : index
      %40 = vector.load %arg9[%c0_25, %c0_26] : memref<1x128xf32, #tpu.memory_space<vmem>>, vector<1x128xf32>
      %cst_27 = arith.constant 7.812500e-03 : f32
      %41 = vector.broadcast %cst_27 : f32 to vector<1x128xf32>
      %42 = arith.mulf %40, %41 : vector<1x128xf32>
      %43 = arith.mulf %39, %39 : vector<1x128xf32>
      %44 = arith.subf %42, %43 : vector<1x128xf32>
      %cst_28 = arith.constant 0.000000e+00 : f32
      %45 = vector.broadcast %cst_28 : f32 to vector<1x128xf32>
      %46 = arith.maximumf %44, %45 : vector<1x128xf32>
      %c0_29 = arith.constant 0 : index
      %c0_30 = arith.constant 0 : index
      %47 = vector.load %arg4[%c0_29, %c0_30] : memref<1x128xf32, #tpu.memory_space<vmem>>, vector<1x128xf32>
      %cst_31 = arith.constant 9.99999974E-6 : f32
      %48 = vector.broadcast %cst_31 : f32 to vector<1x128xf32>
      %49 = arith.addf %46, %48 : vector<1x128xf32>
      %50 = math.rsqrt %49 : vector<1x128xf32>
      %51 = arith.mulf %47, %50 : vector<1x128xf32>
      %c0_32 = arith.constant 0 : index
      %c0_33 = arith.constant 0 : index
      %52 = vector.load %arg5[%c0_32, %c0_33] : memref<1x128xf32, #tpu.memory_space<vmem>>, vector<1x128xf32>
      %53 = arith.mulf %39, %51 : vector<1x128xf32>
      %54 = arith.subf %52, %53 : vector<1x128xf32>
      %c0_34 = arith.constant 0 : index
      %c0_35 = arith.constant 0 : index
      %c0_36 = arith.constant 0 : index
      %55 = vector.load %arg7[%c0_34, %c0_35, %c0_36] : memref<1x128x128xf32, #tpu.memory_space<vmem>>, vector<1x128x128xf32>
      %56 = vector.shape_cast %55 : vector<1x128x128xf32> to vector<128x128xf32>
      %57 = vector.broadcast %51 : vector<1x128xf32> to vector<128x128xf32>
      %58 = arith.mulf %56, %57 : vector<128x128xf32>
      %59 = vector.broadcast %54 : vector<1x128xf32> to vector<128x128xf32>
      %60 = arith.addf %58, %59 : vector<128x128xf32>
      %61 = vector.extract_strided_slice %60 {offsets = [0, 0], sizes = [128, 8], strides = [1, 1]} : vector<128x128xf32> to vector<128x8xf32>
      %c0_37 = arith.constant 0 : index
      %c0_38 = arith.constant 0 : index
      %62 = vector.load %arg6[%c0_37, %c0_38] : memref<128x8xf32, #tpu.memory_space<vmem>>, vector<128x8xf32>
      tpu.vector_store %arg6[%c0_37, %c0_38], %61 {strides = array<i32>} : memref<128x8xf32, #tpu.memory_space<vmem>>, vector<128x8xf32>,
    } else {
    }
    return
  }
  func.func @transform_0(%arg0: i32) -> (i32, i32, i32) {
    %c0_i32 = arith.constant 0 : i32
    %c0_i32_0 = arith.constant 0 : i32
    %c0_i32_1 = arith.constant 0 : i32
    return %c0_i32, %arg0, %c0_i32_0 : i32, i32, i32
  }
  func.func @transform_1(%arg0: i32) -> (i32, i32) {
    %c0_i32 = arith.constant 0 : i32
    %c0_i32_0 = arith.constant 0 : i32
    %c0_i32_1 = arith.constant 0 : i32
    return %c0_i32, %c0_i32_0 : i32, i32
  }
  func.func @transform_2(%arg0: i32) -> (i32, i32) {
    %c0_i32 = arith.constant 0 : i32
    %c0_i32_0 = arith.constant 0 : i32
    %c0_i32_1 = arith.constant 0 : i32
    return %c0_i32, %c0_i32_0 : i32, i32
  }
  func.func @transform_3(%arg0: i32) -> (i32, i32) {
    %c0_i32 = arith.constant 0 : i32
    %c0_i32_0 = arith.constant 0 : i32
    %c0_i32_1 = arith.constant 0 : i32
    return %c0_i32, %c0_i32_0 : i32, i32
  }
  func.func @transform_4(%arg0: i32) -> (i32, i32) {
    %c0_i32 = arith.constant 0 : i32
    %c0_i32_0 = arith.constant 0 : i32
    %c0_i32_1 = arith.constant 0 : i32
    return %c0_i32, %c0_i32_0 : i32, i32
  }
  func.func @transform_5(%arg0: i32) -> (i32, i32) {
    %c0_i32 = arith.constant 0 : i32
    %c0_i32_0 = arith.constant 0 : i32
    %c0_i32_1 = arith.constant 0 : i32
    return %c0_i32, %c0_i32_0 : i32, i32
  }
}

module attributes {stable_mosaic.version = 11 : i64} {
  func.func @fused_conv_bn_kernel(%arg0: i32, %arg1: memref<4x32x128xbf16, #tpu.memory_space<vmem>>, %arg2: memref<128x128xbf16, #tpu.memory_space<vmem>>, %arg3: memref<1x128xf32, #tpu.memory_space<vmem>>, %arg4: memref<1x128xf32, #tpu.memory_space<vmem>>, %arg5: memref<1x128xf32, #tpu.memory_space<vmem>>, %arg6: memref<32x16xf32, #tpu.memory_space<vmem>>, %arg7: memref<1x32x128xf32, #tpu.memory_space<vmem>>, %arg8: memref<1x128xf32, #tpu.memory_space<vmem>>, %arg9: memref<1x128xf32, #tpu.memory_space<vmem>>) attributes {dimension_semantics = [#tpu.dimension_semantics<arbitrary>], iteration_bounds = array<i64: 1>, scalar_prefetch = 0 : i64, scratch_operands = 3 : i64, tpu.core_type = #tpu.core_type<tc>, window_params = [{transform_indices = @transform_0, window_bounds = array<i64: 4, 32, 128>}, {pipeline_mode = #tpu.pipeline_mode<synchronous>, transform_indices = @transform_1, window_bounds = array<i64: 128, 128>}, {pipeline_mode = #tpu.pipeline_mode<synchronous>, transform_indices = @transform_2, window_bounds = array<i64: 1, 128>}, {pipeline_mode = #tpu.pipeline_mode<synchronous>, transform_indices = @transform_3, window_bounds = array<i64: 1, 128>}, {pipeline_mode = #tpu.pipeline_mode<synchronous>, transform_indices = @transform_4, window_bounds = array<i64: 1, 128>}, {pipeline_mode = #tpu.pipeline_mode<synchronous>, transform_indices = @transform_5, window_bounds = array<i64: 32, 16>}]} {
    %c0_i32 = arith.constant 0 : i32
    %0 = arith.cmpi eq, %arg0, %c0_i32 : i32
    %1 = arith.extui %0 : i1 to i32
    %c0_i32_0 = arith.constant 0 : i32
    %2 = arith.cmpi ne, %1, %c0_i32_0 : i32
    scf.if %2 {
      %cst_22 = arith.constant 0.000000e+00 : f32
      %37 = vector.broadcast %cst_22 : f32 to vector<1x128xf32>
      %c0_23 = arith.constant 0 : index
      %c0_24 = arith.constant 0 : index
      %38 = vector.load %arg8[%c0_23, %c0_24] : memref<1x128xf32, #tpu.memory_space<vmem>>, vector<1x128xf32>
      tpu.vector_store %arg8[%c0_23, %c0_24], %37 {strides = array<i32>} : memref<1x128xf32, #tpu.memory_space<vmem>>, vector<1x128xf32>,
      %cst_25 = arith.constant 0.000000e+00 : f32
      %39 = vector.broadcast %cst_25 : f32 to vector<1x128xf32>
      %c0_26 = arith.constant 0 : index
      %c0_27 = arith.constant 0 : index
      %40 = vector.load %arg9[%c0_26, %c0_27] : memref<1x128xf32, #tpu.memory_space<vmem>>, vector<1x128xf32>
      tpu.vector_store %arg9[%c0_26, %c0_27], %39 {strides = array<i32>} : memref<1x128xf32, #tpu.memory_space<vmem>>, vector<1x128xf32>,
    } else {
    }
    %c0 = arith.constant 0 : index
    %c0_1 = arith.constant 0 : index
    %c0_2 = arith.constant 0 : index
    %3 = vector.load %arg1[%c0, %c0_1, %c0_2] : memref<4x32x128xbf16, #tpu.memory_space<vmem>>, vector<4x32x128xbf16>
    %4 = vector.shape_cast %3 : vector<4x32x128xbf16> to vector<128x128xbf16>
    %c0_3 = arith.constant 0 : index
    %c0_4 = arith.constant 0 : index
    %5 = vector.load %arg2[%c0_3, %c0_4] : memref<128x128xbf16, #tpu.memory_space<vmem>>, vector<128x128xbf16>
    %cst = arith.constant dense<0.000000e+00> : vector<128x128xf32>
    %6 = tpu.matmul %4, %5, %cst {dimension_numbers = #tpu.dot_dimension_numbers<[1], [0], [0], [1], [0, 0, 1, 1], [], []>} : vector<128x128xbf16>, vector<128x128xbf16>, vector<128x128xf32> -> vector<128x128xf32>
    %7 = vector.extract_strided_slice %6 {offsets = [0, 0], sizes = [32, 128], strides = [1, 1]} : vector<128x128xf32> to vector<32x128xf32>
    %8 = vector.extract_strided_slice %6 {offsets = [32, 0], sizes = [32, 128], strides = [1, 1]} : vector<128x128xf32> to vector<32x128xf32>
    %9 = arith.maximumf %7, %8 : vector<32x128xf32>
    %10 = vector.extract_strided_slice %6 {offsets = [64, 0], sizes = [32, 128], strides = [1, 1]} : vector<128x128xf32> to vector<32x128xf32>
    %11 = arith.maximumf %9, %10 : vector<32x128xf32>
    %12 = vector.extract_strided_slice %6 {offsets = [96, 0], sizes = [32, 128], strides = [1, 1]} : vector<128x128xf32> to vector<32x128xf32>
    %13 = arith.maximumf %11, %12 : vector<32x128xf32>
    %c0_5 = arith.constant 0 : index
    %c0_6 = arith.constant 0 : index
    %14 = vector.load %arg3[%c0_5, %c0_6] : memref<1x128xf32, #tpu.memory_space<vmem>>, vector<1x128xf32>
    %15 = vector.broadcast %14 : vector<1x128xf32> to vector<32x128xf32>
    %16 = arith.addf %13, %15 : vector<32x128xf32>
    %cst_7 = arith.constant 0.000000e+00 : f32
    %17 = vector.broadcast %cst_7 : f32 to vector<32x128xf32>
    %18 = arith.maximumf %16, %17 : vector<32x128xf32>
    %19 = arith.index_cast %arg0 : i32 to index
    %c0_8 = arith.constant 0 : index
    %c0_9 = arith.constant 0 : index
    %20 = vector.load %arg7[%19, %c0_8, %c0_9] : memref<1x32x128xf32, #tpu.memory_space<vmem>>, vector<1x32x128xf32>
    %21 = vector.shape_cast %20 : vector<1x32x128xf32> to vector<32x128xf32>
    %22 = vector.shape_cast %18 : vector<32x128xf32> to vector<1x32x128xf32>
    tpu.vector_store %arg7[%19, %c0_8, %c0_9], %22 {strides = array<i32>} : memref<1x32x128xf32, #tpu.memory_space<vmem>>, vector<1x32x128xf32>,
    %c0_10 = arith.constant 0 : index
    %c0_11 = arith.constant 0 : index
    %23 = vector.load %arg8[%c0_10, %c0_11] : memref<1x128xf32, #tpu.memory_space<vmem>>, vector<1x128xf32>
    %cst_12 = arith.constant dense<0.000000e+00> : vector<128xf32>
    %24 = vector.multi_reduction <add>, %18, %cst_12 [0] : vector<32x128xf32> to vector<128xf32>
    %25 = vector.shape_cast %24 : vector<128xf32> to vector<1x128xf32>
    %26 = arith.addf %23, %25 : vector<1x128xf32>
    %c0_13 = arith.constant 0 : index
    %c0_14 = arith.constant 0 : index
    %27 = vector.load %arg8[%c0_13, %c0_14] : memref<1x128xf32, #tpu.memory_space<vmem>>, vector<1x128xf32>
    tpu.vector_store %arg8[%c0_13, %c0_14], %26 {strides = array<i32>} : memref<1x128xf32, #tpu.memory_space<vmem>>, vector<1x128xf32>,
    %c0_15 = arith.constant 0 : index
    %c0_16 = arith.constant 0 : index
    %28 = vector.load %arg9[%c0_15, %c0_16] : memref<1x128xf32, #tpu.memory_space<vmem>>, vector<1x128xf32>
    %29 = arith.mulf %18, %18 : vector<32x128xf32>
    %cst_17 = arith.constant dense<0.000000e+00> : vector<128xf32>
    %30 = vector.multi_reduction <add>, %29, %cst_17 [0] : vector<32x128xf32> to vector<128xf32>
    %31 = vector.shape_cast %30 : vector<128xf32> to vector<1x128xf32>
    %32 = arith.addf %28, %31 : vector<1x128xf32>
    %c0_18 = arith.constant 0 : index
    %c0_19 = arith.constant 0 : index
    %33 = vector.load %arg9[%c0_18, %c0_19] : memref<1x128xf32, #tpu.memory_space<vmem>>, vector<1x128xf32>
    tpu.vector_store %arg9[%c0_18, %c0_19], %32 {strides = array<i32>} : memref<1x128xf32, #tpu.memory_space<vmem>>, vector<1x128xf32>,
    %c0_i32_20 = arith.constant 0 : i32
    %34 = arith.cmpi eq, %arg0, %c0_i32_20 : i32
    %35 = arith.extui %34 : i1 to i32
    %c0_i32_21 = arith.constant 0 : i32
    %36 = arith.cmpi ne, %35, %c0_i32_21 : i32
    scf.if %36 {
      %c0_22 = arith.constant 0 : index
      %c0_23 = arith.constant 0 : index
      %37 = vector.load %arg8[%c0_22, %c0_23] : memref<1x128xf32, #tpu.memory_space<vmem>>, vector<1x128xf32>
      %cst_24 = arith.constant 3.125000e-02 : f32
      %38 = vector.broadcast %cst_24 : f32 to vector<1x128xf32>
      %39 = arith.mulf %37, %38 : vector<1x128xf32>
      %c0_25 = arith.constant 0 : index
      %c0_26 = arith.constant 0 : index
      %40 = vector.load %arg9[%c0_25, %c0_26] : memref<1x128xf32, #tpu.memory_space<vmem>>, vector<1x128xf32>
      %cst_27 = arith.constant 3.125000e-02 : f32
      %41 = vector.broadcast %cst_27 : f32 to vector<1x128xf32>
      %42 = arith.mulf %40, %41 : vector<1x128xf32>
      %43 = arith.mulf %39, %39 : vector<1x128xf32>
      %44 = arith.subf %42, %43 : vector<1x128xf32>
      %cst_28 = arith.constant 0.000000e+00 : f32
      %45 = vector.broadcast %cst_28 : f32 to vector<1x128xf32>
      %46 = arith.maximumf %44, %45 : vector<1x128xf32>
      %c0_29 = arith.constant 0 : index
      %c0_30 = arith.constant 0 : index
      %47 = vector.load %arg4[%c0_29, %c0_30] : memref<1x128xf32, #tpu.memory_space<vmem>>, vector<1x128xf32>
      %cst_31 = arith.constant 9.99999974E-6 : f32
      %48 = vector.broadcast %cst_31 : f32 to vector<1x128xf32>
      %49 = arith.addf %46, %48 : vector<1x128xf32>
      %50 = math.rsqrt %49 : vector<1x128xf32>
      %51 = arith.mulf %47, %50 : vector<1x128xf32>
      %c0_32 = arith.constant 0 : index
      %c0_33 = arith.constant 0 : index
      %52 = vector.load %arg5[%c0_32, %c0_33] : memref<1x128xf32, #tpu.memory_space<vmem>>, vector<1x128xf32>
      %53 = arith.mulf %39, %51 : vector<1x128xf32>
      %54 = arith.subf %52, %53 : vector<1x128xf32>
      %c0_34 = arith.constant 0 : index
      %c0_35 = arith.constant 0 : index
      %c0_36 = arith.constant 0 : index
      %55 = vector.load %arg7[%c0_34, %c0_35, %c0_36] : memref<1x32x128xf32, #tpu.memory_space<vmem>>, vector<1x32x128xf32>
      %56 = vector.shape_cast %55 : vector<1x32x128xf32> to vector<32x128xf32>
      %57 = vector.broadcast %51 : vector<1x128xf32> to vector<32x128xf32>
      %58 = arith.mulf %56, %57 : vector<32x128xf32>
      %59 = vector.broadcast %54 : vector<1x128xf32> to vector<32x128xf32>
      %60 = arith.addf %58, %59 : vector<32x128xf32>
      %61 = vector.extract_strided_slice %60 {offsets = [0, 0], sizes = [32, 16], strides = [1, 1]} : vector<32x128xf32> to vector<32x16xf32>
      %c0_37 = arith.constant 0 : index
      %c0_38 = arith.constant 0 : index
      %62 = vector.load %arg6[%c0_37, %c0_38] : memref<32x16xf32, #tpu.memory_space<vmem>>, vector<32x16xf32>
      tpu.vector_store %arg6[%c0_37, %c0_38], %61 {strides = array<i32>} : memref<32x16xf32, #tpu.memory_space<vmem>>, vector<32x16xf32>,
    } else {
    }
    return
  }
  func.func @transform_0(%arg0: i32) -> (i32, i32, i32) {
    %c0_i32 = arith.constant 0 : i32
    %c0_i32_0 = arith.constant 0 : i32
    %c0_i32_1 = arith.constant 0 : i32
    return %c0_i32, %arg0, %c0_i32_0 : i32, i32, i32
  }
  func.func @transform_1(%arg0: i32) -> (i32, i32) {
    %c0_i32 = arith.constant 0 : i32
    %c0_i32_0 = arith.constant 0 : i32
    %c0_i32_1 = arith.constant 0 : i32
    return %c0_i32, %c0_i32_0 : i32, i32
  }
  func.func @transform_2(%arg0: i32) -> (i32, i32) {
    %c0_i32 = arith.constant 0 : i32
    %c0_i32_0 = arith.constant 0 : i32
    %c0_i32_1 = arith.constant 0 : i32
    return %c0_i32, %c0_i32_0 : i32, i32
  }
  func.func @transform_3(%arg0: i32) -> (i32, i32) {
    %c0_i32 = arith.constant 0 : i32
    %c0_i32_0 = arith.constant 0 : i32
    %c0_i32_1 = arith.constant 0 : i32
    return %c0_i32, %c0_i32_0 : i32, i32
  }
  func.func @transform_4(%arg0: i32) -> (i32, i32) {
    %c0_i32 = arith.constant 0 : i32
    %c0_i32_0 = arith.constant 0 : i32
    %c0_i32_1 = arith.constant 0 : i32
    return %c0_i32, %c0_i32_0 : i32, i32
  }
  func.func @transform_5(%arg0: i32) -> (i32, i32) {
    %c0_i32 = arith.constant 0 : i32
    %c0_i32_0 = arith.constant 0 : i32
    %c0_i32_1 = arith.constant 0 : i32
    return %c0_i32, %c0_i32_0 : i32, i32
  }
}

module attributes {stable_mosaic.version = 11 : i64} {
  func.func @fused_conv_bn_kernel(%arg0: i32, %arg1: memref<4x8x256xbf16, #tpu.memory_space<vmem>>, %arg2: memref<256x128xbf16, #tpu.memory_space<vmem>>, %arg3: memref<1x128xf32, #tpu.memory_space<vmem>>, %arg4: memref<1x128xf32, #tpu.memory_space<vmem>>, %arg5: memref<1x128xf32, #tpu.memory_space<vmem>>, %arg6: memref<8x32xf32, #tpu.memory_space<vmem>>, %arg7: memref<1x8x128xf32, #tpu.memory_space<vmem>>, %arg8: memref<1x128xf32, #tpu.memory_space<vmem>>, %arg9: memref<1x128xf32, #tpu.memory_space<vmem>>) attributes {dimension_semantics = [#tpu.dimension_semantics<arbitrary>], iteration_bounds = array<i64: 1>, scalar_prefetch = 0 : i64, scratch_operands = 3 : i64, tpu.core_type = #tpu.core_type<tc>, window_params = [{transform_indices = @transform_0, window_bounds = array<i64: 4, 8, 256>}, {pipeline_mode = #tpu.pipeline_mode<synchronous>, transform_indices = @transform_1, window_bounds = array<i64: 256, 128>}, {pipeline_mode = #tpu.pipeline_mode<synchronous>, transform_indices = @transform_2, window_bounds = array<i64: 1, 128>}, {pipeline_mode = #tpu.pipeline_mode<synchronous>, transform_indices = @transform_3, window_bounds = array<i64: 1, 128>}, {pipeline_mode = #tpu.pipeline_mode<synchronous>, transform_indices = @transform_4, window_bounds = array<i64: 1, 128>}, {pipeline_mode = #tpu.pipeline_mode<synchronous>, transform_indices = @transform_5, window_bounds = array<i64: 8, 32>}]} {
    %c0_i32 = arith.constant 0 : i32
    %0 = arith.cmpi eq, %arg0, %c0_i32 : i32
    %1 = arith.extui %0 : i1 to i32
    %c0_i32_0 = arith.constant 0 : i32
    %2 = arith.cmpi ne, %1, %c0_i32_0 : i32
    scf.if %2 {
      %cst_22 = arith.constant 0.000000e+00 : f32
      %37 = vector.broadcast %cst_22 : f32 to vector<1x128xf32>
      %c0_23 = arith.constant 0 : index
      %c0_24 = arith.constant 0 : index
      %38 = vector.load %arg8[%c0_23, %c0_24] : memref<1x128xf32, #tpu.memory_space<vmem>>, vector<1x128xf32>
      tpu.vector_store %arg8[%c0_23, %c0_24], %37 {strides = array<i32>} : memref<1x128xf32, #tpu.memory_space<vmem>>, vector<1x128xf32>,
      %cst_25 = arith.constant 0.000000e+00 : f32
      %39 = vector.broadcast %cst_25 : f32 to vector<1x128xf32>
      %c0_26 = arith.constant 0 : index
      %c0_27 = arith.constant 0 : index
      %40 = vector.load %arg9[%c0_26, %c0_27] : memref<1x128xf32, #tpu.memory_space<vmem>>, vector<1x128xf32>
      tpu.vector_store %arg9[%c0_26, %c0_27], %39 {strides = array<i32>} : memref<1x128xf32, #tpu.memory_space<vmem>>, vector<1x128xf32>,
    } else {
    }
    %c0 = arith.constant 0 : index
    %c0_1 = arith.constant 0 : index
    %c0_2 = arith.constant 0 : index
    %3 = vector.load %arg1[%c0, %c0_1, %c0_2] : memref<4x8x256xbf16, #tpu.memory_space<vmem>>, vector<4x8x256xbf16>
    %4 = vector.shape_cast %3 : vector<4x8x256xbf16> to vector<32x256xbf16>
    %c0_3 = arith.constant 0 : index
    %c0_4 = arith.constant 0 : index
    %5 = vector.load %arg2[%c0_3, %c0_4] : memref<256x128xbf16, #tpu.memory_space<vmem>>, vector<256x128xbf16>
    %cst = arith.constant dense<0.000000e+00> : vector<32x128xf32>
    %6 = tpu.matmul %4, %5, %cst {dimension_numbers = #tpu.dot_dimension_numbers<[1], [0], [0], [1], [0, 0, 1, 1], [], []>} : vector<32x256xbf16>, vector<256x128xbf16>, vector<32x128xf32> -> vector<32x128xf32>
    %7 = vector.extract_strided_slice %6 {offsets = [0, 0], sizes = [8, 128], strides = [1, 1]} : vector<32x128xf32> to vector<8x128xf32>
    %8 = vector.extract_strided_slice %6 {offsets = [8, 0], sizes = [8, 128], strides = [1, 1]} : vector<32x128xf32> to vector<8x128xf32>
    %9 = arith.maximumf %7, %8 : vector<8x128xf32>
    %10 = vector.extract_strided_slice %6 {offsets = [16, 0], sizes = [8, 128], strides = [1, 1]} : vector<32x128xf32> to vector<8x128xf32>
    %11 = arith.maximumf %9, %10 : vector<8x128xf32>
    %12 = vector.extract_strided_slice %6 {offsets = [24, 0], sizes = [8, 128], strides = [1, 1]} : vector<32x128xf32> to vector<8x128xf32>
    %13 = arith.maximumf %11, %12 : vector<8x128xf32>
    %c0_5 = arith.constant 0 : index
    %c0_6 = arith.constant 0 : index
    %14 = vector.load %arg3[%c0_5, %c0_6] : memref<1x128xf32, #tpu.memory_space<vmem>>, vector<1x128xf32>
    %15 = vector.broadcast %14 : vector<1x128xf32> to vector<8x128xf32>
    %16 = arith.addf %13, %15 : vector<8x128xf32>
    %cst_7 = arith.constant 0.000000e+00 : f32
    %17 = vector.broadcast %cst_7 : f32 to vector<8x128xf32>
    %18 = arith.maximumf %16, %17 : vector<8x128xf32>
    %19 = arith.index_cast %arg0 : i32 to index
    %c0_8 = arith.constant 0 : index
    %c0_9 = arith.constant 0 : index
    %20 = vector.load %arg7[%19, %c0_8, %c0_9] : memref<1x8x128xf32, #tpu.memory_space<vmem>>, vector<1x8x128xf32>
    %21 = vector.shape_cast %20 : vector<1x8x128xf32> to vector<8x128xf32>
    %22 = vector.shape_cast %18 : vector<8x128xf32> to vector<1x8x128xf32>
    tpu.vector_store %arg7[%19, %c0_8, %c0_9], %22 {strides = array<i32>} : memref<1x8x128xf32, #tpu.memory_space<vmem>>, vector<1x8x128xf32>,
    %c0_10 = arith.constant 0 : index
    %c0_11 = arith.constant 0 : index
    %23 = vector.load %arg8[%c0_10, %c0_11] : memref<1x128xf32, #tpu.memory_space<vmem>>, vector<1x128xf32>
    %cst_12 = arith.constant dense<0.000000e+00> : vector<128xf32>
    %24 = vector.multi_reduction <add>, %18, %cst_12 [0] : vector<8x128xf32> to vector<128xf32>
    %25 = vector.shape_cast %24 : vector<128xf32> to vector<1x128xf32>
    %26 = arith.addf %23, %25 : vector<1x128xf32>
    %c0_13 = arith.constant 0 : index
    %c0_14 = arith.constant 0 : index
    %27 = vector.load %arg8[%c0_13, %c0_14] : memref<1x128xf32, #tpu.memory_space<vmem>>, vector<1x128xf32>
    tpu.vector_store %arg8[%c0_13, %c0_14], %26 {strides = array<i32>} : memref<1x128xf32, #tpu.memory_space<vmem>>, vector<1x128xf32>,
    %c0_15 = arith.constant 0 : index
    %c0_16 = arith.constant 0 : index
    %28 = vector.load %arg9[%c0_15, %c0_16] : memref<1x128xf32, #tpu.memory_space<vmem>>, vector<1x128xf32>
    %29 = arith.mulf %18, %18 : vector<8x128xf32>
    %cst_17 = arith.constant dense<0.000000e+00> : vector<128xf32>
    %30 = vector.multi_reduction <add>, %29, %cst_17 [0] : vector<8x128xf32> to vector<128xf32>
    %31 = vector.shape_cast %30 : vector<128xf32> to vector<1x128xf32>
    %32 = arith.addf %28, %31 : vector<1x128xf32>
    %c0_18 = arith.constant 0 : index
    %c0_19 = arith.constant 0 : index
    %33 = vector.load %arg9[%c0_18, %c0_19] : memref<1x128xf32, #tpu.memory_space<vmem>>, vector<1x128xf32>
    tpu.vector_store %arg9[%c0_18, %c0_19], %32 {strides = array<i32>} : memref<1x128xf32, #tpu.memory_space<vmem>>, vector<1x128xf32>,
    %c0_i32_20 = arith.constant 0 : i32
    %34 = arith.cmpi eq, %arg0, %c0_i32_20 : i32
    %35 = arith.extui %34 : i1 to i32
    %c0_i32_21 = arith.constant 0 : i32
    %36 = arith.cmpi ne, %35, %c0_i32_21 : i32
    scf.if %36 {
      %c0_22 = arith.constant 0 : index
      %c0_23 = arith.constant 0 : index
      %37 = vector.load %arg8[%c0_22, %c0_23] : memref<1x128xf32, #tpu.memory_space<vmem>>, vector<1x128xf32>
      %cst_24 = arith.constant 1.250000e-01 : f32
      %38 = vector.broadcast %cst_24 : f32 to vector<1x128xf32>
      %39 = arith.mulf %37, %38 : vector<1x128xf32>
      %c0_25 = arith.constant 0 : index
      %c0_26 = arith.constant 0 : index
      %40 = vector.load %arg9[%c0_25, %c0_26] : memref<1x128xf32, #tpu.memory_space<vmem>>, vector<1x128xf32>
      %cst_27 = arith.constant 1.250000e-01 : f32
      %41 = vector.broadcast %cst_27 : f32 to vector<1x128xf32>
      %42 = arith.mulf %40, %41 : vector<1x128xf32>
      %43 = arith.mulf %39, %39 : vector<1x128xf32>
      %44 = arith.subf %42, %43 : vector<1x128xf32>
      %cst_28 = arith.constant 0.000000e+00 : f32
      %45 = vector.broadcast %cst_28 : f32 to vector<1x128xf32>
      %46 = arith.maximumf %44, %45 : vector<1x128xf32>
      %c0_29 = arith.constant 0 : index
      %c0_30 = arith.constant 0 : index
      %47 = vector.load %arg4[%c0_29, %c0_30] : memref<1x128xf32, #tpu.memory_space<vmem>>, vector<1x128xf32>
      %cst_31 = arith.constant 9.99999974E-6 : f32
      %48 = vector.broadcast %cst_31 : f32 to vector<1x128xf32>
      %49 = arith.addf %46, %48 : vector<1x128xf32>
      %50 = math.rsqrt %49 : vector<1x128xf32>
      %51 = arith.mulf %47, %50 : vector<1x128xf32>
      %c0_32 = arith.constant 0 : index
      %c0_33 = arith.constant 0 : index
      %52 = vector.load %arg5[%c0_32, %c0_33] : memref<1x128xf32, #tpu.memory_space<vmem>>, vector<1x128xf32>
      %53 = arith.mulf %39, %51 : vector<1x128xf32>
      %54 = arith.subf %52, %53 : vector<1x128xf32>
      %c0_34 = arith.constant 0 : index
      %c0_35 = arith.constant 0 : index
      %c0_36 = arith.constant 0 : index
      %55 = vector.load %arg7[%c0_34, %c0_35, %c0_36] : memref<1x8x128xf32, #tpu.memory_space<vmem>>, vector<1x8x128xf32>
      %56 = vector.shape_cast %55 : vector<1x8x128xf32> to vector<8x128xf32>
      %57 = vector.broadcast %51 : vector<1x128xf32> to vector<8x128xf32>
      %58 = arith.mulf %56, %57 : vector<8x128xf32>
      %59 = vector.broadcast %54 : vector<1x128xf32> to vector<8x128xf32>
      %60 = arith.addf %58, %59 : vector<8x128xf32>
      %61 = vector.extract_strided_slice %60 {offsets = [0, 0], sizes = [8, 32], strides = [1, 1]} : vector<8x128xf32> to vector<8x32xf32>
      %c0_37 = arith.constant 0 : index
      %c0_38 = arith.constant 0 : index
      %62 = vector.load %arg6[%c0_37, %c0_38] : memref<8x32xf32, #tpu.memory_space<vmem>>, vector<8x32xf32>
      tpu.vector_store %arg6[%c0_37, %c0_38], %61 {strides = array<i32>} : memref<8x32xf32, #tpu.memory_space<vmem>>, vector<8x32xf32>,
    } else {
    }
    return
  }
  func.func @transform_0(%arg0: i32) -> (i32, i32, i32) {
    %c0_i32 = arith.constant 0 : i32
    %c0_i32_0 = arith.constant 0 : i32
    %c0_i32_1 = arith.constant 0 : i32
    return %c0_i32, %arg0, %c0_i32_0 : i32, i32, i32
  }
  func.func @transform_1(%arg0: i32) -> (i32, i32) {
    %c0_i32 = arith.constant 0 : i32
    %c0_i32_0 = arith.constant 0 : i32
    %c0_i32_1 = arith.constant 0 : i32
    return %c0_i32, %c0_i32_0 : i32, i32
  }
  func.func @transform_2(%arg0: i32) -> (i32, i32) {
    %c0_i32 = arith.constant 0 : i32
    %c0_i32_0 = arith.constant 0 : i32
    %c0_i32_1 = arith.constant 0 : i32
    return %c0_i32, %c0_i32_0 : i32, i32
  }
  func.func @transform_3(%arg0: i32) -> (i32, i32) {
    %c0_i32 = arith.constant 0 : i32
    %c0_i32_0 = arith.constant 0 : i32
    %c0_i32_1 = arith.constant 0 : i32
    return %c0_i32, %c0_i32_0 : i32, i32
  }
  func.func @transform_4(%arg0: i32) -> (i32, i32) {
    %c0_i32 = arith.constant 0 : i32
    %c0_i32_0 = arith.constant 0 : i32
    %c0_i32_1 = arith.constant 0 : i32
    return %c0_i32, %c0_i32_0 : i32, i32
  }
  func.func @transform_5(%arg0: i32) -> (i32, i32) {
    %c0_i32 = arith.constant 0 : i32
    %c0_i32_0 = arith.constant 0 : i32
    %c0_i32_1 = arith.constant 0 : i32
    return %c0_i32, %c0_i32_0 : i32, i32
  }
}

module attributes {stable_mosaic.version = 11 : i64} {
  func.func @fused_conv_bn_kernel(%arg0: i32, %arg1: memref<4x8x384xbf16, #tpu.memory_space<vmem>>, %arg2: memref<384x128xbf16, #tpu.memory_space<vmem>>, %arg3: memref<1x128xf32, #tpu.memory_space<vmem>>, %arg4: memref<1x128xf32, #tpu.memory_space<vmem>>, %arg5: memref<1x128xf32, #tpu.memory_space<vmem>>, %arg6: memref<8x64xf32, #tpu.memory_space<vmem>>, %arg7: memref<1x8x128xf32, #tpu.memory_space<vmem>>, %arg8: memref<1x128xf32, #tpu.memory_space<vmem>>, %arg9: memref<1x128xf32, #tpu.memory_space<vmem>>) attributes {dimension_semantics = [#tpu.dimension_semantics<arbitrary>], iteration_bounds = array<i64: 1>, scalar_prefetch = 0 : i64, scratch_operands = 3 : i64, tpu.core_type = #tpu.core_type<tc>, window_params = [{transform_indices = @transform_0, window_bounds = array<i64: 4, 8, 384>}, {pipeline_mode = #tpu.pipeline_mode<synchronous>, transform_indices = @transform_1, window_bounds = array<i64: 384, 128>}, {pipeline_mode = #tpu.pipeline_mode<synchronous>, transform_indices = @transform_2, window_bounds = array<i64: 1, 128>}, {pipeline_mode = #tpu.pipeline_mode<synchronous>, transform_indices = @transform_3, window_bounds = array<i64: 1, 128>}, {pipeline_mode = #tpu.pipeline_mode<synchronous>, transform_indices = @transform_4, window_bounds = array<i64: 1, 128>}, {pipeline_mode = #tpu.pipeline_mode<synchronous>, transform_indices = @transform_5, window_bounds = array<i64: 8, 64>}]} {
    %c0_i32 = arith.constant 0 : i32
    %0 = arith.cmpi eq, %arg0, %c0_i32 : i32
    %1 = arith.extui %0 : i1 to i32
    %c0_i32_0 = arith.constant 0 : i32
    %2 = arith.cmpi ne, %1, %c0_i32_0 : i32
    scf.if %2 {
      %cst_23 = arith.constant 0.000000e+00 : f32
      %47 = vector.broadcast %cst_23 : f32 to vector<1x128xf32>
      %c0_24 = arith.constant 0 : index
      %c0_25 = arith.constant 0 : index
      %48 = vector.load %arg8[%c0_24, %c0_25] : memref<1x128xf32, #tpu.memory_space<vmem>>, vector<1x128xf32>
      tpu.vector_store %arg8[%c0_24, %c0_25], %47 {strides = array<i32>} : memref<1x128xf32, #tpu.memory_space<vmem>>, vector<1x128xf32>,
      %cst_26 = arith.constant 0.000000e+00 : f32
      %49 = vector.broadcast %cst_26 : f32 to vector<1x128xf32>
      %c0_27 = arith.constant 0 : index
      %c0_28 = arith.constant 0 : index
      %50 = vector.load %arg9[%c0_27, %c0_28] : memref<1x128xf32, #tpu.memory_space<vmem>>, vector<1x128xf32>
      tpu.vector_store %arg9[%c0_27, %c0_28], %49 {strides = array<i32>} : memref<1x128xf32, #tpu.memory_space<vmem>>, vector<1x128xf32>,
    } else {
    }
    %c0 = arith.constant 0 : index
    %c0_1 = arith.constant 0 : index
    %c0_2 = arith.constant 0 : index
    %3 = vector.load %arg1[%c0, %c0_1, %c0_2] : memref<4x8x384xbf16, #tpu.memory_space<vmem>>, vector<4x8x384xbf16>
    %4 = vector.shape_cast %3 : vector<4x8x384xbf16> to vector<32x384xbf16>
    %c0_3 = arith.constant 0 : index
    %c0_4 = arith.constant 0 : index
    %5 = vector.load %arg2[%c0_3, %c0_4] : memref<384x128xbf16, #tpu.memory_space<vmem>>, vector<384x128xbf16>
    %cst = arith.constant dense<0.000000e+00> : vector<32x128xf32>
    %6 = tpu.matmul %4, %5, %cst {dimension_numbers = #tpu.dot_dimension_numbers<[1], [0], [0], [1], [0, 0, 1, 1], [], []>} : vector<32x384xbf16>, vector<384x128xbf16>, vector<32x128xf32> -> vector<32x128xf32>
    %7 = vector.extract_strided_slice %6 {offsets = [0, 0], sizes = [8, 128], strides = [1, 1]} : vector<32x128xf32> to vector<8x128xf32>
    %8 = vector.extract_strided_slice %6 {offsets = [8, 0], sizes = [8, 128], strides = [1, 1]} : vector<32x128xf32> to vector<8x128xf32>
    %9 = arith.maximumf %7, %8 : vector<8x128xf32>
    %10 = vector.extract_strided_slice %6 {offsets = [16, 0], sizes = [8, 128], strides = [1, 1]} : vector<32x128xf32> to vector<8x128xf32>
    %11 = arith.maximumf %9, %10 : vector<8x128xf32>
    %12 = vector.extract_strided_slice %6 {offsets = [24, 0], sizes = [8, 128], strides = [1, 1]} : vector<32x128xf32> to vector<8x128xf32>
    %13 = arith.maximumf %11, %12 : vector<8x128xf32>
    %c0_5 = arith.constant 0 : index
    %c0_6 = arith.constant 0 : index
    %14 = vector.load %arg3[%c0_5, %c0_6] : memref<1x128xf32, #tpu.memory_space<vmem>>, vector<1x128xf32>
    %15 = vector.broadcast %14 : vector<1x128xf32> to vector<8x128xf32>
    %16 = arith.addf %13, %15 : vector<8x128xf32>
    %cst_7 = arith.constant 0.000000e+00 : f32
    %17 = vector.broadcast %cst_7 : f32 to vector<8x128xf32>
    %18 = arith.maximumf %16, %17 : vector<8x128xf32>
    %19 = arith.index_cast %arg0 : i32 to index
    %c0_8 = arith.constant 0 : index
    %c0_9 = arith.constant 0 : index
    %20 = vector.load %arg7[%19, %c0_8, %c0_9] : memref<1x8x128xf32, #tpu.memory_space<vmem>>, vector<1x8x128xf32>
    %21 = vector.shape_cast %20 : vector<1x8x128xf32> to vector<8x128xf32>
    %22 = vector.shape_cast %18 : vector<8x128xf32> to vector<1x8x128xf32>
    tpu.vector_store %arg7[%19, %c0_8, %c0_9], %22 {strides = array<i32>} : memref<1x8x128xf32, #tpu.memory_space<vmem>>, vector<1x8x128xf32>,
    %23 = tpu.iota {dimensions = array<i32: 0>} : vector<8x1xi32>
    %c8_i32 = arith.constant 8 : i32
    %24 = arith.muli %arg0, %c8_i32 : i32
    %25 = vector.broadcast %24 : i32 to vector<8x1xi32>
    %26 = arith.addi %23, %25 : vector<8x1xi32>
    %c2_i32 = arith.constant 2 : i32
    %27 = vector.broadcast %c2_i32 : i32 to vector<8x1xi32>
    %28 = arith.cmpi slt, %26, %27 : vector<8x1xi32>
    %cst_10 = arith.constant 0.000000e+00 : f32
    %29 = vector.shape_cast %28 : vector<8x1xi1> to vector<8x1xi1>
    %30 = vector.broadcast %29 : vector<8x1xi1> to vector<8x128xi1>
    %31 = vector.broadcast %cst_10 : f32 to vector<8x128xf32>
    %32 = arith.select %30, %18, %31 : vector<8x128xi1>, vector<8x128xf32>
    %c0_11 = arith.constant 0 : index
    %c0_12 = arith.constant 0 : index
    %33 = vector.load %arg8[%c0_11, %c0_12] : memref<1x128xf32, #tpu.memory_space<vmem>>, vector<1x128xf32>
    %cst_13 = arith.constant dense<0.000000e+00> : vector<128xf32>
    %34 = vector.multi_reduction <add>, %32, %cst_13 [0] : vector<8x128xf32> to vector<128xf32>
    %35 = vector.shape_cast %34 : vector<128xf32> to vector<1x128xf32>
    %36 = arith.addf %33, %35 : vector<1x128xf32>
    %c0_14 = arith.constant 0 : index
    %c0_15 = arith.constant 0 : index
    %37 = vector.load %arg8[%c0_14, %c0_15] : memref<1x128xf32, #tpu.memory_space<vmem>>, vector<1x128xf32>
    tpu.vector_store %arg8[%c0_14, %c0_15], %36 {strides = array<i32>} : memref<1x128xf32, #tpu.memory_space<vmem>>, vector<1x128xf32>,
    %c0_16 = arith.constant 0 : index
    %c0_17 = arith.constant 0 : index
    %38 = vector.load %arg9[%c0_16, %c0_17] : memref<1x128xf32, #tpu.memory_space<vmem>>, vector<1x128xf32>
    %39 = arith.mulf %32, %32 : vector<8x128xf32>
    %cst_18 = arith.constant dense<0.000000e+00> : vector<128xf32>
    %40 = vector.multi_reduction <add>, %39, %cst_18 [0] : vector<8x128xf32> to vector<128xf32>
    %41 = vector.shape_cast %40 : vector<128xf32> to vector<1x128xf32>
    %42 = arith.addf %38, %41 : vector<1x128xf32>
    %c0_19 = arith.constant 0 : index
    %c0_20 = arith.constant 0 : index
    %43 = vector.load %arg9[%c0_19, %c0_20] : memref<1x128xf32, #tpu.memory_space<vmem>>, vector<1x128xf32>
    tpu.vector_store %arg9[%c0_19, %c0_20], %42 {strides = array<i32>} : memref<1x128xf32, #tpu.memory_space<vmem>>, vector<1x128xf32>,
    %c0_i32_21 = arith.constant 0 : i32
    %44 = arith.cmpi eq, %arg0, %c0_i32_21 : i32
    %45 = arith.extui %44 : i1 to i32
    %c0_i32_22 = arith.constant 0 : i32
    %46 = arith.cmpi ne, %45, %c0_i32_22 : i32
    scf.if %46 {
      %c0_23 = arith.constant 0 : index
      %c0_24 = arith.constant 0 : index
      %47 = vector.load %arg8[%c0_23, %c0_24] : memref<1x128xf32, #tpu.memory_space<vmem>>, vector<1x128xf32>
      %cst_25 = arith.constant 5.000000e-01 : f32
      %48 = vector.broadcast %cst_25 : f32 to vector<1x128xf32>
      %49 = arith.mulf %47, %48 : vector<1x128xf32>
      %c0_26 = arith.constant 0 : index
      %c0_27 = arith.constant 0 : index
      %50 = vector.load %arg9[%c0_26, %c0_27] : memref<1x128xf32, #tpu.memory_space<vmem>>, vector<1x128xf32>
      %cst_28 = arith.constant 5.000000e-01 : f32
      %51 = vector.broadcast %cst_28 : f32 to vector<1x128xf32>
      %52 = arith.mulf %50, %51 : vector<1x128xf32>
      %53 = arith.mulf %49, %49 : vector<1x128xf32>
      %54 = arith.subf %52, %53 : vector<1x128xf32>
      %cst_29 = arith.constant 0.000000e+00 : f32
      %55 = vector.broadcast %cst_29 : f32 to vector<1x128xf32>
      %56 = arith.maximumf %54, %55 : vector<1x128xf32>
      %c0_30 = arith.constant 0 : index
      %c0_31 = arith.constant 0 : index
      %57 = vector.load %arg4[%c0_30, %c0_31] : memref<1x128xf32, #tpu.memory_space<vmem>>, vector<1x128xf32>
      %cst_32 = arith.constant 9.99999974E-6 : f32
      %58 = vector.broadcast %cst_32 : f32 to vector<1x128xf32>
      %59 = arith.addf %56, %58 : vector<1x128xf32>
      %60 = math.rsqrt %59 : vector<1x128xf32>
      %61 = arith.mulf %57, %60 : vector<1x128xf32>
      %c0_33 = arith.constant 0 : index
      %c0_34 = arith.constant 0 : index
      %62 = vector.load %arg5[%c0_33, %c0_34] : memref<1x128xf32, #tpu.memory_space<vmem>>, vector<1x128xf32>
      %63 = arith.mulf %49, %61 : vector<1x128xf32>
      %64 = arith.subf %62, %63 : vector<1x128xf32>
      %c0_35 = arith.constant 0 : index
      %c0_36 = arith.constant 0 : index
      %c0_37 = arith.constant 0 : index
      %65 = vector.load %arg7[%c0_35, %c0_36, %c0_37] : memref<1x8x128xf32, #tpu.memory_space<vmem>>, vector<1x8x128xf32>
      %66 = vector.shape_cast %65 : vector<1x8x128xf32> to vector<8x128xf32>
      %67 = vector.broadcast %61 : vector<1x128xf32> to vector<8x128xf32>
      %68 = arith.mulf %66, %67 : vector<8x128xf32>
      %69 = vector.broadcast %64 : vector<1x128xf32> to vector<8x128xf32>
      %70 = arith.addf %68, %69 : vector<8x128xf32>
      %71 = vector.extract_strided_slice %70 {offsets = [0, 0], sizes = [8, 64], strides = [1, 1]} : vector<8x128xf32> to vector<8x64xf32>
      %c0_38 = arith.constant 0 : index
      %c0_39 = arith.constant 0 : index
      %72 = vector.load %arg6[%c0_38, %c0_39] : memref<8x64xf32, #tpu.memory_space<vmem>>, vector<8x64xf32>
      tpu.vector_store %arg6[%c0_38, %c0_39], %71 {strides = array<i32>} : memref<8x64xf32, #tpu.memory_space<vmem>>, vector<8x64xf32>,
    } else {
    }
    return
  }
  func.func @transform_0(%arg0: i32) -> (i32, i32, i32) {
    %c0_i32 = arith.constant 0 : i32
    %c0_i32_0 = arith.constant 0 : i32
    %c0_i32_1 = arith.constant 0 : i32
    return %c0_i32, %arg0, %c0_i32_0 : i32, i32, i32
  }
  func.func @transform_1(%arg0: i32) -> (i32, i32) {
    %c0_i32 = arith.constant 0 : i32
    %c0_i32_0 = arith.constant 0 : i32
    %c0_i32_1 = arith.constant 0 : i32
    return %c0_i32, %c0_i32_0 : i32, i32
  }
  func.func @transform_2(%arg0: i32) -> (i32, i32) {
    %c0_i32 = arith.constant 0 : i32
    %c0_i32_0 = arith.constant 0 : i32
    %c0_i32_1 = arith.constant 0 : i32
    return %c0_i32, %c0_i32_0 : i32, i32
  }
  func.func @transform_3(%arg0: i32) -> (i32, i32) {
    %c0_i32 = arith.constant 0 : i32
    %c0_i32_0 = arith.constant 0 : i32
    %c0_i32_1 = arith.constant 0 : i32
    return %c0_i32, %c0_i32_0 : i32, i32
  }
  func.func @transform_4(%arg0: i32) -> (i32, i32) {
    %c0_i32 = arith.constant 0 : i32
    %c0_i32_0 = arith.constant 0 : i32
    %c0_i32_1 = arith.constant 0 : i32
    return %c0_i32, %c0_i32_0 : i32, i32
  }
  func.func @transform_5(%arg0: i32) -> (i32, i32) {
    %c0_i32 = arith.constant 0 : i32
    %c0_i32_0 = arith.constant 0 : i32
    %c0_i32_1 = arith.constant 0 : i32
    return %c0_i32, %c0_i32_0 : i32, i32
  }
}

module attributes {stable_mosaic.version = 11 : i64} {
  func.func @fused_conv_bn_kernel(%arg0: i32, %arg1: memref<1x8x128xbf16, #tpu.memory_space<vmem>>, %arg2: memref<128x128xbf16, #tpu.memory_space<vmem>>, %arg3: memref<1x128xf32, #tpu.memory_space<vmem>>, %arg4: memref<1x128xf32, #tpu.memory_space<vmem>>, %arg5: memref<1x128xf32, #tpu.memory_space<vmem>>, %arg6: memref<8x128xf32, #tpu.memory_space<vmem>>, %arg7: memref<1x8x128xf32, #tpu.memory_space<vmem>>, %arg8: memref<1x128xf32, #tpu.memory_space<vmem>>, %arg9: memref<1x128xf32, #tpu.memory_space<vmem>>) attributes {dimension_semantics = [#tpu.dimension_semantics<arbitrary>], iteration_bounds = array<i64: 1>, scalar_prefetch = 0 : i64, scratch_operands = 3 : i64, tpu.core_type = #tpu.core_type<tc>, window_params = [{transform_indices = @transform_0, window_bounds = array<i64: 1, 8, 128>}, {pipeline_mode = #tpu.pipeline_mode<synchronous>, transform_indices = @transform_1, window_bounds = array<i64: 128, 128>}, {pipeline_mode = #tpu.pipeline_mode<synchronous>, transform_indices = @transform_2, window_bounds = array<i64: 1, 128>}, {pipeline_mode = #tpu.pipeline_mode<synchronous>, transform_indices = @transform_3, window_bounds = array<i64: 1, 128>}, {pipeline_mode = #tpu.pipeline_mode<synchronous>, transform_indices = @transform_4, window_bounds = array<i64: 1, 128>}, {pipeline_mode = #tpu.pipeline_mode<synchronous>, transform_indices = @transform_5, window_bounds = array<i64: 8, 128>}]} {
    %c0_i32 = arith.constant 0 : i32
    %0 = arith.cmpi eq, %arg0, %c0_i32 : i32
    %1 = arith.extui %0 : i1 to i32
    %c0_i32_0 = arith.constant 0 : i32
    %2 = arith.cmpi ne, %1, %c0_i32_0 : i32
    scf.if %2 {
      %cst_23 = arith.constant 0.000000e+00 : f32
      %40 = vector.broadcast %cst_23 : f32 to vector<1x128xf32>
      %c0_24 = arith.constant 0 : index
      %c0_25 = arith.constant 0 : index
      %41 = vector.load %arg8[%c0_24, %c0_25] : memref<1x128xf32, #tpu.memory_space<vmem>>, vector<1x128xf32>
      tpu.vector_store %arg8[%c0_24, %c0_25], %40 {strides = array<i32>} : memref<1x128xf32, #tpu.memory_space<vmem>>, vector<1x128xf32>,
      %cst_26 = arith.constant 0.000000e+00 : f32
      %42 = vector.broadcast %cst_26 : f32 to vector<1x128xf32>
      %c0_27 = arith.constant 0 : index
      %c0_28 = arith.constant 0 : index
      %43 = vector.load %arg9[%c0_27, %c0_28] : memref<1x128xf32, #tpu.memory_space<vmem>>, vector<1x128xf32>
      tpu.vector_store %arg9[%c0_27, %c0_28], %42 {strides = array<i32>} : memref<1x128xf32, #tpu.memory_space<vmem>>, vector<1x128xf32>,
    } else {
    }
    %c0 = arith.constant 0 : index
    %c0_1 = arith.constant 0 : index
    %c0_2 = arith.constant 0 : index
    %3 = vector.load %arg1[%c0, %c0_1, %c0_2] : memref<1x8x128xbf16, #tpu.memory_space<vmem>>, vector<1x8x128xbf16>
    %4 = vector.shape_cast %3 : vector<1x8x128xbf16> to vector<8x128xbf16>
    %c0_3 = arith.constant 0 : index
    %c0_4 = arith.constant 0 : index
    %5 = vector.load %arg2[%c0_3, %c0_4] : memref<128x128xbf16, #tpu.memory_space<vmem>>, vector<128x128xbf16>
    %cst = arith.constant dense<0.000000e+00> : vector<8x128xf32>
    %6 = tpu.matmul %4, %5, %cst {dimension_numbers = #tpu.dot_dimension_numbers<[1], [0], [0], [1], [0, 0, 1, 1], [], []>} : vector<8x128xbf16>, vector<128x128xbf16>, vector<8x128xf32> -> vector<8x128xf32>
    %c0_5 = arith.constant 0 : index
    %c0_6 = arith.constant 0 : index
    %7 = vector.load %arg3[%c0_5, %c0_6] : memref<1x128xf32, #tpu.memory_space<vmem>>, vector<1x128xf32>
    %8 = vector.broadcast %7 : vector<1x128xf32> to vector<8x128xf32>
    %9 = arith.addf %6, %8 : vector<8x128xf32>
    %cst_7 = arith.constant 0.000000e+00 : f32
    %10 = vector.broadcast %cst_7 : f32 to vector<8x128xf32>
    %11 = arith.maximumf %9, %10 : vector<8x128xf32>
    %12 = arith.index_cast %arg0 : i32 to index
    %c0_8 = arith.constant 0 : index
    %c0_9 = arith.constant 0 : index
    %13 = vector.load %arg7[%12, %c0_8, %c0_9] : memref<1x8x128xf32, #tpu.memory_space<vmem>>, vector<1x8x128xf32>
    %14 = vector.shape_cast %13 : vector<1x8x128xf32> to vector<8x128xf32>
    %15 = vector.shape_cast %11 : vector<8x128xf32> to vector<1x8x128xf32>
    tpu.vector_store %arg7[%12, %c0_8, %c0_9], %15 {strides = array<i32>} : memref<1x8x128xf32, #tpu.memory_space<vmem>>, vector<1x8x128xf32>,
    %16 = tpu.iota {dimensions = array<i32: 0>} : vector<8x1xi32>
    %c8_i32 = arith.constant 8 : i32
    %17 = arith.muli %arg0, %c8_i32 : i32
    %18 = vector.broadcast %17 : i32 to vector<8x1xi32>
    %19 = arith.addi %16, %18 : vector<8x1xi32>
    %c2_i32 = arith.constant 2 : i32
    %20 = vector.broadcast %c2_i32 : i32 to vector<8x1xi32>
    %21 = arith.cmpi slt, %19, %20 : vector<8x1xi32>
    %cst_10 = arith.constant 0.000000e+00 : f32
    %22 = vector.shape_cast %21 : vector<8x1xi1> to vector<8x1xi1>
    %23 = vector.broadcast %22 : vector<8x1xi1> to vector<8x128xi1>
    %24 = vector.broadcast %cst_10 : f32 to vector<8x128xf32>
    %25 = arith.select %23, %11, %24 : vector<8x128xi1>, vector<8x128xf32>
    %c0_11 = arith.constant 0 : index
    %c0_12 = arith.constant 0 : index
    %26 = vector.load %arg8[%c0_11, %c0_12] : memref<1x128xf32, #tpu.memory_space<vmem>>, vector<1x128xf32>
    %cst_13 = arith.constant dense<0.000000e+00> : vector<128xf32>
    %27 = vector.multi_reduction <add>, %25, %cst_13 [0] : vector<8x128xf32> to vector<128xf32>
    %28 = vector.shape_cast %27 : vector<128xf32> to vector<1x128xf32>
    %29 = arith.addf %26, %28 : vector<1x128xf32>
    %c0_14 = arith.constant 0 : index
    %c0_15 = arith.constant 0 : index
    %30 = vector.load %arg8[%c0_14, %c0_15] : memref<1x128xf32, #tpu.memory_space<vmem>>, vector<1x128xf32>
    tpu.vector_store %arg8[%c0_14, %c0_15], %29 {strides = array<i32>} : memref<1x128xf32, #tpu.memory_space<vmem>>, vector<1x128xf32>,
    %c0_16 = arith.constant 0 : index
    %c0_17 = arith.constant 0 : index
    %31 = vector.load %arg9[%c0_16, %c0_17] : memref<1x128xf32, #tpu.memory_space<vmem>>, vector<1x128xf32>
    %32 = arith.mulf %25, %25 : vector<8x128xf32>
    %cst_18 = arith.constant dense<0.000000e+00> : vector<128xf32>
    %33 = vector.multi_reduction <add>, %32, %cst_18 [0] : vector<8x128xf32> to vector<128xf32>
    %34 = vector.shape_cast %33 : vector<128xf32> to vector<1x128xf32>
    %35 = arith.addf %31, %34 : vector<1x128xf32>
    %c0_19 = arith.constant 0 : index
    %c0_20 = arith.constant 0 : index
    %36 = vector.load %arg9[%c0_19, %c0_20] : memref<1x128xf32, #tpu.memory_space<vmem>>, vector<1x128xf32>
    tpu.vector_store %arg9[%c0_19, %c0_20], %35 {strides = array<i32>} : memref<1x128xf32, #tpu.memory_space<vmem>>, vector<1x128xf32>,
    %c0_i32_21 = arith.constant 0 : i32
    %37 = arith.cmpi eq, %arg0, %c0_i32_21 : i32
    %38 = arith.extui %37 : i1 to i32
    %c0_i32_22 = arith.constant 0 : i32
    %39 = arith.cmpi ne, %38, %c0_i32_22 : i32
    scf.if %39 {
      %c0_23 = arith.constant 0 : index
      %c0_24 = arith.constant 0 : index
      %40 = vector.load %arg8[%c0_23, %c0_24] : memref<1x128xf32, #tpu.memory_space<vmem>>, vector<1x128xf32>
      %cst_25 = arith.constant 5.000000e-01 : f32
      %41 = vector.broadcast %cst_25 : f32 to vector<1x128xf32>
      %42 = arith.mulf %40, %41 : vector<1x128xf32>
      %c0_26 = arith.constant 0 : index
      %c0_27 = arith.constant 0 : index
      %43 = vector.load %arg9[%c0_26, %c0_27] : memref<1x128xf32, #tpu.memory_space<vmem>>, vector<1x128xf32>
      %cst_28 = arith.constant 5.000000e-01 : f32
      %44 = vector.broadcast %cst_28 : f32 to vector<1x128xf32>
      %45 = arith.mulf %43, %44 : vector<1x128xf32>
      %46 = arith.mulf %42, %42 : vector<1x128xf32>
      %47 = arith.subf %45, %46 : vector<1x128xf32>
      %cst_29 = arith.constant 0.000000e+00 : f32
      %48 = vector.broadcast %cst_29 : f32 to vector<1x128xf32>
      %49 = arith.maximumf %47, %48 : vector<1x128xf32>
      %c0_30 = arith.constant 0 : index
      %c0_31 = arith.constant 0 : index
      %50 = vector.load %arg4[%c0_30, %c0_31] : memref<1x128xf32, #tpu.memory_space<vmem>>, vector<1x128xf32>
      %cst_32 = arith.constant 9.99999974E-6 : f32
      %51 = vector.broadcast %cst_32 : f32 to vector<1x128xf32>
      %52 = arith.addf %49, %51 : vector<1x128xf32>
      %53 = math.rsqrt %52 : vector<1x128xf32>
      %54 = arith.mulf %50, %53 : vector<1x128xf32>
      %c0_33 = arith.constant 0 : index
      %c0_34 = arith.constant 0 : index
      %55 = vector.load %arg5[%c0_33, %c0_34] : memref<1x128xf32, #tpu.memory_space<vmem>>, vector<1x128xf32>
      %56 = arith.mulf %42, %54 : vector<1x128xf32>
      %57 = arith.subf %55, %56 : vector<1x128xf32>
      %c0_35 = arith.constant 0 : index
      %c0_36 = arith.constant 0 : index
      %c0_37 = arith.constant 0 : index
      %58 = vector.load %arg7[%c0_35, %c0_36, %c0_37] : memref<1x8x128xf32, #tpu.memory_space<vmem>>, vector<1x8x128xf32>
      %59 = vector.shape_cast %58 : vector<1x8x128xf32> to vector<8x128xf32>
      %60 = vector.broadcast %54 : vector<1x128xf32> to vector<8x128xf32>
      %61 = arith.mulf %59, %60 : vector<8x128xf32>
      %62 = vector.broadcast %57 : vector<1x128xf32> to vector<8x128xf32>
      %63 = arith.addf %61, %62 : vector<8x128xf32>
      %c0_38 = arith.constant 0 : index
      %c0_39 = arith.constant 0 : index
      %64 = vector.load %arg6[%c0_38, %c0_39] : memref<8x128xf32, #tpu.memory_space<vmem>>, vector<8x128xf32>
      tpu.vector_store %arg6[%c0_38, %c0_39], %63 {strides = array<i32>} : memref<8x128xf32, #tpu.memory_space<vmem>>, vector<8x128xf32>,
    } else {
    }
    return
  }
  func.func @transform_0(%arg0: i32) -> (i32, i32, i32) {
    %c0_i32 = arith.constant 0 : i32
    %c0_i32_0 = arith.constant 0 : i32
    %c0_i32_1 = arith.constant 0 : i32
    return %c0_i32, %arg0, %c0_i32_0 : i32, i32, i32
  }
  func.func @transform_1(%arg0: i32) -> (i32, i32) {
    %c0_i32 = arith.constant 0 : i32
    %c0_i32_0 = arith.constant 0 : i32
    %c0_i32_1 = arith.constant 0 : i32
    return %c0_i32, %c0_i32_0 : i32, i32
  }
  func.func @transform_2(%arg0: i32) -> (i32, i32) {
    %c0_i32 = arith.constant 0 : i32
    %c0_i32_0 = arith.constant 0 : i32
    %c0_i32_1 = arith.constant 0 : i32
    return %c0_i32, %c0_i32_0 : i32, i32
  }
  func.func @transform_3(%arg0: i32) -> (i32, i32) {
    %c0_i32 = arith.constant 0 : i32
    %c0_i32_0 = arith.constant 0 : i32
    %c0_i32_1 = arith.constant 0 : i32
    return %c0_i32, %c0_i32_0 : i32, i32
  }
  func.func @transform_4(%arg0: i32) -> (i32, i32) {
    %c0_i32 = arith.constant 0 : i32
    %c0_i32_0 = arith.constant 0 : i32
    %c0_i32_1 = arith.constant 0 : i32
    return %c0_i32, %c0_i32_0 : i32, i32
  }
  func.func @transform_5(%arg0: i32) -> (i32, i32) {
    %c0_i32 = arith.constant 0 : i32
    %c0_i32_0 = arith.constant 0 : i32
    %c0_i32_1 = arith.constant 0 : i32
    return %c0_i32, %c0_i32_0 : i32, i32
  }
}

module attributes {stable_mosaic.version = 11 : i64} {
  func.func @fused_conv_bn_kernel(%arg0: i32, %arg1: memref<1x8x128xbf16, #tpu.memory_space<vmem>>, %arg2: memref<128x128xbf16, #tpu.memory_space<vmem>>, %arg3: memref<1x128xf32, #tpu.memory_space<vmem>>, %arg4: memref<1x128xf32, #tpu.memory_space<vmem>>, %arg5: memref<1x128xf32, #tpu.memory_space<vmem>>, %arg6: memref<8x64xf32, #tpu.memory_space<vmem>>, %arg7: memref<1x8x128xf32, #tpu.memory_space<vmem>>, %arg8: memref<1x128xf32, #tpu.memory_space<vmem>>, %arg9: memref<1x128xf32, #tpu.memory_space<vmem>>) attributes {dimension_semantics = [#tpu.dimension_semantics<arbitrary>], iteration_bounds = array<i64: 1>, scalar_prefetch = 0 : i64, scratch_operands = 3 : i64, tpu.core_type = #tpu.core_type<tc>, window_params = [{transform_indices = @transform_0, window_bounds = array<i64: 1, 8, 128>}, {pipeline_mode = #tpu.pipeline_mode<synchronous>, transform_indices = @transform_1, window_bounds = array<i64: 128, 128>}, {pipeline_mode = #tpu.pipeline_mode<synchronous>, transform_indices = @transform_2, window_bounds = array<i64: 1, 128>}, {pipeline_mode = #tpu.pipeline_mode<synchronous>, transform_indices = @transform_3, window_bounds = array<i64: 1, 128>}, {pipeline_mode = #tpu.pipeline_mode<synchronous>, transform_indices = @transform_4, window_bounds = array<i64: 1, 128>}, {pipeline_mode = #tpu.pipeline_mode<synchronous>, transform_indices = @transform_5, window_bounds = array<i64: 8, 64>}]} {
    %c0_i32 = arith.constant 0 : i32
    %0 = arith.cmpi eq, %arg0, %c0_i32 : i32
    %1 = arith.extui %0 : i1 to i32
    %c0_i32_0 = arith.constant 0 : i32
    %2 = arith.cmpi ne, %1, %c0_i32_0 : i32
    scf.if %2 {
      %cst_23 = arith.constant 0.000000e+00 : f32
      %40 = vector.broadcast %cst_23 : f32 to vector<1x128xf32>
      %c0_24 = arith.constant 0 : index
      %c0_25 = arith.constant 0 : index
      %41 = vector.load %arg8[%c0_24, %c0_25] : memref<1x128xf32, #tpu.memory_space<vmem>>, vector<1x128xf32>
      tpu.vector_store %arg8[%c0_24, %c0_25], %40 {strides = array<i32>} : memref<1x128xf32, #tpu.memory_space<vmem>>, vector<1x128xf32>,
      %cst_26 = arith.constant 0.000000e+00 : f32
      %42 = vector.broadcast %cst_26 : f32 to vector<1x128xf32>
      %c0_27 = arith.constant 0 : index
      %c0_28 = arith.constant 0 : index
      %43 = vector.load %arg9[%c0_27, %c0_28] : memref<1x128xf32, #tpu.memory_space<vmem>>, vector<1x128xf32>
      tpu.vector_store %arg9[%c0_27, %c0_28], %42 {strides = array<i32>} : memref<1x128xf32, #tpu.memory_space<vmem>>, vector<1x128xf32>,
    } else {
    }
    %c0 = arith.constant 0 : index
    %c0_1 = arith.constant 0 : index
    %c0_2 = arith.constant 0 : index
    %3 = vector.load %arg1[%c0, %c0_1, %c0_2] : memref<1x8x128xbf16, #tpu.memory_space<vmem>>, vector<1x8x128xbf16>
    %4 = vector.shape_cast %3 : vector<1x8x128xbf16> to vector<8x128xbf16>
    %c0_3 = arith.constant 0 : index
    %c0_4 = arith.constant 0 : index
    %5 = vector.load %arg2[%c0_3, %c0_4] : memref<128x128xbf16, #tpu.memory_space<vmem>>, vector<128x128xbf16>
    %cst = arith.constant dense<0.000000e+00> : vector<8x128xf32>
    %6 = tpu.matmul %4, %5, %cst {dimension_numbers = #tpu.dot_dimension_numbers<[1], [0], [0], [1], [0, 0, 1, 1], [], []>} : vector<8x128xbf16>, vector<128x128xbf16>, vector<8x128xf32> -> vector<8x128xf32>
    %c0_5 = arith.constant 0 : index
    %c0_6 = arith.constant 0 : index
    %7 = vector.load %arg3[%c0_5, %c0_6] : memref<1x128xf32, #tpu.memory_space<vmem>>, vector<1x128xf32>
    %8 = vector.broadcast %7 : vector<1x128xf32> to vector<8x128xf32>
    %9 = arith.addf %6, %8 : vector<8x128xf32>
    %cst_7 = arith.constant 0.000000e+00 : f32
    %10 = vector.broadcast %cst_7 : f32 to vector<8x128xf32>
    %11 = arith.maximumf %9, %10 : vector<8x128xf32>
    %12 = arith.index_cast %arg0 : i32 to index
    %c0_8 = arith.constant 0 : index
    %c0_9 = arith.constant 0 : index
    %13 = vector.load %arg7[%12, %c0_8, %c0_9] : memref<1x8x128xf32, #tpu.memory_space<vmem>>, vector<1x8x128xf32>
    %14 = vector.shape_cast %13 : vector<1x8x128xf32> to vector<8x128xf32>
    %15 = vector.shape_cast %11 : vector<8x128xf32> to vector<1x8x128xf32>
    tpu.vector_store %arg7[%12, %c0_8, %c0_9], %15 {strides = array<i32>} : memref<1x8x128xf32, #tpu.memory_space<vmem>>, vector<1x8x128xf32>,
    %16 = tpu.iota {dimensions = array<i32: 0>} : vector<8x1xi32>
    %c8_i32 = arith.constant 8 : i32
    %17 = arith.muli %arg0, %c8_i32 : i32
    %18 = vector.broadcast %17 : i32 to vector<8x1xi32>
    %19 = arith.addi %16, %18 : vector<8x1xi32>
    %c2_i32 = arith.constant 2 : i32
    %20 = vector.broadcast %c2_i32 : i32 to vector<8x1xi32>
    %21 = arith.cmpi slt, %19, %20 : vector<8x1xi32>
    %cst_10 = arith.constant 0.000000e+00 : f32
    %22 = vector.shape_cast %21 : vector<8x1xi1> to vector<8x1xi1>
    %23 = vector.broadcast %22 : vector<8x1xi1> to vector<8x128xi1>
    %24 = vector.broadcast %cst_10 : f32 to vector<8x128xf32>
    %25 = arith.select %23, %11, %24 : vector<8x128xi1>, vector<8x128xf32>
    %c0_11 = arith.constant 0 : index
    %c0_12 = arith.constant 0 : index
    %26 = vector.load %arg8[%c0_11, %c0_12] : memref<1x128xf32, #tpu.memory_space<vmem>>, vector<1x128xf32>
    %cst_13 = arith.constant dense<0.000000e+00> : vector<128xf32>
    %27 = vector.multi_reduction <add>, %25, %cst_13 [0] : vector<8x128xf32> to vector<128xf32>
    %28 = vector.shape_cast %27 : vector<128xf32> to vector<1x128xf32>
    %29 = arith.addf %26, %28 : vector<1x128xf32>
    %c0_14 = arith.constant 0 : index
    %c0_15 = arith.constant 0 : index
    %30 = vector.load %arg8[%c0_14, %c0_15] : memref<1x128xf32, #tpu.memory_space<vmem>>, vector<1x128xf32>
    tpu.vector_store %arg8[%c0_14, %c0_15], %29 {strides = array<i32>} : memref<1x128xf32, #tpu.memory_space<vmem>>, vector<1x128xf32>,
    %c0_16 = arith.constant 0 : index
    %c0_17 = arith.constant 0 : index
    %31 = vector.load %arg9[%c0_16, %c0_17] : memref<1x128xf32, #tpu.memory_space<vmem>>, vector<1x128xf32>
    %32 = arith.mulf %25, %25 : vector<8x128xf32>
    %cst_18 = arith.constant dense<0.000000e+00> : vector<128xf32>
    %33 = vector.multi_reduction <add>, %32, %cst_18 [0] : vector<8x128xf32> to vector<128xf32>
    %34 = vector.shape_cast %33 : vector<128xf32> to vector<1x128xf32>
    %35 = arith.addf %31, %34 : vector<1x128xf32>
    %c0_19 = arith.constant 0 : index
    %c0_20 = arith.constant 0 : index
    %36 = vector.load %arg9[%c0_19, %c0_20] : memref<1x128xf32, #tpu.memory_space<vmem>>, vector<1x128xf32>
    tpu.vector_store %arg9[%c0_19, %c0_20], %35 {strides = array<i32>} : memref<1x128xf32, #tpu.memory_space<vmem>>, vector<1x128xf32>,
    %c0_i32_21 = arith.constant 0 : i32
    %37 = arith.cmpi eq, %arg0, %c0_i32_21 : i32
    %38 = arith.extui %37 : i1 to i32
    %c0_i32_22 = arith.constant 0 : i32
    %39 = arith.cmpi ne, %38, %c0_i32_22 : i32
    scf.if %39 {
      %c0_23 = arith.constant 0 : index
      %c0_24 = arith.constant 0 : index
      %40 = vector.load %arg8[%c0_23, %c0_24] : memref<1x128xf32, #tpu.memory_space<vmem>>, vector<1x128xf32>
      %cst_25 = arith.constant 5.000000e-01 : f32
      %41 = vector.broadcast %cst_25 : f32 to vector<1x128xf32>
      %42 = arith.mulf %40, %41 : vector<1x128xf32>
      %c0_26 = arith.constant 0 : index
      %c0_27 = arith.constant 0 : index
      %43 = vector.load %arg9[%c0_26, %c0_27] : memref<1x128xf32, #tpu.memory_space<vmem>>, vector<1x128xf32>
      %cst_28 = arith.constant 5.000000e-01 : f32
      %44 = vector.broadcast %cst_28 : f32 to vector<1x128xf32>
      %45 = arith.mulf %43, %44 : vector<1x128xf32>
      %46 = arith.mulf %42, %42 : vector<1x128xf32>
      %47 = arith.subf %45, %46 : vector<1x128xf32>
      %cst_29 = arith.constant 0.000000e+00 : f32
      %48 = vector.broadcast %cst_29 : f32 to vector<1x128xf32>
      %49 = arith.maximumf %47, %48 : vector<1x128xf32>
      %c0_30 = arith.constant 0 : index
      %c0_31 = arith.constant 0 : index
      %50 = vector.load %arg4[%c0_30, %c0_31] : memref<1x128xf32, #tpu.memory_space<vmem>>, vector<1x128xf32>
      %cst_32 = arith.constant 9.99999974E-6 : f32
      %51 = vector.broadcast %cst_32 : f32 to vector<1x128xf32>
      %52 = arith.addf %49, %51 : vector<1x128xf32>
      %53 = math.rsqrt %52 : vector<1x128xf32>
      %54 = arith.mulf %50, %53 : vector<1x128xf32>
      %c0_33 = arith.constant 0 : index
      %c0_34 = arith.constant 0 : index
      %55 = vector.load %arg5[%c0_33, %c0_34] : memref<1x128xf32, #tpu.memory_space<vmem>>, vector<1x128xf32>
      %56 = arith.mulf %42, %54 : vector<1x128xf32>
      %57 = arith.subf %55, %56 : vector<1x128xf32>
      %c0_35 = arith.constant 0 : index
      %c0_36 = arith.constant 0 : index
      %c0_37 = arith.constant 0 : index
      %58 = vector.load %arg7[%c0_35, %c0_36, %c0_37] : memref<1x8x128xf32, #tpu.memory_space<vmem>>, vector<1x8x128xf32>
      %59 = vector.shape_cast %58 : vector<1x8x128xf32> to vector<8x128xf32>
      %60 = vector.broadcast %54 : vector<1x128xf32> to vector<8x128xf32>
      %61 = arith.mulf %59, %60 : vector<8x128xf32>
      %62 = vector.broadcast %57 : vector<1x128xf32> to vector<8x128xf32>
      %63 = arith.addf %61, %62 : vector<8x128xf32>
      %64 = vector.extract_strided_slice %63 {offsets = [0, 0], sizes = [8, 64], strides = [1, 1]} : vector<8x128xf32> to vector<8x64xf32>
      %c0_38 = arith.constant 0 : index
      %c0_39 = arith.constant 0 : index
      %65 = vector.load %arg6[%c0_38, %c0_39] : memref<8x64xf32, #tpu.memory_space<vmem>>, vector<8x64xf32>
      tpu.vector_store %arg6[%c0_38, %c0_39], %64 {strides = array<i32>} : memref<8x64xf32, #tpu.memory_space<vmem>>, vector<8x64xf32>,
    } else {
    }
    return
  }
  func.func @transform_0(%arg0: i32) -> (i32, i32, i32) {
    %c0_i32 = arith.constant 0 : i32
    %c0_i32_0 = arith.constant 0 : i32
    %c0_i32_1 = arith.constant 0 : i32
    return %c0_i32, %arg0, %c0_i32_0 : i32, i32, i32
  }
  func.func @transform_1(%arg0: i32) -> (i32, i32) {
    %c0_i32 = arith.constant 0 : i32
    %c0_i32_0 = arith.constant 0 : i32
    %c0_i32_1 = arith.constant 0 : i32
    return %c0_i32, %c0_i32_0 : i32, i32
  }
  func.func @transform_2(%arg0: i32) -> (i32, i32) {
    %c0_i32 = arith.constant 0 : i32
    %c0_i32_0 = arith.constant 0 : i32
    %c0_i32_1 = arith.constant 0 : i32
    return %c0_i32, %c0_i32_0 : i32, i32
  }
  func.func @transform_3(%arg0: i32) -> (i32, i32) {
    %c0_i32 = arith.constant 0 : i32
    %c0_i32_0 = arith.constant 0 : i32
    %c0_i32_1 = arith.constant 0 : i32
    return %c0_i32, %c0_i32_0 : i32, i32
  }
  func.func @transform_4(%arg0: i32) -> (i32, i32) {
    %c0_i32 = arith.constant 0 : i32
    %c0_i32_0 = arith.constant 0 : i32
    %c0_i32_1 = arith.constant 0 : i32
    return %c0_i32, %c0_i32_0 : i32, i32
  }
  func.func @transform_5(%arg0: i32) -> (i32, i32) {
    %c0_i32 = arith.constant 0 : i32
    %c0_i32_0 = arith.constant 0 : i32
    %c0_i32_1 = arith.constant 0 : i32
    return %c0_i32, %c0_i32_0 : i32, i32
  }
}

module attributes {stable_mosaic.version = 11 : i64} {
  func.func @fused_conv_bn_kernel(%arg0: i32, %arg1: memref<1x8x1152xbf16, #tpu.memory_space<vmem>>, %arg2: memref<1152x128xbf16, #tpu.memory_space<vmem>>, %arg3: memref<1x128xf32, #tpu.memory_space<vmem>>, %arg4: memref<1x128xf32, #tpu.memory_space<vmem>>, %arg5: memref<1x128xf32, #tpu.memory_space<vmem>>, %arg6: memref<8x32xf32, #tpu.memory_space<vmem>>, %arg7: memref<1x8x128xf32, #tpu.memory_space<vmem>>, %arg8: memref<1x128xf32, #tpu.memory_space<vmem>>, %arg9: memref<1x128xf32, #tpu.memory_space<vmem>>) attributes {dimension_semantics = [#tpu.dimension_semantics<arbitrary>], iteration_bounds = array<i64: 1>, scalar_prefetch = 0 : i64, scratch_operands = 3 : i64, tpu.core_type = #tpu.core_type<tc>, window_params = [{transform_indices = @transform_0, window_bounds = array<i64: 1, 8, 1152>}, {pipeline_mode = #tpu.pipeline_mode<synchronous>, transform_indices = @transform_1, window_bounds = array<i64: 1152, 128>}, {pipeline_mode = #tpu.pipeline_mode<synchronous>, transform_indices = @transform_2, window_bounds = array<i64: 1, 128>}, {pipeline_mode = #tpu.pipeline_mode<synchronous>, transform_indices = @transform_3, window_bounds = array<i64: 1, 128>}, {pipeline_mode = #tpu.pipeline_mode<synchronous>, transform_indices = @transform_4, window_bounds = array<i64: 1, 128>}, {pipeline_mode = #tpu.pipeline_mode<synchronous>, transform_indices = @transform_5, window_bounds = array<i64: 8, 32>}]} {
    %c0_i32 = arith.constant 0 : i32
    %0 = arith.cmpi eq, %arg0, %c0_i32 : i32
    %1 = arith.extui %0 : i1 to i32
    %c0_i32_0 = arith.constant 0 : i32
    %2 = arith.cmpi ne, %1, %c0_i32_0 : i32
    scf.if %2 {
      %cst_22 = arith.constant 0.000000e+00 : f32
      %30 = vector.broadcast %cst_22 : f32 to vector<1x128xf32>
      %c0_23 = arith.constant 0 : index
      %c0_24 = arith.constant 0 : index
      %31 = vector.load %arg8[%c0_23, %c0_24] : memref<1x128xf32, #tpu.memory_space<vmem>>, vector<1x128xf32>
      tpu.vector_store %arg8[%c0_23, %c0_24], %30 {strides = array<i32>} : memref<1x128xf32, #tpu.memory_space<vmem>>, vector<1x128xf32>,
      %cst_25 = arith.constant 0.000000e+00 : f32
      %32 = vector.broadcast %cst_25 : f32 to vector<1x128xf32>
      %c0_26 = arith.constant 0 : index
      %c0_27 = arith.constant 0 : index
      %33 = vector.load %arg9[%c0_26, %c0_27] : memref<1x128xf32, #tpu.memory_space<vmem>>, vector<1x128xf32>
      tpu.vector_store %arg9[%c0_26, %c0_27], %32 {strides = array<i32>} : memref<1x128xf32, #tpu.memory_space<vmem>>, vector<1x128xf32>,
    } else {
    }
    %c0 = arith.constant 0 : index
    %c0_1 = arith.constant 0 : index
    %c0_2 = arith.constant 0 : index
    %3 = vector.load %arg1[%c0, %c0_1, %c0_2] : memref<1x8x1152xbf16, #tpu.memory_space<vmem>>, vector<1x8x1152xbf16>
    %4 = vector.shape_cast %3 : vector<1x8x1152xbf16> to vector<8x1152xbf16>
    %c0_3 = arith.constant 0 : index
    %c0_4 = arith.constant 0 : index
    %5 = vector.load %arg2[%c0_3, %c0_4] : memref<1152x128xbf16, #tpu.memory_space<vmem>>, vector<1152x128xbf16>
    %cst = arith.constant dense<0.000000e+00> : vector<8x128xf32>
    %6 = tpu.matmul %4, %5, %cst {dimension_numbers = #tpu.dot_dimension_numbers<[1], [0], [0], [1], [0, 0, 1, 1], [], []>} : vector<8x1152xbf16>, vector<1152x128xbf16>, vector<8x128xf32> -> vector<8x128xf32>
    %c0_5 = arith.constant 0 : index
    %c0_6 = arith.constant 0 : index
    %7 = vector.load %arg3[%c0_5, %c0_6] : memref<1x128xf32, #tpu.memory_space<vmem>>, vector<1x128xf32>
    %8 = vector.broadcast %7 : vector<1x128xf32> to vector<8x128xf32>
    %9 = arith.addf %6, %8 : vector<8x128xf32>
    %cst_7 = arith.constant 0.000000e+00 : f32
    %10 = vector.broadcast %cst_7 : f32 to vector<8x128xf32>
    %11 = arith.maximumf %9, %10 : vector<8x128xf32>
    %12 = arith.index_cast %arg0 : i32 to index
    %c0_8 = arith.constant 0 : index
    %c0_9 = arith.constant 0 : index
    %13 = vector.load %arg7[%12, %c0_8, %c0_9] : memref<1x8x128xf32, #tpu.memory_space<vmem>>, vector<1x8x128xf32>
    %14 = vector.shape_cast %13 : vector<1x8x128xf32> to vector<8x128xf32>
    %15 = vector.shape_cast %11 : vector<8x128xf32> to vector<1x8x128xf32>
    tpu.vector_store %arg7[%12, %c0_8, %c0_9], %15 {strides = array<i32>} : memref<1x8x128xf32, #tpu.memory_space<vmem>>, vector<1x8x128xf32>,
    %c0_10 = arith.constant 0 : index
    %c0_11 = arith.constant 0 : index
    %16 = vector.load %arg8[%c0_10, %c0_11] : memref<1x128xf32, #tpu.memory_space<vmem>>, vector<1x128xf32>
    %cst_12 = arith.constant dense<0.000000e+00> : vector<128xf32>
    %17 = vector.multi_reduction <add>, %11, %cst_12 [0] : vector<8x128xf32> to vector<128xf32>
    %18 = vector.shape_cast %17 : vector<128xf32> to vector<1x128xf32>
    %19 = arith.addf %16, %18 : vector<1x128xf32>
    %c0_13 = arith.constant 0 : index
    %c0_14 = arith.constant 0 : index
    %20 = vector.load %arg8[%c0_13, %c0_14] : memref<1x128xf32, #tpu.memory_space<vmem>>, vector<1x128xf32>
    tpu.vector_store %arg8[%c0_13, %c0_14], %19 {strides = array<i32>} : memref<1x128xf32, #tpu.memory_space<vmem>>, vector<1x128xf32>,
    %c0_15 = arith.constant 0 : index
    %c0_16 = arith.constant 0 : index
    %21 = vector.load %arg9[%c0_15, %c0_16] : memref<1x128xf32, #tpu.memory_space<vmem>>, vector<1x128xf32>
    %22 = arith.mulf %11, %11 : vector<8x128xf32>
    %cst_17 = arith.constant dense<0.000000e+00> : vector<128xf32>
    %23 = vector.multi_reduction <add>, %22, %cst_17 [0] : vector<8x128xf32> to vector<128xf32>
    %24 = vector.shape_cast %23 : vector<128xf32> to vector<1x128xf32>
    %25 = arith.addf %21, %24 : vector<1x128xf32>
    %c0_18 = arith.constant 0 : index
    %c0_19 = arith.constant 0 : index
    %26 = vector.load %arg9[%c0_18, %c0_19] : memref<1x128xf32, #tpu.memory_space<vmem>>, vector<1x128xf32>
    tpu.vector_store %arg9[%c0_18, %c0_19], %25 {strides = array<i32>} : memref<1x128xf32, #tpu.memory_space<vmem>>, vector<1x128xf32>,
    %c0_i32_20 = arith.constant 0 : i32
    %27 = arith.cmpi eq, %arg0, %c0_i32_20 : i32
    %28 = arith.extui %27 : i1 to i32
    %c0_i32_21 = arith.constant 0 : i32
    %29 = arith.cmpi ne, %28, %c0_i32_21 : i32
    scf.if %29 {
      %c0_22 = arith.constant 0 : index
      %c0_23 = arith.constant 0 : index
      %30 = vector.load %arg8[%c0_22, %c0_23] : memref<1x128xf32, #tpu.memory_space<vmem>>, vector<1x128xf32>
      %cst_24 = arith.constant 1.250000e-01 : f32
      %31 = vector.broadcast %cst_24 : f32 to vector<1x128xf32>
      %32 = arith.mulf %30, %31 : vector<1x128xf32>
      %c0_25 = arith.constant 0 : index
      %c0_26 = arith.constant 0 : index
      %33 = vector.load %arg9[%c0_25, %c0_26] : memref<1x128xf32, #tpu.memory_space<vmem>>, vector<1x128xf32>
      %cst_27 = arith.constant 1.250000e-01 : f32
      %34 = vector.broadcast %cst_27 : f32 to vector<1x128xf32>
      %35 = arith.mulf %33, %34 : vector<1x128xf32>
      %36 = arith.mulf %32, %32 : vector<1x128xf32>
      %37 = arith.subf %35, %36 : vector<1x128xf32>
      %cst_28 = arith.constant 0.000000e+00 : f32
      %38 = vector.broadcast %cst_28 : f32 to vector<1x128xf32>
      %39 = arith.maximumf %37, %38 : vector<1x128xf32>
      %c0_29 = arith.constant 0 : index
      %c0_30 = arith.constant 0 : index
      %40 = vector.load %arg4[%c0_29, %c0_30] : memref<1x128xf32, #tpu.memory_space<vmem>>, vector<1x128xf32>
      %cst_31 = arith.constant 9.99999974E-6 : f32
      %41 = vector.broadcast %cst_31 : f32 to vector<1x128xf32>
      %42 = arith.addf %39, %41 : vector<1x128xf32>
      %43 = math.rsqrt %42 : vector<1x128xf32>
      %44 = arith.mulf %40, %43 : vector<1x128xf32>
      %c0_32 = arith.constant 0 : index
      %c0_33 = arith.constant 0 : index
      %45 = vector.load %arg5[%c0_32, %c0_33] : memref<1x128xf32, #tpu.memory_space<vmem>>, vector<1x128xf32>
      %46 = arith.mulf %32, %44 : vector<1x128xf32>
      %47 = arith.subf %45, %46 : vector<1x128xf32>
      %c0_34 = arith.constant 0 : index
      %c0_35 = arith.constant 0 : index
      %c0_36 = arith.constant 0 : index
      %48 = vector.load %arg7[%c0_34, %c0_35, %c0_36] : memref<1x8x128xf32, #tpu.memory_space<vmem>>, vector<1x8x128xf32>
      %49 = vector.shape_cast %48 : vector<1x8x128xf32> to vector<8x128xf32>
      %50 = vector.broadcast %44 : vector<1x128xf32> to vector<8x128xf32>
      %51 = arith.mulf %49, %50 : vector<8x128xf32>
      %52 = vector.broadcast %47 : vector<1x128xf32> to vector<8x128xf32>
      %53 = arith.addf %51, %52 : vector<8x128xf32>
      %54 = vector.extract_strided_slice %53 {offsets = [0, 0], sizes = [8, 32], strides = [1, 1]} : vector<8x128xf32> to vector<8x32xf32>
      %c0_37 = arith.constant 0 : index
      %c0_38 = arith.constant 0 : index
      %55 = vector.load %arg6[%c0_37, %c0_38] : memref<8x32xf32, #tpu.memory_space<vmem>>, vector<8x32xf32>
      tpu.vector_store %arg6[%c0_37, %c0_38], %54 {strides = array<i32>} : memref<8x32xf32, #tpu.memory_space<vmem>>, vector<8x32xf32>,
    } else {
    }
    return
  }
  func.func @transform_0(%arg0: i32) -> (i32, i32, i32) {
    %c0_i32 = arith.constant 0 : i32
    %c0_i32_0 = arith.constant 0 : i32
    %c0_i32_1 = arith.constant 0 : i32
    return %c0_i32, %arg0, %c0_i32_0 : i32, i32, i32
  }
  func.func @transform_1(%arg0: i32) -> (i32, i32) {
    %c0_i32 = arith.constant 0 : i32
    %c0_i32_0 = arith.constant 0 : i32
    %c0_i32_1 = arith.constant 0 : i32
    return %c0_i32, %c0_i32_0 : i32, i32
  }
  func.func @transform_2(%arg0: i32) -> (i32, i32) {
    %c0_i32 = arith.constant 0 : i32
    %c0_i32_0 = arith.constant 0 : i32
    %c0_i32_1 = arith.constant 0 : i32
    return %c0_i32, %c0_i32_0 : i32, i32
  }
  func.func @transform_3(%arg0: i32) -> (i32, i32) {
    %c0_i32 = arith.constant 0 : i32
    %c0_i32_0 = arith.constant 0 : i32
    %c0_i32_1 = arith.constant 0 : i32
    return %c0_i32, %c0_i32_0 : i32, i32
  }
  func.func @transform_4(%arg0: i32) -> (i32, i32) {
    %c0_i32 = arith.constant 0 : i32
    %c0_i32_0 = arith.constant 0 : i32
    %c0_i32_1 = arith.constant 0 : i32
    return %c0_i32, %c0_i32_0 : i32, i32
  }
  func.func @transform_5(%arg0: i32) -> (i32, i32) {
    %c0_i32 = arith.constant 0 : i32
    %c0_i32_0 = arith.constant 0 : i32
    %c0_i32_1 = arith.constant 0 : i32
    return %c0_i32, %c0_i32_0 : i32, i32
  }
}

module attributes {stable_mosaic.version = 11 : i64} {
  func.func @fused_conv_bn_kernel(%arg0: i32, %arg1: memref<1x32x640xbf16, #tpu.memory_space<vmem>>, %arg2: memref<640x128xbf16, #tpu.memory_space<vmem>>, %arg3: memref<1x128xf32, #tpu.memory_space<vmem>>, %arg4: memref<1x128xf32, #tpu.memory_space<vmem>>, %arg5: memref<1x128xf32, #tpu.memory_space<vmem>>, %arg6: memref<32x16xf32, #tpu.memory_space<vmem>>, %arg7: memref<1x32x128xf32, #tpu.memory_space<vmem>>, %arg8: memref<1x128xf32, #tpu.memory_space<vmem>>, %arg9: memref<1x128xf32, #tpu.memory_space<vmem>>) attributes {dimension_semantics = [#tpu.dimension_semantics<arbitrary>], iteration_bounds = array<i64: 1>, scalar_prefetch = 0 : i64, scratch_operands = 3 : i64, tpu.core_type = #tpu.core_type<tc>, window_params = [{transform_indices = @transform_0, window_bounds = array<i64: 1, 32, 640>}, {pipeline_mode = #tpu.pipeline_mode<synchronous>, transform_indices = @transform_1, window_bounds = array<i64: 640, 128>}, {pipeline_mode = #tpu.pipeline_mode<synchronous>, transform_indices = @transform_2, window_bounds = array<i64: 1, 128>}, {pipeline_mode = #tpu.pipeline_mode<synchronous>, transform_indices = @transform_3, window_bounds = array<i64: 1, 128>}, {pipeline_mode = #tpu.pipeline_mode<synchronous>, transform_indices = @transform_4, window_bounds = array<i64: 1, 128>}, {pipeline_mode = #tpu.pipeline_mode<synchronous>, transform_indices = @transform_5, window_bounds = array<i64: 32, 16>}]} {
    %c0_i32 = arith.constant 0 : i32
    %0 = arith.cmpi eq, %arg0, %c0_i32 : i32
    %1 = arith.extui %0 : i1 to i32
    %c0_i32_0 = arith.constant 0 : i32
    %2 = arith.cmpi ne, %1, %c0_i32_0 : i32
    scf.if %2 {
      %cst_22 = arith.constant 0.000000e+00 : f32
      %30 = vector.broadcast %cst_22 : f32 to vector<1x128xf32>
      %c0_23 = arith.constant 0 : index
      %c0_24 = arith.constant 0 : index
      %31 = vector.load %arg8[%c0_23, %c0_24] : memref<1x128xf32, #tpu.memory_space<vmem>>, vector<1x128xf32>
      tpu.vector_store %arg8[%c0_23, %c0_24], %30 {strides = array<i32>} : memref<1x128xf32, #tpu.memory_space<vmem>>, vector<1x128xf32>,
      %cst_25 = arith.constant 0.000000e+00 : f32
      %32 = vector.broadcast %cst_25 : f32 to vector<1x128xf32>
      %c0_26 = arith.constant 0 : index
      %c0_27 = arith.constant 0 : index
      %33 = vector.load %arg9[%c0_26, %c0_27] : memref<1x128xf32, #tpu.memory_space<vmem>>, vector<1x128xf32>
      tpu.vector_store %arg9[%c0_26, %c0_27], %32 {strides = array<i32>} : memref<1x128xf32, #tpu.memory_space<vmem>>, vector<1x128xf32>,
    } else {
    }
    %c0 = arith.constant 0 : index
    %c0_1 = arith.constant 0 : index
    %c0_2 = arith.constant 0 : index
    %3 = vector.load %arg1[%c0, %c0_1, %c0_2] : memref<1x32x640xbf16, #tpu.memory_space<vmem>>, vector<1x32x640xbf16>
    %4 = vector.shape_cast %3 : vector<1x32x640xbf16> to vector<32x640xbf16>
    %c0_3 = arith.constant 0 : index
    %c0_4 = arith.constant 0 : index
    %5 = vector.load %arg2[%c0_3, %c0_4] : memref<640x128xbf16, #tpu.memory_space<vmem>>, vector<640x128xbf16>
    %cst = arith.constant dense<0.000000e+00> : vector<32x128xf32>
    %6 = tpu.matmul %4, %5, %cst {dimension_numbers = #tpu.dot_dimension_numbers<[1], [0], [0], [1], [0, 0, 1, 1], [], []>} : vector<32x640xbf16>, vector<640x128xbf16>, vector<32x128xf32> -> vector<32x128xf32>
    %c0_5 = arith.constant 0 : index
    %c0_6 = arith.constant 0 : index
    %7 = vector.load %arg3[%c0_5, %c0_6] : memref<1x128xf32, #tpu.memory_space<vmem>>, vector<1x128xf32>
    %8 = vector.broadcast %7 : vector<1x128xf32> to vector<32x128xf32>
    %9 = arith.addf %6, %8 : vector<32x128xf32>
    %cst_7 = arith.constant 0.000000e+00 : f32
    %10 = vector.broadcast %cst_7 : f32 to vector<32x128xf32>
    %11 = arith.maximumf %9, %10 : vector<32x128xf32>
    %12 = arith.index_cast %arg0 : i32 to index
    %c0_8 = arith.constant 0 : index
    %c0_9 = arith.constant 0 : index
    %13 = vector.load %arg7[%12, %c0_8, %c0_9] : memref<1x32x128xf32, #tpu.memory_space<vmem>>, vector<1x32x128xf32>
    %14 = vector.shape_cast %13 : vector<1x32x128xf32> to vector<32x128xf32>
    %15 = vector.shape_cast %11 : vector<32x128xf32> to vector<1x32x128xf32>
    tpu.vector_store %arg7[%12, %c0_8, %c0_9], %15 {strides = array<i32>} : memref<1x32x128xf32, #tpu.memory_space<vmem>>, vector<1x32x128xf32>,
    %c0_10 = arith.constant 0 : index
    %c0_11 = arith.constant 0 : index
    %16 = vector.load %arg8[%c0_10, %c0_11] : memref<1x128xf32, #tpu.memory_space<vmem>>, vector<1x128xf32>
    %cst_12 = arith.constant dense<0.000000e+00> : vector<128xf32>
    %17 = vector.multi_reduction <add>, %11, %cst_12 [0] : vector<32x128xf32> to vector<128xf32>
    %18 = vector.shape_cast %17 : vector<128xf32> to vector<1x128xf32>
    %19 = arith.addf %16, %18 : vector<1x128xf32>
    %c0_13 = arith.constant 0 : index
    %c0_14 = arith.constant 0 : index
    %20 = vector.load %arg8[%c0_13, %c0_14] : memref<1x128xf32, #tpu.memory_space<vmem>>, vector<1x128xf32>
    tpu.vector_store %arg8[%c0_13, %c0_14], %19 {strides = array<i32>} : memref<1x128xf32, #tpu.memory_space<vmem>>, vector<1x128xf32>,
    %c0_15 = arith.constant 0 : index
    %c0_16 = arith.constant 0 : index
    %21 = vector.load %arg9[%c0_15, %c0_16] : memref<1x128xf32, #tpu.memory_space<vmem>>, vector<1x128xf32>
    %22 = arith.mulf %11, %11 : vector<32x128xf32>
    %cst_17 = arith.constant dense<0.000000e+00> : vector<128xf32>
    %23 = vector.multi_reduction <add>, %22, %cst_17 [0] : vector<32x128xf32> to vector<128xf32>
    %24 = vector.shape_cast %23 : vector<128xf32> to vector<1x128xf32>
    %25 = arith.addf %21, %24 : vector<1x128xf32>
    %c0_18 = arith.constant 0 : index
    %c0_19 = arith.constant 0 : index
    %26 = vector.load %arg9[%c0_18, %c0_19] : memref<1x128xf32, #tpu.memory_space<vmem>>, vector<1x128xf32>
    tpu.vector_store %arg9[%c0_18, %c0_19], %25 {strides = array<i32>} : memref<1x128xf32, #tpu.memory_space<vmem>>, vector<1x128xf32>,
    %c0_i32_20 = arith.constant 0 : i32
    %27 = arith.cmpi eq, %arg0, %c0_i32_20 : i32
    %28 = arith.extui %27 : i1 to i32
    %c0_i32_21 = arith.constant 0 : i32
    %29 = arith.cmpi ne, %28, %c0_i32_21 : i32
    scf.if %29 {
      %c0_22 = arith.constant 0 : index
      %c0_23 = arith.constant 0 : index
      %30 = vector.load %arg8[%c0_22, %c0_23] : memref<1x128xf32, #tpu.memory_space<vmem>>, vector<1x128xf32>
      %cst_24 = arith.constant 3.125000e-02 : f32
      %31 = vector.broadcast %cst_24 : f32 to vector<1x128xf32>
      %32 = arith.mulf %30, %31 : vector<1x128xf32>
      %c0_25 = arith.constant 0 : index
      %c0_26 = arith.constant 0 : index
      %33 = vector.load %arg9[%c0_25, %c0_26] : memref<1x128xf32, #tpu.memory_space<vmem>>, vector<1x128xf32>
      %cst_27 = arith.constant 3.125000e-02 : f32
      %34 = vector.broadcast %cst_27 : f32 to vector<1x128xf32>
      %35 = arith.mulf %33, %34 : vector<1x128xf32>
      %36 = arith.mulf %32, %32 : vector<1x128xf32>
      %37 = arith.subf %35, %36 : vector<1x128xf32>
      %cst_28 = arith.constant 0.000000e+00 : f32
      %38 = vector.broadcast %cst_28 : f32 to vector<1x128xf32>
      %39 = arith.maximumf %37, %38 : vector<1x128xf32>
      %c0_29 = arith.constant 0 : index
      %c0_30 = arith.constant 0 : index
      %40 = vector.load %arg4[%c0_29, %c0_30] : memref<1x128xf32, #tpu.memory_space<vmem>>, vector<1x128xf32>
      %cst_31 = arith.constant 9.99999974E-6 : f32
      %41 = vector.broadcast %cst_31 : f32 to vector<1x128xf32>
      %42 = arith.addf %39, %41 : vector<1x128xf32>
      %43 = math.rsqrt %42 : vector<1x128xf32>
      %44 = arith.mulf %40, %43 : vector<1x128xf32>
      %c0_32 = arith.constant 0 : index
      %c0_33 = arith.constant 0 : index
      %45 = vector.load %arg5[%c0_32, %c0_33] : memref<1x128xf32, #tpu.memory_space<vmem>>, vector<1x128xf32>
      %46 = arith.mulf %32, %44 : vector<1x128xf32>
      %47 = arith.subf %45, %46 : vector<1x128xf32>
      %c0_34 = arith.constant 0 : index
      %c0_35 = arith.constant 0 : index
      %c0_36 = arith.constant 0 : index
      %48 = vector.load %arg7[%c0_34, %c0_35, %c0_36] : memref<1x32x128xf32, #tpu.memory_space<vmem>>, vector<1x32x128xf32>
      %49 = vector.shape_cast %48 : vector<1x32x128xf32> to vector<32x128xf32>
      %50 = vector.broadcast %44 : vector<1x128xf32> to vector<32x128xf32>
      %51 = arith.mulf %49, %50 : vector<32x128xf32>
      %52 = vector.broadcast %47 : vector<1x128xf32> to vector<32x128xf32>
      %53 = arith.addf %51, %52 : vector<32x128xf32>
      %54 = vector.extract_strided_slice %53 {offsets = [0, 0], sizes = [32, 16], strides = [1, 1]} : vector<32x128xf32> to vector<32x16xf32>
      %c0_37 = arith.constant 0 : index
      %c0_38 = arith.constant 0 : index
      %55 = vector.load %arg6[%c0_37, %c0_38] : memref<32x16xf32, #tpu.memory_space<vmem>>, vector<32x16xf32>
      tpu.vector_store %arg6[%c0_37, %c0_38], %54 {strides = array<i32>} : memref<32x16xf32, #tpu.memory_space<vmem>>, vector<32x16xf32>,
    } else {
    }
    return
  }
  func.func @transform_0(%arg0: i32) -> (i32, i32, i32) {
    %c0_i32 = arith.constant 0 : i32
    %c0_i32_0 = arith.constant 0 : i32
    %c0_i32_1 = arith.constant 0 : i32
    return %c0_i32, %arg0, %c0_i32_0 : i32, i32, i32
  }
  func.func @transform_1(%arg0: i32) -> (i32, i32) {
    %c0_i32 = arith.constant 0 : i32
    %c0_i32_0 = arith.constant 0 : i32
    %c0_i32_1 = arith.constant 0 : i32
    return %c0_i32, %c0_i32_0 : i32, i32
  }
  func.func @transform_2(%arg0: i32) -> (i32, i32) {
    %c0_i32 = arith.constant 0 : i32
    %c0_i32_0 = arith.constant 0 : i32
    %c0_i32_1 = arith.constant 0 : i32
    return %c0_i32, %c0_i32_0 : i32, i32
  }
  func.func @transform_3(%arg0: i32) -> (i32, i32) {
    %c0_i32 = arith.constant 0 : i32
    %c0_i32_0 = arith.constant 0 : i32
    %c0_i32_1 = arith.constant 0 : i32
    return %c0_i32, %c0_i32_0 : i32, i32
  }
  func.func @transform_4(%arg0: i32) -> (i32, i32) {
    %c0_i32 = arith.constant 0 : i32
    %c0_i32_0 = arith.constant 0 : i32
    %c0_i32_1 = arith.constant 0 : i32
    return %c0_i32, %c0_i32_0 : i32, i32
  }
  func.func @transform_5(%arg0: i32) -> (i32, i32) {
    %c0_i32 = arith.constant 0 : i32
    %c0_i32_0 = arith.constant 0 : i32
    %c0_i32_1 = arith.constant 0 : i32
    return %c0_i32, %c0_i32_0 : i32, i32
  }
}

module attributes {stable_mosaic.version = 11 : i64} {
  func.func @fused_conv_bn_kernel(%arg0: i32, %arg1: memref<1x128x384xbf16, #tpu.memory_space<vmem>>, %arg2: memref<384x128xbf16, #tpu.memory_space<vmem>>, %arg3: memref<1x128xf32, #tpu.memory_space<vmem>>, %arg4: memref<1x128xf32, #tpu.memory_space<vmem>>, %arg5: memref<1x128xf32, #tpu.memory_space<vmem>>, %arg6: memref<128x8xf32, #tpu.memory_space<vmem>>, %arg7: memref<1x128x128xf32, #tpu.memory_space<vmem>>, %arg8: memref<1x128xf32, #tpu.memory_space<vmem>>, %arg9: memref<1x128xf32, #tpu.memory_space<vmem>>) attributes {dimension_semantics = [#tpu.dimension_semantics<arbitrary>], iteration_bounds = array<i64: 1>, scalar_prefetch = 0 : i64, scratch_operands = 3 : i64, tpu.core_type = #tpu.core_type<tc>, window_params = [{transform_indices = @transform_0, window_bounds = array<i64: 1, 128, 384>}, {pipeline_mode = #tpu.pipeline_mode<synchronous>, transform_indices = @transform_1, window_bounds = array<i64: 384, 128>}, {pipeline_mode = #tpu.pipeline_mode<synchronous>, transform_indices = @transform_2, window_bounds = array<i64: 1, 128>}, {pipeline_mode = #tpu.pipeline_mode<synchronous>, transform_indices = @transform_3, window_bounds = array<i64: 1, 128>}, {pipeline_mode = #tpu.pipeline_mode<synchronous>, transform_indices = @transform_4, window_bounds = array<i64: 1, 128>}, {pipeline_mode = #tpu.pipeline_mode<synchronous>, transform_indices = @transform_5, window_bounds = array<i64: 128, 8>}]} {
    %c0_i32 = arith.constant 0 : i32
    %0 = arith.cmpi eq, %arg0, %c0_i32 : i32
    %1 = arith.extui %0 : i1 to i32
    %c0_i32_0 = arith.constant 0 : i32
    %2 = arith.cmpi ne, %1, %c0_i32_0 : i32
    scf.if %2 {
      %cst_22 = arith.constant 0.000000e+00 : f32
      %30 = vector.broadcast %cst_22 : f32 to vector<1x128xf32>
      %c0_23 = arith.constant 0 : index
      %c0_24 = arith.constant 0 : index
      %31 = vector.load %arg8[%c0_23, %c0_24] : memref<1x128xf32, #tpu.memory_space<vmem>>, vector<1x128xf32>
      tpu.vector_store %arg8[%c0_23, %c0_24], %30 {strides = array<i32>} : memref<1x128xf32, #tpu.memory_space<vmem>>, vector<1x128xf32>,
      %cst_25 = arith.constant 0.000000e+00 : f32
      %32 = vector.broadcast %cst_25 : f32 to vector<1x128xf32>
      %c0_26 = arith.constant 0 : index
      %c0_27 = arith.constant 0 : index
      %33 = vector.load %arg9[%c0_26, %c0_27] : memref<1x128xf32, #tpu.memory_space<vmem>>, vector<1x128xf32>
      tpu.vector_store %arg9[%c0_26, %c0_27], %32 {strides = array<i32>} : memref<1x128xf32, #tpu.memory_space<vmem>>, vector<1x128xf32>,
    } else {
    }
    %c0 = arith.constant 0 : index
    %c0_1 = arith.constant 0 : index
    %c0_2 = arith.constant 0 : index
    %3 = vector.load %arg1[%c0, %c0_1, %c0_2] : memref<1x128x384xbf16, #tpu.memory_space<vmem>>, vector<1x128x384xbf16>
    %4 = vector.shape_cast %3 : vector<1x128x384xbf16> to vector<128x384xbf16>
    %c0_3 = arith.constant 0 : index
    %c0_4 = arith.constant 0 : index
    %5 = vector.load %arg2[%c0_3, %c0_4] : memref<384x128xbf16, #tpu.memory_space<vmem>>, vector<384x128xbf16>
    %cst = arith.constant dense<0.000000e+00> : vector<128x128xf32>
    %6 = tpu.matmul %4, %5, %cst {dimension_numbers = #tpu.dot_dimension_numbers<[1], [0], [0], [1], [0, 0, 1, 1], [], []>} : vector<128x384xbf16>, vector<384x128xbf16>, vector<128x128xf32> -> vector<128x128xf32>
    %c0_5 = arith.constant 0 : index
    %c0_6 = arith.constant 0 : index
    %7 = vector.load %arg3[%c0_5, %c0_6] : memref<1x128xf32, #tpu.memory_space<vmem>>, vector<1x128xf32>
    %8 = vector.broadcast %7 : vector<1x128xf32> to vector<128x128xf32>
    %9 = arith.addf %6, %8 : vector<128x128xf32>
    %cst_7 = arith.constant 0.000000e+00 : f32
    %10 = vector.broadcast %cst_7 : f32 to vector<128x128xf32>
    %11 = arith.maximumf %9, %10 : vector<128x128xf32>
    %12 = arith.index_cast %arg0 : i32 to index
    %c0_8 = arith.constant 0 : index
    %c0_9 = arith.constant 0 : index
    %13 = vector.load %arg7[%12, %c0_8, %c0_9] : memref<1x128x128xf32, #tpu.memory_space<vmem>>, vector<1x128x128xf32>
    %14 = vector.shape_cast %13 : vector<1x128x128xf32> to vector<128x128xf32>
    %15 = vector.shape_cast %11 : vector<128x128xf32> to vector<1x128x128xf32>
    tpu.vector_store %arg7[%12, %c0_8, %c0_9], %15 {strides = array<i32>} : memref<1x128x128xf32, #tpu.memory_space<vmem>>, vector<1x128x128xf32>,
    %c0_10 = arith.constant 0 : index
    %c0_11 = arith.constant 0 : index
    %16 = vector.load %arg8[%c0_10, %c0_11] : memref<1x128xf32, #tpu.memory_space<vmem>>, vector<1x128xf32>
    %cst_12 = arith.constant dense<0.000000e+00> : vector<128xf32>
    %17 = vector.multi_reduction <add>, %11, %cst_12 [0] : vector<128x128xf32> to vector<128xf32>
    %18 = vector.shape_cast %17 : vector<128xf32> to vector<1x128xf32>
    %19 = arith.addf %16, %18 : vector<1x128xf32>
    %c0_13 = arith.constant 0 : index
    %c0_14 = arith.constant 0 : index
    %20 = vector.load %arg8[%c0_13, %c0_14] : memref<1x128xf32, #tpu.memory_space<vmem>>, vector<1x128xf32>
    tpu.vector_store %arg8[%c0_13, %c0_14], %19 {strides = array<i32>} : memref<1x128xf32, #tpu.memory_space<vmem>>, vector<1x128xf32>,
    %c0_15 = arith.constant 0 : index
    %c0_16 = arith.constant 0 : index
    %21 = vector.load %arg9[%c0_15, %c0_16] : memref<1x128xf32, #tpu.memory_space<vmem>>, vector<1x128xf32>
    %22 = arith.mulf %11, %11 : vector<128x128xf32>
    %cst_17 = arith.constant dense<0.000000e+00> : vector<128xf32>
    %23 = vector.multi_reduction <add>, %22, %cst_17 [0] : vector<128x128xf32> to vector<128xf32>
    %24 = vector.shape_cast %23 : vector<128xf32> to vector<1x128xf32>
    %25 = arith.addf %21, %24 : vector<1x128xf32>
    %c0_18 = arith.constant 0 : index
    %c0_19 = arith.constant 0 : index
    %26 = vector.load %arg9[%c0_18, %c0_19] : memref<1x128xf32, #tpu.memory_space<vmem>>, vector<1x128xf32>
    tpu.vector_store %arg9[%c0_18, %c0_19], %25 {strides = array<i32>} : memref<1x128xf32, #tpu.memory_space<vmem>>, vector<1x128xf32>,
    %c0_i32_20 = arith.constant 0 : i32
    %27 = arith.cmpi eq, %arg0, %c0_i32_20 : i32
    %28 = arith.extui %27 : i1 to i32
    %c0_i32_21 = arith.constant 0 : i32
    %29 = arith.cmpi ne, %28, %c0_i32_21 : i32
    scf.if %29 {
      %c0_22 = arith.constant 0 : index
      %c0_23 = arith.constant 0 : index
      %30 = vector.load %arg8[%c0_22, %c0_23] : memref<1x128xf32, #tpu.memory_space<vmem>>, vector<1x128xf32>
      %cst_24 = arith.constant 7.812500e-03 : f32
      %31 = vector.broadcast %cst_24 : f32 to vector<1x128xf32>
      %32 = arith.mulf %30, %31 : vector<1x128xf32>
      %c0_25 = arith.constant 0 : index
      %c0_26 = arith.constant 0 : index
      %33 = vector.load %arg9[%c0_25, %c0_26] : memref<1x128xf32, #tpu.memory_space<vmem>>, vector<1x128xf32>
      %cst_27 = arith.constant 7.812500e-03 : f32
      %34 = vector.broadcast %cst_27 : f32 to vector<1x128xf32>
      %35 = arith.mulf %33, %34 : vector<1x128xf32>
      %36 = arith.mulf %32, %32 : vector<1x128xf32>
      %37 = arith.subf %35, %36 : vector<1x128xf32>
      %cst_28 = arith.constant 0.000000e+00 : f32
      %38 = vector.broadcast %cst_28 : f32 to vector<1x128xf32>
      %39 = arith.maximumf %37, %38 : vector<1x128xf32>
      %c0_29 = arith.constant 0 : index
      %c0_30 = arith.constant 0 : index
      %40 = vector.load %arg4[%c0_29, %c0_30] : memref<1x128xf32, #tpu.memory_space<vmem>>, vector<1x128xf32>
      %cst_31 = arith.constant 9.99999974E-6 : f32
      %41 = vector.broadcast %cst_31 : f32 to vector<1x128xf32>
      %42 = arith.addf %39, %41 : vector<1x128xf32>
      %43 = math.rsqrt %42 : vector<1x128xf32>
      %44 = arith.mulf %40, %43 : vector<1x128xf32>
      %c0_32 = arith.constant 0 : index
      %c0_33 = arith.constant 0 : index
      %45 = vector.load %arg5[%c0_32, %c0_33] : memref<1x128xf32, #tpu.memory_space<vmem>>, vector<1x128xf32>
      %46 = arith.mulf %32, %44 : vector<1x128xf32>
      %47 = arith.subf %45, %46 : vector<1x128xf32>
      %c0_34 = arith.constant 0 : index
      %c0_35 = arith.constant 0 : index
      %c0_36 = arith.constant 0 : index
      %48 = vector.load %arg7[%c0_34, %c0_35, %c0_36] : memref<1x128x128xf32, #tpu.memory_space<vmem>>, vector<1x128x128xf32>
      %49 = vector.shape_cast %48 : vector<1x128x128xf32> to vector<128x128xf32>
      %50 = vector.broadcast %44 : vector<1x128xf32> to vector<128x128xf32>
      %51 = arith.mulf %49, %50 : vector<128x128xf32>
      %52 = vector.broadcast %47 : vector<1x128xf32> to vector<128x128xf32>
      %53 = arith.addf %51, %52 : vector<128x128xf32>
      %54 = vector.extract_strided_slice %53 {offsets = [0, 0], sizes = [128, 8], strides = [1, 1]} : vector<128x128xf32> to vector<128x8xf32>
      %c0_37 = arith.constant 0 : index
      %c0_38 = arith.constant 0 : index
      %55 = vector.load %arg6[%c0_37, %c0_38] : memref<128x8xf32, #tpu.memory_space<vmem>>, vector<128x8xf32>
      tpu.vector_store %arg6[%c0_37, %c0_38], %54 {strides = array<i32>} : memref<128x8xf32, #tpu.memory_space<vmem>>, vector<128x8xf32>,
    } else {
    }
    return
  }
  func.func @transform_0(%arg0: i32) -> (i32, i32, i32) {
    %c0_i32 = arith.constant 0 : i32
    %c0_i32_0 = arith.constant 0 : i32
    %c0_i32_1 = arith.constant 0 : i32
    return %c0_i32, %arg0, %c0_i32_0 : i32, i32, i32
  }
  func.func @transform_1(%arg0: i32) -> (i32, i32) {
    %c0_i32 = arith.constant 0 : i32
    %c0_i32_0 = arith.constant 0 : i32
    %c0_i32_1 = arith.constant 0 : i32
    return %c0_i32, %c0_i32_0 : i32, i32
  }
  func.func @transform_2(%arg0: i32) -> (i32, i32) {
    %c0_i32 = arith.constant 0 : i32
    %c0_i32_0 = arith.constant 0 : i32
    %c0_i32_1 = arith.constant 0 : i32
    return %c0_i32, %c0_i32_0 : i32, i32
  }
  func.func @transform_3(%arg0: i32) -> (i32, i32) {
    %c0_i32 = arith.constant 0 : i32
    %c0_i32_0 = arith.constant 0 : i32
    %c0_i32_1 = arith.constant 0 : i32
    return %c0_i32, %c0_i32_0 : i32, i32
  }
  func.func @transform_4(%arg0: i32) -> (i32, i32) {
    %c0_i32 = arith.constant 0 : i32
    %c0_i32_0 = arith.constant 0 : i32
    %c0_i32_1 = arith.constant 0 : i32
    return %c0_i32, %c0_i32_0 : i32, i32
  }
  func.func @transform_5(%arg0: i32) -> (i32, i32) {
    %c0_i32 = arith.constant 0 : i32
    %c0_i32_0 = arith.constant 0 : i32
    %c0_i32_1 = arith.constant 0 : i32
    return %c0_i32, %c0_i32_0 : i32, i32
  }
}

module attributes {stable_mosaic.version = 11 : i64} {
  func.func @fused_conv_bn_kernel(%arg0: i32, %arg1: memref<1x256x256xbf16, #tpu.memory_space<vmem>>, %arg2: memref<256x128xbf16, #tpu.memory_space<vmem>>, %arg3: memref<1x128xf32, #tpu.memory_space<vmem>>, %arg4: memref<1x128xf32, #tpu.memory_space<vmem>>, %arg5: memref<1x128xf32, #tpu.memory_space<vmem>>, %arg6: memref<512x4xf32, #tpu.memory_space<vmem>>, %arg7: memref<2x256x128xf32, #tpu.memory_space<vmem>>, %arg8: memref<1x128xf32, #tpu.memory_space<vmem>>, %arg9: memref<1x128xf32, #tpu.memory_space<vmem>>) attributes {dimension_semantics = [#tpu.dimension_semantics<arbitrary>], iteration_bounds = array<i64: 2>, scalar_prefetch = 0 : i64, scratch_operands = 3 : i64, tpu.core_type = #tpu.core_type<tc>, window_params = [{transform_indices = @transform_0, window_bounds = array<i64: 1, 256, 256>}, {pipeline_mode = #tpu.pipeline_mode<synchronous>, transform_indices = @transform_1, window_bounds = array<i64: 256, 128>}, {pipeline_mode = #tpu.pipeline_mode<synchronous>, transform_indices = @transform_2, window_bounds = array<i64: 1, 128>}, {pipeline_mode = #tpu.pipeline_mode<synchronous>, transform_indices = @transform_3, window_bounds = array<i64: 1, 128>}, {pipeline_mode = #tpu.pipeline_mode<synchronous>, transform_indices = @transform_4, window_bounds = array<i64: 1, 128>}, {pipeline_mode = #tpu.pipeline_mode<synchronous>, transform_indices = @transform_5, window_bounds = array<i64: 512, 4>}]} {
    %c0_i32 = arith.constant 0 : i32
    %0 = arith.cmpi eq, %arg0, %c0_i32 : i32
    %1 = arith.extui %0 : i1 to i32
    %c0_i32_0 = arith.constant 0 : i32
    %2 = arith.cmpi ne, %1, %c0_i32_0 : i32
    scf.if %2 {
      %cst_21 = arith.constant 0.000000e+00 : f32
      %30 = vector.broadcast %cst_21 : f32 to vector<1x128xf32>
      %c0_22 = arith.constant 0 : index
      %c0_23 = arith.constant 0 : index
      %31 = vector.load %arg8[%c0_22, %c0_23] : memref<1x128xf32, #tpu.memory_space<vmem>>, vector<1x128xf32>
      tpu.vector_store %arg8[%c0_22, %c0_23], %30 {strides = array<i32>} : memref<1x128xf32, #tpu.memory_space<vmem>>, vector<1x128xf32>,
      %cst_24 = arith.constant 0.000000e+00 : f32
      %32 = vector.broadcast %cst_24 : f32 to vector<1x128xf32>
      %c0_25 = arith.constant 0 : index
      %c0_26 = arith.constant 0 : index
      %33 = vector.load %arg9[%c0_25, %c0_26] : memref<1x128xf32, #tpu.memory_space<vmem>>, vector<1x128xf32>
      tpu.vector_store %arg9[%c0_25, %c0_26], %32 {strides = array<i32>} : memref<1x128xf32, #tpu.memory_space<vmem>>, vector<1x128xf32>,
    } else {
    }
    %c0 = arith.constant 0 : index
    %c0_1 = arith.constant 0 : index
    %c0_2 = arith.constant 0 : index
    %3 = vector.load %arg1[%c0, %c0_1, %c0_2] : memref<1x256x256xbf16, #tpu.memory_space<vmem>>, vector<1x256x256xbf16>
    %4 = vector.shape_cast %3 : vector<1x256x256xbf16> to vector<256x256xbf16>
    %c0_3 = arith.constant 0 : index
    %c0_4 = arith.constant 0 : index
    %5 = vector.load %arg2[%c0_3, %c0_4] : memref<256x128xbf16, #tpu.memory_space<vmem>>, vector<256x128xbf16>
    %cst = arith.constant dense<0.000000e+00> : vector<256x128xf32>
    %6 = tpu.matmul %4, %5, %cst {dimension_numbers = #tpu.dot_dimension_numbers<[1], [0], [0], [1], [0, 0, 1, 1], [], []>} : vector<256x256xbf16>, vector<256x128xbf16>, vector<256x128xf32> -> vector<256x128xf32>
    %c0_5 = arith.constant 0 : index
    %c0_6 = arith.constant 0 : index
    %7 = vector.load %arg3[%c0_5, %c0_6] : memref<1x128xf32, #tpu.memory_space<vmem>>, vector<1x128xf32>
    %8 = vector.broadcast %7 : vector<1x128xf32> to vector<256x128xf32>
    %9 = arith.addf %6, %8 : vector<256x128xf32>
    %cst_7 = arith.constant 0.000000e+00 : f32
    %10 = vector.broadcast %cst_7 : f32 to vector<256x128xf32>
    %11 = arith.maximumf %9, %10 : vector<256x128xf32>
    %12 = arith.index_cast %arg0 : i32 to index
    %c0_8 = arith.constant 0 : index
    %c0_9 = arith.constant 0 : index
    %13 = vector.load %arg7[%12, %c0_8, %c0_9] : memref<2x256x128xf32, #tpu.memory_space<vmem>>, vector<1x256x128xf32>
    %14 = vector.shape_cast %13 : vector<1x256x128xf32> to vector<256x128xf32>
    %15 = vector.shape_cast %11 : vector<256x128xf32> to vector<1x256x128xf32>
    tpu.vector_store %arg7[%12, %c0_8, %c0_9], %15 {strides = array<i32>} : memref<2x256x128xf32, #tpu.memory_space<vmem>>, vector<1x256x128xf32>,
    %c0_10 = arith.constant 0 : index
    %c0_11 = arith.constant 0 : index
    %16 = vector.load %arg8[%c0_10, %c0_11] : memref<1x128xf32, #tpu.memory_space<vmem>>, vector<1x128xf32>
    %cst_12 = arith.constant dense<0.000000e+00> : vector<128xf32>
    %17 = vector.multi_reduction <add>, %11, %cst_12 [0] : vector<256x128xf32> to vector<128xf32>
    %18 = vector.shape_cast %17 : vector<128xf32> to vector<1x128xf32>
    %19 = arith.addf %16, %18 : vector<1x128xf32>
    %c0_13 = arith.constant 0 : index
    %c0_14 = arith.constant 0 : index
    %20 = vector.load %arg8[%c0_13, %c0_14] : memref<1x128xf32, #tpu.memory_space<vmem>>, vector<1x128xf32>
    tpu.vector_store %arg8[%c0_13, %c0_14], %19 {strides = array<i32>} : memref<1x128xf32, #tpu.memory_space<vmem>>, vector<1x128xf32>,
    %c0_15 = arith.constant 0 : index
    %c0_16 = arith.constant 0 : index
    %21 = vector.load %arg9[%c0_15, %c0_16] : memref<1x128xf32, #tpu.memory_space<vmem>>, vector<1x128xf32>
    %22 = arith.mulf %11, %11 : vector<256x128xf32>
    %cst_17 = arith.constant dense<0.000000e+00> : vector<128xf32>
    %23 = vector.multi_reduction <add>, %22, %cst_17 [0] : vector<256x128xf32> to vector<128xf32>
    %24 = vector.shape_cast %23 : vector<128xf32> to vector<1x128xf32>
    %25 = arith.addf %21, %24 : vector<1x128xf32>
    %c0_18 = arith.constant 0 : index
    %c0_19 = arith.constant 0 : index
    %26 = vector.load %arg9[%c0_18, %c0_19] : memref<1x128xf32, #tpu.memory_space<vmem>>, vector<1x128xf32>
    tpu.vector_store %arg9[%c0_18, %c0_19], %25 {strides = array<i32>} : memref<1x128xf32, #tpu.memory_space<vmem>>, vector<1x128xf32>,
    %c1_i32 = arith.constant 1 : i32
    %27 = arith.cmpi eq, %arg0, %c1_i32 : i32
    %28 = arith.extui %27 : i1 to i32
    %c0_i32_20 = arith.constant 0 : i32
    %29 = arith.cmpi ne, %28, %c0_i32_20 : i32
    scf.if %29 {
      %c0_21 = arith.constant 0 : index
      %c0_22 = arith.constant 0 : index
      %30 = vector.load %arg8[%c0_21, %c0_22] : memref<1x128xf32, #tpu.memory_space<vmem>>, vector<1x128xf32>
      %cst_23 = arith.constant 0.001953125 : f32
      %31 = vector.broadcast %cst_23 : f32 to vector<1x128xf32>
      %32 = arith.mulf %30, %31 : vector<1x128xf32>
      %c0_24 = arith.constant 0 : index
      %c0_25 = arith.constant 0 : index
      %33 = vector.load %arg9[%c0_24, %c0_25] : memref<1x128xf32, #tpu.memory_space<vmem>>, vector<1x128xf32>
      %cst_26 = arith.constant 0.001953125 : f32
      %34 = vector.broadcast %cst_26 : f32 to vector<1x128xf32>
      %35 = arith.mulf %33, %34 : vector<1x128xf32>
      %36 = arith.mulf %32, %32 : vector<1x128xf32>
      %37 = arith.subf %35, %36 : vector<1x128xf32>
      %cst_27 = arith.constant 0.000000e+00 : f32
      %38 = vector.broadcast %cst_27 : f32 to vector<1x128xf32>
      %39 = arith.maximumf %37, %38 : vector<1x128xf32>
      %c0_28 = arith.constant 0 : index
      %c0_29 = arith.constant 0 : index
      %40 = vector.load %arg4[%c0_28, %c0_29] : memref<1x128xf32, #tpu.memory_space<vmem>>, vector<1x128xf32>
      %cst_30 = arith.constant 9.99999974E-6 : f32
      %41 = vector.broadcast %cst_30 : f32 to vector<1x128xf32>
      %42 = arith.addf %39, %41 : vector<1x128xf32>
      %43 = math.rsqrt %42 : vector<1x128xf32>
      %44 = arith.mulf %40, %43 : vector<1x128xf32>
      %c0_31 = arith.constant 0 : index
      %c0_32 = arith.constant 0 : index
      %45 = vector.load %arg5[%c0_31, %c0_32] : memref<1x128xf32, #tpu.memory_space<vmem>>, vector<1x128xf32>
      %46 = arith.mulf %32, %44 : vector<1x128xf32>
      %47 = arith.subf %45, %46 : vector<1x128xf32>
      %c0_33 = arith.constant 0 : index
      %c0_34 = arith.constant 0 : index
      %c0_35 = arith.constant 0 : index
      %48 = vector.load %arg7[%c0_33, %c0_34, %c0_35] : memref<2x256x128xf32, #tpu.memory_space<vmem>>, vector<1x256x128xf32>
      %49 = vector.shape_cast %48 : vector<1x256x128xf32> to vector<256x128xf32>
      %50 = vector.broadcast %44 : vector<1x128xf32> to vector<256x128xf32>
      %51 = arith.mulf %49, %50 : vector<256x128xf32>
      %52 = vector.broadcast %47 : vector<1x128xf32> to vector<256x128xf32>
      %53 = arith.addf %51, %52 : vector<256x128xf32>
      %54 = vector.extract_strided_slice %53 {offsets = [0, 0], sizes = [256, 4], strides = [1, 1]} : vector<256x128xf32> to vector<256x4xf32>
      %c0_36 = arith.constant 0 : index
      %c0_37 = arith.constant 0 : index
      %55 = vector.load %arg6[%c0_36, %c0_37] : memref<512x4xf32, #tpu.memory_space<vmem>>, vector<256x4xf32>
      tpu.vector_store %arg6[%c0_36, %c0_37], %54 {strides = array<i32>} : memref<512x4xf32, #tpu.memory_space<vmem>>, vector<256x4xf32>,
      %c1 = arith.constant 1 : index
      %c0_38 = arith.constant 0 : index
      %c0_39 = arith.constant 0 : index
      %56 = vector.load %arg7[%c1, %c0_38, %c0_39] : memref<2x256x128xf32, #tpu.memory_space<vmem>>, vector<1x256x128xf32>
      %57 = vector.shape_cast %56 : vector<1x256x128xf32> to vector<256x128xf32>
      %58 = vector.broadcast %44 : vector<1x128xf32> to vector<256x128xf32>
      %59 = arith.mulf %57, %58 : vector<256x128xf32>
      %60 = vector.broadcast %47 : vector<1x128xf32> to vector<256x128xf32>
      %61 = arith.addf %59, %60 : vector<256x128xf32>
      %62 = vector.extract_strided_slice %61 {offsets = [0, 0], sizes = [256, 4], strides = [1, 1]} : vector<256x128xf32> to vector<256x4xf32>
      %c256 = arith.constant 256 : index
      %c0_40 = arith.constant 0 : index
      %63 = vector.load %arg6[%c256, %c0_40] : memref<512x4xf32, #tpu.memory_space<vmem>>, vector<256x4xf32>
      tpu.vector_store %arg6[%c256, %c0_40], %62 {strides = array<i32>} : memref<512x4xf32, #tpu.memory_space<vmem>>, vector<256x4xf32>,
    } else {
    }
    return
  }
  func.func @transform_0(%arg0: i32) -> (i32, i32, i32) {
    %c0_i32 = arith.constant 0 : i32
    %c0_i32_0 = arith.constant 0 : i32
    %c0_i32_1 = arith.constant 0 : i32
    return %c0_i32, %arg0, %c0_i32_0 : i32, i32, i32
  }
  func.func @transform_1(%arg0: i32) -> (i32, i32) {
    %c0_i32 = arith.constant 0 : i32
    %c0_i32_0 = arith.constant 0 : i32
    %c0_i32_1 = arith.constant 0 : i32
    return %c0_i32, %c0_i32_0 : i32, i32
  }
  func.func @transform_2(%arg0: i32) -> (i32, i32) {
    %c0_i32 = arith.constant 0 : i32
    %c0_i32_0 = arith.constant 0 : i32
    %c0_i32_1 = arith.constant 0 : i32
    return %c0_i32, %c0_i32_0 : i32, i32
  }
  func.func @transform_3(%arg0: i32) -> (i32, i32) {
    %c0_i32 = arith.constant 0 : i32
    %c0_i32_0 = arith.constant 0 : i32
    %c0_i32_1 = arith.constant 0 : i32
    return %c0_i32, %c0_i32_0 : i32, i32
  }
  func.func @transform_4(%arg0: i32) -> (i32, i32) {
    %c0_i32 = arith.constant 0 : i32
    %c0_i32_0 = arith.constant 0 : i32
    %c0_i32_1 = arith.constant 0 : i32
    return %c0_i32, %c0_i32_0 : i32, i32
  }
  func.func @transform_5(%arg0: i32) -> (i32, i32) {
    %c0_i32 = arith.constant 0 : i32
    %c0_i32_0 = arith.constant 0 : i32
    %c0_i32_1 = arith.constant 0 : i32
    return %c0_i32, %c0_i32_0 : i32, i32
  }
}

module attributes {stable_mosaic.version = 11 : i64} {
  func.func @fused_conv_bn_kernel(%arg0: i32, %arg1: memref<1x256x128xbf16, #tpu.memory_space<vmem>>, %arg2: memref<128x128xbf16, #tpu.memory_space<vmem>>, %arg3: memref<1x128xf32, #tpu.memory_space<vmem>>, %arg4: memref<1x128xf32, #tpu.memory_space<vmem>>, %arg5: memref<1x128xf32, #tpu.memory_space<vmem>>, %arg6: memref<512x1xf32, #tpu.memory_space<vmem>>, %arg7: memref<2x256x128xf32, #tpu.memory_space<vmem>>, %arg8: memref<1x128xf32, #tpu.memory_space<vmem>>, %arg9: memref<1x128xf32, #tpu.memory_space<vmem>>) attributes {dimension_semantics = [#tpu.dimension_semantics<arbitrary>], iteration_bounds = array<i64: 2>, scalar_prefetch = 0 : i64, scratch_operands = 3 : i64, tpu.core_type = #tpu.core_type<tc>, window_params = [{transform_indices = @transform_0, window_bounds = array<i64: 1, 256, 128>}, {pipeline_mode = #tpu.pipeline_mode<synchronous>, transform_indices = @transform_1, window_bounds = array<i64: 128, 128>}, {pipeline_mode = #tpu.pipeline_mode<synchronous>, transform_indices = @transform_2, window_bounds = array<i64: 1, 128>}, {pipeline_mode = #tpu.pipeline_mode<synchronous>, transform_indices = @transform_3, window_bounds = array<i64: 1, 128>}, {pipeline_mode = #tpu.pipeline_mode<synchronous>, transform_indices = @transform_4, window_bounds = array<i64: 1, 128>}, {pipeline_mode = #tpu.pipeline_mode<synchronous>, transform_indices = @transform_5, window_bounds = array<i64: 512, 1>}]} {
    %c0_i32 = arith.constant 0 : i32
    %0 = arith.cmpi eq, %arg0, %c0_i32 : i32
    %1 = arith.extui %0 : i1 to i32
    %c0_i32_0 = arith.constant 0 : i32
    %2 = arith.cmpi ne, %1, %c0_i32_0 : i32
    scf.if %2 {
      %cst_20 = arith.constant 0.000000e+00 : f32
      %28 = vector.broadcast %cst_20 : f32 to vector<1x128xf32>
      %c0_21 = arith.constant 0 : index
      %c0_22 = arith.constant 0 : index
      %29 = vector.load %arg8[%c0_21, %c0_22] : memref<1x128xf32, #tpu.memory_space<vmem>>, vector<1x128xf32>
      tpu.vector_store %arg8[%c0_21, %c0_22], %28 {strides = array<i32>} : memref<1x128xf32, #tpu.memory_space<vmem>>, vector<1x128xf32>,
      %cst_23 = arith.constant 0.000000e+00 : f32
      %30 = vector.broadcast %cst_23 : f32 to vector<1x128xf32>
      %c0_24 = arith.constant 0 : index
      %c0_25 = arith.constant 0 : index
      %31 = vector.load %arg9[%c0_24, %c0_25] : memref<1x128xf32, #tpu.memory_space<vmem>>, vector<1x128xf32>
      tpu.vector_store %arg9[%c0_24, %c0_25], %30 {strides = array<i32>} : memref<1x128xf32, #tpu.memory_space<vmem>>, vector<1x128xf32>,
    } else {
    }
    %c0 = arith.constant 0 : index
    %c0_1 = arith.constant 0 : index
    %c0_2 = arith.constant 0 : index
    %3 = vector.load %arg1[%c0, %c0_1, %c0_2] : memref<1x256x128xbf16, #tpu.memory_space<vmem>>, vector<1x256x128xbf16>
    %4 = vector.shape_cast %3 : vector<1x256x128xbf16> to vector<256x128xbf16>
    %c0_3 = arith.constant 0 : index
    %c0_4 = arith.constant 0 : index
    %5 = vector.load %arg2[%c0_3, %c0_4] : memref<128x128xbf16, #tpu.memory_space<vmem>>, vector<128x128xbf16>
    %cst = arith.constant dense<0.000000e+00> : vector<256x128xf32>
    %6 = tpu.matmul %4, %5, %cst {dimension_numbers = #tpu.dot_dimension_numbers<[1], [0], [0], [1], [0, 0, 1, 1], [], []>} : vector<256x128xbf16>, vector<128x128xbf16>, vector<256x128xf32> -> vector<256x128xf32>
    %c0_5 = arith.constant 0 : index
    %c0_6 = arith.constant 0 : index
    %7 = vector.load %arg3[%c0_5, %c0_6] : memref<1x128xf32, #tpu.memory_space<vmem>>, vector<1x128xf32>
    %8 = vector.broadcast %7 : vector<1x128xf32> to vector<256x128xf32>
    %9 = arith.addf %6, %8 : vector<256x128xf32>
    %10 = arith.index_cast %arg0 : i32 to index
    %c0_7 = arith.constant 0 : index
    %c0_8 = arith.constant 0 : index
    %11 = vector.load %arg7[%10, %c0_7, %c0_8] : memref<2x256x128xf32, #tpu.memory_space<vmem>>, vector<1x256x128xf32>
    %12 = vector.shape_cast %11 : vector<1x256x128xf32> to vector<256x128xf32>
    %13 = vector.shape_cast %9 : vector<256x128xf32> to vector<1x256x128xf32>
    tpu.vector_store %arg7[%10, %c0_7, %c0_8], %13 {strides = array<i32>} : memref<2x256x128xf32, #tpu.memory_space<vmem>>, vector<1x256x128xf32>,
    %c0_9 = arith.constant 0 : index
    %c0_10 = arith.constant 0 : index
    %14 = vector.load %arg8[%c0_9, %c0_10] : memref<1x128xf32, #tpu.memory_space<vmem>>, vector<1x128xf32>
    %cst_11 = arith.constant dense<0.000000e+00> : vector<128xf32>
    %15 = vector.multi_reduction <add>, %9, %cst_11 [0] : vector<256x128xf32> to vector<128xf32>
    %16 = vector.shape_cast %15 : vector<128xf32> to vector<1x128xf32>
    %17 = arith.addf %14, %16 : vector<1x128xf32>
    %c0_12 = arith.constant 0 : index
    %c0_13 = arith.constant 0 : index
    %18 = vector.load %arg8[%c0_12, %c0_13] : memref<1x128xf32, #tpu.memory_space<vmem>>, vector<1x128xf32>
    tpu.vector_store %arg8[%c0_12, %c0_13], %17 {strides = array<i32>} : memref<1x128xf32, #tpu.memory_space<vmem>>, vector<1x128xf32>,
    %c0_14 = arith.constant 0 : index
    %c0_15 = arith.constant 0 : index
    %19 = vector.load %arg9[%c0_14, %c0_15] : memref<1x128xf32, #tpu.memory_space<vmem>>, vector<1x128xf32>
    %20 = arith.mulf %9, %9 : vector<256x128xf32>
    %cst_16 = arith.constant dense<0.000000e+00> : vector<128xf32>
    %21 = vector.multi_reduction <add>, %20, %cst_16 [0] : vector<256x128xf32> to vector<128xf32>
    %22 = vector.shape_cast %21 : vector<128xf32> to vector<1x128xf32>
    %23 = arith.addf %19, %22 : vector<1x128xf32>
    %c0_17 = arith.constant 0 : index
    %c0_18 = arith.constant 0 : index
    %24 = vector.load %arg9[%c0_17, %c0_18] : memref<1x128xf32, #tpu.memory_space<vmem>>, vector<1x128xf32>
    tpu.vector_store %arg9[%c0_17, %c0_18], %23 {strides = array<i32>} : memref<1x128xf32, #tpu.memory_space<vmem>>, vector<1x128xf32>,
    %c1_i32 = arith.constant 1 : i32
    %25 = arith.cmpi eq, %arg0, %c1_i32 : i32
    %26 = arith.extui %25 : i1 to i32
    %c0_i32_19 = arith.constant 0 : i32
    %27 = arith.cmpi ne, %26, %c0_i32_19 : i32
    scf.if %27 {
      %c0_20 = arith.constant 0 : index
      %c0_21 = arith.constant 0 : index
      %28 = vector.load %arg8[%c0_20, %c0_21] : memref<1x128xf32, #tpu.memory_space<vmem>>, vector<1x128xf32>
      %cst_22 = arith.constant 0.001953125 : f32
      %29 = vector.broadcast %cst_22 : f32 to vector<1x128xf32>
      %30 = arith.mulf %28, %29 : vector<1x128xf32>
      %c0_23 = arith.constant 0 : index
      %c0_24 = arith.constant 0 : index
      %31 = vector.load %arg9[%c0_23, %c0_24] : memref<1x128xf32, #tpu.memory_space<vmem>>, vector<1x128xf32>
      %cst_25 = arith.constant 0.001953125 : f32
      %32 = vector.broadcast %cst_25 : f32 to vector<1x128xf32>
      %33 = arith.mulf %31, %32 : vector<1x128xf32>
      %34 = arith.mulf %30, %30 : vector<1x128xf32>
      %35 = arith.subf %33, %34 : vector<1x128xf32>
      %cst_26 = arith.constant 0.000000e+00 : f32
      %36 = vector.broadcast %cst_26 : f32 to vector<1x128xf32>
      %37 = arith.maximumf %35, %36 : vector<1x128xf32>
      %c0_27 = arith.constant 0 : index
      %c0_28 = arith.constant 0 : index
      %38 = vector.load %arg4[%c0_27, %c0_28] : memref<1x128xf32, #tpu.memory_space<vmem>>, vector<1x128xf32>
      %cst_29 = arith.constant 9.99999974E-6 : f32
      %39 = vector.broadcast %cst_29 : f32 to vector<1x128xf32>
      %40 = arith.addf %37, %39 : vector<1x128xf32>
      %41 = math.rsqrt %40 : vector<1x128xf32>
      %42 = arith.mulf %38, %41 : vector<1x128xf32>
      %c0_30 = arith.constant 0 : index
      %c0_31 = arith.constant 0 : index
      %43 = vector.load %arg5[%c0_30, %c0_31] : memref<1x128xf32, #tpu.memory_space<vmem>>, vector<1x128xf32>
      %44 = arith.mulf %30, %42 : vector<1x128xf32>
      %45 = arith.subf %43, %44 : vector<1x128xf32>
      %c0_32 = arith.constant 0 : index
      %c0_33 = arith.constant 0 : index
      %c0_34 = arith.constant 0 : index
      %46 = vector.load %arg7[%c0_32, %c0_33, %c0_34] : memref<2x256x128xf32, #tpu.memory_space<vmem>>, vector<1x256x128xf32>
      %47 = vector.shape_cast %46 : vector<1x256x128xf32> to vector<256x128xf32>
      %48 = vector.broadcast %42 : vector<1x128xf32> to vector<256x128xf32>
      %49 = arith.mulf %47, %48 : vector<256x128xf32>
      %50 = vector.broadcast %45 : vector<1x128xf32> to vector<256x128xf32>
      %51 = arith.addf %49, %50 : vector<256x128xf32>
      %cst_35 = arith.constant 0.000000e+00 : f32
      %52 = vector.broadcast %cst_35 : f32 to vector<256x128xf32>
      %53 = arith.subf %52, %51 : vector<256x128xf32>
      %54 = math.exp %53 : vector<256x128xf32>
      %cst_36 = arith.constant 1.000000e+00 : f32
      %55 = vector.broadcast %cst_36 : f32 to vector<256x128xf32>
      %56 = arith.addf %55, %54 : vector<256x128xf32>
      %57 = tpu.reciprocal %56 {approx = true} : vector<256x128xf32> -> vector<256x128xf32>
      %cst_37 = arith.constant 0.000000e+00 : f32
      %cst_38 = arith.constant 1.000000e+00 : f32
      %58 = vector.broadcast %cst_37 : f32 to vector<256x128xf32>
      %59 = arith.maximumf %58, %57 : vector<256x128xf32>
      %60 = vector.broadcast %cst_38 : f32 to vector<256x128xf32>
      %61 = arith.minimumf %60, %59 : vector<256x128xf32>
      %62 = vector.extract_strided_slice %61 {offsets = [0, 0], sizes = [256, 1], strides = [1, 1]} : vector<256x128xf32> to vector<256x1xf32>
      %c0_39 = arith.constant 0 : index
      %c0_40 = arith.constant 0 : index
      %63 = vector.load %arg6[%c0_39, %c0_40] : memref<512x1xf32, #tpu.memory_space<vmem>>, vector<256x1xf32>
      tpu.vector_store %arg6[%c0_39, %c0_40], %62 {strides = array<i32>} : memref<512x1xf32, #tpu.memory_space<vmem>>, vector<256x1xf32>,
      %c1 = arith.constant 1 : index
      %c0_41 = arith.constant 0 : index
      %c0_42 = arith.constant 0 : index
      %64 = vector.load %arg7[%c1, %c0_41, %c0_42] : memref<2x256x128xf32, #tpu.memory_space<vmem>>, vector<1x256x128xf32>
      %65 = vector.shape_cast %64 : vector<1x256x128xf32> to vector<256x128xf32>
      %66 = vector.broadcast %42 : vector<1x128xf32> to vector<256x128xf32>
      %67 = arith.mulf %65, %66 : vector<256x128xf32>
      %68 = vector.broadcast %45 : vector<1x128xf32> to vector<256x128xf32>
      %69 = arith.addf %67, %68 : vector<256x128xf32>
      %cst_43 = arith.constant 0.000000e+00 : f32
      %70 = vector.broadcast %cst_43 : f32 to vector<256x128xf32>
      %71 = arith.subf %70, %69 : vector<256x128xf32>
      %72 = math.exp %71 : vector<256x128xf32>
      %cst_44 = arith.constant 1.000000e+00 : f32
      %73 = vector.broadcast %cst_44 : f32 to vector<256x128xf32>
      %74 = arith.addf %73, %72 : vector<256x128xf32>
      %75 = tpu.reciprocal %74 {approx = true} : vector<256x128xf32> -> vector<256x128xf32>
      %cst_45 = arith.constant 0.000000e+00 : f32
      %cst_46 = arith.constant 1.000000e+00 : f32
      %76 = vector.broadcast %cst_45 : f32 to vector<256x128xf32>
      %77 = arith.maximumf %76, %75 : vector<256x128xf32>
      %78 = vector.broadcast %cst_46 : f32 to vector<256x128xf32>
      %79 = arith.minimumf %78, %77 : vector<256x128xf32>
      %80 = vector.extract_strided_slice %79 {offsets = [0, 0], sizes = [256, 1], strides = [1, 1]} : vector<256x128xf32> to vector<256x1xf32>
      %c256 = arith.constant 256 : index
      %c0_47 = arith.constant 0 : index
      %81 = vector.load %arg6[%c256, %c0_47] : memref<512x1xf32, #tpu.memory_space<vmem>>, vector<256x1xf32>
      tpu.vector_store %arg6[%c256, %c0_47], %80 {strides = array<i32>} : memref<512x1xf32, #tpu.memory_space<vmem>>, vector<256x1xf32>,
    } else {
    }
    return
  }
  func.func @transform_0(%arg0: i32) -> (i32, i32, i32) {
    %c0_i32 = arith.constant 0 : i32
    %c0_i32_0 = arith.constant 0 : i32
    %c0_i32_1 = arith.constant 0 : i32
    return %c0_i32, %arg0, %c0_i32_0 : i32, i32, i32
  }
  func.func @transform_1(%arg0: i32) -> (i32, i32) {
    %c0_i32 = arith.constant 0 : i32
    %c0_i32_0 = arith.constant 0 : i32
    %c0_i32_1 = arith.constant 0 : i32
    return %c0_i32, %c0_i32_0 : i32, i32
  }
  func.func @transform_2(%arg0: i32) -> (i32, i32) {
    %c0_i32 = arith.constant 0 : i32
    %c0_i32_0 = arith.constant 0 : i32
    %c0_i32_1 = arith.constant 0 : i32
    return %c0_i32, %c0_i32_0 : i32, i32
  }
  func.func @transform_3(%arg0: i32) -> (i32, i32) {
    %c0_i32 = arith.constant 0 : i32
    %c0_i32_0 = arith.constant 0 : i32
    %c0_i32_1 = arith.constant 0 : i32
    return %c0_i32, %c0_i32_0 : i32, i32
  }
  func.func @transform_4(%arg0: i32) -> (i32, i32) {
    %c0_i32 = arith.constant 0 : i32
    %c0_i32_0 = arith.constant 0 : i32
    %c0_i32_1 = arith.constant 0 : i32
    return %c0_i32, %c0_i32_0 : i32, i32
  }
  func.func @transform_5(%arg0: i32) -> (i32, i32) {
    %c0_i32 = arith.constant 0 : i32
    %c0_i32_0 = arith.constant 0 : i32
    %c0_i32_1 = arith.constant 0 : i32
    return %c0_i32, %c0_i32_0 : i32, i32
  }
}

</mosaic_0001>

<bundles_post_ra>
// kernel: unet_like_forward.11
= control target key start
LH: loop header
LB: loop body
LE: loop exit
PB: predicated region body
PF: predicated region fallthrough
CT: control target
= control target key end

     0   :  { %vm761_vm3 = vcmask 64512   ;;  %s1372_s1 = inlined_call_operand.vmem [shape: bf16[128,128], index: 1, kind: input, shape index: {}]   ;;  %s1373_s0 = inlined_call_operand.vmem [shape: bf16[4,128,128], index: 0, kind: input, shape index: {}]   ;;  %s1374_s2 = inlined_call_operand.vmem [shape: f32[1,128], index: 2, kind: input, shape index: {}]   ;;  %s1375_s3 = inlined_call_operand.vmem [shape: f32[1,128], index: 3, kind: input, shape index: {}]   ;;  %s1376_s4 = inlined_call_operand.vmem [shape: f32[1,128], index: 4, kind: input, shape index: {}]   ;;  %s1377_s5 = inlined_call_operand.vmem [shape: f32[128,8], index: 5, kind: output, shape index: {}]  }
   0x1   :  { %v981_v0 = vld [vmem:[%s1372_s1 + $0x38] sm:$0xff]  ;;  %v980_v1 = vld [vmem:[%s1372_s1 + $0x30] sm:$0xff]  ;;  %v979_v2 = vld [vmem:[%s1372_s1 + $0x28] sm:$0xff] }
   0x2   :  { %346 = vmatpush.bf16.msra.mxu0 %v981_v0  ;;  %982 = vmatpush.bf16.msra.mxu1 %v981_v0  ;;  %v978_v3 = vld [vmem:[%s1372_s1 + $0x20] sm:$0xff]  ;;  %v977_v4 = vld [vmem:[%s1372_s1 + $0x18] sm:$0xff]  ;;  %v976_v5 = vld [vmem:[%s1372_s1 + $0x10] sm:$0xff] }
   0x3   :  { %983 = vmatpush.bf16.msra.mxu2 %v981_v0  ;;  %984 = vmatpush.bf16.msra.mxu3 %v981_v0  ;;  %v975_v6 = vld [vmem:[%s1372_s1 + $0x8] sm:$0xff]  ;;  %v974_v7 = vld [vmem:[%s1372_s1] sm:$0xff]  ;;  %v944_v16 = vld [vmem:[%s1373_s0 + $0x10] sm:$0xff] }
   0x4   :  { %v942_v8 = vld [vmem:[%s1373_s0] sm:$0xff]  ;;  %v943_v12 = vld [vmem:[%s1373_s0 + $0x8] sm:$0xff]  ;;  %v952_v17 = vld [vmem:[%s1373_s0 + $0x50] sm:$0xff] }
   0x5   :  { %v950_v9 = vld [vmem:[%s1373_s0 + $0x40] sm:$0xff]  ;;  %v951_v13 = vld [vmem:[%s1373_s0 + $0x48] sm:$0xff]  ;;  %v960_v18 = vld [vmem:[%s1373_s0 + $0x90] sm:$0xff] }
   0x6   :  { %347 = vmatpush.bf16.msra.mxu0 %v980_v1  ;;  %985 = vmatpush.bf16.msra.mxu1 %v980_v1  ;;  %v958_v10 = vld [vmem:[%s1373_s0 + $0x80] sm:$0xff]  ;;  %v959_v14 = vld [vmem:[%s1373_s0 + $0x88] sm:$0xff]  ;;  %v968_v19 = vld [vmem:[%s1373_s0 + $0xd0] sm:$0xff] }
   0x7   :  { %986 = vmatpush.bf16.msra.mxu2 %v980_v1  ;;  %987 = vmatpush.bf16.msra.mxu3 %v980_v1  ;;  %v966_v11 = vld [vmem:[%s1373_s0 + $0xc0] sm:$0xff]  ;;  %v967_v15 = vld [vmem:[%s1373_s0 + $0xc8] sm:$0xff]  ;;  %v945_v20 = vld [vmem:[%s1373_s0 + $0x18] sm:$0xff] }
   0x8   :  { %v953_v21 = vld [vmem:[%s1373_s0 + $0x58] sm:$0xff]  ;;  %v946_v24 = vld [vmem:[%s1373_s0 + $0x20] sm:$0xff]  ;;  %v947_v28 = vld [vmem:[%s1373_s0 + $0x28] sm:$0xff] }
   0x9   :  { %v961_v22 = vld [vmem:[%s1373_s0 + $0x98] sm:$0xff]  ;;  %v954_v25 = vld [vmem:[%s1373_s0 + $0x60] sm:$0xff]  ;;  %v955_v29 = vld [vmem:[%s1373_s0 + $0x68] sm:$0xff] }
   0xa   :  { %348 = vmatpush.bf16.msra.mxu0 %v979_v2  ;;  %988 = vmatpush.bf16.msra.mxu1 %v979_v2  ;;  %v969_v23 = vld [vmem:[%s1373_s0 + $0xd8] sm:$0xff]  ;;  %v962_v26 = vld [vmem:[%s1373_s0 + $0xa0] sm:$0xff]  ;;  %v963_v30 = vld [vmem:[%s1373_s0 + $0xa8] sm:$0xff] }
   0xb   :  { %989 = vmatpush.bf16.msra.mxu2 %v979_v2  ;;  %990 = vmatpush.bf16.msra.mxu3 %v979_v2  ;;  %v970_v27 = vld [vmem:[%s1373_s0 + $0xe0] sm:$0xff]  ;;  %v971_v31 = vld [vmem:[%s1373_s0 + $0xe8] sm:$0xff]  ;;  %v948_v32 = vld [vmem:[%s1373_s0 + $0x30] sm:$0xff] }
   0xc   :  { %v956_v33 = vld [vmem:[%s1373_s0 + $0x70] sm:$0xff]  ;;  %v949_v36 = vld [vmem:[%s1373_s0 + $0x38] sm:$0xff] }
   0xd   :  { %v964_v34 = vld [vmem:[%s1373_s0 + $0xb0] sm:$0xff]  ;;  %v957_v37 = vld [vmem:[%s1373_s0 + $0x78] sm:$0xff] }
   0xe   :  { %349 = vmatpush.bf16.msra.mxu0 %v978_v3  ;;  %991 = vmatpush.bf16.msra.mxu1 %v978_v3  ;;  %v972_v35 = vld [vmem:[%s1373_s0 + $0xf0] sm:$0xff]  ;;  %v965_v38 = vld [vmem:[%s1373_s0 + $0xb8] sm:$0xff] }
   0xf   :  { %992 = vmatpush.bf16.msra.mxu2 %v978_v3  ;;  %993 = vmatpush.bf16.msra.mxu3 %v978_v3  ;;  %v973_v39 = vld [vmem:[%s1373_s0 + $0xf8] sm:$0xff] }
  0x12   :  { %350 = vmatpush.bf16.msra.mxu0 %v977_v4  ;;  %994 = vmatpush.bf16.msra.mxu1 %v977_v4 }
  0x13   :  { %995 = vmatpush.bf16.msra.mxu2 %v977_v4  ;;  %996 = vmatpush.bf16.msra.mxu3 %v977_v4 }
  0x16   :  { %351 = vmatpush.bf16.msra.mxu0 %v976_v5  ;;  %997 = vmatpush.bf16.msra.mxu1 %v976_v5 }
  0x17   :  { %998 = vmatpush.bf16.msra.mxu2 %v976_v5  ;;  %999 = vmatpush.bf16.msra.mxu3 %v976_v5 }
  0x1a   :  { %352 = vmatpush.bf16.msra.mxu0 %v975_v6  ;;  %1000 = vmatpush.bf16.msra.mxu1 %v975_v6 }
  0x1b   :  { %1001 = vmatpush.bf16.msra.mxu2 %v975_v6  ;;  %1002 = vmatpush.bf16.msra.mxu3 %v975_v6 }
  0x1e   :  { %353 = vmatpush.bf16.msra.mxu0 %v974_v7  ;;  %1003 = vmatpush.bf16.msra.mxu1 %v974_v7 }
  0x1f   :  { %1004 = vmatpush.bf16.msra.mxu2 %v974_v7  ;;  %1005 = vmatpush.bf16.msra.mxu3 %v974_v7 }
  0x21   :  { %354 = vmatmul.bf16.vlgmr.msra.gmra.mxu0 %v942_v8  ;;  %394 = vmatmul.bf16.vlgmr.msra.gmra.mxu1 %v950_v9 }
  0x22   :  { %434 = vmatmul.bf16.vlgmr.msra.gmra.mxu2 %v958_v10  ;;  %474 = vmatmul.bf16.vlgmr.msra.gmra.mxu3 %v966_v11 }
  0x31   :  { %359 = vmatmul.bf16.gmra.mxu0 %v943_v12  ;;  %399 = vmatmul.bf16.gmra.mxu1 %v951_v13 }
  0x32   :  { %439 = vmatmul.bf16.gmra.mxu2 %v959_v14  ;;  %479 = vmatmul.bf16.gmra.mxu3 %v967_v15 }
  0x41   :  { %364 = vmatmul.bf16.gmra.mxu0 %v944_v16  ;;  %404 = vmatmul.bf16.gmra.mxu1 %v952_v17 }
  0x42   :  { %444 = vmatmul.bf16.gmra.mxu2 %v960_v18  ;;  %484 = vmatmul.bf16.gmra.mxu3 %v968_v19 }
  0x51   :  { %369 = vmatmul.bf16.gmra.mxu0 %v945_v20  ;;  %409 = vmatmul.bf16.gmra.mxu1 %v953_v21 }
  0x52   :  { %449 = vmatmul.bf16.gmra.mxu2 %v961_v22  ;;  %489 = vmatmul.bf16.gmra.mxu3 %v969_v23 }
  0x61   :  { %374 = vmatmul.bf16.gmra.mxu0 %v946_v24  ;;  %414 = vmatmul.bf16.gmra.mxu1 %v954_v25 }
  0x62   :  { %454 = vmatmul.bf16.gmra.mxu2 %v962_v26  ;;  %494 = vmatmul.bf16.gmra.mxu3 %v970_v27 }
  0x71   :  { %379 = vmatmul.bf16.gmra.mxu0 %v947_v28  ;;  %419 = vmatmul.bf16.gmra.mxu1 %v955_v29 }
  0x72   :  { %459 = vmatmul.bf16.gmra.mxu2 %v963_v30  ;;  %499 = vmatmul.bf16.gmra.mxu3 %v971_v31 }
  0x81   :  { %384 = vmatmul.bf16.gmra.mxu0 %v948_v32  ;;  %424 = vmatmul.bf16.gmra.mxu1 %v956_v33 }
  0x82   :  { %464 = vmatmul.bf16.gmra.mxu2 %v964_v34  ;;  %504 = vmatmul.bf16.gmra.mxu3 %v972_v35 }
  0x91   :  { %389 = vmatmul.bf16.gmra.mxu0 %v949_v36  ;;  %429 = vmatmul.bf16.gmra.mxu1 %v957_v37  ;;  %v1178_v37 = vld [vmem:[%s1374_s2] ss:$0 sm:$0xff] }
  0x92   :  { %469 = vmatmul.bf16.gmra.mxu2 %v965_v38  ;;  %509 = vmatmul.bf16.gmra.mxu3 %v973_v39 }
  0x9e   :  { %v355_v40 = vpop.f32.mrf.mxu0  ;;  %v395_v41 = vpop.f32.mrf.mxu1 }
  0x9f   :  { %v515_v42 = vmax.f32 %v355_v40, %v395_v41 }
  0xa5   :  { %v435_v43 = vpop.f32.mrf.mxu2  ;;  %v1161_v44 = vpop.f32.mrf.mxu3 }
  0xa6   :  { %v1163_v45 = vmax.f32 %v515_v42, %v435_v43  ;;  %v357_v46 = vpop.f32.mrf.mxu0  ;;  %v397_v47 = vpop.f32.mrf.mxu1 }
  0xa7   :  { %v516_v48 = vmax.f32 %v357_v46, %v397_v47 }
  0xa8   :  { %v547_v49 = vmax.f32 %v1163_v45, %v1161_v44 }
  0xaa   :  { %v567_v46 = vadd.f32 %v1178_v37, %v547_v49 }
  0xad   :  { %v437_v50 = vpop.f32.mrf.mxu2  ;;  %v477_v51 = vpop.f32.mrf.mxu3 }
  0xae   :  { %v532_v52 = vmax.f32 %v516_v48, %v437_v50  ;;  %v360_v53 = vpop.f32.mrf.mxu0  ;;  %v400_v54 = vpop.f32.mrf.mxu1 }
  0xaf   :  { %v517_v55 = vmax.f32 %v360_v53, %v400_v54 }
  0xb0   :  { %v548_v56 = vmax.f32 %v532_v52, %v477_v51  ;;  %v1010_v52 = vmov 0.0  }
  0xb1   :  { %24 = vst [vmem:[#allocation3] sm:$0x1] %v1010_v52 }
  0xb2   :  { %v568_v42 = vadd.f32 %v1178_v37, %v548_v56  ;;  %25 = vst [vmem:[#allocation4] sm:$0x1] %v1010_v52  ;;  %v1188_v56 = vmax.f32 %v567_v46, 0.0 }
  0xb4   :  { %v1185_v53 = vmax.f32 %v568_v42, 0.0 }
  0xb5   :  { %v440_v57 = vpop.f32.mrf.mxu2  ;;  %v480_v58 = vpop.f32.mrf.mxu3 }
  0xb6   :  { %v533_v59 = vmax.f32 %v517_v55, %v440_v57  ;;  %v362_v60 = vpop.f32.mrf.mxu0  ;;  %v402_v61 = vpop.f32.mrf.mxu1 }
  0xb7   :  { %v518_v62 = vmax.f32 %v362_v60, %v402_v61 }
  0xb8   :  { %v549_v63 = vmax.f32 %v533_v59, %v480_v58 }
  0xba   :  { %v569_v47 = vadd.f32 %v1178_v37, %v549_v63 }
  0xbc   :  { %v1190_v58 = vmax.f32 %v569_v47, 0.0 }
  0xbd   :  { %v442_v0 = vpop.f32.mrf.mxu2  ;;  %v482_v1 = vpop.f32.mrf.mxu3 }
  0xbe   :  { %v534_v2 = vmax.f32 %v518_v62, %v442_v0  ;;  %v365_v3 = vpop.f32.mrf.mxu0  ;;  %v405_v4 = vpop.f32.mrf.mxu1 }
  0xbf   :  { %v519_v5 = vmax.f32 %v365_v3, %v405_v4 }
  0xc0   :  { %v550_v6 = vmax.f32 %v534_v2, %v482_v1  ;;  %v643_v1 = vmul.f32 %v1185_v53, %v1185_v53 }
  0xc2   :  { %v570_v54 = vadd.f32 %v1178_v37, %v550_v6 }
  0xc4   :  { %v1197_v4 = vmax.f32 %v570_v54, 0.0 }
  0xc5   :  { %v445_v7 = vpop.f32.mrf.mxu2  ;;  %v485_v8 = vpop.f32.mrf.mxu3 }
  0xc6   :  { %v535_v9 = vmax.f32 %v519_v5, %v445_v7  ;;  %v367_v10 = vpop.f32.mrf.mxu0  ;;  %v407_v11 = vpop.f32.mrf.mxu1 }
  0xc7   :  { %v520_v38 = vmax.f32 %v367_v10, %v407_v11 }
  0xc8   :  { %v551_v12 = vmax.f32 %v535_v9, %v485_v8  ;;  %v642_v8 = vmul.f32 %v1188_v56, %v1188_v56  ;;  %v644_v9 = vmul.f32 %v1190_v58, %v1190_v58 }
  0xca   :  { %v571_v49 = vadd.f32 %v1178_v37, %v551_v12 }
  0xcc   :  { %v1205_v10 = vmax.f32 %v571_v49, 0.0 }
  0xcd   :  { %v447_v13 = vpop.f32.mrf.mxu2  ;;  %v487_v14 = vpop.f32.mrf.mxu3 }
  0xce   :  { %v370_v15 = vpop.f32.mrf.mxu0  ;;  %v410_v16 = vpop.f32.mrf.mxu1  ;;  %v536_v45 = vmax.f32 %v520_v38, %v447_v13 }
  0xcf   :  { %v521_v39 = vmax.f32 %v370_v15, %v410_v16  ;;  %v658_v15 = vadd.f32 %v643_v1, %v642_v8 }
  0xd0   :  { %v552_v55 = vmax.f32 %v536_v45, %v487_v14  ;;  %v618_v14 = vadd.f32 %v1185_v53, %v1188_v56 }
  0xd2   :  { %v572_v5 = vadd.f32 %v1178_v37, %v552_v55 }
  0xd5   :  { %v450_v17 = vpop.f32.mrf.mxu2  ;;  %v490_v18 = vpop.f32.mrf.mxu3 }
  0xd6   :  { %v372_v19 = vpop.f32.mrf.mxu0  ;;  %v412_v20 = vpop.f32.mrf.mxu1  ;;  %v537_v48 = vmax.f32 %v521_v39, %v450_v17 }
  0xd7   :  { %v522_v50 = vmax.f32 %v372_v19, %v412_v20  ;;  %v1213_v19 = vmax.f32 %v572_v5, 0.0 }
  0xd8   :  { %v553_v59 = vmax.f32 %v537_v48, %v490_v18  ;;  %v645_v18 = vmul.f32 %v1197_v4, %v1197_v4 }
  0xda   :  { %v573_v11 = vadd.f32 %v1178_v37, %v553_v59 }
  0xdd   :  { %v452_v21 = vpop.f32.mrf.mxu2  ;;  %v1167_v22 = vpop.f32.mrf.mxu3 }
  0xde   :  { %v375_v23 = vpop.f32.mrf.mxu0  ;;  %v415_v24 = vpop.f32.mrf.mxu1  ;;  %v538_v57 = vmax.f32 %v522_v50, %v452_v21 }
  0xdf   :  { %v523_v51 = vmax.f32 %v375_v23, %v415_v24  ;;  %v659_v23 = vadd.f32 %v658_v15, %v644_v9 }
  0xe0   :  { %v554_v6 = vmax.f32 %v538_v57, %v1167_v22  ;;  %v619_v22 = vadd.f32 %v618_v14, %v1190_v58 }
  0xe2   :  { %v574_v20 = vadd.f32 %v1178_v37, %v554_v6 }
  0xe4   :  { %v1227_v38 = vmax.f32 %v574_v20, 0.0 }
  0xe5   :  { %v455_v25 = vpop.f32.mrf.mxu2  ;;  %v1169_v26 = vpop.f32.mrf.mxu3 }
  0xe6   :  { %v377_v27 = vpop.f32.mrf.mxu0  ;;  %v417_v28 = vpop.f32.mrf.mxu1  ;;  %v539_v60 = vmax.f32 %v523_v51, %v455_v25  ;;  %v646_v25 = vmul.f32 %v1205_v10, %v1205_v10  ;;  %v649_v55 = vmul.f32 %v1227_v38, %v1227_v38 }
  0xe7   :  { %v524_v61 = vmax.f32 %v377_v27, %v417_v28 }
  0xe8   :  { %v555_v12 = vmax.f32 %v539_v60, %v1169_v26  ;;  %v1220_v26 = vmax.f32 %v573_v11, 0.0 }
  0xea   :  { %v575_v27 = vadd.f32 %v1178_v37, %v555_v12  ;;  %v648_v46 = vmul.f32 %v1220_v26, %v1220_v26 }
  0xec   :  { %v1234_v47 = vmax.f32 %v575_v27, 0.0 }
  0xed   :  { %v457_v29 = vpop.f32.mrf.mxu2  ;;  %v1171_v30 = vpop.f32.mrf.mxu3 }
  0xee   :  { %v380_v31 = vpop.f32.mrf.mxu0  ;;  %v420_v32 = vpop.f32.mrf.mxu1  ;;  %v540_v7 = vmax.f32 %v524_v61, %v457_v29  ;;  %v650_v61 = vmul.f32 %v1234_v47, %v1234_v47 }
  0xef   :  { %v525_v62 = vmax.f32 %v380_v31, %v420_v32  ;;  %v620_v32 = vadd.f32 %v619_v22, %v1197_v4 }
  0xf0   :  { %v556_v21 = vmax.f32 %v540_v7, %v1171_v30  ;;  %v660_v30 = vadd.f32 %v659_v23, %v645_v18 }
  0xf2   :  { %v576_v39 = vadd.f32 %v1178_v37, %v556_v21  ;;  %v661_v45 = vadd.f32 %v660_v30, %v646_v25 }
  0xf4   :  { %v1241_v57 = vmax.f32 %v576_v39, 0.0 }
  0xf5   :  { %v460_v33 = vpop.f32.mrf.mxu2  ;;  %v1173_v34 = vpop.f32.mrf.mxu3 }
  0xf6   :  { %v382_v35 = vpop.f32.mrf.mxu0  ;;  %v422_v36 = vpop.f32.mrf.mxu1  ;;  %v541_v13 = vmax.f32 %v525_v62, %v460_v33  ;;  %v651_v6 = vmul.f32 %v1241_v57, %v1241_v57 }
  0xf7   :  { %v526_v16 = vmax.f32 %v382_v35, %v422_v36  ;;  %v647_v36 = vmul.f32 %v1213_v19, %v1213_v19 }
  0xf8   :  { %v557_v28 = vmax.f32 %v541_v13, %v1173_v34 }
  0xf9   :  { %v662_v54 = vadd.f32 %v661_v45, %v647_v36 }
  0xfa   :  { %v577_v48 = vadd.f32 %v1178_v37, %v557_v28 }
  0xfb   :  { %v663_v60 = vadd.f32 %v662_v54, %v648_v46 }
  0xfc   :  { %v1247_v62 = vmax.f32 %v577_v48, 0.0 }
  0xfd   :  { %v462_v40 = vpop.f32.mrf.mxu2  ;;  %v1180_v41 = vpop.f32.mrf.mxu3  ;;  %v664_v5 = vadd.f32 %v663_v60, %v649_v55 }
  0xfe   :  { %v385_v43 = vpop.f32.mrf.mxu0  ;;  %v425_v44 = vpop.f32.mrf.mxu1  ;;  %v542_v24 = vmax.f32 %v526_v16, %v462_v40  ;;  %v652_v13 = vmul.f32 %v1247_v62, %v1247_v62 }
  0xff   :  { %v527_v17 = vmax.f32 %v385_v43, %v425_v44  ;;  %v621_v43 = vadd.f32 %v620_v32, %v1205_v10  ;;  %v665_v12 = vadd.f32 %v664_v5, %v650_v61 }
 0x100   :  { %v558_v34 = vmax.f32 %v542_v24, %v1180_v41 }
 0x101   :  { %v622_v50 = vadd.f32 %v621_v43, %v1213_v19  ;;  %v666_v20 = vadd.f32 %v665_v12, %v651_v6 }
 0x102   :  { %v578_v49 = vadd.f32 %v1178_v37, %v558_v34 }
 0x103   :  { %v623_v41 = vadd.f32 %v622_v50, %v1220_v26  ;;  %v667_v25 = vadd.f32 %v666_v20, %v652_v13 }
 0x104   :  { %v1254_v8 = vmax.f32 %v578_v49, 0.0 }
 0x105   :  { %v465_v63 = vpop.f32.mrf.mxu2  ;;  %v1193_v0 = vpop.f32.mrf.mxu3  ;;  %v624_v1 = vadd.f32 %v623_v41, %v1227_v38 }
 0x106   :  { %v387_v2 = vpop.f32.mrf.mxu0  ;;  %v427_v3 = vpop.f32.mrf.mxu1  ;;  %v543_v33 = vmax.f32 %v527_v17, %v465_v63  ;;  %v653_v22 = vmul.f32 %v1254_v8, %v1254_v8 }
 0x107   :  { %v528_v35 = vmax.f32 %v387_v2, %v427_v3  ;;  %v625_v7 = vadd.f32 %v624_v1, %v1234_v47 }
 0x108   :  { %v559_v51 = vmax.f32 %v543_v33, %v1193_v0 }
 0x109   :  { %v626_v16 = vadd.f32 %v625_v7, %v1241_v57 }
 0x10a   :  { %v579_v2 = vadd.f32 %v1178_v37, %v559_v51 }
 0x10b   :  { %v627_v21 = vadd.f32 %v626_v16, %v1247_v62 }
 0x10c   :  { %v1260_v17 = vmax.f32 %v579_v2, 0.0 }
 0x10d   :  { %v467_v29 = vpop.f32.mrf.mxu2  ;;  %v507_v31 = vpop.f32.mrf.mxu3  ;;  %v628_v28 = vadd.f32 %v627_v21, %v1254_v8 }
 0x10e   :  { %v390_v40 = vpop.f32.mrf.mxu0  ;;  %v430_v42 = vpop.f32.mrf.mxu1  ;;  %v544_v44 = vmax.f32 %v528_v35, %v467_v29  ;;  %v654_v29 = vmul.f32 %v1260_v17, %v1260_v17  ;;  %v668_v35 = vadd.f32 %v667_v25, %v653_v22 }
 0x10f   :  { %v529_v52 = vmax.f32 %v390_v40, %v430_v42  ;;  %v629_v30 = vadd.f32 %v628_v28, %v1260_v17 }
 0x110   :  { %v560_v59 = vmax.f32 %v544_v44, %v507_v31  ;;  %v669_v40 = vadd.f32 %v668_v35, %v654_v29 }
 0x112   :  { %v580_v9 = vadd.f32 %v1178_v37, %v560_v59 }
 0x114   :  { %v1266_v23 = vmax.f32 %v580_v9, 0.0 }
 0x115   :  { %v470_v63 = vpop.f32.mrf.mxu2  ;;  %v510_v0 = vpop.f32.mrf.mxu3 }
 0x116   :  { %v545_v3 = vmax.f32 %v529_v52, %v470_v63  ;;  %v392_v14 = vpop.f32.mrf.mxu0  ;;  %v432_v15 = vpop.f32.mrf.mxu1  ;;  %v655_v36 = vmul.f32 %v1266_v23, %v1266_v23  ;;  %v630_v42 = vadd.f32 %v629_v30, %v1266_v23 }
 0x117   :  { %v530_v24 = vmax.f32 %v392_v14, %v432_v15 }
 0x118   :  { %v561_v11 = vmax.f32 %v545_v3, %v510_v0  ;;  %v670_v44 = vadd.f32 %v669_v40, %v655_v36  ;;  %v617_v0 = vld [vmem:[#allocation3] sm:$0x1]  ;;  %v641_v3 = vld [vmem:[#allocation4] sm:$0x1] }
 0x11a   :  { %v581_v18 = vadd.f32 %v1178_v37, %v561_v11 }
 0x11c   :  { %v1271_v31 = vmax.f32 %v581_v18, 0.0 }
 0x11d   :  { %v472_v27 = vpop.f32.mrf.mxu2  ;;  %v512_v33 = vpop.f32.mrf.mxu3 }
 0x11e   :  { %v546_v32 = vmax.f32 %v530_v24, %v472_v27  ;;  %v656_v43 = vmul.f32 %v1271_v31, %v1271_v31  ;;  %v631_v45 = vadd.f32 %v630_v42, %v1271_v31  ;;  %v691_v27 = vld [vmem:[%s1375_s3] sm:$0x1] }
 0x120   :  { %v562_v39 = vmax.f32 %v546_v32, %v512_v33  ;;  %v671_v48 = vadd.f32 %v670_v44, %v656_v43  ;;  %v704_v33 = vld [vmem:[%s1376_s4] sm:$0x1] }
 0x122   :  { %v582_v34 = vadd.f32 %v1178_v37, %v562_v39 }
 0x124   :  { %v1281_v46 = vmax.f32 %v582_v34, 0.0 }
 0x126   :  { %v632_v50 = vadd.f32 %v631_v45, %v1281_v46  ;;  %v657_v51 = vmul.f32 %v1281_v46, %v1281_v46 }
 0x128   :  { %v633_v52 = vrot.slane %v632_v50, 4  ;;  %v672_v54 = vadd.f32 %v671_v48, %v657_v51 }
 0x12a   :  { %v634_v55 = vadd.f32 %v633_v52, %v632_v50  ;;  %v673_v41 = vrot.slane %v672_v54, 4 }
 0x12c   :  { %v635_v49 = vrot.slane %v634_v55, 2  ;;  %v674_v59 = vadd.f32 %v673_v41, %v672_v54 }
 0x12e   :  { %v636_v60 = vadd.f32 %v635_v49, %v634_v55  ;;  %v675_v61 = vrot.slane %v674_v59, 2 }
 0x130   :  { %v637_v37 = vrot.slane %v636_v60, 1  ;;  %v676_v63 = vadd.f32 %v675_v61, %v674_v59 }
 0x132   :  { %v638_v1 = vadd.f32 %v637_v37, %v636_v60  ;;  %v677_v2 = vrot.slane %v676_v63, 1 }
 0x134   :  { %v639_v5 = vadd.f32 %v638_v1, %v617_v0  ;;  %v678_v6 = vadd.f32 %v677_v2, %v676_v63 }
 0x136   :  { %640 = vst [vmem:[#allocation3] sm:$0x1] %v639_v5  ;;  %v679_v7 = vadd.f32 %v678_v6, %v641_v3 }
 0x138   :  { %680 = vst [vmem:[#allocation4] sm:$0x1] %v679_v7 }
 0x13d   :  { %v684_v9 = vld [vmem:[#allocation3] sm:$0x1] }
 0x13e   :  { %v685_v11 = vmul.f32 0.0078125, %v684_v9 }
 0x13f   :  { %v686_v12 = vld [vmem:[#allocation4] sm:$0x1] }
 0x140   :  { %v687_v13 = vmul.f32 0.0078125, %v686_v12  ;;  %v688_v14 = vmul.f32 %v685_v11, %v685_v11 }
 0x142   :  { %v689_v15 = vsub.f32 %v687_v13, %v688_v14 }
 0x144   :  { %v690_v16 = vmax.f32 %v689_v15, 0.0 }
 0x146   :  { %v692_v18 = vadd.f32 1e-05, %v690_v16 }
 0x148   :  { %1008 = vrsqrt.f32 %v692_v18  ;;  %vm699_vm1 = vweird.f32 %v692_v18 }
 0x14e   :  { %v1009_v20 = vpop.eup %1008 }
 0x14f   :  { %v694_v21 = vmul.f32 %v1009_v20, %v692_v18  ;;  %vm700_vm0 = vweird.f32 %v1009_v20 }
 0x150   :  { %vm701_vm2 = vmor %vm699_vm1, %vm700_vm0 }
 0x151   :  { %v695_v22 = vmul.f32 %v1009_v20, %v694_v21 }
 0x153   :  { %v696_v24 = vmul.f32 0.5, %v695_v22 }
 0x155   :  { %v697_v25 = vsub.f32 1.5, %v696_v24 }
 0x157   :  { %v698_v28 = vmul.f32 %v1009_v20, %v697_v25 }
 0x159   :  { %v702_v29 = vsel %vm701_vm2, %v1009_v20, %v698_v28 }
 0x15a   :  { %v703_v32 = vmul.f32 %v702_v29, %v691_v27 }
 0x15c   :  { %v705_v35 = vmul.f32 %v703_v32, %v685_v11  ;;  %v724_v36 = vperm.slane %v703_v32, 0 }
 0x15e   :  { %v706_v30 = vsub.f32 %v704_v33, %v705_v35  ;;  %v726_v39 = vmul.f32 %v724_v36, %v1188_v56  ;;  %v727_v40 = vmul.f32 %v724_v36, %v1185_v53  ;;  %v728_v42 = vmul.f32 %v724_v36, %v1190_v58 }
 0x15f   :  { %v729_v34 = vmul.f32 %v724_v36, %v1197_v4  ;;  %v730_v44 = vmul.f32 %v724_v36, %v1205_v10  ;;  %v731_v51 = vmul.f32 %v724_v36, %v1213_v19  ;;  %v732_v54 = vmul.f32 %v724_v36, %v1220_v26 }
 0x160   :  { %v743_v43 = vperm.slane %v706_v30, 0  ;;  %v733_v53 = vmul.f32 %v724_v36, %v1227_v38  ;;  %v734_v58 = vmul.f32 %v724_v36, %v1234_v47  ;;  %v735_v10 = vmul.f32 %v724_v36, %v1241_v57 }
 0x161   :  { %v736_v26 = vmul.f32 %v724_v36, %v1247_v62  ;;  %v737_v47 = vmul.f32 %v724_v36, %v1254_v8  ;;  %v738_v57 = vmul.f32 %v724_v36, %v1260_v17  ;;  %v739_v62 = vmul.f32 %v724_v36, %v1266_v23 }
 0x162   :  { %v745_v45 = vadd.f32 %v743_v43, %v726_v39  ;;  %v746_v48 = vadd.f32 %v743_v43, %v727_v40  ;;  %v747_v50 = vadd.f32 %v743_v43, %v728_v42  ;;  %v748_v52 = vadd.f32 %v743_v43, %v729_v34 }
 0x163   :  { %v749_v55 = vadd.f32 %v743_v43, %v730_v44  ;;  %v750_v56 = vadd.f32 %v743_v43, %v731_v51  ;;  %v751_v4 = vadd.f32 %v743_v43, %v732_v54  ;;  %v752_v19 = vadd.f32 %v743_v43, %v733_v53 }
 0x164   :  { %762 = vst.msk [vmem:[%s1377_s5] sm:$0xff] %vm761_vm3, %v745_v45  ;;  %v753_v38 = vadd.f32 %v743_v43, %v734_v58  ;;  %v754_v41 = vadd.f32 %v743_v43, %v735_v10  ;;  %v755_v49 = vadd.f32 %v743_v43, %v736_v26  ;;  %v756_v59 = vadd.f32 %v743_v43, %v737_v47 }
 0x165   :  { %763 = vst.msk [vmem:[%s1377_s5 + $0x8] sm:$0xff] %vm761_vm3, %v746_v48  ;;  %v740_v8 = vmul.f32 %v724_v36, %v1271_v31  ;;  %v757_v60 = vadd.f32 %v743_v43, %v738_v57  ;;  %v741_v17 = vmul.f32 %v724_v36, %v1281_v46  ;;  %v758_v61 = vadd.f32 %v743_v43, %v739_v62 }
 0x166   :  { %764 = vst.msk [vmem:[%s1377_s5 + $0x10] sm:$0xff] %vm761_vm3, %v747_v50 }
 0x167   :  { %765 = vst.msk [vmem:[%s1377_s5 + $0x18] sm:$0xff] %vm761_vm3, %v748_v52  ;;  %v759_v23 = vadd.f32 %v743_v43, %v740_v8  ;;  %v760_v31 = vadd.f32 %v743_v43, %v741_v17 }
 0x168   :  { %766 = vst.msk [vmem:[%s1377_s5 + $0x20] sm:$0xff] %vm761_vm3, %v749_v55 }
 0x169   :  { %767 = vst.msk [vmem:[%s1377_s5 + $0x28] sm:$0xff] %vm761_vm3, %v750_v56 }
 0x16a   :  { %768 = vst.msk [vmem:[%s1377_s5 + $0x30] sm:$0xff] %vm761_vm3, %v751_v4 }
 0x16b   :  { %769 = vst.msk [vmem:[%s1377_s5 + $0x38] sm:$0xff] %vm761_vm3, %v752_v19 }
 0x16c   :  { %770 = vst.msk [vmem:[%s1377_s5 + $0x40] sm:$0xff] %vm761_vm3, %v753_v38 }
 0x16d   :  { %771 = vst.msk [vmem:[%s1377_s5 + $0x48] sm:$0xff] %vm761_vm3, %v754_v41 }
 0x16e   :  { %772 = vst.msk [vmem:[%s1377_s5 + $0x50] sm:$0xff] %vm761_vm3, %v755_v49 }
 0x16f   :  { %773 = vst.msk [vmem:[%s1377_s5 + $0x58] sm:$0xff] %vm761_vm3, %v756_v59 }
 0x170   :  { %774 = vst.msk [vmem:[%s1377_s5 + $0x60] sm:$0xff] %vm761_vm3, %v757_v60 }
 0x171   :  { %775 = vst.msk [vmem:[%s1377_s5 + $0x68] sm:$0xff] %vm761_vm3, %v758_v61 }
 0x172   :  { %776 = vst.msk [vmem:[%s1377_s5 + $0x70] sm:$0xff] %vm761_vm3, %v759_v23 }
 0x173   :  { %777 = vst.msk [vmem:[%s1377_s5 + $0x78] sm:$0xff] %vm761_vm3, %v760_v31 }

// kernel: unet_like_forward.12
= control target key start
LH: loop header
LB: loop body
LE: loop exit
PB: predicated region body
PF: predicated region fallthrough
CT: control target
= control target key end

     0   :  { %v422_v18 = vmov 0.0   ;;  %vm305_vm3 = vcmask 130048   ;;  %s534_s1 = inlined_call_operand.vmem [shape: bf16[128,128], index: 1, kind: input, shape index: {}]   ;;  %s535_s0 = inlined_call_operand.vmem [shape: bf16[4,32,128], index: 0, kind: input, shape index: {}]   ;;  %s536_s2 = inlined_call_operand.vmem [shape: f32[1,128], index: 2, kind: input, shape index: {}]   ;;  %s537_s3 = inlined_call_operand.vmem [shape: f32[1,128], index: 3, kind: input, shape index: {}]   ;;  %s538_s4 = inlined_call_operand.vmem [shape: f32[1,128], index: 4, kind: input, shape index: {}]   ;;  %s539_s5 = inlined_call_operand.vmem [shape: f32[32,16], index: 5, kind: output, shape index: {}]  }
   0x1   :  { %v393_v0 = vld [vmem:[%s534_s1 + $0x38] sm:$0xff]  ;;  %v392_v1 = vld [vmem:[%s534_s1 + $0x30] sm:$0xff]  ;;  %v391_v2 = vld [vmem:[%s534_s1 + $0x28] sm:$0xff]  ;;  %24 = vst [vmem:[#allocation3] sm:$0x1] %v422_v18 }
   0x2   :  { %154 = vmatpush.bf16.msra.mxu0 %v393_v0  ;;  %394 = vmatpush.bf16.msra.mxu1 %v393_v0  ;;  %v390_v3 = vld [vmem:[%s534_s1 + $0x20] sm:$0xff]  ;;  %v389_v4 = vld [vmem:[%s534_s1 + $0x18] sm:$0xff]  ;;  %v388_v5 = vld [vmem:[%s534_s1 + $0x10] sm:$0xff]  ;;  %25 = vst [vmem:[#allocation4] sm:$0x1] %v422_v18 }
   0x3   :  { %395 = vmatpush.bf16.msra.mxu2 %v393_v0  ;;  %396 = vmatpush.bf16.msra.mxu3 %v393_v0  ;;  %v387_v6 = vld [vmem:[%s534_s1 + $0x8] sm:$0xff]  ;;  %v386_v7 = vld [vmem:[%s534_s1] sm:$0xff]  ;;  %v380_v9 = vld [vmem:[%s535_s0 + $0x10] sm:$0xff] }
   0x4   :  { %v378_v8 = vld [vmem:[%s535_s0] sm:$0xff]  ;;  %v384_v11 = vld [vmem:[%s535_s0 + $0x30] sm:$0xff]  ;;  %v379_v12 = vld [vmem:[%s535_s0 + $0x8] sm:$0xff] }
   0x5   :  { %v382_v10 = vld [vmem:[%s535_s0 + $0x20] sm:$0xff]  ;;  %v381_v13 = vld [vmem:[%s535_s0 + $0x18] sm:$0xff]  ;;  %v383_v14 = vld [vmem:[%s535_s0 + $0x28] sm:$0xff] }
   0x6   :  { %155 = vmatpush.bf16.msra.mxu0 %v392_v1  ;;  %397 = vmatpush.bf16.msra.mxu1 %v392_v1  ;;  %v385_v15 = vld [vmem:[%s535_s0 + $0x38] sm:$0xff]  ;;  %v419_v36 = vld [vmem:[%s536_s2] ss:$0 sm:$0xff] }
   0x7   :  { %398 = vmatpush.bf16.msra.mxu2 %v392_v1  ;;  %399 = vmatpush.bf16.msra.mxu3 %v392_v1 }
   0xa   :  { %156 = vmatpush.bf16.msra.mxu0 %v391_v2  ;;  %400 = vmatpush.bf16.msra.mxu1 %v391_v2 }
   0xb   :  { %401 = vmatpush.bf16.msra.mxu2 %v391_v2  ;;  %402 = vmatpush.bf16.msra.mxu3 %v391_v2 }
   0xe   :  { %157 = vmatpush.bf16.msra.mxu0 %v390_v3  ;;  %403 = vmatpush.bf16.msra.mxu1 %v390_v3 }
   0xf   :  { %404 = vmatpush.bf16.msra.mxu2 %v390_v3  ;;  %405 = vmatpush.bf16.msra.mxu3 %v390_v3 }
  0x12   :  { %158 = vmatpush.bf16.msra.mxu0 %v389_v4  ;;  %406 = vmatpush.bf16.msra.mxu1 %v389_v4 }
  0x13   :  { %407 = vmatpush.bf16.msra.mxu2 %v389_v4  ;;  %408 = vmatpush.bf16.msra.mxu3 %v389_v4 }
  0x16   :  { %159 = vmatpush.bf16.msra.mxu0 %v388_v5  ;;  %409 = vmatpush.bf16.msra.mxu1 %v388_v5 }
  0x17   :  { %410 = vmatpush.bf16.msra.mxu2 %v388_v5  ;;  %411 = vmatpush.bf16.msra.mxu3 %v388_v5 }
  0x1a   :  { %160 = vmatpush.bf16.msra.mxu0 %v387_v6  ;;  %412 = vmatpush.bf16.msra.mxu1 %v387_v6 }
  0x1b   :  { %413 = vmatpush.bf16.msra.mxu2 %v387_v6  ;;  %414 = vmatpush.bf16.msra.mxu3 %v387_v6 }
  0x1e   :  { %161 = vmatpush.bf16.msra.mxu0 %v386_v7  ;;  %415 = vmatpush.bf16.msra.mxu1 %v386_v7 }
  0x1f   :  { %416 = vmatpush.bf16.msra.mxu2 %v386_v7  ;;  %417 = vmatpush.bf16.msra.mxu3 %v386_v7 }
  0x21   :  { %162 = vmatmul.bf16.vlgmr.msra.gmra.mxu0 %v378_v8  ;;  %172 = vmatmul.bf16.vlgmr.msra.gmra.mxu1 %v380_v9  ;;  %v233_v9 = vld [vmem:[#allocation3] sm:$0x1] }
  0x22   :  { %182 = vmatmul.bf16.vlgmr.msra.gmra.mxu2 %v382_v10  ;;  %192 = vmatmul.bf16.vlgmr.msra.gmra.mxu3 %v384_v11 }
  0x31   :  { %167 = vmatmul.bf16.gmra.mxu0 %v379_v12  ;;  %177 = vmatmul.bf16.gmra.mxu1 %v381_v13  ;;  %v245_v12 = vld [vmem:[#allocation4] sm:$0x1] }
  0x32   :  { %187 = vmatmul.bf16.gmra.mxu2 %v383_v14  ;;  %197 = vmatmul.bf16.gmra.mxu3 %v385_v15 }
  0x9e   :  { %v163_v16 = vpop.f32.mrf.mxu0  ;;  %v173_v17 = vpop.f32.mrf.mxu1 }
  0x9f   :  { %v203_v25 = vmax.f32 %v163_v16, %v173_v17 }
  0xa5   :  { %v183_v19 = vpop.f32.mrf.mxu2  ;;  %v193_v20 = vpop.f32.mrf.mxu3 }
  0xa6   :  { %v165_v21 = vpop.f32.mrf.mxu0  ;;  %v175_v22 = vpop.f32.mrf.mxu1  ;;  %v207_v30 = vmax.f32 %v203_v25, %v183_v19 }
  0xa7   :  { %v204_v26 = vmax.f32 %v165_v21, %v175_v22 }
  0xa8   :  { %v211_v35 = vmax.f32 %v207_v30, %v193_v20 }
  0xaa   :  { %v219_v42 = vadd.f32 %v419_v36, %v211_v35 }
  0xac   :  { %v223_v47 = vmax.f32 %v219_v42, 0.0 }
  0xad   :  { %v185_v23 = vpop.f32.mrf.mxu2  ;;  %v195_v24 = vpop.f32.mrf.mxu3 }
  0xae   :  { %v168_v27 = vpop.f32.mrf.mxu0  ;;  %v178_v28 = vpop.f32.mrf.mxu1  ;;  %v208_v29 = vmax.f32 %v204_v26, %v185_v23  ;;  %v246_v53 = vmul.f32 %v223_v47, %v223_v47 }
  0xaf   :  { %v205_v31 = vmax.f32 %v168_v27, %v178_v28 }
  0xb0   :  { %v212_v32 = vmax.f32 %v208_v29, %v195_v24  ;;  %v271_v29 = vld [vmem:[%s537_s3] sm:$0x1] }
  0xb2   :  { %v220_v38 = vadd.f32 %v419_v36, %v212_v32 }
  0xb4   :  { %v504_v44 = vmax.f32 %v220_v38, 0.0 }
  0xb5   :  { %v188_v33 = vpop.f32.mrf.mxu2  ;;  %v198_v34 = vpop.f32.mrf.mxu3 }
  0xb6   :  { %v209_v37 = vmax.f32 %v205_v31, %v188_v33  ;;  %v170_v40 = vpop.f32.mrf.mxu0  ;;  %v180_v41 = vpop.f32.mrf.mxu1  ;;  %v247_v51 = vmul.f32 %v504_v44, %v504_v44  ;;  %v234_v54 = vadd.f32 %v504_v44, %v223_v47  ;;  %v284_v33 = vld [vmem:[%s538_s4] sm:$0x1] }
  0xb7   :  { %v206_v45 = vmax.f32 %v170_v40, %v180_v41 }
  0xb8   :  { %v213_v39 = vmax.f32 %v209_v37, %v198_v34  ;;  %v250_v57 = vadd.f32 %v247_v51, %v246_v53 }
  0xba   :  { %v221_v43 = vadd.f32 %v419_v36, %v213_v39 }
  0xbc   :  { %v506_v48 = vmax.f32 %v221_v43, 0.0 }
  0xbd   :  { %v190_v46 = vpop.f32.mrf.mxu2  ;;  %v200_v50 = vpop.f32.mrf.mxu3 }
  0xbe   :  { %v210_v49 = vmax.f32 %v206_v45, %v190_v46  ;;  %v248_v55 = vmul.f32 %v506_v48, %v506_v48  ;;  %v235_v58 = vadd.f32 %v234_v54, %v506_v48 }
  0xc0   :  { %v214_v52 = vmax.f32 %v210_v49, %v200_v50  ;;  %v251_v60 = vadd.f32 %v250_v57, %v248_v55 }
  0xc2   :  { %v222_v56 = vadd.f32 %v419_v36, %v214_v52 }
  0xc4   :  { %v226_v59 = vmax.f32 %v222_v56, 0.0 }
  0xc6   :  { %v236_v61 = vadd.f32 %v235_v58, %v226_v59  ;;  %v249_v62 = vmul.f32 %v226_v59, %v226_v59 }
  0xc8   :  { %v237_v63 = vrot.slane %v236_v61, 4  ;;  %v252_v0 = vadd.f32 %v251_v60, %v249_v62 }
  0xca   :  { %v238_v1 = vadd.f32 %v237_v63, %v236_v61  ;;  %v253_v2 = vrot.slane %v252_v0, 4 }
  0xcc   :  { %v239_v3 = vrot.slane %v238_v1, 2  ;;  %v254_v4 = vadd.f32 %v253_v2, %v252_v0 }
  0xce   :  { %v240_v5 = vadd.f32 %v239_v3, %v238_v1  ;;  %v255_v6 = vrot.slane %v254_v4, 2 }
  0xd0   :  { %v241_v7 = vrot.slane %v240_v5, 1  ;;  %v256_v8 = vadd.f32 %v255_v6, %v254_v4 }
  0xd2   :  { %v242_v10 = vadd.f32 %v241_v7, %v240_v5  ;;  %v257_v11 = vrot.slane %v256_v8, 1 }
  0xd4   :  { %v243_v13 = vadd.f32 %v242_v10, %v233_v9  ;;  %v258_v14 = vadd.f32 %v257_v11, %v256_v8 }
  0xd6   :  { %244 = vst [vmem:[#allocation3] sm:$0x1] %v243_v13  ;;  %v259_v15 = vadd.f32 %v258_v14, %v245_v12 }
  0xd8   :  { %260 = vst [vmem:[#allocation4] sm:$0x1] %v259_v15 }
  0xdd   :  { %v264_v16 = vld [vmem:[#allocation3] sm:$0x1] }
  0xde   :  { %v265_v17 = vmul.f32 0.03125, %v264_v16 }
  0xdf   :  { %v266_v18 = vld [vmem:[#allocation4] sm:$0x1] }
  0xe0   :  { %v267_v19 = vmul.f32 0.03125, %v266_v18  ;;  %v268_v20 = vmul.f32 %v265_v17, %v265_v17 }
  0xe2   :  { %v269_v21 = vsub.f32 %v267_v19, %v268_v20 }
  0xe4   :  { %v270_v22 = vmax.f32 %v269_v21, 0.0 }
  0xe6   :  { %v272_v23 = vadd.f32 1e-05, %v270_v22 }
  0xe8   :  { %420 = vrsqrt.f32 %v272_v23  ;;  %vm279_vm1 = vweird.f32 %v272_v23 }
  0xee   :  { %v421_v24 = vpop.eup %420 }
  0xef   :  { %v274_v25 = vmul.f32 %v421_v24, %v272_v23  ;;  %vm280_vm0 = vweird.f32 %v421_v24 }
  0xf0   :  { %vm281_vm2 = vmor %vm279_vm1, %vm280_vm0 }
  0xf1   :  { %v275_v26 = vmul.f32 %v421_v24, %v274_v25 }
  0xf3   :  { %v276_v27 = vmul.f32 0.5, %v275_v26 }
  0xf5   :  { %v277_v28 = vsub.f32 1.5, %v276_v27 }
  0xf7   :  { %v278_v30 = vmul.f32 %v421_v24, %v277_v28 }
  0xf9   :  { %v282_v31 = vsel %vm281_vm2, %v421_v24, %v278_v30 }
  0xfa   :  { %v283_v32 = vmul.f32 %v282_v31, %v271_v29 }
  0xfc   :  { %v285_v34 = vmul.f32 %v283_v32, %v265_v17  ;;  %v292_v35 = vperm.slane %v283_v32, 0 }
  0xfe   :  { %v286_v36 = vsub.f32 %v284_v33, %v285_v34  ;;  %v294_v37 = vmul.f32 %v292_v35, %v223_v47  ;;  %v295_v38 = vmul.f32 %v292_v35, %v504_v44  ;;  %v296_v39 = vmul.f32 %v292_v35, %v506_v48 }
  0xff   :  { %v297_v41 = vmul.f32 %v292_v35, %v226_v59 }
 0x100   :  { %v299_v40 = vperm.slane %v286_v36, 0 }
 0x102   :  { %v301_v42 = vadd.f32 %v299_v40, %v294_v37  ;;  %v302_v43 = vadd.f32 %v299_v40, %v295_v38  ;;  %v303_v45 = vadd.f32 %v299_v40, %v296_v39  ;;  %v304_v46 = vadd.f32 %v299_v40, %v297_v41 }
 0x104   :  { %306 = vst.msk [vmem:[%s539_s5] sm:$0xff] %vm305_vm3, %v301_v42 }
 0x105   :  { %307 = vst.msk [vmem:[%s539_s5 + $0x8] sm:$0xff] %vm305_vm3, %v302_v43 }
 0x106   :  { %308 = vst.msk [vmem:[%s539_s5 + $0x10] sm:$0xff] %vm305_vm3, %v303_v45 }
 0x107   :  { %309 = vst.msk [vmem:[%s539_s5 + $0x18] sm:$0xff] %vm305_vm3, %v304_v46 }

// kernel: unet_like_forward.13
= control target key start
LH: loop header
LB: loop body
LE: loop exit
PB: predicated region body
PF: predicated region fallthrough
CT: control target
= control target key end

     0   :  { %v408_v28 = vmov 0.0   ;;  %vm282_vm3 = vcmask 261120   ;;  %s523_s1 = inlined_call_operand.vmem [shape: bf16[256,128], index: 1, kind: input, shape index: {}]   ;;  %s524_s0 = inlined_call_operand.vmem [shape: bf16[4,8,256], index: 0, kind: input, shape index: {}]   ;;  %s525_s2 = inlined_call_operand.vmem [shape: f32[1,128], index: 2, kind: input, shape index: {}]   ;;  %s526_s3 = inlined_call_operand.vmem [shape: f32[1,128], index: 3, kind: input, shape index: {}]   ;;  %s527_s4 = inlined_call_operand.vmem [shape: f32[1,128], index: 4, kind: input, shape index: {}]   ;;  %s528_s5 = inlined_call_operand.vmem [shape: f32[8,32], index: 5, kind: output, shape index: {}]  }
   0x1   :  { %v379_v0 = vld [vmem:[%s523_s1 + $0x38] sm:$0xff]  ;;  %v378_v2 = vld [vmem:[%s523_s1 + $0x30] sm:$0xff]  ;;  %v377_v4 = vld [vmem:[%s523_s1 + $0x28] sm:$0xff]  ;;  %24 = vst [vmem:[#allocation3] sm:$0x1] %v408_v28 }
   0x2   :  { %v387_v1 = vld [vmem:[%s523_s1 + $0x78] sm:$0xff]  ;;  %178 = vmatpush.bf16.msra.mxu0 %v379_v0  ;;  %388 = vmatpush.bf16.msra.mxu2 %v379_v0  ;;  %v386_v3 = vld [vmem:[%s523_s1 + $0x70] sm:$0xff]  ;;  %v385_v5 = vld [vmem:[%s523_s1 + $0x68] sm:$0xff]  ;;  %25 = vst [vmem:[#allocation4] sm:$0x1] %v408_v28 }
   0x3   :  { %197 = vmatpush.bf16.msra.mxu1 %v387_v1  ;;  %396 = vmatpush.bf16.msra.mxu3 %v387_v1  ;;  %v376_v6 = vld [vmem:[%s523_s1 + $0x20] sm:$0xff]  ;;  %v375_v8 = vld [vmem:[%s523_s1 + $0x18] sm:$0xff]  ;;  %v374_v10 = vld [vmem:[%s523_s1 + $0x10] sm:$0xff] }
   0x4   :  { %v384_v7 = vld [vmem:[%s523_s1 + $0x60] sm:$0xff]  ;;  %v383_v9 = vld [vmem:[%s523_s1 + $0x58] sm:$0xff]  ;;  %v382_v11 = vld [vmem:[%s523_s1 + $0x50] sm:$0xff] }
   0x5   :  { %v373_v12 = vld [vmem:[%s523_s1 + $0x8] sm:$0xff]  ;;  %v372_v14 = vld [vmem:[%s523_s1] sm:$0xff]  ;;  %v298_v18 = vld [vmem:[%s524_s0 + $0x10] sm:$0xf] }
   0x6   :  { %179 = vmatpush.bf16.msra.mxu0 %v378_v2  ;;  %389 = vmatpush.bf16.msra.mxu2 %v378_v2  ;;  %v381_v13 = vld [vmem:[%s523_s1 + $0x48] sm:$0xff]  ;;  %v380_v15 = vld [vmem:[%s523_s1 + $0x40] sm:$0xff]  ;;  %v371_v19 = vld [vmem:[%s524_s0 + $0x14] sm:$0xf0] }
   0x7   :  { %198 = vmatpush.bf16.msra.mxu1 %v386_v3  ;;  %397 = vmatpush.bf16.msra.mxu3 %v386_v3  ;;  %v290_v16 = vld [vmem:[%s524_s0] sm:$0xf]  ;;  %v369_v17 = vld [vmem:[%s524_s0 + $0x4] sm:$0xf0]  ;;  %v368_v20 = vld [vmem:[%s524_s0 + $0x4] sm:$0xf]  ;;  %v299_v25 = vor.u32 %v371_v19, %v298_v18 }
   0x8   :  { %v292_v21 = vld [vmem:[%s524_s0 + $0x8] sm:$0xf0]  ;;  %v370_v22 = vld [vmem:[%s524_s0 + $0x14] sm:$0xf]  ;;  %v300_v23 = vld [vmem:[%s524_s0 + $0x18] sm:$0xf0]  ;;  %v291_v24 = vor.u32 %v369_v17, %v290_v16 }
   0x9   :  { %v295_v26 = vor.u32 %v368_v20, %v292_v21  ;;  %v303_v27 = vor.u32 %v370_v22, %v300_v23  ;;  %v405_v43 = vld [vmem:[%s525_s2] ss:$0 sm:$0xff]  ;;  %v237_v60 = vld [vmem:[#allocation4] sm:$0x1] }
   0xa   :  { %180 = vmatpush.bf16.msra.mxu0 %v377_v4  ;;  %390 = vmatpush.bf16.msra.mxu2 %v377_v4  ;;  %v228_v57 = vld [vmem:[#allocation3] sm:$0x1] }
   0xb   :  { %199 = vmatpush.bf16.msra.mxu1 %v385_v5  ;;  %398 = vmatpush.bf16.msra.mxu3 %v385_v5  ;;  %v270_v17 = vld [vmem:[%s527_s4] sm:$0x1] }
   0xe   :  { %181 = vmatpush.bf16.msra.mxu0 %v376_v6  ;;  %391 = vmatpush.bf16.msra.mxu2 %v376_v6 }
   0xf   :  { %200 = vmatpush.bf16.msra.mxu1 %v384_v7  ;;  %399 = vmatpush.bf16.msra.mxu3 %v384_v7 }
  0x12   :  { %182 = vmatpush.bf16.msra.mxu0 %v375_v8  ;;  %392 = vmatpush.bf16.msra.mxu2 %v375_v8 }
  0x13   :  { %201 = vmatpush.bf16.msra.mxu1 %v383_v9  ;;  %400 = vmatpush.bf16.msra.mxu3 %v383_v9 }
  0x16   :  { %183 = vmatpush.bf16.msra.mxu0 %v374_v10  ;;  %393 = vmatpush.bf16.msra.mxu2 %v374_v10 }
  0x17   :  { %202 = vmatpush.bf16.msra.mxu1 %v382_v11  ;;  %401 = vmatpush.bf16.msra.mxu3 %v382_v11 }
  0x1a   :  { %184 = vmatpush.bf16.msra.mxu0 %v373_v12  ;;  %394 = vmatpush.bf16.msra.mxu2 %v373_v12 }
  0x1b   :  { %203 = vmatpush.bf16.msra.mxu1 %v381_v13  ;;  %402 = vmatpush.bf16.msra.mxu3 %v381_v13  ;;  %v257_v13 = vld [vmem:[%s526_s3] sm:$0x1] }
  0x1e   :  { %185 = vmatpush.bf16.msra.mxu0 %v372_v14  ;;  %395 = vmatpush.bf16.msra.mxu2 %v372_v14 }
  0x1f   :  { %204 = vmatpush.bf16.msra.mxu1 %v380_v15  ;;  %403 = vmatpush.bf16.msra.mxu3 %v380_v15 }
  0x21   :  { %186 = vmatmul.bf16.vlgmr.msra.gmra.mxu0 %v291_v24  ;;  %191 = vmatmul.bf16.vlgmr.msra.gmra.mxu2 %v299_v25 }
  0x22   :  { %205 = vmatmul.bf16.vlgmr.msra.gmra.mxu1 %v295_v26  ;;  %210 = vmatmul.bf16.vlgmr.msra.gmra.mxu3 %v303_v27 }
  0x9e   :  { %v187_v29 = vpop.f32.mrf.mxu0 }
  0x9f   :  { %v206_v30 = vpop.f32.mrf.mxu1 }
  0xa0   :  { %v207_v35 = vadd.f32 %v206_v30, %v187_v29 }
  0xa4   :  { %v192_v31 = vpop.f32.mrf.mxu2 }
  0xa5   :  { %v211_v32 = vpop.f32.mrf.mxu3 }
  0xa6   :  { %v189_v33 = vpop.f32.mrf.mxu0  ;;  %v212_v38 = vadd.f32 %v211_v32, %v192_v31 }
  0xa7   :  { %v208_v34 = vpop.f32.mrf.mxu1 }
  0xa8   :  { %v209_v36 = vadd.f32 %v208_v34, %v189_v33 }
  0xaa   :  { %v216_v37 = vmax.f32 %v207_v35, %v209_v36 }
  0xac   :  { %v194_v39 = vpop.f32.mrf.mxu2  ;;  %v217_v42 = vmax.f32 %v216_v37, %v212_v38 }
  0xad   :  { %v213_v40 = vpop.f32.mrf.mxu3 }
  0xae   :  { %v214_v41 = vadd.f32 %v213_v40, %v194_v39 }
  0xb0   :  { %v218_v44 = vmax.f32 %v217_v42, %v214_v41 }
  0xb2   :  { %v223_v45 = vadd.f32 %v405_v43, %v218_v44 }
  0xb4   :  { %v224_v46 = vmax.f32 %v223_v45, 0.0 }
  0xb6   :  { %v229_v47 = vrot.slane %v224_v46, 4  ;;  %v238_v48 = vmul.f32 %v224_v46, %v224_v46 }
  0xb8   :  { %v230_v49 = vadd.f32 %v229_v47, %v224_v46  ;;  %v239_v50 = vrot.slane %v238_v48, 4 }
  0xba   :  { %v231_v51 = vrot.slane %v230_v49, 2  ;;  %v240_v52 = vadd.f32 %v239_v50, %v238_v48 }
  0xbc   :  { %v232_v53 = vadd.f32 %v231_v51, %v230_v49  ;;  %v241_v54 = vrot.slane %v240_v52, 2 }
  0xbe   :  { %v233_v55 = vrot.slane %v232_v53, 1  ;;  %v242_v56 = vadd.f32 %v241_v54, %v240_v52 }
  0xc0   :  { %v234_v58 = vadd.f32 %v233_v55, %v232_v53  ;;  %v243_v59 = vrot.slane %v242_v56, 1 }
  0xc2   :  { %v235_v61 = vadd.f32 %v234_v58, %v228_v57  ;;  %v244_v62 = vadd.f32 %v243_v59, %v242_v56 }
  0xc4   :  { %236 = vst [vmem:[#allocation3] sm:$0x1] %v235_v61  ;;  %v245_v63 = vadd.f32 %v244_v62, %v237_v60 }
  0xc6   :  { %246 = vst [vmem:[#allocation4] sm:$0x1] %v245_v63 }
  0xcb   :  { %v250_v0 = vld [vmem:[#allocation3] sm:$0x1] }
  0xcc   :  { %v251_v1 = vmul.f32 0.125, %v250_v0 }
  0xcd   :  { %v252_v2 = vld [vmem:[#allocation4] sm:$0x1] }
  0xce   :  { %v253_v3 = vmul.f32 0.125, %v252_v2  ;;  %v254_v4 = vmul.f32 %v251_v1, %v251_v1 }
  0xd0   :  { %v255_v5 = vsub.f32 %v253_v3, %v254_v4 }
  0xd2   :  { %v256_v6 = vmax.f32 %v255_v5, 0.0 }
  0xd4   :  { %v258_v7 = vadd.f32 1e-05, %v256_v6 }
  0xd6   :  { %406 = vrsqrt.f32 %v258_v7  ;;  %vm265_vm1 = vweird.f32 %v258_v7 }
  0xdc   :  { %v407_v8 = vpop.eup %406 }
  0xdd   :  { %v260_v9 = vmul.f32 %v407_v8, %v258_v7  ;;  %vm266_vm0 = vweird.f32 %v407_v8 }
  0xde   :  { %vm267_vm2 = vmor %vm265_vm1, %vm266_vm0 }
  0xdf   :  { %v261_v10 = vmul.f32 %v407_v8, %v260_v9 }
  0xe1   :  { %v262_v11 = vmul.f32 0.5, %v261_v10 }
  0xe3   :  { %v263_v12 = vsub.f32 1.5, %v262_v11 }
  0xe5   :  { %v264_v14 = vmul.f32 %v407_v8, %v263_v12 }
  0xe7   :  { %v268_v15 = vsel %vm267_vm2, %v407_v8, %v264_v14 }
  0xe8   :  { %v269_v16 = vmul.f32 %v268_v15, %v257_v13 }
  0xea   :  { %v271_v18 = vmul.f32 %v269_v16, %v251_v1  ;;  %v275_v19 = vperm.slane %v269_v16, 0 }
  0xec   :  { %v272_v20 = vsub.f32 %v270_v17, %v271_v18  ;;  %v277_v21 = vmul.f32 %v275_v19, %v224_v46 }
  0xee   :  { %v279_v22 = vperm.slane %v272_v20, 0 }
  0xf0   :  { %v281_v23 = vadd.f32 %v279_v22, %v277_v21 }
  0xf2   :  { %283 = vst.msk [vmem:[%s528_s5] sm:$0xff] %vm282_vm3, %v281_v23 }

// kernel: unet_like_forward.16
= control target key start
LH: loop header
LB: loop body
LE: loop exit
PB: predicated region body
PF: predicated region fallthrough
CT: control target
= control target key end

     0   :  { %v224_v2 = vmov 0.0   ;;  %v112_v10 = vlaneseq  ;;  %vm174_vm4 = vcmask 523264   ;;  %s294_s1 = inlined_call_operand.vmem [shape: bf16[128,128], index: 1, kind: input, shape index: {}]   ;;  %s295_s2 = inlined_call_operand.vmem [shape: f32[1,128], index: 2, kind: input, shape index: {}]   ;;  %s296_s0 = inlined_call_operand.vmem [shape: bf16[1,8,128], index: 0, kind: input, shape index: {}]   ;;  %s297_s3 = inlined_call_operand.vmem [shape: f32[1,128], index: 3, kind: input, shape index: {}]   ;;  %s298_s4 = inlined_call_operand.vmem [shape: f32[1,128], index: 4, kind: input, shape index: {}]   ;;  %s299_s5 = inlined_call_operand.vmem [shape: f32[8,64], index: 5, kind: output, shape index: {}]  }
   0x1   :  { %v219_v0 = vld [vmem:[%s294_s1 + $0x38] sm:$0xff]  ;;  %v218_v1 = vld [vmem:[%s294_s1 + $0x30] sm:$0xff]  ;;  %24 = vst [vmem:[#allocation3] sm:$0x1] %v224_v2  ;;  %v217_v3 = vld [vmem:[%s294_s1 + $0x28] sm:$0xff] }
   0x2   :  { %95 = vmatpush.bf16.msra.mxu0 %v219_v0  ;;  %25 = vst [vmem:[#allocation4] sm:$0x1] %v224_v2  ;;  %v216_v4 = vld [vmem:[%s294_s1 + $0x20] sm:$0xff]  ;;  %v215_v5 = vld [vmem:[%s294_s1 + $0x18] sm:$0xff]  ;;  %v214_v6 = vld [vmem:[%s294_s1 + $0x10] sm:$0xff]  ;;  %v113_v12 = vshrl.u32 %v112_v10, 7 }
   0x3   :  { %v213_v7 = vld [vmem:[%s294_s1 + $0x8] sm:$0xff]  ;;  %v212_v8 = vld [vmem:[%s294_s1] sm:$0xff] }
   0x4   :  { %v26_v9 = vld [vmem:[%s296_s0] sm:$0xf]  ;;  %vm116_vm0 = vcmp.lt.s32.totalorder %v113_v12, 2 }
   0x5   :  { %v221_v11 = vld [vmem:[%s295_s2] ss:$0 sm:$0xff] }
   0x6   :  { %96 = vmatpush.bf16.msra.mxu0 %v218_v1  ;;  %v149_v48 = vld [vmem:[%s297_s3] sm:$0x1] }
   0x7   :  { %v162_v52 = vld [vmem:[%s298_s4] sm:$0x1] }
   0x8   :  { %v120_v28 = vld [vmem:[#allocation3] sm:$0x1] }
   0x9   :  { %v129_v31 = vld [vmem:[#allocation4] sm:$0x1] }
   0xa   :  { %97 = vmatpush.bf16.msra.mxu0 %v217_v3 }
   0xe   :  { %98 = vmatpush.bf16.msra.mxu0 %v216_v4 }
  0x12   :  { %99 = vmatpush.bf16.msra.mxu0 %v215_v5 }
  0x16   :  { %100 = vmatpush.bf16.msra.mxu0 %v214_v6 }
  0x1a   :  { %101 = vmatpush.bf16.msra.mxu0 %v213_v7 }
  0x1e   :  { %102 = vmatpush.bf16.msra.mxu0 %v212_v8 }
  0x21   :  { %103 = vmatmul.bf16.vlgmr.msra.gmra.mxu0 %v26_v9 }
  0x9e   :  { %v104_v13 = vpop.f32.mrf.mxu0 }
  0x9f   :  { %v105_v14 = vadd.f32 %v221_v11, %v104_v13 }
  0xa1   :  { %v108_v15 = vmax.f32 %v105_v14, 0.0 }
  0xa3   :  { %v119_v16 = vsel %vm116_vm0, %v108_v15, 0.0 }
  0xa4   :  { %v121_v17 = vrot.slane %v119_v16, 4  ;;  %v130_v18 = vmul.f32 %v119_v16, %v119_v16 }
  0xa6   :  { %v122_v19 = vadd.f32 %v121_v17, %v119_v16  ;;  %v131_v20 = vrot.slane %v130_v18, 4  ;;  %v106_v21 = vpop.f32.mrf.mxu0 }
  0xa8   :  { %v123_v22 = vrot.slane %v122_v19, 2  ;;  %v132_v23 = vadd.f32 %v131_v20, %v130_v18 }
  0xaa   :  { %v124_v24 = vadd.f32 %v123_v22, %v122_v19  ;;  %v133_v25 = vrot.slane %v132_v23, 2 }
  0xac   :  { %v125_v26 = vrot.slane %v124_v24, 1  ;;  %v134_v27 = vadd.f32 %v133_v25, %v132_v23 }
  0xae   :  { %v126_v29 = vadd.f32 %v125_v26, %v124_v24  ;;  %v135_v30 = vrot.slane %v134_v27, 1 }
  0xb0   :  { %v127_v32 = vadd.f32 %v126_v29, %v120_v28  ;;  %v136_v33 = vadd.f32 %v135_v30, %v134_v27 }
  0xb2   :  { %128 = vst [vmem:[#allocation3] sm:$0x1] %v127_v32  ;;  %v137_v34 = vadd.f32 %v136_v33, %v129_v31 }
  0xb4   :  { %138 = vst [vmem:[#allocation4] sm:$0x1] %v137_v34 }
  0xb9   :  { %v142_v35 = vld [vmem:[#allocation3] sm:$0x1] }
  0xba   :  { %v143_v36 = vmul.f32 0.5, %v142_v35 }
  0xbb   :  { %v144_v37 = vld [vmem:[#allocation4] sm:$0x1] }
  0xbc   :  { %v145_v38 = vmul.f32 0.5, %v144_v37  ;;  %v146_v39 = vmul.f32 %v143_v36, %v143_v36 }
  0xbe   :  { %v147_v40 = vsub.f32 %v145_v38, %v146_v39 }
  0xc0   :  { %v148_v41 = vmax.f32 %v147_v40, 0.0 }
  0xc2   :  { %v150_v42 = vadd.f32 1e-05, %v148_v41 }
  0xc4   :  { %222 = vrsqrt.f32 %v150_v42  ;;  %vm157_vm2 = vweird.f32 %v150_v42 }
  0xca   :  { %v223_v43 = vpop.eup %222 }
  0xcb   :  { %v152_v44 = vmul.f32 %v223_v43, %v150_v42  ;;  %vm158_vm1 = vweird.f32 %v223_v43 }
  0xcc   :  { %vm159_vm3 = vmor %vm157_vm2, %vm158_vm1 }
  0xcd   :  { %v153_v45 = vmul.f32 %v223_v43, %v152_v44 }
  0xcf   :  { %v154_v46 = vmul.f32 0.5, %v153_v45 }
  0xd1   :  { %v155_v47 = vsub.f32 1.5, %v154_v46 }
  0xd3   :  { %v156_v49 = vmul.f32 %v223_v43, %v155_v47 }
  0xd5   :  { %v160_v50 = vsel %vm159_vm3, %v223_v43, %v156_v49 }
  0xd6   :  { %v161_v51 = vmul.f32 %v160_v50, %v149_v48 }
  0xd8   :  { %v163_v53 = vmul.f32 %v161_v51, %v143_v36  ;;  %v167_v54 = vperm.slane %v161_v51, 0 }
  0xda   :  { %v164_v55 = vsub.f32 %v162_v52, %v163_v53  ;;  %v169_v56 = vmul.f32 %v167_v54, %v108_v15 }
  0xdc   :  { %v171_v57 = vperm.slane %v164_v55, 0 }
  0xde   :  { %v173_v58 = vadd.f32 %v171_v57, %v169_v56 }
  0xe0   :  { %175 = vst.msk [vmem:[%s299_s5] sm:$0xff] %vm174_vm4, %v173_v58 }

// kernel: unet_like_forward.14
= control target key start
LH: loop header
LB: loop body
LE: loop exit
PB: predicated region body
PF: predicated region fallthrough
CT: control target
= control target key end

     0   :  { %v557_v42 = vmov 0.0   ;;  %v327_v60 = vlaneseq  ;;  %vm389_vm4 = vcmask 523264   ;;  %s708_s1 = inlined_call_operand.vmem [shape: bf16[384,128], index: 1, kind: input, shape index: {}]   ;;  %s709_s0 = inlined_call_operand.vmem [shape: bf16[4,8,384], index: 0, kind: input, shape index: {}]   ;;  %s710_s2 = inlined_call_operand.vmem [shape: f32[1,128], index: 2, kind: input, shape index: {}]   ;;  %s711_s3 = inlined_call_operand.vmem [shape: f32[1,128], index: 3, kind: input, shape index: {}]   ;;  %s712_s4 = inlined_call_operand.vmem [shape: f32[1,128], index: 4, kind: input, shape index: {}]   ;;  %s713_s5 = inlined_call_operand.vmem [shape: f32[8,64], index: 5, kind: output, shape index: {}]  }
   0x1   :  { %v528_v0 = vld [vmem:[%s708_s1 + $0x38] sm:$0xff]  ;;  %v527_v3 = vld [vmem:[%s708_s1 + $0x30] sm:$0xff]  ;;  %v526_v6 = vld [vmem:[%s708_s1 + $0x28] sm:$0xff]  ;;  %24 = vst [vmem:[#allocation3] sm:$0x1] %v557_v42 }
   0x2   :  { %v536_v1 = vld [vmem:[%s708_s1 + $0x78] sm:$0xff]  ;;  %258 = vmatpush.bf16.msra.mxu0 %v528_v0  ;;  %v535_v4 = vld [vmem:[%s708_s1 + $0x70] sm:$0xff]  ;;  %545 = vmatpush.bf16.msra.mxu3 %v528_v0  ;;  %v534_v7 = vld [vmem:[%s708_s1 + $0x68] sm:$0xff]  ;;  %25 = vst [vmem:[#allocation4] sm:$0x1] %v557_v42 }
   0x3   :  { %v544_v2 = vld [vmem:[%s708_s1 + $0xb8] sm:$0xff]  ;;  %277 = vmatpush.bf16.msra.mxu1 %v536_v1  ;;  %v543_v5 = vld [vmem:[%s708_s1 + $0xb0] sm:$0xff]  ;;  %v542_v8 = vld [vmem:[%s708_s1 + $0xa8] sm:$0xff] }
   0x4   :  { %296 = vmatpush.bf16.msra.mxu2 %v544_v2  ;;  %v525_v9 = vld [vmem:[%s708_s1 + $0x20] sm:$0xff]  ;;  %v524_v12 = vld [vmem:[%s708_s1 + $0x18] sm:$0xff]  ;;  %v523_v15 = vld [vmem:[%s708_s1 + $0x10] sm:$0xff] }
   0x5   :  { %v533_v10 = vld [vmem:[%s708_s1 + $0x60] sm:$0xff]  ;;  %v532_v13 = vld [vmem:[%s708_s1 + $0x58] sm:$0xff]  ;;  %v531_v16 = vld [vmem:[%s708_s1 + $0x50] sm:$0xff] }
   0x6   :  { %259 = vmatpush.bf16.msra.mxu0 %v527_v3  ;;  %546 = vmatpush.bf16.msra.mxu3 %v527_v3  ;;  %v541_v11 = vld [vmem:[%s708_s1 + $0xa0] sm:$0xff]  ;;  %v540_v14 = vld [vmem:[%s708_s1 + $0x98] sm:$0xff]  ;;  %v539_v17 = vld [vmem:[%s708_s1 + $0x90] sm:$0xff]  ;;  %v328_v3 = vshrl.u32 %v327_v60, 7 }
   0x7   :  { %278 = vmatpush.bf16.msra.mxu1 %v535_v4  ;;  %v522_v18 = vld [vmem:[%s708_s1 + $0x8] sm:$0xff]  ;;  %v521_v21 = vld [vmem:[%s708_s1] sm:$0xff]  ;;  %v399_v27 = vld [vmem:[%s709_s0 + $0xc] sm:$0xf0] }
   0x8   :  { %297 = vmatpush.bf16.msra.mxu2 %v543_v5  ;;  %v530_v19 = vld [vmem:[%s708_s1 + $0x48] sm:$0xff]  ;;  %v529_v22 = vld [vmem:[%s708_s1 + $0x40] sm:$0xff]  ;;  %v517_v29 = vld [vmem:[%s709_s0 + $0x10] sm:$0xf0]  ;;  %vm331_vm0 = vcmp.lt.s32.totalorder %v328_v3, 2 }
   0x9   :  { %v538_v20 = vld [vmem:[%s708_s1 + $0x88] sm:$0xff]  ;;  %v537_v23 = vld [vmem:[%s708_s1 + $0x80] sm:$0xff]  ;;  %v409_v30 = vld [vmem:[%s709_s0 + $0x18] sm:$0xf] }
   0xa   :  { %260 = vmatpush.bf16.msra.mxu0 %v526_v6  ;;  %547 = vmatpush.bf16.msra.mxu3 %v526_v6  ;;  %v397_v24 = vld [vmem:[%s709_s0] sm:$0xf]  ;;  %v516_v25 = vld [vmem:[%s709_s0 + $0x8] sm:$0xf0]  ;;  %v515_v26 = vld [vmem:[%s709_s0 + $0x4] sm:$0xf] }
   0xb   :  { %279 = vmatpush.bf16.msra.mxu1 %v534_v7  ;;  %v405_v28 = vld [vmem:[%s709_s0 + $0x8] sm:$0xf]  ;;  %v519_v31 = vld [vmem:[%s709_s0 + $0x20] sm:$0xf0]  ;;  %v398_v32 = vor.u32 %v516_v25, %v397_v24  ;;  %v402_v33 = vor.u32 %v515_v26, %v399_v27  ;;  %v518_v36 = vld [vmem:[%s709_s0 + $0x1c] sm:$0xf] }
   0xc   :  { %298 = vmatpush.bf16.msra.mxu2 %v542_v8  ;;  %v406_v34 = vor.u32 %v517_v29, %v405_v28  ;;  %v410_v35 = vor.u32 %v519_v31, %v409_v30  ;;  %v411_v37 = vld [vmem:[%s709_s0 + $0x24] sm:$0xf0]  ;;  %v417_v38 = vld [vmem:[%s709_s0 + $0x20] sm:$0xf]  ;;  %v520_v39 = vld [vmem:[%s709_s0 + $0x28] sm:$0xf0] }
   0xd   :  { %v414_v40 = vor.u32 %v518_v36, %v411_v37  ;;  %v418_v41 = vor.u32 %v520_v39, %v417_v38  ;;  %v554_v2 = vld [vmem:[%s710_s2] ss:$0 sm:$0xff] }
   0xe   :  { %261 = vmatpush.bf16.msra.mxu0 %v525_v9  ;;  %548 = vmatpush.bf16.msra.mxu3 %v525_v9  ;;  %v364_v38 = vld [vmem:[%s711_s3] sm:$0x1] }
   0xf   :  { %280 = vmatpush.bf16.msra.mxu1 %v533_v10  ;;  %v377_v42 = vld [vmem:[%s712_s4] sm:$0x1] }
  0x10   :  { %299 = vmatpush.bf16.msra.mxu2 %v541_v11 }
  0x12   :  { %262 = vmatpush.bf16.msra.mxu0 %v524_v12  ;;  %549 = vmatpush.bf16.msra.mxu3 %v524_v12 }
  0x13   :  { %281 = vmatpush.bf16.msra.mxu1 %v532_v13 }
  0x14   :  { %300 = vmatpush.bf16.msra.mxu2 %v540_v14 }
  0x16   :  { %263 = vmatpush.bf16.msra.mxu0 %v523_v15  ;;  %550 = vmatpush.bf16.msra.mxu3 %v523_v15 }
  0x17   :  { %282 = vmatpush.bf16.msra.mxu1 %v531_v16 }
  0x18   :  { %301 = vmatpush.bf16.msra.mxu2 %v539_v17 }
  0x1a   :  { %264 = vmatpush.bf16.msra.mxu0 %v522_v18  ;;  %551 = vmatpush.bf16.msra.mxu3 %v522_v18  ;;  %v335_v18 = vld [vmem:[#allocation3] sm:$0x1] }
  0x1b   :  { %283 = vmatpush.bf16.msra.mxu1 %v530_v19 }
  0x1c   :  { %302 = vmatpush.bf16.msra.mxu2 %v538_v20 }
  0x1e   :  { %265 = vmatpush.bf16.msra.mxu0 %v521_v21  ;;  %552 = vmatpush.bf16.msra.mxu3 %v521_v21  ;;  %v344_v21 = vld [vmem:[#allocation4] sm:$0x1] }
  0x1f   :  { %284 = vmatpush.bf16.msra.mxu1 %v529_v22 }
  0x20   :  { %303 = vmatpush.bf16.msra.mxu2 %v537_v23 }
  0x21   :  { %266 = vmatmul.bf16.vlgmr.msra.gmra.mxu0 %v398_v32  ;;  %271 = vmatmul.bf16.vlgmr.msra.gmra.mxu3 %v410_v35 }
  0x22   :  { %285 = vmatmul.bf16.vlgmr.msra.gmra.mxu1 %v402_v33 }
  0x23   :  { %304 = vmatmul.bf16.vlgmr.msra.gmra.mxu2 %v406_v34 }
  0x32   :  { %290 = vmatmul.bf16.gmra.mxu1 %v414_v40 }
  0x33   :  { %309 = vmatmul.bf16.gmra.mxu2 %v418_v41 }
  0x9e   :  { %v267_v46 = vpop.f32.mrf.mxu0 }
  0x9f   :  { %v286_v43 = vpop.f32.mrf.mxu1 }
  0xa0   :  { %v287_v52 = vadd.f32 %v286_v43, %v267_v46 }
  0xa4   :  { %v272_v49 = vpop.f32.mrf.mxu3 }
  0xa6   :  { %v305_v44 = vpop.f32.mrf.mxu2  ;;  %v269_v50 = vpop.f32.mrf.mxu0 }
  0xa7   :  { %v288_v45 = vpop.f32.mrf.mxu1  ;;  %v306_v57 = vadd.f32 %v305_v44, %v287_v52 }
  0xa8   :  { %v289_v53 = vadd.f32 %v288_v45, %v269_v50 }
  0xac   :  { %v274_v59 = vpop.f32.mrf.mxu3 }
  0xae   :  { %v307_v47 = vpop.f32.mrf.mxu2 }
  0xaf   :  { %v291_v48 = vpop.f32.mrf.mxu1  ;;  %v308_v55 = vadd.f32 %v307_v47, %v289_v53 }
  0xb0   :  { %v292_v54 = vadd.f32 %v291_v48, %v272_v49 }
  0xb1   :  { %v315_v61 = vmax.f32 %v306_v57, %v308_v55 }
  0xb6   :  { %v310_v51 = vpop.f32.mrf.mxu2 }
  0xb7   :  { %v293_v56 = vpop.f32.mrf.mxu1  ;;  %v311_v58 = vadd.f32 %v310_v51, %v292_v54 }
  0xb8   :  { %v294_v62 = vadd.f32 %v293_v56, %v274_v59 }
  0xb9   :  { %v316_v0 = vmax.f32 %v315_v61, %v311_v58 }
  0xbe   :  { %v312_v63 = vpop.f32.mrf.mxu2 }
  0xbf   :  { %v313_v1 = vadd.f32 %v312_v63, %v294_v62 }
  0xc1   :  { %v317_v4 = vmax.f32 %v316_v0, %v313_v1 }
  0xc3   :  { %v322_v5 = vadd.f32 %v554_v2, %v317_v4 }
  0xc5   :  { %v323_v6 = vmax.f32 %v322_v5, 0.0 }
  0xc7   :  { %v334_v7 = vsel %vm331_vm0, %v323_v6, 0.0 }
  0xc8   :  { %v336_v8 = vrot.slane %v334_v7, 4  ;;  %v345_v9 = vmul.f32 %v334_v7, %v334_v7 }
  0xca   :  { %v337_v10 = vadd.f32 %v336_v8, %v334_v7  ;;  %v346_v11 = vrot.slane %v345_v9, 4 }
  0xcc   :  { %v338_v12 = vrot.slane %v337_v10, 2  ;;  %v347_v13 = vadd.f32 %v346_v11, %v345_v9 }
  0xce   :  { %v339_v14 = vadd.f32 %v338_v12, %v337_v10  ;;  %v348_v15 = vrot.slane %v347_v13, 2 }
  0xd0   :  { %v340_v16 = vrot.slane %v339_v14, 1  ;;  %v349_v17 = vadd.f32 %v348_v15, %v347_v13 }
  0xd2   :  { %v341_v19 = vadd.f32 %v340_v16, %v339_v14  ;;  %v350_v20 = vrot.slane %v349_v17, 1 }
  0xd4   :  { %v342_v22 = vadd.f32 %v341_v19, %v335_v18  ;;  %v351_v23 = vadd.f32 %v350_v20, %v349_v17 }
  0xd6   :  { %343 = vst [vmem:[#allocation3] sm:$0x1] %v342_v22  ;;  %v352_v24 = vadd.f32 %v351_v23, %v344_v21 }
  0xd8   :  { %353 = vst [vmem:[#allocation4] sm:$0x1] %v352_v24 }
  0xdd   :  { %v357_v25 = vld [vmem:[#allocation3] sm:$0x1] }
  0xde   :  { %v358_v26 = vmul.f32 0.5, %v357_v25 }
  0xdf   :  { %v359_v27 = vld [vmem:[#allocation4] sm:$0x1] }
  0xe0   :  { %v360_v28 = vmul.f32 0.5, %v359_v27  ;;  %v361_v29 = vmul.f32 %v358_v26, %v358_v26 }
  0xe2   :  { %v362_v30 = vsub.f32 %v360_v28, %v361_v29 }
  0xe4   :  { %v363_v31 = vmax.f32 %v362_v30, 0.0 }
  0xe6   :  { %v365_v32 = vadd.f32 1e-05, %v363_v31 }
  0xe8   :  { %555 = vrsqrt.f32 %v365_v32  ;;  %vm372_vm2 = vweird.f32 %v365_v32 }
  0xee   :  { %v556_v33 = vpop.eup %555 }
  0xef   :  { %v367_v34 = vmul.f32 %v556_v33, %v365_v32  ;;  %vm373_vm1 = vweird.f32 %v556_v33 }
  0xf0   :  { %vm374_vm3 = vmor %vm372_vm2, %vm373_vm1 }
  0xf1   :  { %v368_v35 = vmul.f32 %v556_v33, %v367_v34 }
  0xf3   :  { %v369_v36 = vmul.f32 0.5, %v368_v35 }
  0xf5   :  { %v370_v37 = vsub.f32 1.5, %v369_v36 }
  0xf7   :  { %v371_v39 = vmul.f32 %v556_v33, %v370_v37 }
  0xf9   :  { %v375_v40 = vsel %vm374_vm3, %v556_v33, %v371_v39 }
  0xfa   :  { %v376_v41 = vmul.f32 %v375_v40, %v364_v38 }
  0xfc   :  { %v378_v43 = vmul.f32 %v376_v41, %v358_v26  ;;  %v382_v44 = vperm.slane %v376_v41, 0 }
  0xfe   :  { %v379_v45 = vsub.f32 %v377_v42, %v378_v43  ;;  %v384_v46 = vmul.f32 %v382_v44, %v323_v6 }
 0x100   :  { %v386_v47 = vperm.slane %v379_v45, 0 }
 0x102   :  { %v388_v48 = vadd.f32 %v386_v47, %v384_v46 }
 0x104   :  { %390 = vst.msk [vmem:[%s713_s5] sm:$0xff] %vm389_vm4, %v388_v48 }

// kernel: unet_like_forward.15
= control target key start
LH: loop header
LB: loop body
LE: loop exit
PB: predicated region body
PF: predicated region fallthrough
CT: control target
= control target key end

     0   :  { %v223_v2 = vmov 0.0   ;;  %v112_v10 = vlaneseq  ;;  %s293_s1 = inlined_call_operand.vmem [shape: bf16[128,128], index: 1, kind: input, shape index: {}]   ;;  %s294_s2 = inlined_call_operand.vmem [shape: f32[1,128], index: 2, kind: input, shape index: {}]   ;;  %s295_s0 = inlined_call_operand.vmem [shape: bf16[1,8,128], index: 0, kind: input, shape index: {}]   ;;  %s296_s3 = inlined_call_operand.vmem [shape: f32[1,128], index: 3, kind: input, shape index: {}]   ;;  %s297_s4 = inlined_call_operand.vmem [shape: f32[1,128], index: 4, kind: input, shape index: {}]   ;;  %s298_s5 = inlined_call_operand.vmem [shape: f32[8,128], index: 5, kind: output, shape index: {}]  }
   0x1   :  { %v218_v0 = vld [vmem:[%s293_s1 + $0x38] sm:$0xff]  ;;  %v217_v1 = vld [vmem:[%s293_s1 + $0x30] sm:$0xff]  ;;  %24 = vst [vmem:[#allocation3] sm:$0x1] %v223_v2  ;;  %v216_v3 = vld [vmem:[%s293_s1 + $0x28] sm:$0xff] }
   0x2   :  { %95 = vmatpush.bf16.msra.mxu0 %v218_v0  ;;  %25 = vst [vmem:[#allocation4] sm:$0x1] %v223_v2  ;;  %v215_v4 = vld [vmem:[%s293_s1 + $0x20] sm:$0xff]  ;;  %v214_v5 = vld [vmem:[%s293_s1 + $0x18] sm:$0xff]  ;;  %v213_v6 = vld [vmem:[%s293_s1 + $0x10] sm:$0xff]  ;;  %v113_v12 = vshrl.u32 %v112_v10, 7 }
   0x3   :  { %v212_v7 = vld [vmem:[%s293_s1 + $0x8] sm:$0xff]  ;;  %v211_v8 = vld [vmem:[%s293_s1] sm:$0xff] }
   0x4   :  { %v26_v9 = vld [vmem:[%s295_s0] sm:$0xf]  ;;  %vm116_vm0 = vcmp.lt.s32.totalorder %v113_v12, 2 }
   0x5   :  { %v220_v11 = vld [vmem:[%s294_s2] ss:$0 sm:$0xff] }
   0x6   :  { %96 = vmatpush.bf16.msra.mxu0 %v217_v1  ;;  %v149_v48 = vld [vmem:[%s296_s3] sm:$0x1] }
   0x7   :  { %v162_v52 = vld [vmem:[%s297_s4] sm:$0x1] }
   0x8   :  { %v120_v28 = vld [vmem:[#allocation3] sm:$0x1] }
   0x9   :  { %v129_v31 = vld [vmem:[#allocation4] sm:$0x1] }
   0xa   :  { %97 = vmatpush.bf16.msra.mxu0 %v216_v3 }
   0xe   :  { %98 = vmatpush.bf16.msra.mxu0 %v215_v4 }
  0x12   :  { %99 = vmatpush.bf16.msra.mxu0 %v214_v5 }
  0x16   :  { %100 = vmatpush.bf16.msra.mxu0 %v213_v6 }
  0x1a   :  { %101 = vmatpush.bf16.msra.mxu0 %v212_v7 }
  0x1e   :  { %102 = vmatpush.bf16.msra.mxu0 %v211_v8 }
  0x21   :  { %103 = vmatmul.bf16.vlgmr.msra.gmra.mxu0 %v26_v9 }
  0x9e   :  { %v104_v13 = vpop.f32.mrf.mxu0 }
  0x9f   :  { %v105_v14 = vadd.f32 %v220_v11, %v104_v13 }
  0xa1   :  { %v108_v15 = vmax.f32 %v105_v14, 0.0 }
  0xa3   :  { %v119_v16 = vsel %vm116_vm0, %v108_v15, 0.0 }
  0xa4   :  { %v121_v17 = vrot.slane %v119_v16, 4  ;;  %v130_v18 = vmul.f32 %v119_v16, %v119_v16 }
  0xa6   :  { %v122_v19 = vadd.f32 %v121_v17, %v119_v16  ;;  %v131_v20 = vrot.slane %v130_v18, 4  ;;  %v106_v21 = vpop.f32.mrf.mxu0 }
  0xa8   :  { %v123_v22 = vrot.slane %v122_v19, 2  ;;  %v132_v23 = vadd.f32 %v131_v20, %v130_v18 }
  0xaa   :  { %v124_v24 = vadd.f32 %v123_v22, %v122_v19  ;;  %v133_v25 = vrot.slane %v132_v23, 2 }
  0xac   :  { %v125_v26 = vrot.slane %v124_v24, 1  ;;  %v134_v27 = vadd.f32 %v133_v25, %v132_v23 }
  0xae   :  { %v126_v29 = vadd.f32 %v125_v26, %v124_v24  ;;  %v135_v30 = vrot.slane %v134_v27, 1 }
  0xb0   :  { %v127_v32 = vadd.f32 %v126_v29, %v120_v28  ;;  %v136_v33 = vadd.f32 %v135_v30, %v134_v27 }
  0xb2   :  { %128 = vst [vmem:[#allocation3] sm:$0x1] %v127_v32  ;;  %v137_v34 = vadd.f32 %v136_v33, %v129_v31 }
  0xb4   :  { %138 = vst [vmem:[#allocation4] sm:$0x1] %v137_v34 }
  0xb9   :  { %v142_v35 = vld [vmem:[#allocation3] sm:$0x1] }
  0xba   :  { %v143_v36 = vmul.f32 0.5, %v142_v35 }
  0xbb   :  { %v144_v37 = vld [vmem:[#allocation4] sm:$0x1] }
  0xbc   :  { %v145_v38 = vmul.f32 0.5, %v144_v37  ;;  %v146_v39 = vmul.f32 %v143_v36, %v143_v36 }
  0xbe   :  { %v147_v40 = vsub.f32 %v145_v38, %v146_v39 }
  0xc0   :  { %v148_v41 = vmax.f32 %v147_v40, 0.0 }
  0xc2   :  { %v150_v42 = vadd.f32 1e-05, %v148_v41 }
  0xc4   :  { %221 = vrsqrt.f32 %v150_v42  ;;  %vm157_vm2 = vweird.f32 %v150_v42 }
  0xca   :  { %v222_v43 = vpop.eup %221 }
  0xcb   :  { %v152_v44 = vmul.f32 %v222_v43, %v150_v42  ;;  %vm158_vm1 = vweird.f32 %v222_v43 }
  0xcc   :  { %vm159_vm3 = vmor %vm157_vm2, %vm158_vm1 }
  0xcd   :  { %v153_v45 = vmul.f32 %v222_v43, %v152_v44 }
  0xcf   :  { %v154_v46 = vmul.f32 0.5, %v153_v45 }
  0xd1   :  { %v155_v47 = vsub.f32 1.5, %v154_v46 }
  0xd3   :  { %v156_v49 = vmul.f32 %v222_v43, %v155_v47 }
  0xd5   :  { %v160_v50 = vsel %vm159_vm3, %v222_v43, %v156_v49 }
  0xd6   :  { %v161_v51 = vmul.f32 %v160_v50, %v149_v48 }
  0xd8   :  { %v163_v53 = vmul.f32 %v161_v51, %v143_v36  ;;  %v167_v54 = vperm.slane %v161_v51, 0 }
  0xda   :  { %v164_v55 = vsub.f32 %v162_v52, %v163_v53  ;;  %v169_v56 = vmul.f32 %v167_v54, %v108_v15 }
  0xdc   :  { %v171_v57 = vperm.slane %v164_v55, 0 }
  0xde   :  { %v173_v58 = vadd.f32 %v171_v57, %v169_v56 }
  0xe0   :  { %174 = vst [vmem:[%s298_s5] sm:$0xff] %v173_v58 }

// kernel: unet_like_forward.17
= control target key start
LH: loop header
LB: loop body
LE: loop exit
PB: predicated region body
PF: predicated region fallthrough
CT: control target
= control target key end

     0   :  { %vm818_vm3 = vcmask 261120   ;;  %s1462_s1 = inlined_call_operand.vmem [shape: bf16[1152,128], index: 1, kind: input, shape index: {}]   ;;  %s1463_s2 = inlined_call_operand.vmem [shape: f32[1,128], index: 2, kind: input, shape index: {}]   ;;  %s1464_s0 = inlined_call_operand.vmem [shape: bf16[1,8,1152], index: 0, kind: input, shape index: {}]   ;;  %s1465_s3 = inlined_call_operand.vmem [shape: f32[1,128], index: 3, kind: input, shape index: {}]   ;;  %s1466_s4 = inlined_call_operand.vmem [shape: f32[1,128], index: 4, kind: input, shape index: {}]   ;;  %s1467_s5 = inlined_call_operand.vmem [shape: f32[8,32], index: 5, kind: output, shape index: {}]  }
   0x1   :  { %v1119_v0 = vld [vmem:[%s1462_s1 + $0x38] sm:$0xff]  ;;  %v1118_v4 = vld [vmem:[%s1462_s1 + $0x30] sm:$0xff]  ;;  %v1117_v8 = vld [vmem:[%s1462_s1 + $0x28] sm:$0xff] }
   0x2   :  { %v1135_v1 = vld [vmem:[%s1462_s1 + $0xb8] sm:$0xff]  ;;  %643 = vmatpush.bf16.msra.mxu0 %v1119_v0  ;;  %v1134_v5 = vld [vmem:[%s1462_s1 + $0xb0] sm:$0xff]  ;;  %v1133_v9 = vld [vmem:[%s1462_s1 + $0xa8] sm:$0xff] }
   0x3   :  { %v1143_v2 = vld [vmem:[%s1462_s1 + $0xf8] sm:$0xff]  ;;  %669 = vmatpush.bf16.msra.mxu2 %v1135_v1  ;;  %v1142_v6 = vld [vmem:[%s1462_s1 + $0xf0] sm:$0xff]  ;;  %v1141_v10 = vld [vmem:[%s1462_s1 + $0xe8] sm:$0xff] }
   0x4   :  { %v1127_v3 = vld [vmem:[%s1462_s1 + $0x78] sm:$0xff]  ;;  %682 = vmatpush.bf16.msra.mxu3 %v1143_v2  ;;  %v1126_v7 = vld [vmem:[%s1462_s1 + $0x70] sm:$0xff]  ;;  %v1125_v11 = vld [vmem:[%s1462_s1 + $0x68] sm:$0xff] }
   0x5   :  { %656 = vmatpush.bf16.msra.mxu1 %v1127_v3  ;;  %v1116_v12 = vld [vmem:[%s1462_s1 + $0x20] sm:$0xff]  ;;  %v1115_v16 = vld [vmem:[%s1462_s1 + $0x18] sm:$0xff]  ;;  %v1114_v20 = vld [vmem:[%s1462_s1 + $0x10] sm:$0xff] }
   0x6   :  { %644 = vmatpush.bf16.msra.mxu0 %v1118_v4  ;;  %v1132_v13 = vld [vmem:[%s1462_s1 + $0xa0] sm:$0xff]  ;;  %v1131_v17 = vld [vmem:[%s1462_s1 + $0x98] sm:$0xff]  ;;  %v1130_v21 = vld [vmem:[%s1462_s1 + $0x90] sm:$0xff] }
   0x7   :  { %670 = vmatpush.bf16.msra.mxu2 %v1134_v5  ;;  %v1140_v14 = vld [vmem:[%s1462_s1 + $0xe0] sm:$0xff]  ;;  %v1139_v18 = vld [vmem:[%s1462_s1 + $0xd8] sm:$0xff]  ;;  %v1138_v22 = vld [vmem:[%s1462_s1 + $0xd0] sm:$0xff] }
   0x8   :  { %683 = vmatpush.bf16.msra.mxu3 %v1142_v6  ;;  %v1124_v15 = vld [vmem:[%s1462_s1 + $0x60] sm:$0xff]  ;;  %v1123_v19 = vld [vmem:[%s1462_s1 + $0x58] sm:$0xff]  ;;  %v1122_v23 = vld [vmem:[%s1462_s1 + $0x50] sm:$0xff] }
   0x9   :  { %657 = vmatpush.bf16.msra.mxu1 %v1126_v7  ;;  %v1113_v24 = vld [vmem:[%s1462_s1 + $0x8] sm:$0xff]  ;;  %v26_v29 = vld [vmem:[%s1464_s0] sm:$0xff]  ;;  %v1151_v34 = vld [vmem:[%s1462_s1 + $0x138] sm:$0xff] }
   0xa   :  { %645 = vmatpush.bf16.msra.mxu0 %v1117_v8  ;;  %v1129_v25 = vld [vmem:[%s1462_s1 + $0x88] sm:$0xff]  ;;  %v1112_v30 = vld [vmem:[%s1462_s1] sm:$0xff]  ;;  %v184_v33 = vunpack.c.l.b16 %v26_v29  ;;  %v1167_v35 = vld [vmem:[%s1462_s1 + $0x1b8] sm:$0xff]  ;;  %v185_v39 = vunpack.c.h.b16 %v26_v29 }
   0xb   :  { %671 = vmatpush.bf16.msra.mxu2 %v1133_v9  ;;  %v1137_v26 = vld [vmem:[%s1462_s1 + $0xc8] sm:$0xff]  ;;  %v1128_v31 = vld [vmem:[%s1462_s1 + $0x80] sm:$0xff]  ;;  %v1175_v40 = vld [vmem:[%s1462_s1 + $0x1f8] sm:$0xff] }
   0xc   :  { %684 = vmatpush.bf16.msra.mxu3 %v1141_v10  ;;  %v1121_v27 = vld [vmem:[%s1462_s1 + $0x48] sm:$0xff]  ;;  %v1136_v36 = vld [vmem:[%s1462_s1 + $0xc0] sm:$0xff]  ;;  %v1159_v41 = vld [vmem:[%s1462_s1 + $0x178] sm:$0xff]  ;;  %v193_v43 = vpack.c.b16 %v184_v33, %v184_v33  ;;  %v194_v47 = vpack.c.b16 %v185_v39, %v185_v39 }
   0xd   :  { %658 = vmatpush.bf16.msra.mxu1 %v1125_v11  ;;  %v27_v28 = vld [vmem:[%s1464_s0 + $0x8] sm:$0xff]  ;;  %v1120_v37 = vld [vmem:[%s1462_s1 + $0x40] sm:$0xff]  ;;  %v1150_v44 = vld [vmem:[%s1462_s1 + $0x130] sm:$0xff] }
   0xe   :  { %646 = vmatpush.bf16.msra.mxu0 %v1116_v12  ;;  %v186_v32 = vunpack.c.l.b16 %v27_v28  ;;  %v187_v38 = vunpack.c.h.b16 %v27_v28  ;;  %v1166_v45 = vld [vmem:[%s1462_s1 + $0x1b0] sm:$0xff]  ;;  %v1149_v50 = vld [vmem:[%s1462_s1 + $0x128] sm:$0xff]  ;;  %v1148_v54 = vld [vmem:[%s1462_s1 + $0x120] sm:$0xff] }
   0xf   :  { %672 = vmatpush.bf16.msra.mxu2 %v1132_v13  ;;  %v1174_v48 = vld [vmem:[%s1462_s1 + $0x1f0] sm:$0xff]  ;;  %v1165_v51 = vld [vmem:[%s1462_s1 + $0x1a8] sm:$0xff]  ;;  %v1164_v55 = vld [vmem:[%s1462_s1 + $0x1a0] sm:$0xff] }
  0x10   :  { %685 = vmatpush.bf16.msra.mxu3 %v1140_v14  ;;  %v195_v42 = vpack.c.b16 %v186_v32, %v186_v32  ;;  %v196_v46 = vpack.c.b16 %v187_v38, %v187_v38  ;;  %v1158_v49 = vld [vmem:[%s1462_s1 + $0x170] sm:$0xff]  ;;  %v1173_v52 = vld [vmem:[%s1462_s1 + $0x1e8] sm:$0xff]  ;;  %v1172_v56 = vld [vmem:[%s1462_s1 + $0x1e0] sm:$0xff] }
  0x11   :  { %659 = vmatpush.bf16.msra.mxu1 %v1124_v15  ;;  %v1157_v53 = vld [vmem:[%s1462_s1 + $0x168] sm:$0xff]  ;;  %v1156_v57 = vld [vmem:[%s1462_s1 + $0x160] sm:$0xff]  ;;  %v1147_v58 = vld [vmem:[%s1462_s1 + $0x118] sm:$0xff] }
  0x12   :  { %647 = vmatpush.bf16.msra.mxu0 %v1115_v16  ;;  %v1163_v59 = vld [vmem:[%s1462_s1 + $0x198] sm:$0xff]  ;;  %v1146_v62 = vld [vmem:[%s1462_s1 + $0x110] sm:$0xff]  ;;  %v1145_v2 = vld [vmem:[%s1462_s1 + $0x108] sm:$0xff] }
  0x13   :  { %673 = vmatpush.bf16.msra.mxu2 %v1131_v17  ;;  %v1171_v60 = vld [vmem:[%s1462_s1 + $0x1d8] sm:$0xff]  ;;  %v1162_v63 = vld [vmem:[%s1462_s1 + $0x190] sm:$0xff]  ;;  %v1161_v3 = vld [vmem:[%s1462_s1 + $0x188] sm:$0xff] }
  0x14   :  { %686 = vmatpush.bf16.msra.mxu3 %v1139_v18  ;;  %v1155_v61 = vld [vmem:[%s1462_s1 + $0x158] sm:$0xff]  ;;  %v1170_v0 = vld [vmem:[%s1462_s1 + $0x1d0] sm:$0xff]  ;;  %v1169_v6 = vld [vmem:[%s1462_s1 + $0x1c8] sm:$0xff] }
  0x15   :  { %660 = vmatpush.bf16.msra.mxu1 %v1123_v19  ;;  %v1154_v1 = vld [vmem:[%s1462_s1 + $0x150] sm:$0xff]  ;;  %v29_v4 = vld [vmem:[%s1464_s0 + $0x18] sm:$0xff]  ;;  %v1153_v7 = vld [vmem:[%s1462_s1 + $0x148] sm:$0xff] }
  0x16   :  { %648 = vmatpush.bf16.msra.mxu0 %v1114_v20  ;;  %v28_v5 = vld [vmem:[%s1464_s0 + $0x10] sm:$0xff]  ;;  %v190_v8 = vunpack.c.l.b16 %v29_v4  ;;  %v1144_v10 = vld [vmem:[%s1462_s1 + $0x100] sm:$0xff]  ;;  %v1183_v12 = vld [vmem:[%s1462_s1 + $0x238] sm:$0xff]  ;;  %v191_v13 = vunpack.c.h.b16 %v29_v4 }
  0x17   :  { %674 = vmatpush.bf16.msra.mxu2 %v1130_v21  ;;  %v188_v9 = vunpack.c.l.b16 %v28_v5  ;;  %v1160_v11 = vld [vmem:[%s1462_s1 + $0x180] sm:$0xff]  ;;  %v189_v16 = vunpack.c.h.b16 %v28_v5  ;;  %v1182_v19 = vld [vmem:[%s1462_s1 + $0x230] sm:$0xff] }
  0x18   :  { %687 = vmatpush.bf16.msra.mxu3 %v1138_v22  ;;  %v1168_v14 = vld [vmem:[%s1462_s1 + $0x1c0] sm:$0xff]  ;;  %v199_v17 = vpack.c.b16 %v190_v8, %v190_v8  ;;  %v200_v20 = vpack.c.b16 %v191_v13, %v191_v13  ;;  %v1181_v22 = vld [vmem:[%s1462_s1 + $0x228] sm:$0xff] }
  0x19   :  { %661 = vmatpush.bf16.msra.mxu1 %v1122_v23  ;;  %v1152_v15 = vld [vmem:[%s1462_s1 + $0x140] sm:$0xff]  ;;  %v197_v18 = vpack.c.b16 %v188_v9, %v188_v9  ;;  %v198_v21 = vpack.c.b16 %v189_v16, %v189_v16 }
  0x1a   :  { %649 = vmatpush.bf16.msra.mxu0 %v1113_v24  ;;  %v1180_v23 = vld [vmem:[%s1462_s1 + $0x220] sm:$0xff]  ;;  %v1179_v24 = vld [vmem:[%s1462_s1 + $0x218] sm:$0xff] }
  0x1b   :  { %675 = vmatpush.bf16.msra.mxu2 %v1129_v25  ;;  %v1178_v25 = vld [vmem:[%s1462_s1 + $0x210] sm:$0xff]  ;;  %v1176_v29 = vld [vmem:[%s1462_s1 + $0x200] sm:$0xff] }
  0x1c   :  { %688 = vmatpush.bf16.msra.mxu3 %v1137_v26  ;;  %v1177_v26 = vld [vmem:[%s1462_s1 + $0x208] sm:$0xff] }
  0x1d   :  { %662 = vmatpush.bf16.msra.mxu1 %v1121_v27  ;;  %v30_v27 = vld [vmem:[%s1464_s0 + $0x20] sm:$0xf] }
  0x1e   :  { %650 = vmatpush.bf16.msra.mxu0 %v1112_v30  ;;  %v192_v28 = vunpack.c.l.b16 %v30_v27  ;;  %v793_v27 = vld [vmem:[%s1465_s3] sm:$0x1] }
  0x1f   :  { %676 = vmatpush.bf16.msra.mxu2 %v1128_v31 }
  0x20   :  { %689 = vmatpush.bf16.msra.mxu3 %v1136_v36  ;;  %v201_v30 = vpack.c.b16 %v192_v28, %v192_v28 }
  0x21   :  { %663 = vmatpush.bf16.msra.mxu1 %v1120_v37  ;;  %651 = vmatmul.bf16.vlgmr.msra.gmra.mxu0 %v193_v43  ;;  %v1188_v37 = vmov 0.0  }
  0x22   :  { %695 = vmatpush.bf16.msrb.mxu0 %v1151_v34  ;;  %677 = vmatmul.bf16.vlgmr.msra.gmra.mxu2 %v195_v42  ;;  %24 = vst [vmem:[#allocation3] sm:$0x1] %v1188_v37 }
  0x23   :  { %721 = vmatpush.bf16.msrb.mxu2 %v1167_v35  ;;  %690 = vmatmul.bf16.vlgmr.msra.gmra.mxu3 %v196_v46  ;;  %25 = vst [vmem:[#allocation4] sm:$0x1] %v1188_v37 }
  0x24   :  { %734 = vmatpush.bf16.msrb.mxu3 %v1175_v40  ;;  %664 = vmatmul.bf16.vlgmr.msra.gmra.mxu1 %v194_v47  ;;  %v1185_v40 = vld [vmem:[%s1463_s2] ss:$0 sm:$0xff] }
  0x25   :  { %708 = vmatpush.bf16.msrb.mxu1 %v1159_v41 }
  0x26   :  { %696 = vmatpush.bf16.msrb.mxu0 %v1150_v44 }
  0x27   :  { %722 = vmatpush.bf16.msrb.mxu2 %v1166_v45 }
  0x28   :  { %735 = vmatpush.bf16.msrb.mxu3 %v1174_v48 }
  0x29   :  { %709 = vmatpush.bf16.msrb.mxu1 %v1158_v49 }
  0x2a   :  { %697 = vmatpush.bf16.msrb.mxu0 %v1149_v50 }
  0x2b   :  { %723 = vmatpush.bf16.msrb.mxu2 %v1165_v51 }
  0x2c   :  { %736 = vmatpush.bf16.msrb.mxu3 %v1173_v52 }
  0x2d   :  { %710 = vmatpush.bf16.msrb.mxu1 %v1157_v53 }
  0x2e   :  { %698 = vmatpush.bf16.msrb.mxu0 %v1148_v54 }
  0x2f   :  { %724 = vmatpush.bf16.msrb.mxu2 %v1164_v55 }
  0x30   :  { %737 = vmatpush.bf16.msrb.mxu3 %v1172_v56 }
  0x31   :  { %711 = vmatpush.bf16.msrb.mxu1 %v1156_v57 }
  0x32   :  { %699 = vmatpush.bf16.msrb.mxu0 %v1147_v58 }
  0x33   :  { %725 = vmatpush.bf16.msrb.mxu2 %v1163_v59 }
  0x34   :  { %738 = vmatpush.bf16.msrb.mxu3 %v1171_v60 }
  0x35   :  { %712 = vmatpush.bf16.msrb.mxu1 %v1155_v61 }
  0x36   :  { %700 = vmatpush.bf16.msrb.mxu0 %v1146_v62 }
  0x37   :  { %726 = vmatpush.bf16.msrb.mxu2 %v1162_v63 }
  0x38   :  { %739 = vmatpush.bf16.msrb.mxu3 %v1170_v0 }
  0x39   :  { %713 = vmatpush.bf16.msrb.mxu1 %v1154_v1 }
  0x3a   :  { %701 = vmatpush.bf16.msrb.mxu0 %v1145_v2 }
  0x3b   :  { %727 = vmatpush.bf16.msrb.mxu2 %v1161_v3 }
  0x3c   :  { %740 = vmatpush.bf16.msrb.mxu3 %v1169_v6 }
  0x3d   :  { %714 = vmatpush.bf16.msrb.mxu1 %v1153_v7  ;;  %v764_v7 = vld [vmem:[#allocation3] sm:$0x1] }
  0x3e   :  { %702 = vmatpush.bf16.msrb.mxu0 %v1144_v10  ;;  %v773_v10 = vld [vmem:[#allocation4] sm:$0x1] }
  0x3f   :  { %728 = vmatpush.bf16.msrb.mxu2 %v1160_v11 }
  0x40   :  { %741 = vmatpush.bf16.msrb.mxu3 %v1168_v14 }
  0x41   :  { %715 = vmatpush.bf16.msrb.mxu1 %v1152_v15  ;;  %703 = vmatmul.bf16.vlgmr.msrb.gmra.mxu0 %v197_v18 }
  0x42   :  { %747 = vmatpush.bf16.msra.mxu0 %v1183_v12  ;;  %729 = vmatmul.bf16.vlgmr.msrb.gmra.mxu2 %v199_v17 }
  0x43   :  { %742 = vmatmul.bf16.vlgmr.msrb.gmra.mxu3 %v200_v20 }
  0x44   :  { %716 = vmatmul.bf16.vlgmr.msrb.gmra.mxu1 %v198_v21 }
  0x46   :  { %748 = vmatpush.bf16.msra.mxu0 %v1182_v19 }
  0x4a   :  { %749 = vmatpush.bf16.msra.mxu0 %v1181_v22 }
  0x4e   :  { %750 = vmatpush.bf16.msra.mxu0 %v1180_v23 }
  0x52   :  { %751 = vmatpush.bf16.msra.mxu0 %v1179_v24 }
  0x56   :  { %752 = vmatpush.bf16.msra.mxu0 %v1178_v25 }
  0x5a   :  { %753 = vmatpush.bf16.msra.mxu0 %v1177_v26 }
  0x5e   :  { %754 = vmatpush.bf16.msra.mxu0 %v1176_v29 }
  0x61   :  { %755 = vmatmul.bf16.vlgmr.msra.gmra.mxu0 %v201_v30 }
  0x9e   :  { %v652_v31 = vpop.f32.mrf.mxu0 }
  0x9f   :  { %v653_v41 = vadd.f32 %v1185_v40, %v652_v31  ;;  %v806_v31 = vld [vmem:[%s1466_s4] sm:$0x1] }
  0xa1   :  { %v665_v32 = vpop.f32.mrf.mxu1 }
  0xa2   :  { %v666_v44 = vadd.f32 %v665_v32, %v653_v41 }
  0xa5   :  { %v678_v33 = vpop.f32.mrf.mxu2 }
  0xa6   :  { %v691_v34 = vpop.f32.mrf.mxu3  ;;  %v654_v35 = vpop.f32.mrf.mxu0  ;;  %v679_v46 = vadd.f32 %v678_v33, %v666_v44 }
  0xa8   :  { %v692_v50 = vadd.f32 %v691_v34, %v679_v46 }
  0xa9   :  { %v667_v36 = vpop.f32.mrf.mxu1 }
  0xad   :  { %v680_v38 = vpop.f32.mrf.mxu2 }
  0xae   :  { %v693_v39 = vpop.f32.mrf.mxu3 }
  0xbe   :  { %v704_v42 = vpop.f32.mrf.mxu0 }
  0xbf   :  { %v705_v52 = vadd.f32 %v704_v42, %v692_v50 }
  0xc1   :  { %v717_v43 = vpop.f32.mrf.mxu1 }
  0xc2   :  { %v718_v54 = vadd.f32 %v717_v43, %v705_v52 }
  0xc5   :  { %v730_v45 = vpop.f32.mrf.mxu2 }
  0xc6   :  { %v743_v47 = vpop.f32.mrf.mxu3  ;;  %v706_v48 = vpop.f32.mrf.mxu0  ;;  %v731_v55 = vadd.f32 %v730_v45, %v718_v54 }
  0xc8   :  { %v744_v56 = vadd.f32 %v743_v47, %v731_v55 }
  0xc9   :  { %v719_v49 = vpop.f32.mrf.mxu1 }
  0xcd   :  { %v732_v51 = vpop.f32.mrf.mxu2 }
  0xce   :  { %v745_v53 = vpop.f32.mrf.mxu3 }
  0xde   :  { %v756_v57 = vpop.f32.mrf.mxu0 }
  0xdf   :  { %v757_v58 = vadd.f32 %v756_v57, %v744_v56 }
  0xe1   :  { %v760_v59 = vmax.f32 %v757_v58, 0.0 }
  0xe3   :  { %v765_v60 = vrot.slane %v760_v59, 4  ;;  %v774_v61 = vmul.f32 %v760_v59, %v760_v59 }
  0xe5   :  { %v766_v62 = vadd.f32 %v765_v60, %v760_v59  ;;  %v775_v63 = vrot.slane %v774_v61, 4 }
  0xe6   :  { %v758_v0 = vpop.f32.mrf.mxu0 }
  0xe7   :  { %v767_v1 = vrot.slane %v766_v62, 2  ;;  %v776_v2 = vadd.f32 %v775_v63, %v774_v61 }
  0xe9   :  { %v768_v3 = vadd.f32 %v767_v1, %v766_v62  ;;  %v777_v4 = vrot.slane %v776_v2, 2 }
  0xeb   :  { %v769_v5 = vrot.slane %v768_v3, 1  ;;  %v778_v6 = vadd.f32 %v777_v4, %v776_v2 }
  0xed   :  { %v770_v8 = vadd.f32 %v769_v5, %v768_v3  ;;  %v779_v9 = vrot.slane %v778_v6, 1 }
  0xef   :  { %v771_v11 = vadd.f32 %v770_v8, %v764_v7  ;;  %v780_v12 = vadd.f32 %v779_v9, %v778_v6 }
  0xf1   :  { %772 = vst [vmem:[#allocation3] sm:$0x1] %v771_v11  ;;  %v781_v13 = vadd.f32 %v780_v12, %v773_v10 }
  0xf3   :  { %782 = vst [vmem:[#allocation4] sm:$0x1] %v781_v13 }
  0xf8   :  { %v786_v14 = vld [vmem:[#allocation3] sm:$0x1] }
  0xf9   :  { %v787_v15 = vmul.f32 0.125, %v786_v14 }
  0xfa   :  { %v788_v16 = vld [vmem:[#allocation4] sm:$0x1] }
  0xfb   :  { %v789_v17 = vmul.f32 0.125, %v788_v16  ;;  %v790_v18 = vmul.f32 %v787_v15, %v787_v15 }
  0xfd   :  { %v791_v19 = vsub.f32 %v789_v17, %v790_v18 }
  0xff   :  { %v792_v20 = vmax.f32 %v791_v19, 0.0 }
 0x101   :  { %v794_v21 = vadd.f32 1e-05, %v792_v20 }
 0x103   :  { %1186 = vrsqrt.f32 %v794_v21  ;;  %vm801_vm1 = vweird.f32 %v794_v21 }
 0x109   :  { %v1187_v22 = vpop.eup %1186 }
 0x10a   :  { %v796_v23 = vmul.f32 %v1187_v22, %v794_v21  ;;  %vm802_vm0 = vweird.f32 %v1187_v22 }
 0x10b   :  { %vm803_vm2 = vmor %vm801_vm1, %vm802_vm0 }
 0x10c   :  { %v797_v24 = vmul.f32 %v1187_v22, %v796_v23 }
 0x10e   :  { %v798_v25 = vmul.f32 0.5, %v797_v24 }
 0x110   :  { %v799_v26 = vsub.f32 1.5, %v798_v25 }
 0x112   :  { %v800_v28 = vmul.f32 %v1187_v22, %v799_v26 }
 0x114   :  { %v804_v29 = vsel %vm803_vm2, %v1187_v22, %v800_v28 }
 0x115   :  { %v805_v30 = vmul.f32 %v804_v29, %v793_v27 }
 0x117   :  { %v807_v32 = vmul.f32 %v805_v30, %v787_v15  ;;  %v811_v33 = vperm.slane %v805_v30, 0 }
 0x119   :  { %v808_v34 = vsub.f32 %v806_v31, %v807_v32  ;;  %v813_v35 = vmul.f32 %v811_v33, %v760_v59 }
 0x11b   :  { %v815_v36 = vperm.slane %v808_v34, 0 }
 0x11d   :  { %v817_v37 = vadd.f32 %v815_v36, %v813_v35 }
 0x11f   :  { %819 = vst.msk [vmem:[%s1467_s5] sm:$0xff] %vm818_vm3, %v817_v37 }

// kernel: unet_like_forward.18
= control target key start
LH: loop header
LB: loop body
LE: loop exit
PB: predicated region body
PF: predicated region fallthrough
CT: control target
= control target key end

     0   :  { %vm591_vm3 = vcmask 130048   ;;  %s1094_s1 = inlined_call_operand.vmem [shape: bf16[640,128], index: 1, kind: input, shape index: {}]   ;;  %s1095_s2 = inlined_call_operand.vmem [shape: f32[1,128], index: 2, kind: input, shape index: {}]   ;;  %s1096_s0 = inlined_call_operand.vmem [shape: bf16[1,32,640], index: 0, kind: input, shape index: {}]   ;;  %s1097_s3 = inlined_call_operand.vmem [shape: f32[1,128], index: 3, kind: input, shape index: {}]   ;;  %s1098_s4 = inlined_call_operand.vmem [shape: f32[1,128], index: 4, kind: input, shape index: {}]   ;;  %s1099_s5 = inlined_call_operand.vmem [shape: f32[32,16], index: 5, kind: output, shape index: {}]  }
   0x1   :  { %v817_v0 = vld [vmem:[%s1094_s1 + $0x38] sm:$0xff]  ;;  %v816_v4 = vld [vmem:[%s1094_s1 + $0x30] sm:$0xff]  ;;  %v815_v8 = vld [vmem:[%s1094_s1 + $0x28] sm:$0xff] }
   0x2   :  { %v825_v1 = vld [vmem:[%s1094_s1 + $0x78] sm:$0xff]  ;;  %414 = vmatpush.bf16.msra.mxu0 %v817_v0  ;;  %v824_v5 = vld [vmem:[%s1094_s1 + $0x70] sm:$0xff]  ;;  %v823_v9 = vld [vmem:[%s1094_s1 + $0x68] sm:$0xff] }
   0x3   :  { %v833_v2 = vld [vmem:[%s1094_s1 + $0xb8] sm:$0xff]  ;;  %433 = vmatpush.bf16.msra.mxu1 %v825_v1  ;;  %v832_v6 = vld [vmem:[%s1094_s1 + $0xb0] sm:$0xff]  ;;  %v831_v10 = vld [vmem:[%s1094_s1 + $0xa8] sm:$0xff] }
   0x4   :  { %v841_v3 = vld [vmem:[%s1094_s1 + $0xf8] sm:$0xff]  ;;  %452 = vmatpush.bf16.msra.mxu2 %v833_v2  ;;  %v840_v7 = vld [vmem:[%s1094_s1 + $0xf0] sm:$0xff]  ;;  %v839_v11 = vld [vmem:[%s1094_s1 + $0xe8] sm:$0xff] }
   0x5   :  { %471 = vmatpush.bf16.msra.mxu3 %v841_v3  ;;  %v814_v12 = vld [vmem:[%s1094_s1 + $0x20] sm:$0xff]  ;;  %v813_v16 = vld [vmem:[%s1094_s1 + $0x18] sm:$0xff]  ;;  %v812_v20 = vld [vmem:[%s1094_s1 + $0x10] sm:$0xff] }
   0x6   :  { %415 = vmatpush.bf16.msra.mxu0 %v816_v4  ;;  %v822_v13 = vld [vmem:[%s1094_s1 + $0x60] sm:$0xff]  ;;  %v821_v17 = vld [vmem:[%s1094_s1 + $0x58] sm:$0xff]  ;;  %v820_v21 = vld [vmem:[%s1094_s1 + $0x50] sm:$0xff] }
   0x7   :  { %434 = vmatpush.bf16.msra.mxu1 %v824_v5  ;;  %v830_v14 = vld [vmem:[%s1094_s1 + $0xa0] sm:$0xff]  ;;  %v829_v18 = vld [vmem:[%s1094_s1 + $0x98] sm:$0xff]  ;;  %v828_v22 = vld [vmem:[%s1094_s1 + $0x90] sm:$0xff] }
   0x8   :  { %453 = vmatpush.bf16.msra.mxu2 %v832_v6  ;;  %v838_v15 = vld [vmem:[%s1094_s1 + $0xe0] sm:$0xff]  ;;  %v837_v19 = vld [vmem:[%s1094_s1 + $0xd8] sm:$0xff]  ;;  %v836_v23 = vld [vmem:[%s1094_s1 + $0xd0] sm:$0xff] }
   0x9   :  { %472 = vmatpush.bf16.msra.mxu3 %v840_v7  ;;  %v811_v24 = vld [vmem:[%s1094_s1 + $0x8] sm:$0xff]  ;;  %v810_v28 = vld [vmem:[%s1094_s1] sm:$0xff]  ;;  %v802_v33 = vld [vmem:[%s1096_s0 + $0x10] sm:$0xf0] }
   0xa   :  { %416 = vmatpush.bf16.msra.mxu0 %v815_v8  ;;  %v819_v25 = vld [vmem:[%s1094_s1 + $0x48] sm:$0xff]  ;;  %v818_v29 = vld [vmem:[%s1094_s1 + $0x40] sm:$0xff]  ;;  %v604_v35 = vld [vmem:[%s1096_s0 + $0x14] sm:$0xf0] }
   0xb   :  { %435 = vmatpush.bf16.msra.mxu1 %v823_v9  ;;  %v827_v26 = vld [vmem:[%s1094_s1 + $0x88] sm:$0xff]  ;;  %v826_v30 = vld [vmem:[%s1094_s1 + $0x80] sm:$0xff]  ;;  %v803_v37 = vld [vmem:[%s1096_s0 + $0x18] sm:$0xf0] }
   0xc   :  { %454 = vmatpush.bf16.msra.mxu2 %v831_v10  ;;  %v835_v27 = vld [vmem:[%s1094_s1 + $0xc8] sm:$0xff]  ;;  %v834_v31 = vld [vmem:[%s1094_s1 + $0xc0] sm:$0xff]  ;;  %v849_v40 = vld [vmem:[%s1094_s1 + $0x138] sm:$0xff] }
   0xd   :  { %473 = vmatpush.bf16.msra.mxu3 %v839_v11  ;;  %v602_v32 = vld [vmem:[%s1096_s0] sm:$0xf]  ;;  %v800_v34 = vld [vmem:[%s1096_s0 + $0x4] sm:$0xf]  ;;  %v610_v36 = vld [vmem:[%s1096_s0 + $0x8] sm:$0xf] }
   0xe   :  { %417 = vmatpush.bf16.msra.mxu0 %v814_v12  ;;  %v801_v38 = vld [vmem:[%s1096_s0 + $0xc] sm:$0xf]  ;;  %v612_v39 = vld [vmem:[%s1096_s0 + $0x1c] sm:$0xf0]  ;;  %v603_v41 = vor.u32 %v802_v33, %v602_v32  ;;  %v607_v42 = vor.u32 %v800_v34, %v604_v35  ;;  %v611_v43 = vor.u32 %v803_v37, %v610_v36  ;;  %v848_v45 = vld [vmem:[%s1094_s1 + $0x130] sm:$0xff] }
   0xf   :  { %436 = vmatpush.bf16.msra.mxu1 %v822_v13  ;;  %v615_v44 = vor.u32 %v801_v38, %v612_v39  ;;  %v847_v46 = vld [vmem:[%s1094_s1 + $0x128] sm:$0xff]  ;;  %v846_v47 = vld [vmem:[%s1094_s1 + $0x120] sm:$0xff]  ;;  %v807_v49 = vld [vmem:[%s1096_s0 + $0x38] sm:$0xf0] }
  0x10   :  { %455 = vmatpush.bf16.msra.mxu2 %v830_v14  ;;  %v622_v48 = vld [vmem:[%s1096_s0 + $0x28] sm:$0xf]  ;;  %v805_v50 = vld [vmem:[%s1096_s0 + $0x2c] sm:$0xf]  ;;  %v624_v51 = vld [vmem:[%s1096_s0 + $0x3c] sm:$0xf0] }
  0x11   :  { %474 = vmatpush.bf16.msra.mxu3 %v838_v15  ;;  %v630_v52 = vld [vmem:[%s1096_s0 + $0x30] sm:$0xf]  ;;  %v808_v53 = vld [vmem:[%s1096_s0 + $0x40] sm:$0xf0]  ;;  %v806_v54 = vld [vmem:[%s1096_s0 + $0x34] sm:$0xf]  ;;  %v623_v57 = vor.u32 %v807_v49, %v622_v48  ;;  %v627_v58 = vor.u32 %v805_v50, %v624_v51 }
  0x12   :  { %418 = vmatpush.bf16.msra.mxu0 %v813_v16  ;;  %v632_v55 = vld [vmem:[%s1096_s0 + $0x44] sm:$0xf0]  ;;  %v845_v56 = vld [vmem:[%s1094_s1 + $0x118] sm:$0xff]  ;;  %v631_v59 = vor.u32 %v808_v53, %v630_v52  ;;  %v844_v61 = vld [vmem:[%s1094_s1 + $0x110] sm:$0xff]  ;;  %v862_v16 = vmov 0.0  }
  0x13   :  { %437 = vmatpush.bf16.msra.mxu1 %v821_v17  ;;  %v635_v60 = vor.u32 %v806_v54, %v632_v55  ;;  %v843_v62 = vld [vmem:[%s1094_s1 + $0x108] sm:$0xff]  ;;  %v842_v63 = vld [vmem:[%s1094_s1 + $0x100] sm:$0xff]  ;;  %v618_v0 = vld [vmem:[%s1096_s0 + $0x10] sm:$0xf]  ;;  %24 = vst [vmem:[#allocation3] sm:$0x1] %v862_v16 }
  0x14   :  { %456 = vmatpush.bf16.msra.mxu2 %v829_v18  ;;  %v804_v1 = vld [vmem:[%s1096_s0 + $0x20] sm:$0xf0]  ;;  %v638_v2 = vld [vmem:[%s1096_s0 + $0x38] sm:$0xf]  ;;  %v809_v3 = vld [vmem:[%s1096_s0 + $0x48] sm:$0xf0] }
  0x15   :  { %475 = vmatpush.bf16.msra.mxu3 %v837_v19  ;;  %v619_v4 = vor.u32 %v804_v1, %v618_v0  ;;  %v639_v5 = vor.u32 %v809_v3, %v638_v2  ;;  %25 = vst [vmem:[#allocation4] sm:$0x1] %v862_v16  ;;  %v859_v17 = vld [vmem:[%s1095_s2] ss:$0 sm:$0xff] }
  0x16   :  { %419 = vmatpush.bf16.msra.mxu0 %v812_v20 }
  0x17   :  { %438 = vmatpush.bf16.msra.mxu1 %v820_v21 }
  0x18   :  { %457 = vmatpush.bf16.msra.mxu2 %v828_v22 }
  0x19   :  { %476 = vmatpush.bf16.msra.mxu3 %v836_v23 }
  0x1a   :  { %420 = vmatpush.bf16.msra.mxu0 %v811_v24 }
  0x1b   :  { %439 = vmatpush.bf16.msra.mxu1 %v819_v25 }
  0x1c   :  { %458 = vmatpush.bf16.msra.mxu2 %v827_v26 }
  0x1d   :  { %477 = vmatpush.bf16.msra.mxu3 %v835_v27 }
  0x1e   :  { %421 = vmatpush.bf16.msra.mxu0 %v810_v28 }
  0x1f   :  { %440 = vmatpush.bf16.msra.mxu1 %v818_v29 }
  0x20   :  { %459 = vmatpush.bf16.msra.mxu2 %v826_v30 }
  0x21   :  { %478 = vmatpush.bf16.msra.mxu3 %v834_v31  ;;  %422 = vmatmul.bf16.vlgmr.msra.gmra.mxu0 %v603_v41 }
  0x22   :  { %490 = vmatpush.bf16.msrb.mxu0 %v849_v40  ;;  %441 = vmatmul.bf16.vlgmr.msra.gmra.mxu1 %v607_v42 }
  0x23   :  { %850 = vmatpush.bf16.msrb.mxu1 %v849_v40  ;;  %460 = vmatmul.bf16.vlgmr.msra.gmra.mxu2 %v611_v43 }
  0x24   :  { %479 = vmatmul.bf16.vlgmr.msra.gmra.mxu3 %v615_v44 }
  0x26   :  { %491 = vmatpush.bf16.msrb.mxu0 %v848_v45 }
  0x27   :  { %851 = vmatpush.bf16.msrb.mxu1 %v848_v45 }
  0x2a   :  { %492 = vmatpush.bf16.msrb.mxu0 %v847_v46 }
  0x2b   :  { %852 = vmatpush.bf16.msrb.mxu1 %v847_v46 }
  0x2e   :  { %493 = vmatpush.bf16.msrb.mxu0 %v846_v47 }
  0x2f   :  { %853 = vmatpush.bf16.msrb.mxu1 %v846_v47 }
  0x31   :  { %427 = vmatmul.bf16.gmra.mxu0 %v623_v57 }
  0x32   :  { %494 = vmatpush.bf16.msrb.mxu0 %v845_v56  ;;  %446 = vmatmul.bf16.gmra.mxu1 %v627_v58 }
  0x33   :  { %854 = vmatpush.bf16.msrb.mxu1 %v845_v56  ;;  %465 = vmatmul.bf16.gmra.mxu2 %v631_v59 }
  0x34   :  { %484 = vmatmul.bf16.gmra.mxu3 %v635_v60 }
  0x36   :  { %495 = vmatpush.bf16.msrb.mxu0 %v844_v61 }
  0x37   :  { %855 = vmatpush.bf16.msrb.mxu1 %v844_v61 }
  0x3a   :  { %496 = vmatpush.bf16.msrb.mxu0 %v843_v62 }
  0x3b   :  { %856 = vmatpush.bf16.msrb.mxu1 %v843_v62 }
  0x3e   :  { %497 = vmatpush.bf16.msrb.mxu0 %v842_v63 }
  0x3f   :  { %857 = vmatpush.bf16.msrb.mxu1 %v842_v63 }
  0x41   :  { %498 = vmatmul.bf16.vlgmr.msrb.gmra.mxu0 %v619_v4 }
  0x42   :  { %503 = vmatmul.bf16.vlgmr.msrb.gmra.mxu1 %v639_v5 }
  0x9e   :  { %v423_v6 = vpop.f32.mrf.mxu0 }
  0x9f   :  { %v442_v7 = vpop.f32.mrf.mxu1  ;;  %v424_v21 = vadd.f32 %v859_v17, %v423_v6 }
  0xa1   :  { %v443_v24 = vadd.f32 %v442_v7, %v424_v21  ;;  %v519_v7 = vld [vmem:[#allocation3] sm:$0x1] }
  0xa6   :  { %v461_v8 = vpop.f32.mrf.mxu2  ;;  %v425_v10 = vpop.f32.mrf.mxu0 }
  0xa7   :  { %v480_v9 = vpop.f32.mrf.mxu3  ;;  %v444_v11 = vpop.f32.mrf.mxu1  ;;  %v426_v25 = vadd.f32 %v859_v17, %v425_v10  ;;  %v462_v27 = vadd.f32 %v461_v8, %v443_v24  ;;  %v531_v10 = vld [vmem:[#allocation4] sm:$0x1] }
  0xa9   :  { %v445_v32 = vadd.f32 %v444_v11, %v426_v25  ;;  %v481_v35 = vadd.f32 %v480_v9, %v462_v27  ;;  %v557_v27 = vld [vmem:[%s1097_s3] sm:$0x1] }
  0xae   :  { %v463_v12 = vpop.f32.mrf.mxu2  ;;  %v428_v14 = vpop.f32.mrf.mxu0 }
  0xaf   :  { %v482_v13 = vpop.f32.mrf.mxu3  ;;  %v447_v15 = vpop.f32.mrf.mxu1  ;;  %v429_v23 = vadd.f32 %v859_v17, %v428_v14  ;;  %v464_v36 = vadd.f32 %v463_v12, %v445_v32 }
  0xb1   :  { %v448_v28 = vadd.f32 %v447_v15, %v429_v23  ;;  %v483_v41 = vadd.f32 %v482_v13, %v464_v36 }
  0xb6   :  { %v466_v18 = vpop.f32.mrf.mxu2  ;;  %v430_v19 = vpop.f32.mrf.mxu0 }
  0xb7   :  { %v449_v20 = vpop.f32.mrf.mxu1  ;;  %v485_v22 = vpop.f32.mrf.mxu3  ;;  %v431_v26 = vadd.f32 %v859_v17, %v430_v19  ;;  %v467_v33 = vadd.f32 %v466_v18, %v448_v28 }
  0xb9   :  { %v450_v34 = vadd.f32 %v449_v20, %v431_v26  ;;  %v486_v39 = vadd.f32 %v485_v22, %v467_v33 }
  0xbe   :  { %v468_v29 = vpop.f32.mrf.mxu2  ;;  %v499_v30 = vpop.f32.mrf.mxu0 }
  0xbf   :  { %v504_v31 = vpop.f32.mrf.mxu1  ;;  %v469_v37 = vadd.f32 %v468_v29, %v450_v34  ;;  %v487_v38 = vpop.f32.mrf.mxu3  ;;  %v500_v40 = vadd.f32 %v499_v30, %v481_v35 }
  0xc0   :  { %v505_v43 = vadd.f32 %v504_v31, %v486_v39  ;;  %v570_v31 = vld [vmem:[%s1098_s4] sm:$0x1] }
  0xc1   :  { %v488_v42 = vadd.f32 %v487_v38, %v469_v37  ;;  %v509_v46 = vmax.f32 %v500_v40, 0.0 }
  0xc2   :  { %v511_v49 = vmax.f32 %v505_v43, 0.0 }
  0xc3   :  { %v532_v51 = vmul.f32 %v509_v46, %v509_v46 }
  0xc4   :  { %v534_v55 = vmul.f32 %v511_v49, %v511_v49 }
  0xc6   :  { %v501_v44 = vpop.f32.mrf.mxu0 }
  0xc7   :  { %v506_v45 = vpop.f32.mrf.mxu1  ;;  %v502_v47 = vadd.f32 %v501_v44, %v483_v41 }
  0xc8   :  { %v507_v48 = vadd.f32 %v506_v45, %v488_v42 }
  0xc9   :  { %v510_v50 = vmax.f32 %v502_v47, 0.0 }
  0xca   :  { %v512_v54 = vmax.f32 %v507_v48, 0.0 }
  0xcb   :  { %v520_v52 = vadd.f32 %v510_v50, %v509_v46  ;;  %v533_v53 = vmul.f32 %v510_v50, %v510_v50 }
  0xcc   :  { %v535_v59 = vmul.f32 %v512_v54, %v512_v54 }
  0xcd   :  { %v536_v56 = vadd.f32 %v533_v53, %v532_v51  ;;  %v521_v57 = vadd.f32 %v520_v52, %v511_v49 }
  0xcf   :  { %v522_v58 = vadd.f32 %v521_v57, %v512_v54  ;;  %v537_v60 = vadd.f32 %v536_v56, %v534_v55 }
  0xd1   :  { %v523_v61 = vrot.slane %v522_v58, 4  ;;  %v538_v62 = vadd.f32 %v537_v60, %v535_v59 }
  0xd3   :  { %v524_v63 = vadd.f32 %v523_v61, %v522_v58  ;;  %v539_v0 = vrot.slane %v538_v62, 4 }
  0xd5   :  { %v525_v1 = vrot.slane %v524_v63, 2  ;;  %v540_v2 = vadd.f32 %v539_v0, %v538_v62 }
  0xd7   :  { %v526_v3 = vadd.f32 %v525_v1, %v524_v63  ;;  %v541_v4 = vrot.slane %v540_v2, 2 }
  0xd9   :  { %v527_v5 = vrot.slane %v526_v3, 1  ;;  %v542_v6 = vadd.f32 %v541_v4, %v540_v2 }
  0xdb   :  { %v528_v8 = vadd.f32 %v527_v5, %v526_v3  ;;  %v543_v9 = vrot.slane %v542_v6, 1 }
  0xdd   :  { %v529_v11 = vadd.f32 %v528_v8, %v519_v7  ;;  %v544_v12 = vadd.f32 %v543_v9, %v542_v6 }
  0xdf   :  { %530 = vst [vmem:[#allocation3] sm:$0x1] %v529_v11  ;;  %v545_v13 = vadd.f32 %v544_v12, %v531_v10 }
  0xe1   :  { %546 = vst [vmem:[#allocation4] sm:$0x1] %v545_v13 }
  0xe6   :  { %v550_v14 = vld [vmem:[#allocation3] sm:$0x1] }
  0xe7   :  { %v551_v15 = vmul.f32 0.03125, %v550_v14 }
  0xe8   :  { %v552_v16 = vld [vmem:[#allocation4] sm:$0x1] }
  0xe9   :  { %v553_v17 = vmul.f32 0.03125, %v552_v16  ;;  %v554_v18 = vmul.f32 %v551_v15, %v551_v15 }
  0xeb   :  { %v555_v19 = vsub.f32 %v553_v17, %v554_v18 }
  0xed   :  { %v556_v20 = vmax.f32 %v555_v19, 0.0 }
  0xef   :  { %v558_v21 = vadd.f32 1e-05, %v556_v20 }
  0xf1   :  { %860 = vrsqrt.f32 %v558_v21  ;;  %vm565_vm1 = vweird.f32 %v558_v21 }
  0xf7   :  { %v861_v22 = vpop.eup %860 }
  0xf8   :  { %v560_v23 = vmul.f32 %v861_v22, %v558_v21  ;;  %vm566_vm0 = vweird.f32 %v861_v22 }
  0xf9   :  { %vm567_vm2 = vmor %vm565_vm1, %vm566_vm0 }
  0xfa   :  { %v561_v24 = vmul.f32 %v861_v22, %v560_v23 }
  0xfc   :  { %v562_v25 = vmul.f32 0.5, %v561_v24 }
  0xfe   :  { %v563_v26 = vsub.f32 1.5, %v562_v25 }
 0x100   :  { %v564_v28 = vmul.f32 %v861_v22, %v563_v26 }
 0x102   :  { %v568_v29 = vsel %vm567_vm2, %v861_v22, %v564_v28 }
 0x103   :  { %v569_v30 = vmul.f32 %v568_v29, %v557_v27 }
 0x105   :  { %v571_v32 = vmul.f32 %v569_v30, %v551_v15  ;;  %v578_v33 = vperm.slane %v569_v30, 0 }
 0x107   :  { %v572_v34 = vsub.f32 %v570_v31, %v571_v32  ;;  %v580_v35 = vmul.f32 %v578_v33, %v509_v46  ;;  %v581_v36 = vmul.f32 %v578_v33, %v510_v50  ;;  %v582_v37 = vmul.f32 %v578_v33, %v511_v49 }
 0x108   :  { %v583_v39 = vmul.f32 %v578_v33, %v512_v54 }
 0x109   :  { %v585_v38 = vperm.slane %v572_v34, 0 }
 0x10b   :  { %v587_v40 = vadd.f32 %v585_v38, %v580_v35  ;;  %v588_v41 = vadd.f32 %v585_v38, %v581_v36  ;;  %v589_v42 = vadd.f32 %v585_v38, %v582_v37  ;;  %v590_v43 = vadd.f32 %v585_v38, %v583_v39 }
 0x10d   :  { %592 = vst.msk [vmem:[%s1099_s5] sm:$0xff] %vm591_vm3, %v587_v40 }
 0x10e   :  { %593 = vst.msk [vmem:[%s1099_s5 + $0x8] sm:$0xff] %vm591_vm3, %v588_v41 }
 0x10f   :  { %594 = vst.msk [vmem:[%s1099_s5 + $0x10] sm:$0xff] %vm591_vm3, %v589_v42 }
 0x110   :  { %595 = vst.msk [vmem:[%s1099_s5 + $0x18] sm:$0xff] %vm591_vm3, %v590_v43 }

// kernel: unet_like_forward.19
= control target key start
LH: loop header
LB: loop body
LE: loop exit
PB: predicated region body
PF: predicated region fallthrough
CT: control target
= control target key end

     0   :  { %vm707_vm3 = vcmask 64512   ;;  %s1497_s1 = inlined_call_operand.vmem [shape: bf16[384,128], index: 1, kind: input, shape index: {}]   ;;  %s1498_s2 = inlined_call_operand.vmem [shape: f32[1,128], index: 2, kind: input, shape index: {}]   ;;  %s1499_s0 = inlined_call_operand.vmem [shape: bf16[1,128,384], index: 0, kind: input, shape index: {}]   ;;  %s1500_s3 = inlined_call_operand.vmem [shape: f32[1,128], index: 3, kind: input, shape index: {}]   ;;  %s1501_s4 = inlined_call_operand.vmem [shape: f32[1,128], index: 4, kind: input, shape index: {}]   ;;  %s1502_s5 = inlined_call_operand.vmem [shape: f32[128,8], index: 5, kind: output, shape index: {}]  }
   0x1   :  { %v951_v0 = vld [vmem:[%s1497_s1 + $0x38] sm:$0xff]  ;;  %v950_v3 = vld [vmem:[%s1497_s1 + $0x30] sm:$0xff]  ;;  %v949_v6 = vld [vmem:[%s1497_s1 + $0x28] sm:$0xff] }
   0x2   :  { %v1033_v1 = vld [vmem:[%s1497_s1 + $0x78] sm:$0xff]  ;;  %382 = vmatpush.bf16.msra.mxu0 %v951_v0  ;;  %968 = vmatpush.bf16.msra.mxu3 %v951_v0  ;;  %v1048_v4 = vld [vmem:[%s1497_s1 + $0x70] sm:$0xff]  ;;  %v957_v7 = vld [vmem:[%s1497_s1 + $0x68] sm:$0xff] }
   0x3   :  { %v1038_v2 = vld [vmem:[%s1497_s1 + $0xb8] sm:$0xff]  ;;  %431 = vmatpush.bf16.msra.mxu1 %v1033_v1  ;;  %v1053_v5 = vld [vmem:[%s1497_s1 + $0xb0] sm:$0xff]  ;;  %v1066_v8 = vld [vmem:[%s1497_s1 + $0xa8] sm:$0xff] }
   0x4   :  { %480 = vmatpush.bf16.msra.mxu2 %v1038_v2  ;;  %v948_v9 = vld [vmem:[%s1497_s1 + $0x20] sm:$0xff]  ;;  %v947_v12 = vld [vmem:[%s1497_s1 + $0x18] sm:$0xff]  ;;  %v946_v15 = vld [vmem:[%s1497_s1 + $0x10] sm:$0xff] }
   0x5   :  { %v956_v10 = vld [vmem:[%s1497_s1 + $0x60] sm:$0xff]  ;;  %v955_v13 = vld [vmem:[%s1497_s1 + $0x58] sm:$0xff]  ;;  %v954_v16 = vld [vmem:[%s1497_s1 + $0x50] sm:$0xff] }
   0x6   :  { %383 = vmatpush.bf16.msra.mxu0 %v950_v3  ;;  %969 = vmatpush.bf16.msra.mxu3 %v950_v3  ;;  %v1078_v11 = vld [vmem:[%s1497_s1 + $0xa0] sm:$0xff]  ;;  %v1090_v14 = vld [vmem:[%s1497_s1 + $0x98] sm:$0xff]  ;;  %v1102_v17 = vld [vmem:[%s1497_s1 + $0x90] sm:$0xff] }
   0x7   :  { %432 = vmatpush.bf16.msra.mxu1 %v1048_v4  ;;  %v945_v18 = vld [vmem:[%s1497_s1 + $0x8] sm:$0xff]  ;;  %v944_v21 = vld [vmem:[%s1497_s1] sm:$0xff]  ;;  %v802_v26 = vld [vmem:[%s1499_s0 + $0x90] sm:$0xf] }
   0x8   :  { %481 = vmatpush.bf16.msra.mxu2 %v1053_v5  ;;  %v953_v19 = vld [vmem:[%s1497_s1 + $0x48] sm:$0xff]  ;;  %v952_v22 = vld [vmem:[%s1497_s1 + $0x40] sm:$0xff]  ;;  %v939_v27 = vld [vmem:[%s1499_s0 + $0x98] sm:$0xf0] }
   0x9   :  { %v1114_v20 = vld [vmem:[%s1497_s1 + $0x88] sm:$0xff]  ;;  %v1125_v23 = vld [vmem:[%s1497_s1 + $0x80] sm:$0xff]  ;;  %v732_v29 = vld [vmem:[%s1499_s0 + $0xc] sm:$0xf0]  ;;  %v803_v33 = vor.u32 %v939_v27, %v802_v26 }
   0xa   :  { %384 = vmatpush.bf16.msra.mxu0 %v949_v6  ;;  %970 = vmatpush.bf16.msra.mxu3 %v949_v6  ;;  %v730_v24 = vld [vmem:[%s1499_s0] sm:$0xf]  ;;  %v921_v25 = vld [vmem:[%s1499_s0 + $0x8] sm:$0xf0]  ;;  %v920_v28 = vld [vmem:[%s1499_s0 + $0x4] sm:$0xf] }
   0xb   :  { %433 = vmatpush.bf16.msra.mxu1 %v957_v7  ;;  %v738_v30 = vld [vmem:[%s1499_s0 + $0x8] sm:$0xf]  ;;  %v922_v31 = vld [vmem:[%s1499_s0 + $0x10] sm:$0xf0]  ;;  %v731_v32 = vor.u32 %v921_v25, %v730_v24  ;;  %v735_v34 = vor.u32 %v920_v28, %v732_v29  ;;  %v742_v36 = vld [vmem:[%s1499_s0 + $0x18] sm:$0xf] }
   0xc   :  { %482 = vmatpush.bf16.msra.mxu2 %v1066_v8  ;;  %v739_v35 = vor.u32 %v922_v31, %v738_v30  ;;  %v924_v37 = vld [vmem:[%s1499_s0 + $0x20] sm:$0xf0]  ;;  %v814_v38 = vld [vmem:[%s1499_s0 + $0xa8] sm:$0xf]  ;;  %v942_v39 = vld [vmem:[%s1499_s0 + $0xb0] sm:$0xf0] }
   0xd   :  { %v923_v40 = vld [vmem:[%s1499_s0 + $0x1c] sm:$0xf]  ;;  %v744_v41 = vld [vmem:[%s1499_s0 + $0x24] sm:$0xf0]  ;;  %v750_v42 = vld [vmem:[%s1499_s0 + $0x20] sm:$0xf]  ;;  %v743_v44 = vor.u32 %v924_v37, %v742_v36  ;;  %v815_v45 = vor.u32 %v942_v39, %v814_v38 }
   0xe   :  { %385 = vmatpush.bf16.msra.mxu0 %v948_v9  ;;  %971 = vmatpush.bf16.msra.mxu3 %v948_v9  ;;  %v925_v43 = vld [vmem:[%s1499_s0 + $0x28] sm:$0xf0]  ;;  %v747_v46 = vor.u32 %v923_v40, %v744_v41  ;;  %v754_v48 = vld [vmem:[%s1499_s0 + $0x30] sm:$0xf]  ;;  %v927_v49 = vld [vmem:[%s1499_s0 + $0x38] sm:$0xf0] }
   0xf   :  { %434 = vmatpush.bf16.msra.mxu1 %v956_v10  ;;  %v751_v47 = vor.u32 %v925_v43, %v750_v42  ;;  %v926_v50 = vld [vmem:[%s1499_s0 + $0x34] sm:$0xf]  ;;  %v804_v52 = vld [vmem:[%s1499_s0 + $0x9c] sm:$0xf0]  ;;  %v762_v54 = vld [vmem:[%s1499_s0 + $0x38] sm:$0xf]  ;;  %v755_v56 = vor.u32 %v927_v49, %v754_v48 }
  0x10   :  { %483 = vmatpush.bf16.msra.mxu2 %v1078_v11  ;;  %v938_v51 = vld [vmem:[%s1499_s0 + $0x94] sm:$0xf]  ;;  %v756_v53 = vld [vmem:[%s1499_s0 + $0x3c] sm:$0xf0]  ;;  %v928_v55 = vld [vmem:[%s1499_s0 + $0x40] sm:$0xf0] }
  0x11   :  { %v807_v57 = vor.u32 %v938_v51, %v804_v52  ;;  %v759_v58 = vor.u32 %v926_v50, %v756_v53  ;;  %v763_v59 = vor.u32 %v928_v55, %v762_v54  ;;  %v766_v60 = vld [vmem:[%s1499_s0 + $0x48] sm:$0xf]  ;;  %v930_v61 = vld [vmem:[%s1499_s0 + $0x50] sm:$0xf0]  ;;  %v929_v62 = vld [vmem:[%s1499_s0 + $0x4c] sm:$0xf] }
  0x12   :  { %386 = vmatpush.bf16.msra.mxu0 %v947_v12  ;;  %972 = vmatpush.bf16.msra.mxu3 %v947_v12  ;;  %v941_v63 = vld [vmem:[%s1499_s0 + $0xac] sm:$0xf]  ;;  %v816_v0 = vld [vmem:[%s1499_s0 + $0xb4] sm:$0xf0]  ;;  %v931_v3 = vld [vmem:[%s1499_s0 + $0x58] sm:$0xf0] }
  0x13   :  { %435 = vmatpush.bf16.msra.mxu1 %v955_v13  ;;  %v933_v9 = vld [vmem:[%s1499_s0 + $0x68] sm:$0xf0]  ;;  %v940_v12 = vld [vmem:[%s1499_s0 + $0xa0] sm:$0xf0]  ;;  %v943_v24 = vld [vmem:[%s1499_s0 + $0xb8] sm:$0xf0] }
  0x14   :  { %484 = vmatpush.bf16.msra.mxu2 %v1090_v14  ;;  %v792_v25 = vld [vmem:[%s1499_s0 + $0x84] sm:$0xf0]  ;;  %v798_v26 = vld [vmem:[%s1499_s0 + $0x80] sm:$0xf]  ;;  %v937_v27 = vld [vmem:[%s1499_s0 + $0x88] sm:$0xf0] }
  0x15   :  { %v799_v31 = vor.u32 %v937_v27, %v798_v26 }
  0x16   :  { %387 = vmatpush.bf16.msra.mxu0 %v946_v15  ;;  %973 = vmatpush.bf16.msra.mxu3 %v946_v15  ;;  %v934_v15 = vld [vmem:[%s1499_s0 + $0x70] sm:$0xf0] }
  0x17   :  { %436 = vmatpush.bf16.msra.mxu1 %v954_v16 }
  0x18   :  { %485 = vmatpush.bf16.msra.mxu2 %v1102_v17 }
  0x1a   :  { %388 = vmatpush.bf16.msra.mxu0 %v945_v18  ;;  %974 = vmatpush.bf16.msra.mxu3 %v945_v18 }
  0x1b   :  { %437 = vmatpush.bf16.msra.mxu1 %v953_v19 }
  0x1c   :  { %486 = vmatpush.bf16.msra.mxu2 %v1114_v20 }
  0x1e   :  { %389 = vmatpush.bf16.msra.mxu0 %v944_v21  ;;  %975 = vmatpush.bf16.msra.mxu3 %v944_v21  ;;  %v936_v21 = vld [vmem:[%s1499_s0 + $0x80] sm:$0xf0] }
  0x1f   :  { %438 = vmatpush.bf16.msra.mxu1 %v952_v22 }
  0x20   :  { %487 = vmatpush.bf16.msra.mxu2 %v1125_v23 }
  0x21   :  { %390 = vmatmul.bf16.vlgmr.msra.gmra.mxu0 %v731_v32  ;;  %420 = vmatmul.bf16.vlgmr.msra.gmra.mxu3 %v803_v33  ;;  %v1286_v32 = vld [vmem:[%s1498_s2] ss:$0 sm:$0xff] }
  0x22   :  { %976 = vmatpush.bf16.msrb.mxu3 %v1033_v1  ;;  %439 = vmatmul.bf16.vlgmr.msra.gmra.mxu1 %v735_v34  ;;  %v768_v1 = vld [vmem:[%s1499_s0 + $0x54] sm:$0xf0] }
  0x23   :  { %488 = vmatmul.bf16.vlgmr.msra.gmra.mxu2 %v739_v35  ;;  %v771_v6 = vor.u32 %v929_v62, %v768_v1 }
  0x26   :  { %977 = vmatpush.bf16.msrb.mxu3 %v1048_v4  ;;  %v767_v4 = vor.u32 %v930_v61, %v766_v60 }
  0x2a   :  { %978 = vmatpush.bf16.msrb.mxu3 %v957_v7 }
  0x2e   :  { %979 = vmatpush.bf16.msrb.mxu3 %v956_v10  ;;  %v932_v10 = vld [vmem:[%s1499_s0 + $0x64] sm:$0xf] }
  0x31   :  { %395 = vmatmul.bf16.gmra.mxu0 %v743_v44  ;;  %425 = vmatmul.bf16.gmra.mxu3 %v815_v45 }
  0x32   :  { %980 = vmatpush.bf16.msrb.mxu3 %v955_v13  ;;  %444 = vmatmul.bf16.gmra.mxu1 %v747_v46  ;;  %v780_v13 = vld [vmem:[%s1499_s0 + $0x6c] sm:$0xf0] }
  0x33   :  { %493 = vmatmul.bf16.gmra.mxu2 %v751_v47  ;;  %v783_v18 = vor.u32 %v932_v10, %v780_v13 }
  0x36   :  { %981 = vmatpush.bf16.msrb.mxu3 %v954_v16 }
  0x3a   :  { %982 = vmatpush.bf16.msrb.mxu3 %v953_v19 }
  0x3e   :  { %983 = vmatpush.bf16.msrb.mxu3 %v952_v22  ;;  %v935_v22 = vld [vmem:[%s1499_s0 + $0x7c] sm:$0xf] }
  0x3f   :  { %v795_v30 = vor.u32 %v935_v22, %v792_v25  ;;  %v996_v25 = vmov 0.0  }
  0x40   :  { %24 = vst [vmem:[#allocation3] sm:$0x1] %v996_v25 }
  0x41   :  { %400 = vmatmul.bf16.gmra.mxu0 %v755_v56  ;;  %469 = vmatmul.bf16.vlgmr.msrb.gmra.mxu3 %v807_v57  ;;  %25 = vst [vmem:[#allocation4] sm:$0x1] %v996_v25 }
  0x42   :  { %984 = vmatpush.bf16.msra.mxu3 %v1038_v2  ;;  %449 = vmatmul.bf16.gmra.mxu1 %v759_v58  ;;  %v774_v2 = vld [vmem:[%s1499_s0 + $0x50] sm:$0xf] }
  0x43   :  { %498 = vmatmul.bf16.gmra.mxu2 %v763_v59  ;;  %v775_v7 = vor.u32 %v931_v3, %v774_v2 }
  0x46   :  { %985 = vmatpush.bf16.msra.mxu3 %v1053_v5  ;;  %v819_v5 = vor.u32 %v941_v63, %v816_v0 }
  0x4a   :  { %986 = vmatpush.bf16.msra.mxu3 %v1066_v8  ;;  %v778_v8 = vld [vmem:[%s1499_s0 + $0x60] sm:$0xf] }
  0x4b   :  { %v779_v16 = vor.u32 %v933_v9, %v778_v8 }
  0x4e   :  { %987 = vmatpush.bf16.msra.mxu3 %v1078_v11  ;;  %v810_v11 = vld [vmem:[%s1499_s0 + $0x98] sm:$0xf] }
  0x51   :  { %405 = vmatmul.bf16.gmra.mxu0 %v767_v4  ;;  %474 = vmatmul.bf16.gmra.mxu3 %v819_v5 }
  0x52   :  { %988 = vmatpush.bf16.msra.mxu3 %v1090_v14  ;;  %454 = vmatmul.bf16.gmra.mxu1 %v771_v6  ;;  %v786_v14 = vld [vmem:[%s1499_s0 + $0x68] sm:$0xf] }
  0x53   :  { %503 = vmatmul.bf16.gmra.mxu2 %v775_v7  ;;  %v787_v19 = vor.u32 %v934_v15, %v786_v14 }
  0x56   :  { %989 = vmatpush.bf16.msra.mxu3 %v1102_v17  ;;  %v811_v17 = vor.u32 %v940_v12, %v810_v11 }
  0x5a   :  { %990 = vmatpush.bf16.msra.mxu3 %v1114_v20  ;;  %v790_v20 = vld [vmem:[%s1499_s0 + $0x78] sm:$0xf] }
  0x5b   :  { %v791_v28 = vor.u32 %v936_v21, %v790_v20 }
  0x5e   :  { %991 = vmatpush.bf16.msra.mxu3 %v1125_v23  ;;  %v822_v23 = vld [vmem:[%s1499_s0 + $0xb0] sm:$0xf] }
  0x5f   :  { %v823_v29 = vor.u32 %v943_v24, %v822_v23 }
  0x61   :  { %410 = vmatmul.bf16.gmra.mxu0 %v779_v16  ;;  %518 = vmatmul.bf16.vlgmr.msra.gmra.mxu3 %v811_v17 }
  0x62   :  { %459 = vmatmul.bf16.gmra.mxu1 %v783_v18 }
  0x63   :  { %508 = vmatmul.bf16.gmra.mxu2 %v787_v19 }
  0x71   :  { %415 = vmatmul.bf16.gmra.mxu0 %v791_v28  ;;  %523 = vmatmul.bf16.gmra.mxu3 %v823_v29 }
  0x72   :  { %464 = vmatmul.bf16.gmra.mxu1 %v795_v30 }
  0x73   :  { %513 = vmatmul.bf16.gmra.mxu2 %v799_v31 }
  0x9e   :  { %v391_v33 = vpop.f32.mrf.mxu0 }
  0x9f   :  { %v392_v34 = vadd.f32 %v1286_v32, %v391_v33  ;;  %v440_v35 = vpop.f32.mrf.mxu1 }
  0xa1   :  { %v441_v36 = vadd.f32 %v440_v35, %v392_v34 }
  0xa4   :  { %v1289_v37 = vpop.f32.mrf.mxu3 }
  0xa6   :  { %v489_v38 = vpop.f32.mrf.mxu2  ;;  %v393_v40 = vpop.f32.mrf.mxu0 }
  0xa7   :  { %v490_v39 = vadd.f32 %v489_v38, %v441_v36  ;;  %v442_v41 = vpop.f32.mrf.mxu1  ;;  %v394_v2 = vadd.f32 %v1286_v32, %v393_v40 }
  0xa9   :  { %v443_v6 = vadd.f32 %v442_v41, %v394_v2  ;;  %v1315_v22 = vmax.f32 %v490_v39, 0.0 }
  0xab   :  { %v588_v34 = vmul.f32 %v1315_v22, %v1315_v22 }
  0xac   :  { %v1291_v42 = vpop.f32.mrf.mxu3 }
  0xae   :  { %v491_v43 = vpop.f32.mrf.mxu2  ;;  %v396_v44 = vpop.f32.mrf.mxu0 }
  0xaf   :  { %v445_v45 = vpop.f32.mrf.mxu1  ;;  %v397_v4 = vadd.f32 %v1286_v32, %v396_v44  ;;  %v492_v9 = vadd.f32 %v491_v43, %v443_v6 }
  0xb1   :  { %v446_v10 = vadd.f32 %v445_v45, %v397_v4  ;;  %v1309_v13 = vmax.f32 %v492_v9, 0.0 }
  0xb3   :  { %v589_v26 = vmul.f32 %v1309_v13, %v1309_v13  ;;  %v564_v39 = vadd.f32 %v1309_v13, %v1315_v22 }
  0xb4   :  { %v1293_v46 = vpop.f32.mrf.mxu3 }
  0xb5   :  { %v604_v40 = vadd.f32 %v589_v26, %v588_v34  ;;  %v427_v34 = vadd.f32 %v1286_v32, %v1293_v46 }
  0xb6   :  { %v494_v47 = vpop.f32.mrf.mxu2  ;;  %v398_v48 = vpop.f32.mrf.mxu0 }
  0xb7   :  { %v447_v49 = vpop.f32.mrf.mxu1  ;;  %v399_v11 = vadd.f32 %v1286_v32, %v398_v48  ;;  %v495_v15 = vadd.f32 %v494_v47, %v446_v10 }
  0xb9   :  { %v448_v16 = vadd.f32 %v447_v49, %v399_v11  ;;  %v1319_v27 = vmax.f32 %v495_v15, 0.0 }
  0xbb   :  { %v590_v41 = vmul.f32 %v1319_v27, %v1319_v27 }
  0xbc   :  { %v1295_v50 = vpop.f32.mrf.mxu3 }
  0xbe   :  { %v496_v51 = vpop.f32.mrf.mxu2  ;;  %v401_v52 = vpop.f32.mrf.mxu0 }
  0xbf   :  { %v450_v53 = vpop.f32.mrf.mxu1  ;;  %v402_v12 = vadd.f32 %v1286_v32, %v401_v52  ;;  %v497_v23 = vadd.f32 %v496_v51, %v448_v16  ;;  %v565_v52 = vadd.f32 %v564_v39, %v1319_v27 }
  0xc1   :  { %v451_v17 = vadd.f32 %v450_v53, %v402_v12  ;;  %v1325_v35 = vmax.f32 %v497_v23, 0.0 }
  0xc3   :  { %v591_v53 = vmul.f32 %v1325_v35, %v1325_v35 }
  0xc4   :  { %v1297_v54 = vpop.f32.mrf.mxu3 }
  0xc6   :  { %v499_v55 = vpop.f32.mrf.mxu2  ;;  %v403_v56 = vpop.f32.mrf.mxu0 }
  0xc7   :  { %v452_v57 = vpop.f32.mrf.mxu1  ;;  %v404_v18 = vadd.f32 %v1286_v32, %v403_v56  ;;  %v500_v28 = vadd.f32 %v499_v55, %v451_v17 }
  0xc9   :  { %v453_v29 = vadd.f32 %v452_v57, %v404_v18  ;;  %v1331_v43 = vmax.f32 %v500_v28, 0.0  ;;  %v424_v28 = vadd.f32 %v1286_v32, %v1291_v42 }
  0xcc   :  { %v1299_v58 = vpop.f32.mrf.mxu3 }
  0xce   :  { %v501_v59 = vpop.f32.mrf.mxu2  ;;  %v406_v60 = vpop.f32.mrf.mxu0 }
  0xcf   :  { %v455_v61 = vpop.f32.mrf.mxu1  ;;  %v407_v20 = vadd.f32 %v1286_v32, %v406_v60  ;;  %v502_v36 = vadd.f32 %v501_v59, %v453_v29  ;;  %v605_v59 = vadd.f32 %v604_v40, %v590_v41  ;;  %v566_v60 = vadd.f32 %v565_v52, %v1325_v35 }
  0xd1   :  { %v456_v30 = vadd.f32 %v455_v61, %v407_v20  ;;  %v1337_v55 = vmax.f32 %v502_v36, 0.0  ;;  %v592_v61 = vmul.f32 %v1331_v43, %v1331_v43  ;;  %v606_v6 = vadd.f32 %v605_v59, %v591_v53 }
  0xd2   :  { %v422_v20 = vadd.f32 %v1286_v32, %v1289_v37  ;;  %v473_v36 = vadd.f32 %v1299_v58, %v424_v28 }
  0xd3   :  { %v607_v10 = vadd.f32 %v606_v6, %v592_v61 }
  0xd4   :  { %v1301_v62 = vpop.f32.mrf.mxu3  ;;  %v471_v29 = vadd.f32 %v1297_v54, %v422_v20 }
  0xd6   :  { %v504_v63 = vpop.f32.mrf.mxu2  ;;  %v408_v0 = vpop.f32.mrf.mxu0 }
  0xd7   :  { %v457_v1 = vpop.f32.mrf.mxu1  ;;  %v409_v31 = vadd.f32 %v1286_v32, %v408_v0  ;;  %v505_v45 = vadd.f32 %v504_v63, %v456_v30 }
  0xd9   :  { %v458_v47 = vadd.f32 %v457_v1, %v409_v31  ;;  %v1343_v0 = vmax.f32 %v505_v45, 0.0  ;;  %v429_v45 = vadd.f32 %v1286_v32, %v1295_v50 }
  0xdb   :  { %v594_v16 = vmul.f32 %v1343_v0, %v1343_v0 }
  0xdc   :  { %v1304_v3 = vpop.f32.mrf.mxu3 }
  0xdd   :  { %v478_v52 = vadd.f32 %v1304_v3, %v429_v45 }
  0xde   :  { %v506_v5 = vpop.f32.mrf.mxu2  ;;  %v411_v7 = vpop.f32.mrf.mxu0 }
  0xdf   :  { %v460_v8 = vpop.f32.mrf.mxu1  ;;  %v412_v33 = vadd.f32 %v1286_v32, %v411_v7  ;;  %v507_v57 = vadd.f32 %v506_v5, %v458_v47  ;;  %v593_v7 = vmul.f32 %v1337_v55, %v1337_v55  ;;  %v476_v47 = vadd.f32 %v1301_v62, %v427_v34 }
  0xe1   :  { %v461_v48 = vadd.f32 %v460_v8, %v412_v33  ;;  %v567_v8 = vadd.f32 %v566_v60, %v1331_v43  ;;  %v1348_v9 = vmax.f32 %v507_v57, 0.0 }
  0xe3   :  { %v568_v15 = vadd.f32 %v567_v8, %v1337_v55 }
  0xe4   :  { %v1311_v14 = vpop.f32.mrf.mxu3 }
  0xe5   :  { %v569_v23 = vadd.f32 %v568_v15, %v1343_v0  ;;  %v520_v39 = vadd.f32 %v1311_v14, %v471_v29 }
  0xe6   :  { %v509_v19 = vpop.f32.mrf.mxu2  ;;  %v413_v21 = vpop.f32.mrf.mxu0 }
  0xe7   :  { %v462_v24 = vpop.f32.mrf.mxu1  ;;  %v414_v49 = vadd.f32 %v1286_v32, %v413_v21  ;;  %v510_v1 = vadd.f32 %v509_v19, %v461_v48  ;;  %v608_v21 = vadd.f32 %v607_v10, %v593_v7  ;;  %v570_v31 = vadd.f32 %v569_v23, %v1348_v9 }
  0xe8   :  { %v1385_v53 = vmax.f32 %v520_v39, 0.0  ;;  %v587_v39 = vld [vmem:[#allocation4] sm:$0x1] }
  0xe9   :  { %v463_v2 = vadd.f32 %v462_v24, %v414_v49  ;;  %v1353_v17 = vmax.f32 %v510_v1, 0.0  ;;  %v595_v24 = vmul.f32 %v1348_v9, %v1348_v9  ;;  %v609_v30 = vadd.f32 %v608_v21, %v594_v16 }
  0xea   :  { %v600_v3 = vmul.f32 %v1385_v53, %v1385_v53 }
  0xeb   :  { %v596_v37 = vmul.f32 %v1353_v17, %v1353_v17  ;;  %v610_v41 = vadd.f32 %v609_v30, %v595_v24  ;;  %v571_v42 = vadd.f32 %v570_v31, %v1353_v17 }
  0xec   :  { %v521_v38 = vpop.f32.mrf.mxu3 }
  0xed   :  { %v522_v48 = vadd.f32 %v521_v38, %v473_v36  ;;  %v611_v46 = vadd.f32 %v610_v41, %v596_v37  ;;  %v563_v37 = vld [vmem:[#allocation3] sm:$0x1] }
  0xee   :  { %v511_v44 = vpop.f32.mrf.mxu2  ;;  %v416_v51 = vpop.f32.mrf.mxu0 }
  0xef   :  { %v417_v56 = vadd.f32 %v1286_v32, %v416_v51  ;;  %v465_v63 = vpop.f32.mrf.mxu1  ;;  %v512_v5 = vadd.f32 %v511_v44, %v463_v2  ;;  %v1390_v62 = vmax.f32 %v522_v48, 0.0 }
  0xf1   :  { %v466_v4 = vadd.f32 %v465_v63, %v417_v56  ;;  %v1360_v25 = vmax.f32 %v512_v5, 0.0  ;;  %v601_v6 = vmul.f32 %v1390_v62, %v1390_v62 }
  0xf3   :  { %v597_v54 = vmul.f32 %v1360_v25, %v1360_v25  ;;  %v572_v58 = vadd.f32 %v571_v42, %v1360_v25 }
  0xf4   :  { %v524_v12 = vpop.f32.mrf.mxu3 }
  0xf5   :  { %v612_v57 = vadd.f32 %v611_v46, %v597_v54 }
  0xf6   :  { %v514_v11 = vpop.f32.mrf.mxu2  ;;  %v418_v19 = vpop.f32.mrf.mxu0 }
  0xf7   :  { %v515_v18 = vadd.f32 %v514_v11, %v466_v4  ;;  %v419_v26 = vadd.f32 %v1286_v32, %v418_v19  ;;  %v467_v40 = vpop.f32.mrf.mxu1  ;;  %v525_v32 = vadd.f32 %v524_v12, %v476_v47 }
  0xf9   :  { %v1369_v33 = vmax.f32 %v515_v18, 0.0  ;;  %v468_v44 = vadd.f32 %v467_v40, %v419_v26  ;;  %v1397_v1 = vmax.f32 %v525_v32, 0.0 }
  0xfb   :  { %v598_v14 = vmul.f32 %v1369_v33, %v1369_v33  ;;  %v573_v59 = vadd.f32 %v572_v58, %v1369_v33  ;;  %v602_v10 = vmul.f32 %v1397_v1, %v1397_v1 }
  0xfc   :  { %v526_v56 = vpop.f32.mrf.mxu3 }
  0xfd   :  { %v613_v38 = vadd.f32 %v612_v57, %v598_v14  ;;  %v527_v63 = vadd.f32 %v526_v56, %v478_v52 }
  0xfe   :  { %v516_v49 = vpop.f32.mrf.mxu2 }
  0xff   :  { %v517_v51 = vadd.f32 %v516_v49, %v468_v44  ;;  %v1402_v8 = vmax.f32 %v527_v63, 0.0 }
 0x101   :  { %v1388_v50 = vmax.f32 %v517_v51, 0.0  ;;  %v603_v16 = vmul.f32 %v1402_v8, %v1402_v8 }
 0x103   :  { %v574_v60 = vadd.f32 %v573_v59, %v1388_v50  ;;  %v599_v61 = vmul.f32 %v1388_v50, %v1388_v50  ;;  %v637_v59 = vld [vmem:[%s1500_s3] sm:$0x1] }
 0x105   :  { %v575_v2 = vadd.f32 %v574_v60, %v1385_v53  ;;  %v614_v4 = vadd.f32 %v613_v38, %v599_v61  ;;  %v650_v61 = vld [vmem:[%s1501_s4] sm:$0x1] }
 0x107   :  { %v615_v7 = vadd.f32 %v614_v4, %v600_v3  ;;  %v576_v5 = vadd.f32 %v575_v2, %v1390_v62 }
 0x109   :  { %v577_v11 = vadd.f32 %v576_v5, %v1397_v1  ;;  %v616_v12 = vadd.f32 %v615_v7, %v601_v6 }
 0x10b   :  { %v578_v15 = vadd.f32 %v577_v11, %v1402_v8  ;;  %v617_v18 = vadd.f32 %v616_v12, %v602_v10 }
 0x10d   :  { %v579_v19 = vrot.slane %v578_v15, 4  ;;  %v618_v20 = vadd.f32 %v617_v18, %v603_v16 }
 0x10f   :  { %v580_v21 = vadd.f32 %v579_v19, %v578_v15  ;;  %v619_v23 = vrot.slane %v618_v20, 4 }
 0x111   :  { %v581_v24 = vrot.slane %v580_v21, 2  ;;  %v620_v26 = vadd.f32 %v619_v23, %v618_v20 }
 0x113   :  { %v582_v28 = vadd.f32 %v581_v24, %v580_v21  ;;  %v621_v29 = vrot.slane %v620_v26, 2 }
 0x115   :  { %v583_v30 = vrot.slane %v582_v28, 1  ;;  %v622_v31 = vadd.f32 %v621_v29, %v620_v26 }
 0x117   :  { %v584_v34 = vadd.f32 %v583_v30, %v582_v28  ;;  %v623_v36 = vrot.slane %v622_v31, 1 }
 0x119   :  { %v585_v40 = vadd.f32 %v584_v34, %v563_v37  ;;  %v624_v41 = vadd.f32 %v623_v36, %v622_v31 }
 0x11b   :  { %586 = vst [vmem:[#allocation3] sm:$0x1] %v585_v40  ;;  %v625_v42 = vadd.f32 %v624_v41, %v587_v39 }
 0x11d   :  { %626 = vst [vmem:[#allocation4] sm:$0x1] %v625_v42 }
 0x122   :  { %v630_v54 = vld [vmem:[#allocation3] sm:$0x1] }
 0x123   :  { %v631_v44 = vmul.f32 0.0078125, %v630_v54 }
 0x124   :  { %v632_v45 = vld [vmem:[#allocation4] sm:$0x1] }
 0x125   :  { %v633_v47 = vmul.f32 0.0078125, %v632_v45  ;;  %v634_v48 = vmul.f32 %v631_v44, %v631_v44 }
 0x127   :  { %v635_v49 = vsub.f32 %v633_v47, %v634_v48 }
 0x129   :  { %v636_v46 = vmax.f32 %v635_v49, 0.0 }
 0x12b   :  { %v638_v58 = vadd.f32 1e-05, %v636_v46 }
 0x12d   :  { %994 = vrsqrt.f32 %v638_v58  ;;  %vm645_vm1 = vweird.f32 %v638_v58 }
 0x133   :  { %v995_v14 = vpop.eup %994 }
 0x134   :  { %v640_v51 = vmul.f32 %v995_v14, %v638_v58  ;;  %vm646_vm0 = vweird.f32 %v995_v14 }
 0x135   :  { %vm647_vm2 = vmor %vm645_vm1, %vm646_vm0 }
 0x136   :  { %v641_v52 = vmul.f32 %v995_v14, %v640_v51 }
 0x138   :  { %v642_v56 = vmul.f32 0.5, %v641_v52 }
 0x13a   :  { %v643_v57 = vsub.f32 1.5, %v642_v56 }
 0x13c   :  { %v644_v32 = vmul.f32 %v995_v14, %v643_v57 }
 0x13e   :  { %v648_v38 = vsel %vm647_vm2, %v995_v14, %v644_v32 }
 0x13f   :  { %v649_v60 = vmul.f32 %v648_v38, %v637_v59 }
 0x141   :  { %v651_v63 = vmul.f32 %v649_v60, %v631_v44  ;;  %v670_v2 = vperm.slane %v649_v60, 0 }
 0x143   :  { %v652_v3 = vsub.f32 %v650_v61, %v651_v63  ;;  %v672_v4 = vmul.f32 %v670_v2, %v1315_v22  ;;  %v673_v6 = vmul.f32 %v670_v2, %v1309_v13  ;;  %v674_v7 = vmul.f32 %v670_v2, %v1319_v27 }
 0x144   :  { %v675_v10 = vmul.f32 %v670_v2, %v1325_v35  ;;  %v676_v11 = vmul.f32 %v670_v2, %v1331_v43  ;;  %v677_v18 = vmul.f32 %v670_v2, %v1337_v55  ;;  %v678_v20 = vmul.f32 %v670_v2, %v1343_v0 }
 0x145   :  { %v689_v5 = vperm.slane %v652_v3, 0  ;;  %v679_v13 = vmul.f32 %v670_v2, %v1348_v9  ;;  %v680_v27 = vmul.f32 %v670_v2, %v1353_v17  ;;  %v681_v43 = vmul.f32 %v670_v2, %v1360_v25 }
 0x146   :  { %v682_v0 = vmul.f32 %v670_v2, %v1369_v33  ;;  %v683_v17 = vmul.f32 %v670_v2, %v1388_v50  ;;  %v684_v25 = vmul.f32 %v670_v2, %v1385_v53  ;;  %v685_v33 = vmul.f32 %v670_v2, %v1390_v62 }
 0x147   :  { %v691_v12 = vadd.f32 %v689_v5, %v672_v4  ;;  %v692_v15 = vadd.f32 %v689_v5, %v673_v6  ;;  %v693_v16 = vadd.f32 %v689_v5, %v674_v7  ;;  %v694_v19 = vadd.f32 %v689_v5, %v675_v10 }
 0x148   :  { %v695_v21 = vadd.f32 %v689_v5, %v676_v11  ;;  %v696_v22 = vadd.f32 %v689_v5, %v677_v18  ;;  %v697_v35 = vadd.f32 %v689_v5, %v678_v20  ;;  %v698_v55 = vadd.f32 %v689_v5, %v679_v13 }
 0x149   :  { %708 = vst.msk [vmem:[%s1502_s5] sm:$0xff] %vm707_vm3, %v691_v12  ;;  %v699_v9 = vadd.f32 %v689_v5, %v680_v27  ;;  %v700_v23 = vadd.f32 %v689_v5, %v681_v43  ;;  %v701_v24 = vadd.f32 %v689_v5, %v682_v0  ;;  %v702_v26 = vadd.f32 %v689_v5, %v683_v17 }
 0x14a   :  { %709 = vst.msk [vmem:[%s1502_s5 + $0x8] sm:$0xff] %vm707_vm3, %v692_v15  ;;  %v686_v50 = vmul.f32 %v670_v2, %v1397_v1  ;;  %v703_v28 = vadd.f32 %v689_v5, %v684_v25  ;;  %v687_v53 = vmul.f32 %v670_v2, %v1402_v8  ;;  %v704_v29 = vadd.f32 %v689_v5, %v685_v33 }
 0x14b   :  { %710 = vst.msk [vmem:[%s1502_s5 + $0x10] sm:$0xff] %vm707_vm3, %v693_v16 }
 0x14c   :  { %711 = vst.msk [vmem:[%s1502_s5 + $0x18] sm:$0xff] %vm707_vm3, %v694_v19  ;;  %v705_v62 = vadd.f32 %v689_v5, %v686_v50  ;;  %v706_v1 = vadd.f32 %v689_v5, %v687_v53 }
 0x14d   :  { %712 = vst.msk [vmem:[%s1502_s5 + $0x20] sm:$0xff] %vm707_vm3, %v695_v21 }
 0x14e   :  { %713 = vst.msk [vmem:[%s1502_s5 + $0x28] sm:$0xff] %vm707_vm3, %v696_v22 }
 0x14f   :  { %714 = vst.msk [vmem:[%s1502_s5 + $0x30] sm:$0xff] %vm707_vm3, %v697_v35 }
 0x150   :  { %715 = vst.msk [vmem:[%s1502_s5 + $0x38] sm:$0xff] %vm707_vm3, %v698_v55 }
 0x151   :  { %716 = vst.msk [vmem:[%s1502_s5 + $0x40] sm:$0xff] %vm707_vm3, %v699_v9 }
 0x152   :  { %717 = vst.msk [vmem:[%s1502_s5 + $0x48] sm:$0xff] %vm707_vm3, %v700_v23 }
 0x153   :  { %718 = vst.msk [vmem:[%s1502_s5 + $0x50] sm:$0xff] %vm707_vm3, %v701_v24 }
 0x154   :  { %719 = vst.msk [vmem:[%s1502_s5 + $0x58] sm:$0xff] %vm707_vm3, %v702_v26 }
 0x155   :  { %720 = vst.msk [vmem:[%s1502_s5 + $0x60] sm:$0xff] %vm707_vm3, %v703_v28 }
 0x156   :  { %721 = vst.msk [vmem:[%s1502_s5 + $0x68] sm:$0xff] %vm707_vm3, %v704_v29 }
 0x157   :  { %722 = vst.msk [vmem:[%s1502_s5 + $0x70] sm:$0xff] %vm707_vm3, %v705_v62 }
 0x158   :  { %723 = vst.msk [vmem:[%s1502_s5 + $0x78] sm:$0xff] %vm707_vm3, %v706_v1 }

// kernel: unet_like_forward.20
= control target key start
LH: loop header
LB: loop body
LE: loop exit
PB: predicated region body
PF: predicated region fallthrough
CT: control target
= control target key end

     0   :  { %s1542_s18 = smov 0   ;;  %s2270_s0 = inlined_call_operand.vmem [shape: bf16[1,512,256], index: 0, kind: input, shape index: {}]   ;;  %s2271_s1 = inlined_call_operand.vmem [shape: bf16[256,128], index: 1, kind: input, shape index: {}]   ;;  %s2272_s2 = inlined_call_operand.vmem [shape: f32[1,128], index: 2, kind: input, shape index: {}]   ;;  %s2273_s3 = inlined_call_operand.vmem [shape: f32[1,128], index: 3, kind: input, shape index: {}]   ;;  %s2274_s4 = inlined_call_operand.vmem [shape: f32[1,128], index: 4, kind: input, shape index: {}]   ;;  %s2275_s5 = inlined_call_operand.vmem [shape: f32[512,4], index: 5, kind: output, shape index: {}]  }
   0x1 LB: > { %s1548_s19 = sadd.s32 4294967295, %s1509_s18   ;;  %p1225_p0 = scmp.ge.s32.totalorder %s1509_s18, 1  ;;  %s1509_s18 = sphi %s1542_s18, %s15_s18  }
   0x2   : > { %p184_p1 = scmp.lt.s32.totalorder %s1509_s18, 3 }
   0x4   : > { %p185_p2 = pnand %p1225_p0, %p184_p1 }
   0x5   : > { %s1226_s20 = sshll.u32 (!%p185_p2), %s1548_s19, 5  ;;  %p1229_p4 = scmp.ne.s32.totalorder (!%p185_p2), %s1548_s19, 0 }
   0x6   : > { %188 = sbr.rel (%p185_p2) target bundleno = 461 (0x1cd), region = 40  ;;  %p209_p3 = scmp.lt.s32.totalorder (!%p185_p2), %s1226_s20, 63 }
   0xb   : > { %s2277_s20 = smov (!%p209_p3, %s1226_s20), 63  ;;  %218 = sbr.rel (%p1229_p4) target bundleno = 19 (0x13), region = 44 }
   0xc   : > { %s1426_s21 = sshll.u32 %s2277_s20, 3 }
   0xd   : > { %s1556_s24 = scalar_lea.vmem %s2270_s0, %s1426_s21 }
  0x10   : > { %v1511_v0 = vmov 0.0  }
  0x11   : > { %219 = vst [vmem:[#allocation3] sm:$0x1] %v1511_v0 }
  0x12   : > { %220 = vst [vmem:[#allocation4] sm:$0x1] %v1511_v0 }
  0x13 PF: > { %v1466_v1 = vld [vmem:[%s2271_s1 + $0x38] sm:$0xff]  ;;  %v1465_v3 = vld [vmem:[%s2271_s1 + $0x30] sm:$0xff]  ;;  %v1464_v5 = vld [vmem:[%s2271_s1 + $0x28] sm:$0xff]  ;;  %s1422_s12 = sshll.u32 %s1548_s19, 8  ;;  %p1423_p5 = scmp.ne.s32.totalorder %s1548_s19, 1 }
  0x14   : > { %v1474_v2 = vld [vmem:[%s2271_s1 + $0x78] sm:$0xff]  ;;  %545 = vmatpush.bf16.msra.mxu0 %v1466_v1  ;;  %v1473_v4 = vld [vmem:[%s2271_s1 + $0x70] sm:$0xff]  ;;  %1475 = vmatpush.bf16.msra.mxu2 %v1466_v1  ;;  %v1472_v6 = vld [vmem:[%s2271_s1 + $0x68] sm:$0xff] }
  0x15   : > { %634 = vmatpush.bf16.msra.mxu1 %v1474_v2  ;;  %1483 = vmatpush.bf16.msra.mxu3 %v1474_v2  ;;  %v1463_v7 = vld [vmem:[%s2271_s1 + $0x20] sm:$0xff]  ;;  %v1462_v9 = vld [vmem:[%s2271_s1 + $0x18] sm:$0xff]  ;;  %v1461_v11 = vld [vmem:[%s2271_s1 + $0x10] sm:$0xff] }
  0x16   : > { %v1471_v8 = vld [vmem:[%s2271_s1 + $0x60] sm:$0xff]  ;;  %v1470_v10 = vld [vmem:[%s2271_s1 + $0x58] sm:$0xff]  ;;  %v1469_v12 = vld [vmem:[%s2271_s1 + $0x50] sm:$0xff] }
  0x17   : > { %v1460_v13 = vld [vmem:[%s2271_s1 + $0x8] sm:$0xff]  ;;  %v1459_v15 = vld [vmem:[%s2271_s1] sm:$0xff]  ;;  %v1240_v29 = vld [vmem:[%s1556_s24 + $0x10] sm:$0xf] }
  0x18   : > { %546 = vmatpush.bf16.msra.mxu0 %v1465_v3  ;;  %1476 = vmatpush.bf16.msra.mxu2 %v1465_v3  ;;  %v1468_v14 = vld [vmem:[%s2271_s1 + $0x48] sm:$0xff]  ;;  %v1467_v16 = vld [vmem:[%s2271_s1 + $0x40] sm:$0xff]  ;;  %v1430_v30 = vld [vmem:[%s1556_s24 + $0x14] sm:$0xf0] }
  0x19   : > { %635 = vmatpush.bf16.msra.mxu1 %v1473_v4  ;;  %1484 = vmatpush.bf16.msra.mxu3 %v1473_v4  ;;  %v1232_v17 = vld [vmem:[%s1556_s24] sm:$0xf]  ;;  %v1428_v18 = vld [vmem:[%s1556_s24 + $0x4] sm:$0xf0]  ;;  %v1427_v19 = vld [vmem:[%s1556_s24 + $0x4] sm:$0xf]  ;;  %v1241_v37 = vor.u32 %v1430_v30, %v1240_v29 }
  0x1a   : > { %v1234_v20 = vld [vmem:[%s1556_s24 + $0x8] sm:$0xf0]  ;;  %v1296_v21 = vld [vmem:[%s1556_s24 + $0x80] sm:$0xf]  ;;  %v1444_v22 = vld [vmem:[%s1556_s24 + $0x84] sm:$0xf0]  ;;  %v1233_v25 = vor.u32 %v1428_v18, %v1232_v17 }
  0x1b   : > { %v1443_v23 = vld [vmem:[%s1556_s24 + $0x84] sm:$0xf]  ;;  %v1298_v24 = vld [vmem:[%s1556_s24 + $0x88] sm:$0xf0]  ;;  %v1237_v26 = vor.u32 %v1427_v19, %v1234_v20  ;;  %v1297_v27 = vor.u32 %v1444_v22, %v1296_v21  ;;  %v1429_v31 = vld [vmem:[%s1556_s24 + $0x14] sm:$0xf] }
  0x1c   : > { %547 = vmatpush.bf16.msra.mxu0 %v1464_v5  ;;  %1477 = vmatpush.bf16.msra.mxu2 %v1464_v5  ;;  %v1301_v28 = vor.u32 %v1443_v23, %v1298_v24  ;;  %v1242_v32 = vld [vmem:[%s1556_s24 + $0x18] sm:$0xf0]  ;;  %v1304_v33 = vld [vmem:[%s1556_s24 + $0x90] sm:$0xf]  ;;  %v1446_v34 = vld [vmem:[%s1556_s24 + $0x94] sm:$0xf0] }
  0x1d   : > { %636 = vmatpush.bf16.msra.mxu1 %v1472_v6  ;;  %1485 = vmatpush.bf16.msra.mxu3 %v1472_v6  ;;  %v1445_v35 = vld [vmem:[%s1556_s24 + $0x94] sm:$0xf]  ;;  %v1306_v36 = vld [vmem:[%s1556_s24 + $0x98] sm:$0xf0]  ;;  %v1245_v38 = vor.u32 %v1429_v31, %v1242_v32  ;;  %v1305_v39 = vor.u32 %v1446_v34, %v1304_v33  ;;  %v1248_v41 = vld [vmem:[%s1556_s24 + $0x20] sm:$0xf] }
  0x1e   : > { %v1309_v40 = vor.u32 %v1445_v35, %v1306_v36  ;;  %v1432_v42 = vld [vmem:[%s1556_s24 + $0x24] sm:$0xf0]  ;;  %v1431_v43 = vld [vmem:[%s1556_s24 + $0x24] sm:$0xf]  ;;  %v1250_v44 = vld [vmem:[%s1556_s24 + $0x28] sm:$0xf0] }
  0x1f   : > { %v1312_v45 = vld [vmem:[%s1556_s24 + $0xa0] sm:$0xf]  ;;  %v1448_v46 = vld [vmem:[%s1556_s24 + $0xa4] sm:$0xf0]  ;;  %v1447_v47 = vld [vmem:[%s1556_s24 + $0xa4] sm:$0xf]  ;;  %v1249_v49 = vor.u32 %v1432_v42, %v1248_v41  ;;  %v1253_v50 = vor.u32 %v1431_v43, %v1250_v44 }
  0x20   : > { %548 = vmatpush.bf16.msra.mxu0 %v1463_v7  ;;  %1478 = vmatpush.bf16.msra.mxu2 %v1463_v7  ;;  %v1314_v48 = vld [vmem:[%s1556_s24 + $0xa8] sm:$0xf0]  ;;  %v1313_v51 = vor.u32 %v1448_v46, %v1312_v45  ;;  %v1256_v53 = vld [vmem:[%s1556_s24 + $0x30] sm:$0xf]  ;;  %v1434_v54 = vld [vmem:[%s1556_s24 + $0x34] sm:$0xf0] }
  0x21   : > { %637 = vmatpush.bf16.msra.mxu1 %v1471_v8  ;;  %1486 = vmatpush.bf16.msra.mxu3 %v1471_v8  ;;  %v1317_v52 = vor.u32 %v1447_v47, %v1314_v48  ;;  %v1433_v55 = vld [vmem:[%s1556_s24 + $0x34] sm:$0xf]  ;;  %v1258_v56 = vld [vmem:[%s1556_s24 + $0x38] sm:$0xf0]  ;;  %v1320_v57 = vld [vmem:[%s1556_s24 + $0xb0] sm:$0xf]  ;;  %v1257_v61 = vor.u32 %v1434_v54, %v1256_v53 }
  0x22   : > { %v1450_v58 = vld [vmem:[%s1556_s24 + $0xb4] sm:$0xf0]  ;;  %v1449_v59 = vld [vmem:[%s1556_s24 + $0xb4] sm:$0xf]  ;;  %v1322_v60 = vld [vmem:[%s1556_s24 + $0xb8] sm:$0xf0]  ;;  %v1261_v62 = vor.u32 %v1433_v55, %v1258_v56 }
  0x23   : > { %v1321_v63 = vor.u32 %v1450_v58, %v1320_v57  ;;  %v1325_v0 = vor.u32 %v1449_v59, %v1322_v60  ;;  %v1264_v1 = vld [vmem:[%s1556_s24 + $0x40] sm:$0xf]  ;;  %v1436_v2 = vld [vmem:[%s1556_s24 + $0x44] sm:$0xf0]  ;;  %v1435_v3 = vld [vmem:[%s1556_s24 + $0x44] sm:$0xf] }
  0x24   : > { %549 = vmatpush.bf16.msra.mxu0 %v1462_v9  ;;  %1479 = vmatpush.bf16.msra.mxu2 %v1462_v9  ;;  %v1266_v4 = vld [vmem:[%s1556_s24 + $0x48] sm:$0xf0]  ;;  %v1328_v5 = vld [vmem:[%s1556_s24 + $0xc0] sm:$0xf]  ;;  %v1452_v6 = vld [vmem:[%s1556_s24 + $0xc4] sm:$0xf0]  ;;  %v1265_v9 = vor.u32 %v1436_v2, %v1264_v1 }
  0x25   : > { %638 = vmatpush.bf16.msra.mxu1 %v1470_v10  ;;  %1487 = vmatpush.bf16.msra.mxu3 %v1470_v10  ;;  %v1451_v7 = vld [vmem:[%s1556_s24 + $0xc4] sm:$0xf]  ;;  %v1330_v8 = vld [vmem:[%s1556_s24 + $0xc8] sm:$0xf0]  ;;  %v1269_v10 = vor.u32 %v1435_v3, %v1266_v4  ;;  %v1336_v17 = vld [vmem:[%s1556_s24 + $0xd0] sm:$0xf] }
  0x26   : > { %v1454_v18 = vld [vmem:[%s1556_s24 + $0xd4] sm:$0xf0]  ;;  %v1453_v19 = vld [vmem:[%s1556_s24 + $0xd4] sm:$0xf]  ;;  %v1338_v20 = vld [vmem:[%s1556_s24 + $0xd8] sm:$0xf0] }
  0x27   : > { %v1337_v23 = vor.u32 %v1454_v18, %v1336_v17  ;;  %v1341_v24 = vor.u32 %v1453_v19, %v1338_v20  ;;  %v1344_v29 = vld [vmem:[%s1556_s24 + $0xe0] sm:$0xf]  ;;  %v1456_v30 = vld [vmem:[%s1556_s24 + $0xe4] sm:$0xf0]  ;;  %v1455_v31 = vld [vmem:[%s1556_s24 + $0xe4] sm:$0xf] }
  0x28   : > { %550 = vmatpush.bf16.msra.mxu0 %v1461_v11  ;;  %1480 = vmatpush.bf16.msra.mxu2 %v1461_v11  ;;  %v1329_v11 = vor.u32 %v1452_v6, %v1328_v5  ;;  %v1346_v32 = vld [vmem:[%s1556_s24 + $0xe8] sm:$0xf0]  ;;  %v1345_v35 = vor.u32 %v1456_v30, %v1344_v29  ;;  %v1352_v41 = vld [vmem:[%s1556_s24 + $0xf0] sm:$0xf]  ;;  %v1458_v42 = vld [vmem:[%s1556_s24 + $0xf4] sm:$0xf0] }
  0x29   : > { %639 = vmatpush.bf16.msra.mxu1 %v1469_v12  ;;  %1488 = vmatpush.bf16.msra.mxu3 %v1469_v12  ;;  %v1333_v12 = vor.u32 %v1451_v7, %v1330_v8  ;;  %v1349_v36 = vor.u32 %v1455_v31, %v1346_v32  ;;  %v1457_v43 = vld [vmem:[%s1556_s24 + $0xf4] sm:$0xf]  ;;  %v1354_v44 = vld [vmem:[%s1556_s24 + $0xf8] sm:$0xf0]  ;;  %v1353_v47 = vor.u32 %v1458_v42, %v1352_v41 }
  0x2a   : > { %v1357_v48 = vor.u32 %v1457_v43, %v1354_v44 }
  0x2c   : > { %551 = vmatpush.bf16.msra.mxu0 %v1460_v13  ;;  %1481 = vmatpush.bf16.msra.mxu2 %v1460_v13  ;;  %v1272_v13 = vld [vmem:[%s1556_s24 + $0x50] sm:$0xf] }
  0x2d   : > { %640 = vmatpush.bf16.msra.mxu1 %v1468_v14  ;;  %1489 = vmatpush.bf16.msra.mxu3 %v1468_v14  ;;  %v1438_v14 = vld [vmem:[%s1556_s24 + $0x54] sm:$0xf0] }
  0x2e   : > { %v1273_v21 = vor.u32 %v1438_v14, %v1272_v13 }
  0x30   : > { %552 = vmatpush.bf16.msra.mxu0 %v1459_v15  ;;  %1482 = vmatpush.bf16.msra.mxu2 %v1459_v15  ;;  %v1437_v15 = vld [vmem:[%s1556_s24 + $0x54] sm:$0xf] }
  0x31   : > { %641 = vmatpush.bf16.msra.mxu1 %v1467_v16  ;;  %1490 = vmatpush.bf16.msra.mxu3 %v1467_v16  ;;  %v1274_v16 = vld [vmem:[%s1556_s24 + $0x58] sm:$0xf0] }
  0x32   : > { %v1277_v22 = vor.u32 %v1437_v15, %v1274_v16 }
  0x33   : > { %553 = vmatmul.bf16.vlgmr.msra.gmra.mxu0 %v1233_v25  ;;  %593 = vmatmul.bf16.vlgmr.msra.gmra.mxu2 %v1297_v27  ;;  %v1280_v25 = vld [vmem:[%s1556_s24 + $0x60] sm:$0xf]  ;;  %v1439_v27 = vld [vmem:[%s1556_s24 + $0x64] sm:$0xf] }
  0x34   : > { %642 = vmatmul.bf16.vlgmr.msra.gmra.mxu1 %v1237_v26  ;;  %682 = vmatmul.bf16.vlgmr.msra.gmra.mxu3 %v1301_v28  ;;  %v1440_v26 = vld [vmem:[%s1556_s24 + $0x64] sm:$0xf0]  ;;  %v1282_v28 = vld [vmem:[%s1556_s24 + $0x68] sm:$0xf0] }
  0x35   : > { %v1281_v33 = vor.u32 %v1440_v26, %v1280_v25  ;;  %v1285_v34 = vor.u32 %v1439_v27, %v1282_v28 }
  0x43   : > { %558 = vmatmul.bf16.gmra.mxu0 %v1241_v37  ;;  %598 = vmatmul.bf16.gmra.mxu2 %v1305_v39  ;;  %v1288_v37 = vld [vmem:[%s1556_s24 + $0x70] sm:$0xf]  ;;  %v1441_v39 = vld [vmem:[%s1556_s24 + $0x74] sm:$0xf] }
  0x44   : > { %647 = vmatmul.bf16.gmra.mxu1 %v1245_v38  ;;  %687 = vmatmul.bf16.gmra.mxu3 %v1309_v40  ;;  %v1442_v38 = vld [vmem:[%s1556_s24 + $0x74] sm:$0xf0]  ;;  %v1290_v40 = vld [vmem:[%s1556_s24 + $0x78] sm:$0xf0]  ;;  %s1678_s24 = scalar_lea.vmem [#allocation2], %s1422_s12 }
  0x45   : > { %v1289_v45 = vor.u32 %v1442_v38, %v1288_v37  ;;  %v1293_v46 = vor.u32 %v1441_v39, %v1290_v40 }
  0x53   : > { %563 = vmatmul.bf16.gmra.mxu0 %v1249_v49  ;;  %603 = vmatmul.bf16.gmra.mxu2 %v1313_v51  ;;  %v1674_v49 = vld [vmem:[%s2272_s2] ss:$0 sm:$0xff] }
  0x54   : > { %652 = vmatmul.bf16.gmra.mxu1 %v1253_v50  ;;  %692 = vmatmul.bf16.gmra.mxu3 %v1317_v52 }
  0x63   : > { %568 = vmatmul.bf16.gmra.mxu0 %v1257_v61  ;;  %608 = vmatmul.bf16.gmra.mxu2 %v1321_v63 }
  0x64   : > { %657 = vmatmul.bf16.gmra.mxu1 %v1261_v62  ;;  %697 = vmatmul.bf16.gmra.mxu3 %v1325_v0 }
  0x73   : > { %573 = vmatmul.bf16.gmra.mxu0 %v1265_v9  ;;  %613 = vmatmul.bf16.gmra.mxu2 %v1329_v11 }
  0x74   : > { %662 = vmatmul.bf16.gmra.mxu1 %v1269_v10  ;;  %702 = vmatmul.bf16.gmra.mxu3 %v1333_v12 }
  0x83   : > { %578 = vmatmul.bf16.gmra.mxu0 %v1273_v21  ;;  %618 = vmatmul.bf16.gmra.mxu2 %v1337_v23 }
  0x84   : > { %667 = vmatmul.bf16.gmra.mxu1 %v1277_v22  ;;  %707 = vmatmul.bf16.gmra.mxu3 %v1341_v24 }
  0x93   : > { %583 = vmatmul.bf16.gmra.mxu0 %v1281_v33  ;;  %623 = vmatmul.bf16.gmra.mxu2 %v1345_v35 }
  0x94   : > { %672 = vmatmul.bf16.gmra.mxu1 %v1285_v34  ;;  %712 = vmatmul.bf16.gmra.mxu3 %v1349_v36 }
  0xa3   : > { %588 = vmatmul.bf16.gmra.mxu0 %v1289_v45  ;;  %628 = vmatmul.bf16.gmra.mxu2 %v1353_v47 }
  0xa4   : > { %677 = vmatmul.bf16.gmra.mxu1 %v1293_v46  ;;  %717 = vmatmul.bf16.gmra.mxu3 %v1357_v48 }
  0xb0   : > { %v554_v50 = vpop.f32.mrf.mxu0 }
  0xb1   : > { %v643_v51 = vpop.f32.mrf.mxu1  ;;  %v555_v52 = vadd.f32 %v1674_v49, %v554_v50 }
  0xb3   : > { %v644_v53 = vadd.f32 %v643_v51, %v555_v52 }
  0xb5   : > { %v723_v54 = vmax.f32 %v644_v53, 0.0 }
  0xb6   : > { %v594_v55 = vpop.f32.mrf.mxu2 }
  0xb7   : > { %757 = vst [vmem:[%s1678_s24] sm:$0xff] %v723_v54  ;;  %v683_v56 = vpop.f32.mrf.mxu3  ;;  %v595_v59 = vadd.f32 %v1674_v49, %v594_v55  ;;  %v830_v1 = vmul.f32 %v723_v54, %v723_v54 }
  0xb8   : > { %v556_v57 = vpop.f32.mrf.mxu0 }
  0xb9   : > { %v645_v58 = vpop.f32.mrf.mxu1  ;;  %v557_v60 = vadd.f32 %v1674_v49, %v556_v57  ;;  %v684_v61 = vadd.f32 %v683_v56, %v595_v59 }
  0xbb   : > { %v646_v62 = vadd.f32 %v645_v58, %v557_v60  ;;  %v1683_v63 = vmax.f32 %v684_v61, 0.0 }
  0xbd   : > { %v724_v0 = vmax.f32 %v646_v62, 0.0  ;;  %773 = vst [vmem:[%s1678_s24 + $0x80] sm:$0xff] %v1683_v63 }
  0xbe   : > { %v596_v4 = vpop.f32.mrf.mxu2 }
  0xbf   : > { %758 = vst [vmem:[%s1678_s24 + $0x8] sm:$0xff] %v724_v0  ;;  %v790_v2 = vadd.f32 %v724_v0, %v723_v54  ;;  %v831_v3 = vmul.f32 %v724_v0, %v724_v0  ;;  %v685_v5 = vpop.f32.mrf.mxu3  ;;  %v597_v8 = vadd.f32 %v1674_v49, %v596_v4 }
  0xc0   : > { %v559_v6 = vpop.f32.mrf.mxu0 }
  0xc1   : > { %v648_v7 = vpop.f32.mrf.mxu1  ;;  %v862_v9 = vadd.f32 %v831_v3, %v830_v1  ;;  %v560_v10 = vadd.f32 %v1674_v49, %v559_v6  ;;  %v686_v11 = vadd.f32 %v685_v5, %v597_v8 }
  0xc3   : > { %v649_v12 = vadd.f32 %v648_v7, %v560_v10  ;;  %v1690_v13 = vmax.f32 %v686_v11, 0.0 }
  0xc5   : > { %v725_v14 = vmax.f32 %v649_v12, 0.0  ;;  %774 = vst [vmem:[%s1678_s24 + $0x88] sm:$0xff] %v1690_v13 }
  0xc6   : > { %v599_v17 = vpop.f32.mrf.mxu2 }
  0xc7   : > { %759 = vst [vmem:[%s1678_s24 + $0x10] sm:$0xff] %v725_v14  ;;  %v791_v15 = vadd.f32 %v790_v2, %v725_v14  ;;  %v832_v16 = vmul.f32 %v725_v14, %v725_v14  ;;  %v688_v18 = vpop.f32.mrf.mxu3  ;;  %v600_v21 = vadd.f32 %v1674_v49, %v599_v17 }
  0xc8   : > { %v561_v19 = vpop.f32.mrf.mxu0 }
  0xc9   : > { %v650_v20 = vpop.f32.mrf.mxu1  ;;  %v863_v22 = vadd.f32 %v862_v9, %v832_v16  ;;  %v562_v23 = vadd.f32 %v1674_v49, %v561_v19  ;;  %v689_v24 = vadd.f32 %v688_v18, %v600_v21 }
  0xcb   : > { %v651_v25 = vadd.f32 %v650_v20, %v562_v23  ;;  %v1697_v26 = vmax.f32 %v689_v24, 0.0 }
  0xcd   : > { %v726_v27 = vmax.f32 %v651_v25, 0.0  ;;  %775 = vst [vmem:[%s1678_s24 + $0x90] sm:$0xff] %v1697_v26 }
  0xce   : > { %v601_v30 = vpop.f32.mrf.mxu2 }
  0xcf   : > { %760 = vst [vmem:[%s1678_s24 + $0x18] sm:$0xff] %v726_v27  ;;  %v792_v28 = vadd.f32 %v791_v15, %v726_v27  ;;  %v833_v29 = vmul.f32 %v726_v27, %v726_v27  ;;  %v690_v31 = vpop.f32.mrf.mxu3  ;;  %v602_v34 = vadd.f32 %v1674_v49, %v601_v30 }
  0xd0   : > { %v564_v32 = vpop.f32.mrf.mxu0 }
  0xd1   : > { %v653_v33 = vpop.f32.mrf.mxu1  ;;  %v864_v35 = vadd.f32 %v863_v22, %v833_v29  ;;  %v565_v36 = vadd.f32 %v1674_v49, %v564_v32  ;;  %v691_v37 = vadd.f32 %v690_v31, %v602_v34 }
  0xd3   : > { %v654_v38 = vadd.f32 %v653_v33, %v565_v36  ;;  %v1704_v39 = vmax.f32 %v691_v37, 0.0 }
  0xd5   : > { %v727_v40 = vmax.f32 %v654_v38, 0.0  ;;  %776 = vst [vmem:[%s1678_s24 + $0x98] sm:$0xff] %v1704_v39 }
  0xd6   : > { %v604_v43 = vpop.f32.mrf.mxu2 }
  0xd7   : > { %761 = vst [vmem:[%s1678_s24 + $0x20] sm:$0xff] %v727_v40  ;;  %v1709_v41 = vadd.f32 %v792_v28, %v727_v40  ;;  %v834_v42 = vmul.f32 %v727_v40, %v727_v40  ;;  %v693_v44 = vpop.f32.mrf.mxu3  ;;  %v605_v47 = vadd.f32 %v1674_v49, %v604_v43 }
  0xd8   : > { %v566_v45 = vpop.f32.mrf.mxu0 }
  0xd9   : > { %v655_v46 = vpop.f32.mrf.mxu1  ;;  %v1712_v48 = vadd.f32 %v864_v35, %v834_v42  ;;  %v567_v50 = vadd.f32 %v1674_v49, %v566_v45  ;;  %v694_v51 = vadd.f32 %v693_v44, %v605_v47 }
  0xdb   : > { %v656_v52 = vadd.f32 %v655_v46, %v567_v50  ;;  %v1715_v53 = vmax.f32 %v694_v51, 0.0 }
  0xdd   : > { %v1717_v54 = vmax.f32 %v656_v52, 0.0  ;;  %777 = vst [vmem:[%s1678_s24 + $0xa0] sm:$0xff] %v1715_v53 }
  0xde   : > { %v606_v55 = vpop.f32.mrf.mxu2 }
  0xdf   : > { %762 = vst [vmem:[%s1678_s24 + $0x28] sm:$0xff] %v1717_v54  ;;  %v695_v56 = vpop.f32.mrf.mxu3  ;;  %v607_v59 = vadd.f32 %v1674_v49, %v606_v55 }
  0xe0   : > { %v569_v57 = vpop.f32.mrf.mxu0 }
  0xe1   : > { %v658_v58 = vpop.f32.mrf.mxu1  ;;  %v570_v60 = vadd.f32 %v1674_v49, %v569_v57  ;;  %v696_v61 = vadd.f32 %v695_v56, %v607_v59 }
  0xe3   : > { %v659_v62 = vadd.f32 %v658_v58, %v570_v60  ;;  %v1725_v0 = vmax.f32 %v696_v61, 0.0 }
  0xe5   : > { %v1727_v1 = vmax.f32 %v659_v62, 0.0  ;;  %778 = vst [vmem:[%s1678_s24 + $0xa8] sm:$0xff] %v1725_v0 }
  0xe6   : > { %v609_v2 = vpop.f32.mrf.mxu2 }
  0xe7   : > { %763 = vst [vmem:[%s1678_s24 + $0x30] sm:$0xff] %v1727_v1  ;;  %v698_v3 = vpop.f32.mrf.mxu3  ;;  %v610_v6 = vadd.f32 %v1674_v49, %v609_v2 }
  0xe8   : > { %v571_v4 = vpop.f32.mrf.mxu0 }
  0xe9   : > { %v660_v5 = vpop.f32.mrf.mxu1  ;;  %v572_v7 = vadd.f32 %v1674_v49, %v571_v4  ;;  %v699_v8 = vadd.f32 %v698_v3, %v610_v6 }
  0xeb   : > { %v661_v9 = vadd.f32 %v660_v5, %v572_v7  ;;  %v1735_v10 = vmax.f32 %v699_v8, 0.0 }
  0xed   : > { %v1737_v11 = vmax.f32 %v661_v9, 0.0  ;;  %779 = vst [vmem:[%s1678_s24 + $0xb0] sm:$0xff] %v1735_v10 }
  0xee   : > { %v611_v12 = vpop.f32.mrf.mxu2 }
  0xef   : > { %764 = vst [vmem:[%s1678_s24 + $0x38] sm:$0xff] %v1737_v11  ;;  %v700_v14 = vpop.f32.mrf.mxu3  ;;  %v612_v17 = vadd.f32 %v1674_v49, %v611_v12 }
  0xf0   : > { %v574_v15 = vpop.f32.mrf.mxu0 }
  0xf1   : > { %v663_v16 = vpop.f32.mrf.mxu1  ;;  %v575_v18 = vadd.f32 %v1674_v49, %v574_v15  ;;  %v701_v19 = vadd.f32 %v700_v14, %v612_v17  ;;  %v835_v17 = vmul.f32 %v1717_v54, %v1717_v54 }
  0xf3   : > { %v664_v20 = vadd.f32 %v663_v16, %v575_v18  ;;  %v1745_v21 = vmax.f32 %v701_v19, 0.0 }
  0xf5   : > { %v1747_v22 = vmax.f32 %v664_v20, 0.0  ;;  %780 = vst [vmem:[%s1678_s24 + $0xb8] sm:$0xff] %v1745_v21  ;;  %v794_v20 = vadd.f32 %v1709_v41, %v1717_v54 }
  0xf6   : > { %v614_v23 = vpop.f32.mrf.mxu2 }
  0xf7   : > { %765 = vst [vmem:[%s1678_s24 + $0x40] sm:$0xff] %v1747_v22  ;;  %v703_v24 = vpop.f32.mrf.mxu3  ;;  %v615_v28 = vadd.f32 %v1674_v49, %v614_v23  ;;  %v836_v23 = vmul.f32 %v1727_v1, %v1727_v1  ;;  %v838_v41 = vmul.f32 %v1747_v22, %v1747_v22 }
  0xf8   : > { %v576_v25 = vpop.f32.mrf.mxu0 }
  0xf9   : > { %v665_v27 = vpop.f32.mrf.mxu1  ;;  %v577_v29 = vadd.f32 %v1674_v49, %v576_v25  ;;  %v704_v30 = vadd.f32 %v703_v24, %v615_v28  ;;  %v795_v28 = vadd.f32 %v794_v20, %v1727_v1 }
  0xfb   : > { %v666_v31 = vadd.f32 %v665_v27, %v577_v29  ;;  %v1755_v32 = vmax.f32 %v704_v30, 0.0  ;;  %v866_v27 = vadd.f32 %v1712_v48, %v835_v17  ;;  %v837_v29 = vmul.f32 %v1737_v11, %v1737_v11 }
  0xfd   : > { %v1757_v33 = vmax.f32 %v666_v31, 0.0  ;;  %781 = vst [vmem:[%s1678_s24 + $0xc0] sm:$0xff] %v1755_v32  ;;  %v867_v31 = vadd.f32 %v866_v27, %v836_v23 }
  0xfe   : > { %v616_v34 = vpop.f32.mrf.mxu2 }
  0xff   : > { %766 = vst [vmem:[%s1678_s24 + $0x48] sm:$0xff] %v1757_v33  ;;  %v705_v35 = vpop.f32.mrf.mxu3  ;;  %v617_v38 = vadd.f32 %v1674_v49, %v616_v34  ;;  %v796_v34 = vadd.f32 %v795_v28, %v1737_v11  ;;  %v868_v1 = vadd.f32 %v867_v31, %v837_v29  ;;  %v846_v31 = vmul.f32 %v1683_v63, %v1683_v63 }
 0x100   : > { %v579_v36 = vpop.f32.mrf.mxu0 }
 0x101   : > { %v668_v37 = vpop.f32.mrf.mxu1  ;;  %v580_v40 = vadd.f32 %v1674_v49, %v579_v36  ;;  %v706_v42 = vadd.f32 %v705_v35, %v617_v38  ;;  %v797_v38 = vadd.f32 %v796_v34, %v1747_v22 }
 0x103   : > { %v669_v43 = vadd.f32 %v668_v37, %v580_v40  ;;  %v1765_v44 = vmax.f32 %v706_v42, 0.0  ;;  %v839_v40 = vmul.f32 %v1757_v33, %v1757_v33 }
 0x105   : > { %v1767_v45 = vmax.f32 %v669_v43, 0.0  ;;  %782 = vst [vmem:[%s1678_s24 + $0xc8] sm:$0xff] %v1765_v44  ;;  %v869_v43 = vadd.f32 %v868_v1, %v838_v41 }
 0x106   : > { %v619_v46 = vpop.f32.mrf.mxu2 }
 0x107   : > { %767 = vst [vmem:[%s1678_s24 + $0x50] sm:$0xff] %v1767_v45  ;;  %v708_v47 = vpop.f32.mrf.mxu3  ;;  %v620_v52 = vadd.f32 %v1674_v49, %v619_v46  ;;  %v798_v46 = vadd.f32 %v797_v38, %v1757_v33  ;;  %v849_v38 = vmul.f32 %v1704_v39, %v1704_v39 }
 0x108   : > { %v581_v50 = vpop.f32.mrf.mxu0 }
 0x109   : > { %v670_v51 = vpop.f32.mrf.mxu1  ;;  %v582_v55 = vadd.f32 %v1674_v49, %v581_v50  ;;  %v709_v56 = vadd.f32 %v708_v47, %v620_v52  ;;  %v840_v47 = vmul.f32 %v1767_v45, %v1767_v45  ;;  %v870_v52 = vadd.f32 %v869_v43, %v839_v40 }
 0x10a   : > { %v851_v43 = vmul.f32 %v1725_v0, %v1725_v0 }
 0x10b   : > { %v671_v57 = vadd.f32 %v670_v51, %v582_v55  ;;  %v1775_v58 = vmax.f32 %v709_v56, 0.0  ;;  %v799_v55 = vadd.f32 %v798_v46, %v1767_v45 }
 0x10d   : > { %v734_v59 = vmax.f32 %v671_v57, 0.0  ;;  %783 = vst [vmem:[%s1678_s24 + $0xd0] sm:$0xff] %v1775_v58  ;;  %v871_v57 = vadd.f32 %v870_v52, %v840_v47  ;;  %v852_v47 = vmul.f32 %v1735_v10, %v1735_v10 }
 0x10e   : > { %v621_v60 = vpop.f32.mrf.mxu2 }
 0x10f   : > { %768 = vst [vmem:[%s1678_s24 + $0x58] sm:$0xff] %v734_v59  ;;  %v710_v61 = vpop.f32.mrf.mxu3  ;;  %v622_v3 = vadd.f32 %v1674_v49, %v621_v60  ;;  %v841_v22 = vmul.f32 %v734_v59, %v734_v59  ;;  %v800_v60 = vadd.f32 %v799_v55, %v734_v59 }
 0x110   : > { %v584_v62 = vpop.f32.mrf.mxu0 }
 0x111   : > { %v673_v2 = vpop.f32.mrf.mxu1  ;;  %v585_v4 = vadd.f32 %v1674_v49, %v584_v62  ;;  %v711_v5 = vadd.f32 %v710_v61, %v622_v3 }
 0x113   : > { %v674_v6 = vadd.f32 %v673_v2, %v585_v4  ;;  %v1782_v7 = vmax.f32 %v711_v5, 0.0  ;;  %v872_v4 = vadd.f32 %v871_v57, %v841_v22 }
 0x115   : > { %v735_v8 = vmax.f32 %v674_v6, 0.0  ;;  %784 = vst [vmem:[%s1678_s24 + $0xd8] sm:$0xff] %v1782_v7 }
 0x116   : > { %v624_v9 = vpop.f32.mrf.mxu2 }
 0x117   : > { %769 = vst [vmem:[%s1678_s24 + $0x60] sm:$0xff] %v735_v8  ;;  %v713_v12 = vpop.f32.mrf.mxu3  ;;  %v625_v16 = vadd.f32 %v1674_v49, %v624_v9  ;;  %v842_v61 = vmul.f32 %v735_v8, %v735_v8  ;;  %v801_v5 = vadd.f32 %v800_v60, %v735_v8 }
 0x118   : > { %v586_v14 = vpop.f32.mrf.mxu0 }
 0x119   : > { %v675_v15 = vpop.f32.mrf.mxu1  ;;  %v587_v18 = vadd.f32 %v1674_v49, %v586_v14  ;;  %v714_v19 = vadd.f32 %v713_v12, %v625_v16  ;;  %v873_v14 = vadd.f32 %v872_v4, %v842_v61 }
 0x11b   : > { %v676_v24 = vadd.f32 %v675_v15, %v587_v18  ;;  %v1795_v25 = vmax.f32 %v714_v19, 0.0 }
 0x11d   : > { %v736_v30 = vmax.f32 %v676_v24, 0.0  ;;  %785 = vst [vmem:[%s1678_s24 + $0xe0] sm:$0xff] %v1795_v25  ;;  %v858_v4 = vmul.f32 %v1795_v25, %v1795_v25 }
 0x11e   : > { %v626_v54 = vpop.f32.mrf.mxu2 }
 0x11f   : > { %770 = vst [vmem:[%s1678_s24 + $0x68] sm:$0xff] %v736_v30  ;;  %v715_v35 = vpop.f32.mrf.mxu3  ;;  %v627_v48 = vadd.f32 %v1674_v49, %v626_v54  ;;  %v843_v6 = vmul.f32 %v736_v30, %v736_v30  ;;  %v802_v15 = vadd.f32 %v801_v5, %v736_v30  ;;  %v847_v54 = vmul.f32 %v1690_v13, %v1690_v13 }
 0x120   : > { %v589_v36 = vpop.f32.mrf.mxu0 }
 0x121   : > { %v678_v37 = vpop.f32.mrf.mxu1  ;;  %v590_v11 = vadd.f32 %v1674_v49, %v589_v36  ;;  %v716_v42 = vadd.f32 %v715_v35, %v627_v48  ;;  %v874_v18 = vadd.f32 %v873_v14, %v843_v6  ;;  %v848_v48 = vmul.f32 %v1697_v26, %v1697_v26 }
 0x123   : > { %v679_v50 = vadd.f32 %v678_v37, %v590_v11  ;;  %v1815_v51 = vmax.f32 %v716_v42, 0.0  ;;  %v850_v11 = vmul.f32 %v1715_v53, %v1715_v53 }
 0x125   : > { %v737_v56 = vmax.f32 %v679_v50, 0.0  ;;  %786 = vst [vmem:[%s1678_s24 + $0xe8] sm:$0xff] %v1815_v51 }
 0x126   : > { %v629_v62 = vpop.f32.mrf.mxu2 }
 0x127   : > { %771 = vst [vmem:[%s1678_s24 + $0x70] sm:$0xff] %v737_v56  ;;  %v718_v2 = vpop.f32.mrf.mxu3  ;;  %v630_v3 = vadd.f32 %v1674_v49, %v629_v62  ;;  %v844_v16 = vmul.f32 %v737_v56, %v737_v56  ;;  %v803_v19 = vadd.f32 %v802_v15, %v737_v56 }
 0x128   : > { %v591_v33 = vpop.f32.mrf.mxu0 }
 0x129   : > { %v592_v45 = vadd.f32 %v1674_v49, %v591_v33  ;;  %v680_v9 = vpop.f32.mrf.mxu1  ;;  %v719_v12 = vadd.f32 %v718_v2, %v630_v3  ;;  %v875_v23 = vadd.f32 %v874_v18, %v844_v16 }
 0x12b   : > { %v681_v59 = vadd.f32 %v680_v9, %v592_v45  ;;  %v753_v17 = vmax.f32 %v719_v12, 0.0  ;;  %v859_v45 = vmul.f32 %v1815_v51, %v1815_v51 }
 0x12d   : > { %v738_v20 = vmax.f32 %v681_v59, 0.0  ;;  %787 = vst [vmem:[%s1678_s24 + $0xf0] sm:$0xff] %v753_v17  ;;  %v860_v12 = vmul.f32 %v753_v17, %v753_v17 }
 0x12e   : > { %v631_v8 = vpop.f32.mrf.mxu2 }
 0x12f   : > { %772 = vst [vmem:[%s1678_s24 + $0x78] sm:$0xff] %v738_v20  ;;  %v804_v24 = vadd.f32 %v803_v19, %v738_v20  ;;  %v845_v27 = vmul.f32 %v738_v20, %v738_v20  ;;  %v720_v28 = vpop.f32.mrf.mxu3  ;;  %v632_v29 = vadd.f32 %v1674_v49, %v631_v8 }
 0x131   : > { %v805_v30 = vadd.f32 %v804_v24, %v1683_v63  ;;  %v876_v34 = vadd.f32 %v875_v23, %v845_v27  ;;  %v721_v41 = vadd.f32 %v720_v28, %v632_v29  ;;  %v789_v28 = vld [vmem:[#allocation3] sm:$0x1] }
 0x133   : > { %v806_v35 = vadd.f32 %v805_v30, %v1690_v13  ;;  %v877_v36 = vadd.f32 %v876_v34, %v846_v31  ;;  %v754_v37 = vmax.f32 %v721_v41, 0.0 }
 0x135   : > { %v807_v1 = vadd.f32 %v806_v35, %v1697_v26  ;;  %v878_v49 = vadd.f32 %v877_v36, %v847_v54  ;;  %788 = vst [vmem:[%s1678_s24 + $0xf8] sm:$0xff] %v754_v37  ;;  %v861_v16 = vmul.f32 %v754_v37, %v754_v37 }
 0x137   : > { %v808_v63 = vadd.f32 %v807_v1, %v1704_v39  ;;  %v879_v40 = vadd.f32 %v878_v49, %v848_v48  ;;  %v853_v39 = vmul.f32 %v1745_v21, %v1745_v21 }
 0x139   : > { %v809_v13 = vadd.f32 %v808_v63, %v1715_v53  ;;  %v880_v42 = vadd.f32 %v879_v40, %v849_v38  ;;  %v854_v53 = vmul.f32 %v1755_v32, %v1755_v32 }
 0x13b   : > { %v810_v46 = vadd.f32 %v809_v13, %v1725_v0  ;;  %v881_v26 = vadd.f32 %v880_v42, %v850_v11  ;;  %v855_v0 = vmul.f32 %v1765_v44, %v1765_v44 }
 0x13d   : > { %v882_v50 = vadd.f32 %v881_v26, %v851_v43  ;;  %v811_v52 = vadd.f32 %v810_v46, %v1735_v10  ;;  %v856_v10 = vmul.f32 %v1775_v58, %v1775_v58 }
 0x13f   : > { %v812_v55 = vadd.f32 %v811_v52, %v1745_v21  ;;  %v883_v22 = vadd.f32 %v882_v50, %v852_v47  ;;  %v857_v21 = vmul.f32 %v1782_v7, %v1782_v7 }
 0x141   : > { %v813_v56 = vadd.f32 %v812_v55, %v1755_v32  ;;  %v884_v57 = vadd.f32 %v883_v22, %v853_v39 }
 0x143   : > { %v814_v60 = vadd.f32 %v813_v56, %v1765_v44  ;;  %v885_v61 = vadd.f32 %v884_v57, %v854_v53 }
 0x145   : > { %v815_v62 = vadd.f32 %v814_v60, %v1775_v58  ;;  %v886_v2 = vadd.f32 %v885_v61, %v855_v0 }
 0x147   : > { %v816_v33 = vadd.f32 %v815_v62, %v1782_v7  ;;  %v887_v3 = vadd.f32 %v886_v2, %v856_v10 }
 0x149   : > { %v817_v32 = vadd.f32 %v816_v33, %v1795_v25  ;;  %v888_v5 = vadd.f32 %v887_v3, %v857_v21 }
 0x14b   : > { %v889_v44 = vadd.f32 %v888_v5, %v858_v4  ;;  %v818_v6 = vadd.f32 %v817_v32, %v1815_v51  ;;  %v829_v51 = vld [vmem:[#allocation4] sm:$0x1] }
 0x14d   : > { %v890_v58 = vadd.f32 %v889_v44, %v859_v45  ;;  %v819_v9 = vadd.f32 %v818_v6, %v753_v17 }
 0x14f   : > { %v891_v14 = vadd.f32 %v890_v58, %v860_v12  ;;  %v820_v15 = vadd.f32 %v819_v9, %v754_v37 }
 0x151   : > { %v821_v7 = vrot.slane %v820_v15, 4  ;;  %v892_v59 = vadd.f32 %v891_v14, %v861_v16 }
 0x153   : > { %v822_v18 = vadd.f32 %v821_v7, %v820_v15  ;;  %v893_v19 = vrot.slane %v892_v59, 4 }
 0x155   : > { %v823_v20 = vrot.slane %v822_v18, 2  ;;  %v894_v23 = vadd.f32 %v893_v19, %v892_v59 }
 0x157   : > { %v824_v25 = vadd.f32 %v823_v20, %v822_v18  ;;  %v895_v24 = vrot.slane %v894_v23, 2 }
 0x159   : > { %v825_v27 = vrot.slane %v824_v25, 1  ;;  %v896_v8 = vadd.f32 %v895_v24, %v894_v23 }
 0x15b   : > { %v826_v29 = vadd.f32 %v825_v27, %v824_v25  ;;  %v897_v31 = vrot.slane %v896_v8, 1 }
 0x15d   : > { %v827_v30 = vadd.f32 %v826_v29, %v789_v28  ;;  %v898_v34 = vadd.f32 %v897_v31, %v896_v8  ;;  %904 = sbr.rel (%p1423_p5) target bundleno = 461 (0x1cd), region = 48 }
 0x15f   : > { %828 = vst [vmem:[#allocation3] sm:$0x1] %v827_v30  ;;  %v899_v17 = vadd.f32 %v898_v34, %v829_v51 }
 0x161   : > { %900 = vst [vmem:[#allocation4] sm:$0x1] %v899_v17 }
 0x162   : > { %v912_v42 = vld [vmem:[%s2273_s3] sm:$0x1]  ;;  %v929_v52 = vld [vmem:[#allocation2 + $0x8] sm:$0xff]  ;;  %v930_v39 = vld [vmem:[#allocation2 + $0x10] sm:$0xff]  ;;  %vm1030_vm3 = vcmask 31744  }
 0x163   : > { %v925_v47 = vld [vmem:[%s2274_s4] sm:$0x1]  ;;  %v931_v53 = vld [vmem:[#allocation2 + $0x18] sm:$0xff]  ;;  %v933_v10 = vld [vmem:[#allocation2 + $0x28] sm:$0xff] }
 0x164   : > { %v928_v50 = vld [vmem:[#allocation2] sm:$0xff]  ;;  %v934_v2 = vld [vmem:[#allocation2 + $0x30] sm:$0xff]  ;;  %v935_v3 = vld [vmem:[#allocation2 + $0x38] sm:$0xff] }
 0x165   : > { %v932_v56 = vld [vmem:[#allocation2 + $0x20] sm:$0xff]  ;;  %v937_v58 = vld [vmem:[#allocation2 + $0x48] sm:$0xff]  ;;  %v938_v14 = vld [vmem:[#allocation2 + $0x50] sm:$0xff] }
 0x166   : > { %v905_v41 = vld [vmem:[#allocation3] sm:$0x1]  ;;  %v939_v7 = vld [vmem:[#allocation2 + $0x58] sm:$0xff]  ;;  %v941_v25 = vld [vmem:[#allocation2 + $0x68] sm:$0xff] }
 0x167   : > { %v906_v35 = vmul.f32 0.001953125, %v905_v41  ;;  %v936_v4 = vld [vmem:[#allocation2 + $0x40] sm:$0xff]  ;;  %v942_v8 = vld [vmem:[#allocation2 + $0x70] sm:$0xff]  ;;  %v943_v31 = vld [vmem:[#allocation2 + $0x78] sm:$0xff] }
 0x168   : > { %v907_v54 = vld [vmem:[#allocation4] sm:$0x1] }
 0x169   : > { %v908_v36 = vmul.f32 0.001953125, %v907_v54  ;;  %v909_v37 = vmul.f32 %v906_v35, %v906_v35  ;;  %v940_v19 = vld [vmem:[#allocation2 + $0x60] sm:$0xff]  ;;  %v945_v54 = vld [vmem:[#allocation2 + $0x88] sm:$0xff] }
 0x16a   : > { %v944_v34 = vld [vmem:[#allocation2 + $0x80] sm:$0xff] }
 0x16b   : > { %v910_v48 = vsub.f32 %v908_v36, %v909_v37  ;;  %v946_v37 = vld [vmem:[#allocation2 + $0x90] sm:$0xff] }
 0x16d   : > { %v911_v1 = vmax.f32 %v910_v48, 0.0 }
 0x16f   : > { %v913_v49 = vadd.f32 1e-05, %v911_v1 }
 0x171   : > { %1501 = vrsqrt.f32 %v913_v49  ;;  %vm920_vm0 = vweird.f32 %v913_v49 }
 0x177   : > { %v1502_v38 = vpop.eup %1501 }
 0x178   : > { %v915_v63 = vmul.f32 %v1502_v38, %v913_v49  ;;  %vm921_vm1 = vweird.f32 %v1502_v38  ;;  %v947_v49 = vld [vmem:[#allocation2 + $0x98] sm:$0xff] }
 0x179   : > { %vm922_vm2 = vmor %vm920_vm0, %vm921_vm1 }
 0x17a   : > { %v916_v40 = vmul.f32 %v1502_v38, %v915_v63 }
 0x17c   : > { %v917_v11 = vmul.f32 0.5, %v916_v40  ;;  %v948_v40 = vld [vmem:[#allocation2 + $0xa0] sm:$0xff] }
 0x17e   : > { %v918_v13 = vsub.f32 1.5, %v917_v11 }
 0x180   : > { %v919_v43 = vmul.f32 %v1502_v38, %v918_v13 }
 0x182   : > { %v923_v46 = vsel %vm922_vm2, %v1502_v38, %v919_v43 }
 0x183   : > { %v924_v26 = vmul.f32 %v923_v46, %v912_v42  ;;  %v949_v42 = vld [vmem:[#allocation2 + $0xa8] sm:$0xff] }
 0x185   : > { %v926_v55 = vmul.f32 %v924_v26, %v906_v35  ;;  %v1876_v22 = vperm.slane %v924_v26, 0  ;;  %v950_v26 = vld [vmem:[#allocation2 + $0xb0] sm:$0xff] }
 0x187   : > { %v927_v57 = vsub.f32 %v925_v47, %v926_v55  ;;  %v963_v0 = vmul.f32 %v1876_v22, %v928_v50  ;;  %v964_v60 = vmul.f32 %v1876_v22, %v929_v52  ;;  %v965_v61 = vmul.f32 %v1876_v22, %v930_v39  ;;  %v951_v52 = vld [vmem:[#allocation2 + $0xb8] sm:$0xff] }
 0x188   : > { %v966_v62 = vmul.f32 %v1876_v22, %v931_v53  ;;  %v967_v33 = vmul.f32 %v1876_v22, %v932_v56  ;;  %v968_v32 = vmul.f32 %v1876_v22, %v933_v10  ;;  %v969_v45 = vmul.f32 %v1876_v22, %v934_v2  ;;  %v952_v53 = vld [vmem:[#allocation2 + $0xc0] sm:$0xff]  ;;  %v954_v10 = vld [vmem:[#allocation2 + $0xd0] sm:$0xff] }
 0x189   : > { %v1882_v21 = vperm.slane %v927_v57, 0  ;;  %v970_v12 = vmul.f32 %v1876_v22, %v935_v3  ;;  %v971_v16 = vmul.f32 %v1876_v22, %v936_v4  ;;  %v972_v18 = vmul.f32 %v1876_v22, %v937_v58  ;;  %v956_v4 = vld [vmem:[#allocation2 + $0xe0] sm:$0xff] }
 0x18a   : > { %v973_v23 = vmul.f32 %v1876_v22, %v938_v14  ;;  %v974_v27 = vmul.f32 %v1876_v22, %v939_v7  ;;  %v975_v29 = vmul.f32 %v1876_v22, %v940_v19  ;;  %v976_v30 = vmul.f32 %v1876_v22, %v941_v25 }
 0x18b   : > { %v998_v5 = vadd.f32 %v1882_v21, %v963_v0  ;;  %v999_v44 = vadd.f32 %v1882_v21, %v964_v60  ;;  %v1000_v6 = vadd.f32 %v1882_v21, %v965_v61  ;;  %v1001_v9 = vadd.f32 %v1882_v21, %v966_v62  ;;  %v953_v0 = vld [vmem:[#allocation2 + $0xc8] sm:$0xff] }
 0x18c   : > { %v1002_v15 = vadd.f32 %v1882_v21, %v967_v33  ;;  %v1003_v59 = vadd.f32 %v1882_v21, %v968_v32  ;;  %v1004_v20 = vadd.f32 %v1882_v21, %v969_v45  ;;  %v1005_v24 = vadd.f32 %v1882_v21, %v970_v12  ;;  %v955_v33 = vld [vmem:[#allocation2 + $0xd8] sm:$0xff] }
 0x18d   : > { %1031 = vst.msk [vmem:[%s2275_s5] sm:$0xff] %vm1030_vm3, %v998_v5  ;;  %v1006_v28 = vadd.f32 %v1882_v21, %v971_v16  ;;  %v1007_v51 = vadd.f32 %v1882_v21, %v972_v18  ;;  %v1008_v17 = vadd.f32 %v1882_v21, %v973_v23  ;;  %v977_v41 = vmul.f32 %v1876_v22, %v942_v8 }
 0x18e   : > { %1032 = vst.msk [vmem:[%s2275_s5 + $0x8] sm:$0xff] %vm1030_vm3, %v999_v44  ;;  %v1009_v35 = vadd.f32 %v1882_v21, %v974_v27  ;;  %v978_v36 = vmul.f32 %v1876_v22, %v943_v31  ;;  %v1010_v48 = vadd.f32 %v1882_v21, %v975_v29  ;;  %v979_v1 = vmul.f32 %v1876_v22, %v944_v34 }
 0x18f   : > { %1033 = vst.msk [vmem:[%s2275_s5 + $0x10] sm:$0xff] %vm1030_vm3, %v1000_v6  ;;  %v1011_v38 = vadd.f32 %v1882_v21, %v976_v30  ;;  %v980_v63 = vmul.f32 %v1876_v22, %v945_v54  ;;  %v1012_v11 = vadd.f32 %v1882_v21, %v977_v41  ;;  %v981_v13 = vmul.f32 %v1876_v22, %v946_v37  ;;  %v957_v6 = vld [vmem:[#allocation2 + $0xe8] sm:$0xff]  ;;  %v1095_v30 = vld [vmem:[#allocation2 + $0x1f8] sm:$0xff]  ;;  %v1070_v37 = vld [vmem:[#allocation2 + $0x130] sm:$0xff] }
 0x190   : > { %1034 = vst.msk [vmem:[%s2275_s5 + $0x18] sm:$0xff] %vm1030_vm3, %v1001_v9  ;;  %v1013_v43 = vadd.f32 %v1882_v21, %v978_v36  ;;  %v982_v46 = vmul.f32 %v1876_v22, %v947_v49  ;;  %v1014_v47 = vadd.f32 %v1882_v21, %v979_v1  ;;  %v983_v50 = vmul.f32 %v1876_v22, %v948_v40  ;;  %v958_v9 = vld [vmem:[#allocation2 + $0xf0] sm:$0xff]  ;;  %v1069_v41 = vld [vmem:[#allocation2 + $0x128] sm:$0xff]  ;;  %v1071_v49 = vld [vmem:[#allocation2 + $0x138] sm:$0xff] }
 0x191   : > { %1035 = vst.msk [vmem:[%s2275_s5 + $0x20] sm:$0xff] %vm1030_vm3, %v1002_v15  ;;  %v1015_v39 = vadd.f32 %v1882_v21, %v980_v63  ;;  %v984_v55 = vmul.f32 %v1876_v22, %v949_v42  ;;  %v1016_v56 = vadd.f32 %v1882_v21, %v981_v13  ;;  %v985_v57 = vmul.f32 %v1876_v22, %v950_v26  ;;  %v959_v15 = vld [vmem:[#allocation2 + $0xf8] sm:$0xff] }
 0x192   : > { %1036 = vst.msk [vmem:[%s2275_s5 + $0x28] sm:$0xff] %vm1030_vm3, %v1003_v59  ;;  %v1017_v60 = vadd.f32 %v1882_v21, %v982_v46  ;;  %v986_v61 = vmul.f32 %v1876_v22, %v951_v52  ;;  %v1018_v62 = vadd.f32 %v1882_v21, %v983_v50  ;;  %v987_v2 = vmul.f32 %v1876_v22, %v952_v53  ;;  %v1064_v59 = vld [vmem:[#allocation2 + $0x100] sm:$0xff] }
 0x193   : > { %1037 = vst.msk [vmem:[%s2275_s5 + $0x30] sm:$0xff] %vm1030_vm3, %v1004_v20  ;;  %v1019_v3 = vadd.f32 %v1882_v21, %v984_v55  ;;  %v988_v32 = vmul.f32 %v1876_v22, %v953_v0  ;;  %v1020_v5 = vadd.f32 %v1882_v21, %v985_v57  ;;  %v989_v44 = vmul.f32 %v1876_v22, %v954_v10  ;;  %v1065_v20 = vld [vmem:[#allocation2 + $0x108] sm:$0xff] }
 0x194   : > { %1038 = vst.msk [vmem:[%s2275_s5 + $0x38] sm:$0xff] %vm1030_vm3, %v1005_v24  ;;  %v1021_v45 = vadd.f32 %v1882_v21, %v986_v61  ;;  %v990_v58 = vmul.f32 %v1876_v22, %v955_v33  ;;  %v1022_v12 = vadd.f32 %v1882_v21, %v987_v2  ;;  %v991_v14 = vmul.f32 %v1876_v22, %v956_v4  ;;  %v1066_v24 = vld [vmem:[#allocation2 + $0x110] sm:$0xff] }
 0x195   : > { %1039 = vst.msk [vmem:[%s2275_s5 + $0x40] sm:$0xff] %vm1030_vm3, %v1006_v28  ;;  %v1023_v16 = vadd.f32 %v1882_v21, %v988_v32  ;;  %v992_v7 = vmul.f32 %v1876_v22, %v957_v6  ;;  %v1024_v18 = vadd.f32 %v1882_v21, %v989_v44  ;;  %v993_v19 = vmul.f32 %v1876_v22, %v958_v9  ;;  %v1067_v28 = vld [vmem:[#allocation2 + $0x118] sm:$0xff] }
 0x196   : > { %1040 = vst.msk [vmem:[%s2275_s5 + $0x48] sm:$0xff] %vm1030_vm3, %v1007_v51  ;;  %v1025_v23 = vadd.f32 %v1882_v21, %v990_v58  ;;  %v994_v25 = vmul.f32 %v1876_v22, %v959_v15  ;;  %v1026_v27 = vadd.f32 %v1882_v21, %v991_v14  ;;  %v1096_v8 = vmul.f32 %v1064_v59, %v1876_v22  ;;  %v1068_v51 = vld [vmem:[#allocation2 + $0x120] sm:$0xff] }
 0x197   : > { %1041 = vst.msk [vmem:[%s2275_s5 + $0x50] sm:$0xff] %vm1030_vm3, %v1008_v17  ;;  %v1027_v29 = vadd.f32 %v1882_v21, %v992_v7  ;;  %v1097_v31 = vmul.f32 %v1065_v20, %v1876_v22  ;;  %v1028_v34 = vadd.f32 %v1882_v21, %v993_v19  ;;  %v1098_v17 = vmul.f32 %v1066_v24, %v1876_v22 }
 0x198   : > { %1042 = vst.msk [vmem:[%s2275_s5 + $0x58] sm:$0xff] %vm1030_vm3, %v1009_v35  ;;  %v1127_v54 = vmul.f32 %v1095_v30, %v1876_v22  ;;  %v1029_v35 = vadd.f32 %v1882_v21, %v994_v25  ;;  %v1099_v36 = vmul.f32 %v1067_v28, %v1876_v22  ;;  %v1100_v1 = vmul.f32 %v1068_v51, %v1876_v22  ;;  %v1088_v30 = vld [vmem:[#allocation2 + $0x1c0] sm:$0xff] }
 0x199   : > { %1043 = vst.msk [vmem:[%s2275_s5 + $0x60] sm:$0xff] %vm1030_vm3, %v1010_v48  ;;  %v1128_v48 = vadd.f32 %v1096_v8, %v1882_v21  ;;  %v1129_v63 = vadd.f32 %v1097_v31, %v1882_v21  ;;  %v1101_v40 = vmul.f32 %v1069_v41, %v1876_v22  ;;  %v1130_v13 = vadd.f32 %v1098_v17, %v1882_v21  ;;  %v1089_v41 = vld [vmem:[#allocation2 + $0x1c8] sm:$0xff] }
 0x19a   : > { %1044 = vst.msk [vmem:[%s2275_s5 + $0x68] sm:$0xff] %vm1030_vm3, %v1011_v38  ;;  %v2068_v38 = vadd.f32 %v1127_v54, %v1882_v21  ;;  %v1102_v42 = vmul.f32 %v1070_v37, %v1876_v22  ;;  %v1131_v46 = vadd.f32 %v1099_v36, %v1882_v21  ;;  %v1103_v26 = vmul.f32 %v1071_v49, %v1876_v22  ;;  %v1090_v36 = vld [vmem:[#allocation2 + $0x1d0] sm:$0xff] }
 0x19b   : > { %1045 = vst.msk [vmem:[%s2275_s5 + $0x70] sm:$0xff] %vm1030_vm3, %v1012_v11  ;;  %v1072_v11 = vld [vmem:[#allocation2 + $0x140] sm:$0xff]  ;;  %v1132_v50 = vadd.f32 %v1100_v1, %v1882_v21  ;;  %v1133_v55 = vadd.f32 %v1101_v40, %v1882_v21  ;;  %v1091_v1 = vld [vmem:[#allocation2 + $0x1d8] sm:$0xff] }
 0x19c   : > { %1046 = vst.msk [vmem:[%s2275_s5 + $0x78] sm:$0xff] %vm1030_vm3, %v1013_v43  ;;  %v1073_v43 = vld [vmem:[#allocation2 + $0x148] sm:$0xff]  ;;  %v1104_v52 = vmul.f32 %v1072_v11, %v1876_v22  ;;  %v1134_v57 = vadd.f32 %v1102_v42, %v1882_v21  ;;  %v1135_v61 = vadd.f32 %v1103_v26, %v1882_v21  ;;  %v1092_v40 = vld [vmem:[#allocation2 + $0x1e0] sm:$0xff]  ;;  %v1094_v26 = vld [vmem:[#allocation2 + $0x1f0] sm:$0xff] }
 0x19d   : > { %1047 = vst.msk [vmem:[%s2275_s5 + $0x80] sm:$0xff] %vm1030_vm3, %v1014_v47  ;;  %v1074_v47 = vld [vmem:[#allocation2 + $0x150] sm:$0xff]  ;;  %v1105_v53 = vmul.f32 %v1073_v43, %v1876_v22  ;;  %v1093_v42 = vld [vmem:[#allocation2 + $0x1e8] sm:$0xff] }
 0x19e   : > { %1048 = vst.msk [vmem:[%s2275_s5 + $0x88] sm:$0xff] %vm1030_vm3, %v1015_v39  ;;  %v1075_v39 = vld [vmem:[#allocation2 + $0x158] sm:$0xff]  ;;  %v1106_v0 = vmul.f32 %v1074_v47, %v1876_v22  ;;  %v1136_v2 = vadd.f32 %v1104_v52, %v1882_v21 }
 0x19f   : > { %1049 = vst.msk [vmem:[%s2275_s5 + $0x90] sm:$0xff] %vm1030_vm3, %v1016_v56  ;;  %v1076_v56 = vld [vmem:[#allocation2 + $0x160] sm:$0xff]  ;;  %v1107_v10 = vmul.f32 %v1075_v39, %v1876_v22  ;;  %v1137_v32 = vadd.f32 %v1105_v53, %v1882_v21  ;;  %v1125_v39 = vmul.f32 %v1093_v42, %v1876_v22  ;;  %v1126_v53 = vmul.f32 %v1094_v26, %v1876_v22 }
 0x1a0   : > { %1050 = vst.msk [vmem:[%s2275_s5 + $0x98] sm:$0xff] %vm1030_vm3, %v1017_v60  ;;  %v1077_v60 = vld [vmem:[#allocation2 + $0x168] sm:$0xff]  ;;  %v1108_v33 = vmul.f32 %v1076_v56, %v1876_v22  ;;  %v1138_v44 = vadd.f32 %v1106_v0, %v1882_v21 }
 0x1a1   : > { %1051 = vst.msk [vmem:[%s2275_s5 + $0xa0] sm:$0xff] %vm1030_vm3, %v1018_v62  ;;  %v1078_v62 = vld [vmem:[#allocation2 + $0x170] sm:$0xff]  ;;  %v1109_v4 = vmul.f32 %v1077_v60, %v1876_v22  ;;  %v1139_v58 = vadd.f32 %v1107_v10, %v1882_v21  ;;  %v1158_v0 = vadd.f32 %v1126_v53, %v1882_v21 }
 0x1a2   : > { %1052 = vst.msk [vmem:[%s2275_s5 + $0xa8] sm:$0xff] %vm1030_vm3, %v1019_v3  ;;  %v1079_v3 = vld [vmem:[#allocation2 + $0x178] sm:$0xff]  ;;  %v1110_v6 = vmul.f32 %v1078_v62, %v1876_v22  ;;  %v1140_v14 = vadd.f32 %v1108_v33, %v1882_v21 }
 0x1a3   : > { %1053 = vst.msk [vmem:[%s2275_s5 + $0xb0] sm:$0xff] %vm1030_vm3, %v1020_v5  ;;  %v1080_v5 = vld [vmem:[#allocation2 + $0x180] sm:$0xff]  ;;  %v1111_v9 = vmul.f32 %v1079_v3, %v1876_v22  ;;  %v1141_v7 = vadd.f32 %v1109_v4, %v1882_v21 }
 0x1a4   : > { %1054 = vst.msk [vmem:[%s2275_s5 + $0xb8] sm:$0xff] %vm1030_vm3, %v1021_v45  ;;  %v1081_v45 = vld [vmem:[#allocation2 + $0x188] sm:$0xff]  ;;  %v1112_v15 = vmul.f32 %v1080_v5, %v1876_v22  ;;  %v1142_v19 = vadd.f32 %v1110_v6, %v1882_v21 }
 0x1a5   : > { %1055 = vst.msk [vmem:[%s2275_s5 + $0xc0] sm:$0xff] %vm1030_vm3, %v1022_v12  ;;  %v1082_v12 = vld [vmem:[#allocation2 + $0x190] sm:$0xff]  ;;  %v1113_v59 = vmul.f32 %v1081_v45, %v1876_v22  ;;  %v1143_v25 = vadd.f32 %v1111_v9, %v1882_v21 }
 0x1a6   : > { %1056 = vst.msk [vmem:[%s2275_s5 + $0xc8] sm:$0xff] %vm1030_vm3, %v1023_v16  ;;  %v1083_v16 = vld [vmem:[#allocation2 + $0x198] sm:$0xff]  ;;  %v1114_v20 = vmul.f32 %v1082_v12, %v1876_v22  ;;  %v1144_v8 = vadd.f32 %v1112_v15, %v1882_v21 }
 0x1a7   : > { %1057 = vst.msk [vmem:[%s2275_s5 + $0xd0] sm:$0xff] %vm1030_vm3, %v1024_v18  ;;  %v1084_v18 = vld [vmem:[#allocation2 + $0x1a0] sm:$0xff]  ;;  %v1115_v24 = vmul.f32 %v1083_v16, %v1876_v22  ;;  %v1145_v31 = vadd.f32 %v1113_v59, %v1882_v21 }
 0x1a8   : > { %1058 = vst.msk [vmem:[%s2275_s5 + $0xd8] sm:$0xff] %vm1030_vm3, %v1025_v23  ;;  %v1085_v23 = vld [vmem:[#allocation2 + $0x1a8] sm:$0xff]  ;;  %v1116_v28 = vmul.f32 %v1084_v18, %v1876_v22 }
 0x1a9   : > { %1059 = vst.msk [vmem:[%s2275_s5 + $0xe0] sm:$0xff] %vm1030_vm3, %v1026_v27  ;;  %v1086_v27 = vld [vmem:[#allocation2 + $0x1b0] sm:$0xff]  ;;  %v1117_v51 = vmul.f32 %v1085_v23, %v1876_v22  ;;  %v1147_v54 = vadd.f32 %v1115_v24, %v1882_v21 }
 0x1aa   : > { %1060 = vst.msk [vmem:[%s2275_s5 + $0xe8] sm:$0xff] %vm1030_vm3, %v1027_v29  ;;  %v1087_v29 = vld [vmem:[#allocation2 + $0x1b8] sm:$0xff]  ;;  %v1118_v17 = vmul.f32 %v1086_v27, %v1876_v22  ;;  %v1148_v37 = vadd.f32 %v1116_v28, %v1882_v21 }
 0x1ab   : > { %1061 = vst.msk [vmem:[%s2275_s5 + $0xf0] sm:$0xff] %vm1030_vm3, %v1028_v34  ;;  %v1146_v34 = vadd.f32 %v1114_v20, %v1882_v21  ;;  %v1149_v49 = vadd.f32 %v1117_v51, %v1882_v21 }
 0x1ac   : > { %1062 = vst.msk [vmem:[%s2275_s5 + $0xf8] sm:$0xff] %vm1030_vm3, %v1029_v35  ;;  %v1119_v35 = vmul.f32 %v1087_v29, %v1876_v22  ;;  %v1150_v11 = vadd.f32 %v1118_v17, %v1882_v21 }
 0x1ad   : > { %1160 = vst.msk [vmem:[%s2275_s5 + $0x100] sm:$0xff] %vm1030_vm3, %v1128_v48  ;;  %v1120_v48 = vmul.f32 %v1088_v30, %v1876_v22 }
 0x1ae   : > { %1161 = vst.msk [vmem:[%s2275_s5 + $0x108] sm:$0xff] %vm1030_vm3, %v1129_v63  ;;  %v1121_v63 = vmul.f32 %v1089_v41, %v1876_v22  ;;  %v1151_v43 = vadd.f32 %v1119_v35, %v1882_v21 }
 0x1af   : > { %1162 = vst.msk [vmem:[%s2275_s5 + $0x110] sm:$0xff] %vm1030_vm3, %v1130_v13  ;;  %v1122_v13 = vmul.f32 %v1090_v36, %v1876_v22  ;;  %v1152_v47 = vadd.f32 %v1120_v48, %v1882_v21 }
 0x1b0   : > { %1163 = vst.msk [vmem:[%s2275_s5 + $0x118] sm:$0xff] %vm1030_vm3, %v1131_v46  ;;  %v1123_v46 = vmul.f32 %v1091_v1, %v1876_v22  ;;  %v1153_v52 = vadd.f32 %v1121_v63, %v1882_v21 }
 0x1b1   : > { %1164 = vst.msk [vmem:[%s2275_s5 + $0x120] sm:$0xff] %vm1030_vm3, %v1132_v50  ;;  %v1124_v50 = vmul.f32 %v1092_v40, %v1876_v22  ;;  %v1157_v22 = vadd.f32 %v1125_v39, %v1882_v21 }
 0x1b2   : > { %1165 = vst.msk [vmem:[%s2275_s5 + $0x128] sm:$0xff] %vm1030_vm3, %v1133_v55  ;;  %v1154_v55 = vadd.f32 %v1122_v13, %v1882_v21  ;;  %v1155_v56 = vadd.f32 %v1123_v46, %v1882_v21 }
 0x1b3   : > { %1166 = vst.msk [vmem:[%s2275_s5 + $0x130] sm:$0xff] %vm1030_vm3, %v1134_v57  ;;  %v1156_v57 = vadd.f32 %v1124_v50, %v1882_v21 }
 0x1b4   : > { %1167 = vst.msk [vmem:[%s2275_s5 + $0x138] sm:$0xff] %vm1030_vm3, %v1135_v61 }
 0x1b5   : > { %1168 = vst.msk [vmem:[%s2275_s5 + $0x140] sm:$0xff] %vm1030_vm3, %v1136_v2 }
 0x1b6   : > { %1169 = vst.msk [vmem:[%s2275_s5 + $0x148] sm:$0xff] %vm1030_vm3, %v1137_v32 }
 0x1b7   : > { %1170 = vst.msk [vmem:[%s2275_s5 + $0x150] sm:$0xff] %vm1030_vm3, %v1138_v44 }
 0x1b8   : > { %1171 = vst.msk [vmem:[%s2275_s5 + $0x158] sm:$0xff] %vm1030_vm3, %v1139_v58 }
 0x1b9   : > { %1172 = vst.msk [vmem:[%s2275_s5 + $0x160] sm:$0xff] %vm1030_vm3, %v1140_v14 }
 0x1ba   : > { %1173 = vst.msk [vmem:[%s2275_s5 + $0x168] sm:$0xff] %vm1030_vm3, %v1141_v7 }
 0x1bb   : > { %1174 = vst.msk [vmem:[%s2275_s5 + $0x170] sm:$0xff] %vm1030_vm3, %v1142_v19 }
 0x1bc   : > { %1175 = vst.msk [vmem:[%s2275_s5 + $0x178] sm:$0xff] %vm1030_vm3, %v1143_v25 }
 0x1bd   : > { %1176 = vst.msk [vmem:[%s2275_s5 + $0x180] sm:$0xff] %vm1030_vm3, %v1144_v8 }
 0x1be   : > { %1177 = vst.msk [vmem:[%s2275_s5 + $0x188] sm:$0xff] %vm1030_vm3, %v1145_v31 }
 0x1bf   : > { %1178 = vst.msk [vmem:[%s2275_s5 + $0x190] sm:$0xff] %vm1030_vm3, %v1146_v34 }
 0x1c0   : > { %1179 = vst.msk [vmem:[%s2275_s5 + $0x198] sm:$0xff] %vm1030_vm3, %v1147_v54 }
 0x1c1   : > { %1180 = vst.msk [vmem:[%s2275_s5 + $0x1a0] sm:$0xff] %vm1030_vm3, %v1148_v37 }
 0x1c2   : > { %1181 = vst.msk [vmem:[%s2275_s5 + $0x1a8] sm:$0xff] %vm1030_vm3, %v1149_v49 }
 0x1c3   : > { %1182 = vst.msk [vmem:[%s2275_s5 + $0x1b0] sm:$0xff] %vm1030_vm3, %v1150_v11 }
 0x1c4   : > { %1183 = vst.msk [vmem:[%s2275_s5 + $0x1b8] sm:$0xff] %vm1030_vm3, %v1151_v43 }
 0x1c5   : > { %1184 = vst.msk [vmem:[%s2275_s5 + $0x1c0] sm:$0xff] %vm1030_vm3, %v1152_v47 }
 0x1c6   : > { %1185 = vst.msk [vmem:[%s2275_s5 + $0x1c8] sm:$0xff] %vm1030_vm3, %v1153_v52 }
 0x1c7   : > { %1186 = vst.msk [vmem:[%s2275_s5 + $0x1d0] sm:$0xff] %vm1030_vm3, %v1154_v55 }
 0x1c8   : > { %1187 = vst.msk [vmem:[%s2275_s5 + $0x1d8] sm:$0xff] %vm1030_vm3, %v1155_v56 }
 0x1c9   : > { %1188 = vst.msk [vmem:[%s2275_s5 + $0x1e0] sm:$0xff] %vm1030_vm3, %v1156_v57 }
 0x1ca   : > { %1189 = vst.msk [vmem:[%s2275_s5 + $0x1e8] sm:$0xff] %vm1030_vm3, %v1157_v22 }
 0x1cb   : > { %1190 = vst.msk [vmem:[%s2275_s5 + $0x1f0] sm:$0xff] %vm1030_vm3, %v1158_v0 }
 0x1cc   : > { %1191 = vst.msk [vmem:[%s2275_s5 + $0x1f8] sm:$0xff] %vm1030_vm3, %v2068_v38 }
 0x1cd PF: > { %s15_s18 = sadd.s32 1, %s1509_s18  }
 0x1ce   : > { %p12_p6 = scmp.ge.s32.totalorder %s15_s18, 4  }
 0x1d0   :  { %14 = sbr.rel (!%p12_p6) target bundleno = 1 (0x1), region = 76 }

// kernel: unet_like_forward.21
= control target key start
LH: loop header
LB: loop body
LE: loop exit
PB: predicated region body
PF: predicated region fallthrough
CT: control target
= control target key end

     0   :  { %s1880_s18 = smov 0   ;;  %s2581_s0 = inlined_call_operand.vmem [shape: bf16[1,512,128], index: 0, kind: input, shape index: {}]   ;;  %s2582_s1 = inlined_call_operand.vmem [shape: bf16[128,128], index: 1, kind: input, shape index: {}]   ;;  %s2583_s2 = inlined_call_operand.vmem [shape: f32[1,128], index: 2, kind: input, shape index: {}]   ;;  %s2584_s3 = inlined_call_operand.vmem [shape: f32[1,128], index: 3, kind: input, shape index: {}]   ;;  %s2585_s4 = inlined_call_operand.vmem [shape: f32[1,128], index: 4, kind: input, shape index: {}]   ;;  %s2586_s5 = inlined_call_operand.vmem [shape: f32[512,1], index: 5, kind: output, shape index: {}]  }
   0x1 LB: > { %s1886_s19 = sadd.s32 4294967295, %s1847_s18   ;;  %p1421_p0 = scmp.ge.s32.totalorder %s1847_s18, 1  ;;  %s1847_s18 = sphi %s1880_s18, %s15_s18  }
   0x2   : > { %p183_p1 = scmp.lt.s32.totalorder %s1847_s18, 3 }
   0x4   : > { %p184_p2 = pnand %p1421_p0, %p183_p1 }
   0x5   : > { %s1422_s20 = sshll.u32 (!%p184_p2), %s1886_s19, 5  ;;  %p1424_p4 = scmp.ne.s32.totalorder (!%p184_p2), %s1886_s19, 0 }
   0x6   : > { %187 = sbr.rel (%p184_p2) target bundleno = 498 (0x1f2), region = 40  ;;  %p207_p3 = scmp.lt.s32.totalorder (!%p184_p2), %s1422_s20, 63 }
   0xb   : > { %s2588_s20 = smov (!%p207_p3, %s1422_s20), 63  ;;  %215 = sbr.rel (%p1424_p4) target bundleno = 19 (0x13), region = 44 }
   0xc   : > { %s1423_s21 = sshll.u32 %s2588_s20, 2 }
   0xd   : > { %s1894_s24 = scalar_lea.vmem %s2581_s0, %s1423_s21 }
  0x10   : > { %v1849_v0 = vmov 0.0  }
  0x11   : > { %216 = vst [vmem:[#allocation3] sm:$0x1] %v1849_v0 }
  0x12   : > { %217 = vst [vmem:[#allocation4] sm:$0x1] %v1849_v0 }
  0x13 PF: > { %v1548_v1 = vld [vmem:[%s2582_s1 + $0x38] sm:$0xff]  ;;  %v1547_v2 = vld [vmem:[%s2582_s1 + $0x30] sm:$0xff]  ;;  %v1546_v3 = vld [vmem:[%s2582_s1 + $0x28] sm:$0xff]  ;;  %s1521_s20 = sshll.u32 %s1886_s19, 8  ;;  %p1522_p5 = scmp.ne.s32.totalorder %s1886_s19, 1 }
  0x14   : > { %414 = vmatpush.bf16.msra.mxu0 %v1548_v1  ;;  %1549 = vmatpush.bf16.msra.mxu1 %v1548_v1  ;;  %v1545_v4 = vld [vmem:[%s2582_s1 + $0x20] sm:$0xff]  ;;  %v1544_v5 = vld [vmem:[%s2582_s1 + $0x18] sm:$0xff]  ;;  %v1543_v6 = vld [vmem:[%s2582_s1 + $0x10] sm:$0xff]  ;;  %s1949_s21 = scalar_lea.vmem [#allocation2], %s1521_s20 }
  0x15   : > { %1550 = vmatpush.bf16.msra.mxu2 %v1548_v1  ;;  %1551 = vmatpush.bf16.msra.mxu3 %v1548_v1  ;;  %v1542_v7 = vld [vmem:[%s2582_s1 + $0x8] sm:$0xff]  ;;  %v1541_v8 = vld [vmem:[%s2582_s1] sm:$0xff]  ;;  %v1527_v17 = vld [vmem:[%s1894_s24 + $0x10] sm:$0xff] }
  0x16   : > { %v1525_v9 = vld [vmem:[%s1894_s24] sm:$0xff]  ;;  %v1526_v13 = vld [vmem:[%s1894_s24 + $0x8] sm:$0xff]  ;;  %v1531_v18 = vld [vmem:[%s1894_s24 + $0x30] sm:$0xff] }
  0x17   : > { %v1529_v10 = vld [vmem:[%s1894_s24 + $0x20] sm:$0xff]  ;;  %v1530_v14 = vld [vmem:[%s1894_s24 + $0x28] sm:$0xff]  ;;  %v1535_v19 = vld [vmem:[%s1894_s24 + $0x50] sm:$0xff] }
  0x18   : > { %415 = vmatpush.bf16.msra.mxu0 %v1547_v2  ;;  %1552 = vmatpush.bf16.msra.mxu1 %v1547_v2  ;;  %v1533_v11 = vld [vmem:[%s1894_s24 + $0x40] sm:$0xff]  ;;  %v1534_v15 = vld [vmem:[%s1894_s24 + $0x48] sm:$0xff]  ;;  %v1539_v20 = vld [vmem:[%s1894_s24 + $0x70] sm:$0xff] }
  0x19   : > { %1553 = vmatpush.bf16.msra.mxu2 %v1547_v2  ;;  %1554 = vmatpush.bf16.msra.mxu3 %v1547_v2  ;;  %v1537_v12 = vld [vmem:[%s1894_s24 + $0x60] sm:$0xff]  ;;  %v1538_v16 = vld [vmem:[%s1894_s24 + $0x68] sm:$0xff]  ;;  %v1528_v21 = vld [vmem:[%s1894_s24 + $0x18] sm:$0xff] }
  0x1a   : > { %v1532_v22 = vld [vmem:[%s1894_s24 + $0x38] sm:$0xff]  ;;  %v1940_v25 = vld [vmem:[%s2583_s2] ss:$0 sm:$0xff] }
  0x1b   : > { %v1536_v23 = vld [vmem:[%s1894_s24 + $0x58] sm:$0xff] }
  0x1c   : > { %416 = vmatpush.bf16.msra.mxu0 %v1546_v3  ;;  %1555 = vmatpush.bf16.msra.mxu1 %v1546_v3  ;;  %v1540_v24 = vld [vmem:[%s1894_s24 + $0x78] sm:$0xff] }
  0x1d   : > { %1556 = vmatpush.bf16.msra.mxu2 %v1546_v3  ;;  %1557 = vmatpush.bf16.msra.mxu3 %v1546_v3 }
  0x20   : > { %417 = vmatpush.bf16.msra.mxu0 %v1545_v4  ;;  %1558 = vmatpush.bf16.msra.mxu1 %v1545_v4 }
  0x21   : > { %1559 = vmatpush.bf16.msra.mxu2 %v1545_v4  ;;  %1560 = vmatpush.bf16.msra.mxu3 %v1545_v4 }
  0x24   : > { %418 = vmatpush.bf16.msra.mxu0 %v1544_v5  ;;  %1561 = vmatpush.bf16.msra.mxu1 %v1544_v5 }
  0x25   : > { %1562 = vmatpush.bf16.msra.mxu2 %v1544_v5  ;;  %1563 = vmatpush.bf16.msra.mxu3 %v1544_v5 }
  0x28   : > { %419 = vmatpush.bf16.msra.mxu0 %v1543_v6  ;;  %1564 = vmatpush.bf16.msra.mxu1 %v1543_v6 }
  0x29   : > { %1565 = vmatpush.bf16.msra.mxu2 %v1543_v6  ;;  %1566 = vmatpush.bf16.msra.mxu3 %v1543_v6 }
  0x2c   : > { %420 = vmatpush.bf16.msra.mxu0 %v1542_v7  ;;  %1567 = vmatpush.bf16.msra.mxu1 %v1542_v7 }
  0x2d   : > { %1568 = vmatpush.bf16.msra.mxu2 %v1542_v7  ;;  %1569 = vmatpush.bf16.msra.mxu3 %v1542_v7 }
  0x30   : > { %421 = vmatpush.bf16.msra.mxu0 %v1541_v8  ;;  %1570 = vmatpush.bf16.msra.mxu1 %v1541_v8 }
  0x31   : > { %1571 = vmatpush.bf16.msra.mxu2 %v1541_v8  ;;  %1572 = vmatpush.bf16.msra.mxu3 %v1541_v8 }
  0x33   : > { %422 = vmatmul.bf16.vlgmr.msra.gmra.mxu0 %v1525_v9  ;;  %442 = vmatmul.bf16.vlgmr.msra.gmra.mxu1 %v1529_v10 }
  0x34   : > { %462 = vmatmul.bf16.vlgmr.msra.gmra.mxu2 %v1533_v11  ;;  %482 = vmatmul.bf16.vlgmr.msra.gmra.mxu3 %v1537_v12 }
  0x43   : > { %427 = vmatmul.bf16.gmra.mxu0 %v1526_v13  ;;  %447 = vmatmul.bf16.gmra.mxu1 %v1530_v14 }
  0x44   : > { %467 = vmatmul.bf16.gmra.mxu2 %v1534_v15  ;;  %487 = vmatmul.bf16.gmra.mxu3 %v1538_v16 }
  0x53   : > { %432 = vmatmul.bf16.gmra.mxu0 %v1527_v17  ;;  %452 = vmatmul.bf16.gmra.mxu1 %v1531_v18 }
  0x54   : > { %472 = vmatmul.bf16.gmra.mxu2 %v1535_v19  ;;  %492 = vmatmul.bf16.gmra.mxu3 %v1539_v20 }
  0x63   : > { %437 = vmatmul.bf16.gmra.mxu0 %v1528_v21  ;;  %457 = vmatmul.bf16.gmra.mxu1 %v1532_v22 }
  0x64   : > { %477 = vmatmul.bf16.gmra.mxu2 %v1536_v23  ;;  %497 = vmatmul.bf16.gmra.mxu3 %v1540_v24 }
  0xb0   : > { %v423_v26 = vpop.f32.mrf.mxu0  ;;  %v443_v27 = vpop.f32.mrf.mxu1 }
  0xb1   : > { %v1944_v28 = vadd.f32 %v1940_v25, %v423_v26  ;;  %v1947_v29 = vadd.f32 %v1940_v25, %v443_v27 }
  0xb3   : > { %505 = vst [vmem:[%s1949_s21] sm:$0xff] %v1944_v28  ;;  %v578_v6 = vmul.f32 %v1944_v28, %v1944_v28 }
  0xb4   : > { %513 = vst [vmem:[%s1949_s21 + $0x40] sm:$0xff] %v1947_v29 }
  0xb7   : > { %v463_v30 = vpop.f32.mrf.mxu2  ;;  %v483_v36 = vpop.f32.mrf.mxu3 }
  0xb8   : > { %v425_v31 = vpop.f32.mrf.mxu0  ;;  %v445_v32 = vpop.f32.mrf.mxu1  ;;  %v1956_v33 = vadd.f32 %v1940_v25, %v463_v30  ;;  %v1968_v37 = vadd.f32 %v1940_v25, %v483_v36 }
  0xb9   : > { %v426_v34 = vadd.f32 %v1940_v25, %v425_v31  ;;  %v1960_v35 = vadd.f32 %v1940_v25, %v445_v32 }
  0xba   : > { %521 = vst [vmem:[%s1949_s21 + $0x80] sm:$0xff] %v1956_v33 }
  0xbb   : > { %506 = vst [vmem:[%s1949_s21 + $0x8] sm:$0xff] %v426_v34  ;;  %v579_v5 = vmul.f32 %v426_v34, %v426_v34  ;;  %v538_v7 = vadd.f32 %v426_v34, %v1944_v28 }
  0xbc   : > { %514 = vst [vmem:[%s1949_s21 + $0x48] sm:$0xff] %v1960_v35 }
  0xbd   : > { %529 = vst [vmem:[%s1949_s21 + $0xc0] sm:$0xff] %v1968_v37  ;;  %v610_v10 = vadd.f32 %v579_v5, %v578_v6 }
  0xbf   : > { %v465_v38 = vpop.f32.mrf.mxu2  ;;  %v485_v44 = vpop.f32.mrf.mxu3 }
  0xc0   : > { %v428_v39 = vpop.f32.mrf.mxu0  ;;  %v448_v40 = vpop.f32.mrf.mxu1  ;;  %v1973_v41 = vadd.f32 %v1940_v25, %v465_v38  ;;  %v1982_v45 = vadd.f32 %v1940_v25, %v485_v44 }
  0xc1   : > { %v429_v42 = vadd.f32 %v1940_v25, %v428_v39  ;;  %v1977_v43 = vadd.f32 %v1940_v25, %v448_v40 }
  0xc2   : > { %522 = vst [vmem:[%s1949_s21 + $0x88] sm:$0xff] %v1973_v41 }
  0xc3   : > { %507 = vst [vmem:[%s1949_s21 + $0x10] sm:$0xff] %v429_v42  ;;  %v580_v8 = vmul.f32 %v429_v42, %v429_v42  ;;  %v539_v11 = vadd.f32 %v538_v7, %v429_v42 }
  0xc4   : > { %515 = vst [vmem:[%s1949_s21 + $0x50] sm:$0xff] %v1977_v43 }
  0xc5   : > { %530 = vst [vmem:[%s1949_s21 + $0xc8] sm:$0xff] %v1982_v45  ;;  %v611_v21 = vadd.f32 %v610_v10, %v580_v8 }
  0xc7   : > { %v468_v46 = vpop.f32.mrf.mxu2  ;;  %v488_v52 = vpop.f32.mrf.mxu3 }
  0xc8   : > { %v430_v47 = vpop.f32.mrf.mxu0  ;;  %v450_v48 = vpop.f32.mrf.mxu1  ;;  %v1990_v49 = vadd.f32 %v1940_v25, %v468_v46  ;;  %v2009_v59 = vadd.f32 %v1940_v25, %v488_v52  ;;  %v586_v52 = vmul.f32 %v1947_v29, %v1947_v29 }
  0xc9   : > { %v431_v50 = vadd.f32 %v1940_v25, %v430_v47  ;;  %v1994_v51 = vadd.f32 %v1940_v25, %v450_v48 }
  0xca   : > { %523 = vst [vmem:[%s1949_s21 + $0x90] sm:$0xff] %v1990_v49 }
  0xcb   : > { %508 = vst [vmem:[%s1949_s21 + $0x18] sm:$0xff] %v431_v50  ;;  %v581_v15 = vmul.f32 %v431_v50, %v431_v50  ;;  %v540_v22 = vadd.f32 %v539_v11, %v431_v50 }
  0xcc   : > { %516 = vst [vmem:[%s1949_s21 + $0x58] sm:$0xff] %v1994_v51 }
  0xcd   : > { %531 = vst [vmem:[%s1949_s21 + $0xd0] sm:$0xff] %v2009_v59  ;;  %v612_v24 = vadd.f32 %v611_v21, %v581_v15 }
  0xcf   : > { %v470_v53 = vpop.f32.mrf.mxu2  ;;  %v490_v60 = vpop.f32.mrf.mxu3 }
  0xd0   : > { %v433_v54 = vpop.f32.mrf.mxu0  ;;  %v453_v55 = vpop.f32.mrf.mxu1  ;;  %v2002_v56 = vadd.f32 %v1940_v25, %v470_v53  ;;  %v2014_v61 = vadd.f32 %v1940_v25, %v490_v60 }
  0xd1   : > { %v434_v57 = vadd.f32 %v1940_v25, %v433_v54  ;;  %v2006_v58 = vadd.f32 %v1940_v25, %v453_v55  ;;  %v587_v55 = vmul.f32 %v1960_v35, %v1960_v35 }
  0xd2   : > { %524 = vst [vmem:[%s1949_s21 + $0x98] sm:$0xff] %v2002_v56 }
  0xd3   : > { %509 = vst [vmem:[%s1949_s21 + $0x20] sm:$0xff] %v434_v57  ;;  %v582_v23 = vmul.f32 %v434_v57, %v434_v57  ;;  %v541_v26 = vadd.f32 %v540_v22, %v434_v57  ;;  %v594_v22 = vmul.f32 %v1956_v33, %v1956_v33 }
  0xd4   : > { %517 = vst [vmem:[%s1949_s21 + $0x60] sm:$0xff] %v2006_v58 }
  0xd5   : > { %532 = vst [vmem:[%s1949_s21 + $0xd8] sm:$0xff] %v2014_v61  ;;  %v613_v28 = vadd.f32 %v612_v24, %v582_v23 }
  0xd7   : > { %v473_v62 = vpop.f32.mrf.mxu2  ;;  %v493_v4 = vpop.f32.mrf.mxu3 }
  0xd8   : > { %v435_v63 = vpop.f32.mrf.mxu0  ;;  %v455_v0 = vpop.f32.mrf.mxu1  ;;  %v2024_v1 = vadd.f32 %v1940_v25, %v473_v62  ;;  %v2044_v18 = vadd.f32 %v1940_v25, %v493_v4 }
  0xd9   : > { %v436_v2 = vadd.f32 %v1940_v25, %v435_v63  ;;  %v2028_v3 = vadd.f32 %v1940_v25, %v455_v0  ;;  %v588_v0 = vmul.f32 %v1977_v43, %v1977_v43 }
  0xda   : > { %525 = vst [vmem:[%s1949_s21 + $0xa0] sm:$0xff] %v2024_v1 }
  0xdb   : > { %510 = vst [vmem:[%s1949_s21 + $0x28] sm:$0xff] %v436_v2  ;;  %v583_v27 = vmul.f32 %v436_v2, %v436_v2  ;;  %v542_v30 = vadd.f32 %v541_v26, %v436_v2 }
  0xdc   : > { %518 = vst [vmem:[%s1949_s21 + $0x68] sm:$0xff] %v2028_v3 }
  0xdd   : > { %533 = vst [vmem:[%s1949_s21 + $0xe0] sm:$0xff] %v2044_v18  ;;  %v614_v39 = vadd.f32 %v613_v28, %v583_v27 }
  0xdf   : > { %v475_v9 = vpop.f32.mrf.mxu2  ;;  %v495_v19 = vpop.f32.mrf.mxu3 }
  0xe0   : > { %v438_v12 = vpop.f32.mrf.mxu0  ;;  %v458_v13 = vpop.f32.mrf.mxu1  ;;  %v2039_v14 = vadd.f32 %v1940_v25, %v475_v9  ;;  %v2049_v20 = vadd.f32 %v1940_v25, %v495_v19 }
  0xe1   : > { %v439_v16 = vadd.f32 %v1940_v25, %v438_v12  ;;  %v459_v17 = vadd.f32 %v1940_v25, %v458_v13 }
  0xe2   : > { %526 = vst [vmem:[%s1949_s21 + $0xa8] sm:$0xff] %v2039_v14 }
  0xe3   : > { %511 = vst [vmem:[%s1949_s21 + $0x30] sm:$0xff] %v439_v16  ;;  %v584_v31 = vmul.f32 %v439_v16, %v439_v16  ;;  %v543_v40 = vadd.f32 %v542_v30, %v439_v16  ;;  %v592_v15 = vmul.f32 %v459_v17, %v459_v17  ;;  %v597_v30 = vmul.f32 %v2002_v56, %v2002_v56 }
  0xe4   : > { %519 = vst [vmem:[%s1949_s21 + $0x70] sm:$0xff] %v459_v17 }
  0xe5   : > { %534 = vst [vmem:[%s1949_s21 + $0xe8] sm:$0xff] %v2049_v20  ;;  %v615_v47 = vadd.f32 %v614_v39, %v584_v31  ;;  %v599_v39 = vmul.f32 %v2039_v14, %v2039_v14 }
  0xe7   : > { %v478_v32 = vpop.f32.mrf.mxu2  ;;  %v498_v46 = vpop.f32.mrf.mxu3 }
  0xe8   : > { %v440_v34 = vpop.f32.mrf.mxu0  ;;  %v460_v36 = vpop.f32.mrf.mxu1  ;;  %v2058_v38 = vadd.f32 %v1940_v25, %v478_v32 }
  0xe9   : > { %v441_v42 = vadd.f32 %v1940_v25, %v440_v34  ;;  %v461_v44 = vadd.f32 %v1940_v25, %v460_v36 }
  0xea   : > { %527 = vst [vmem:[%s1949_s21 + $0xb0] sm:$0xff] %v2058_v38 }
  0xeb   : > { %512 = vst [vmem:[%s1949_s21 + $0x38] sm:$0xff] %v441_v42  ;;  %v544_v48 = vadd.f32 %v543_v40, %v441_v42  ;;  %v585_v50 = vmul.f32 %v441_v42, %v441_v42  ;;  %v593_v21 = vmul.f32 %v461_v44, %v461_v44 }
  0xec   : > { %520 = vst [vmem:[%s1949_s21 + $0x78] sm:$0xff] %v461_v44 }
  0xed   : > { %v545_v53 = vadd.f32 %v544_v48, %v1947_v29  ;;  %v616_v54 = vadd.f32 %v615_v47, %v585_v50  ;;  %v2077_v29 = vadd.f32 %v1940_v25, %v498_v46  ;;  %v602_v48 = vmul.f32 %v1968_v37, %v1968_v37 }
  0xef   : > { %v546_v57 = vadd.f32 %v545_v53, %v1960_v35  ;;  %v617_v60 = vadd.f32 %v616_v54, %v586_v52  ;;  %v480_v62 = vpop.f32.mrf.mxu2  ;;  %v500_v5 = vpop.f32.mrf.mxu3  ;;  %v589_v35 = vmul.f32 %v1994_v51, %v1994_v51  ;;  %535 = vst [vmem:[%s1949_s21 + $0xf0] sm:$0xff] %v2077_v29  ;;  %v603_v52 = vmul.f32 %v1982_v45, %v1982_v45 }
  0xf0   : > { %v481_v63 = vadd.f32 %v1940_v25, %v480_v62  ;;  %v2081_v6 = vadd.f32 %v1940_v25, %v500_v5  ;;  %v591_v25 = vmul.f32 %v2028_v3, %v2028_v3  ;;  %v604_v54 = vmul.f32 %v2009_v59, %v2009_v59 }
  0xf1   : > { %v547_v2 = vadd.f32 %v546_v57, %v1977_v43  ;;  %v618_v4 = vadd.f32 %v617_v60, %v587_v55  ;;  %v590_v43 = vmul.f32 %v2006_v58, %v2006_v58  ;;  %v605_v57 = vmul.f32 %v2014_v61, %v2014_v61 }
  0xf2   : > { %528 = vst [vmem:[%s1949_s21 + $0xb8] sm:$0xff] %v481_v63  ;;  %v601_v47 = vmul.f32 %v481_v63, %v481_v63 }
  0xf3   : > { %v619_v7 = vadd.f32 %v618_v4, %v588_v0  ;;  %v548_v8 = vadd.f32 %v547_v2, %v1994_v51  ;;  %536 = vst [vmem:[%s1949_s21 + $0xf8] sm:$0xff] %v2081_v6  ;;  %v607_v2 = vmul.f32 %v2049_v20, %v2049_v20 }
  0xf5   : > { %v549_v9 = vadd.f32 %v548_v8, %v2006_v58  ;;  %v620_v10 = vadd.f32 %v619_v7, %v589_v35  ;;  %v595_v58 = vmul.f32 %v1973_v41, %v1973_v41  ;;  %v608_v35 = vmul.f32 %v2077_v29, %v2077_v29 }
  0xf6   : > { %v609_v8 = vmul.f32 %v2081_v6, %v2081_v6 }
  0xf7   : > { %v550_v11 = vadd.f32 %v549_v9, %v2028_v3  ;;  %v621_v12 = vadd.f32 %v620_v10, %v590_v43  ;;  %v596_v3 = vmul.f32 %v1990_v49, %v1990_v49 }
  0xf9   : > { %v551_v13 = vadd.f32 %v550_v11, %v459_v17  ;;  %v622_v16 = vadd.f32 %v621_v12, %v591_v25 }
  0xfb   : > { %v623_v51 = vadd.f32 %v622_v16, %v592_v15  ;;  %v552_v19 = vadd.f32 %v551_v13, %v461_v44  ;;  %v600_v44 = vmul.f32 %v2058_v38, %v2058_v38  ;;  %v537_v16 = vld [vmem:[#allocation3] sm:$0x1] }
  0xfd   : > { %v553_v23 = vadd.f32 %v552_v19, %v1956_v33  ;;  %v624_v24 = vadd.f32 %v623_v51, %v593_v21  ;;  %v598_v33 = vmul.f32 %v2024_v1, %v2024_v1 }
  0xff   : > { %v554_v26 = vadd.f32 %v553_v23, %v1973_v41  ;;  %v625_v27 = vadd.f32 %v624_v24, %v594_v22 }
 0x101   : > { %v626_v17 = vadd.f32 %v625_v27, %v595_v58  ;;  %v555_v28 = vadd.f32 %v554_v26, %v1990_v49 }
 0x103   : > { %v556_v31 = vadd.f32 %v555_v28, %v2002_v56  ;;  %v627_v32 = vadd.f32 %v626_v17, %v596_v3 }
 0x105   : > { %v557_v34 = vadd.f32 %v556_v31, %v2024_v1  ;;  %v628_v36 = vadd.f32 %v627_v32, %v597_v30 }
 0x107   : > { %v558_v41 = vadd.f32 %v557_v34, %v2039_v14  ;;  %v629_v40 = vadd.f32 %v628_v36, %v598_v33 }
 0x109   : > { %v630_v42 = vadd.f32 %v629_v40, %v599_v39  ;;  %v559_v49 = vadd.f32 %v558_v41, %v2058_v38 }
 0x10b   : > { %v631_v56 = vadd.f32 %v630_v42, %v600_v44  ;;  %v560_v46 = vadd.f32 %v559_v49, %v481_v63 }
 0x10d   : > { %v561_v1 = vadd.f32 %v560_v46, %v1968_v37  ;;  %v632_v50 = vadd.f32 %v631_v56, %v601_v47  ;;  %v606_v37 = vmul.f32 %v2044_v18, %v2044_v18 }
 0x10f   : > { %v562_v14 = vadd.f32 %v561_v1, %v1982_v45  ;;  %v633_v53 = vadd.f32 %v632_v50, %v602_v48 }
 0x111   : > { %v634_v55 = vadd.f32 %v633_v53, %v603_v52  ;;  %v563_v38 = vadd.f32 %v562_v14, %v2009_v59 }
 0x113   : > { %v564_v60 = vadd.f32 %v563_v38, %v2014_v61  ;;  %v635_v62 = vadd.f32 %v634_v55, %v604_v54 }
 0x115   : > { %v565_v63 = vadd.f32 %v564_v60, %v2044_v18  ;;  %v636_v0 = vadd.f32 %v635_v62, %v605_v57 }
 0x117   : > { %v566_v45 = vadd.f32 %v565_v63, %v2049_v20  ;;  %v637_v4 = vadd.f32 %v636_v0, %v606_v37 }
 0x119   : > { %v638_v5 = vadd.f32 %v637_v4, %v607_v2  ;;  %v567_v59 = vadd.f32 %v566_v45, %v2077_v29  ;;  %v577_v29 = vld [vmem:[#allocation4] sm:$0x1] }
 0x11b   : > { %v639_v61 = vadd.f32 %v638_v5, %v608_v35  ;;  %v568_v7 = vadd.f32 %v567_v59, %v2081_v6 }
 0x11d   : > { %v569_v18 = vrot.slane %v568_v7, 4  ;;  %v640_v43 = vadd.f32 %v639_v61, %v609_v8 }
 0x11f   : > { %v570_v9 = vadd.f32 %v569_v18, %v568_v7  ;;  %v641_v10 = vrot.slane %v640_v43, 4 }
 0x121   : > { %v571_v25 = vrot.slane %v570_v9, 2  ;;  %v642_v11 = vadd.f32 %v641_v10, %v640_v43 }
 0x123   : > { %v572_v20 = vadd.f32 %v571_v25, %v570_v9  ;;  %v643_v12 = vrot.slane %v642_v11, 2 }
 0x125   : > { %v573_v13 = vrot.slane %v572_v20, 1  ;;  %v644_v15 = vadd.f32 %v643_v12, %v642_v11 }
 0x127   : > { %v574_v51 = vadd.f32 %v573_v13, %v572_v20  ;;  %v645_v19 = vrot.slane %v644_v15, 1 }
 0x129   : > { %v575_v21 = vadd.f32 %v574_v51, %v537_v16  ;;  %v646_v22 = vadd.f32 %v645_v19, %v644_v15  ;;  %652 = sbr.rel (%p1522_p5) target bundleno = 498 (0x1f2), region = 48 }
 0x12b   : > { %576 = vst [vmem:[#allocation3] sm:$0x1] %v575_v21  ;;  %v647_v23 = vadd.f32 %v646_v22, %v577_v29 }
 0x12d   : > { %648 = vst [vmem:[#allocation4] sm:$0x1] %v647_v23 }
 0x12e   : > { %v660_v36 = vld [vmem:[%s2584_s3] sm:$0x1]  ;;  %v677_v44 = vld [vmem:[#allocation2 + $0x8] sm:$0xff]  ;;  %v678_v56 = vld [vmem:[#allocation2 + $0x10] sm:$0xff]  ;;  %vm1002_vm3 = vcmask 7168  }
 0x12f   : > { %v673_v42 = vld [vmem:[%s2585_s4] sm:$0x1]  ;;  %v679_v46 = vld [vmem:[#allocation2 + $0x18] sm:$0xff]  ;;  %v681_v50 = vld [vmem:[#allocation2 + $0x28] sm:$0xff] }
 0x130   : > { %v676_v49 = vld [vmem:[#allocation2] sm:$0xff]  ;;  %v682_v52 = vld [vmem:[#allocation2 + $0x30] sm:$0xff]  ;;  %v683_v14 = vld [vmem:[#allocation2 + $0x38] sm:$0xff] }
 0x131   : > { %v680_v47 = vld [vmem:[#allocation2 + $0x20] sm:$0xff]  ;;  %v685_v54 = vld [vmem:[#allocation2 + $0x48] sm:$0xff]  ;;  %v686_v55 = vld [vmem:[#allocation2 + $0x50] sm:$0xff] }
 0x132   : > { %v653_v6 = vld [vmem:[#allocation3] sm:$0x1]  ;;  %v687_v37 = vld [vmem:[#allocation2 + $0x58] sm:$0xff]  ;;  %v689_v0 = vld [vmem:[#allocation2 + $0x68] sm:$0xff] }
 0x133   : > { %v654_v58 = vmul.f32 0.001953125, %v653_v6  ;;  %v684_v53 = vld [vmem:[#allocation2 + $0x40] sm:$0xff] }
 0x134   : > { %v655_v24 = vld [vmem:[#allocation4] sm:$0x1] }
 0x135   : > { %v656_v26 = vmul.f32 0.001953125, %v655_v24  ;;  %v657_v27 = vmul.f32 %v654_v58, %v654_v58  ;;  %v688_v63 = vld [vmem:[#allocation2 + $0x60] sm:$0xff] }
 0x137   : > { %v658_v3 = vsub.f32 %v656_v26, %v657_v27 }
 0x139   : > { %v659_v17 = vmax.f32 %v658_v3, 0.0 }
 0x13b   : > { %v661_v28 = vadd.f32 1e-05, %v659_v17 }
 0x13d   : > { %1583 = vrsqrt.f32 %v661_v28  ;;  %vm668_vm0 = vweird.f32 %v661_v28 }
 0x143   : > { %v1584_v30 = vpop.eup %1583 }
 0x144   : > { %v663_v31 = vmul.f32 %v1584_v30, %v661_v28  ;;  %vm669_vm1 = vweird.f32 %v1584_v30 }
 0x145   : > { %vm670_vm2 = vmor %vm668_vm0, %vm669_vm1 }
 0x146   : > { %v664_v32 = vmul.f32 %v1584_v30, %v663_v31 }
 0x148   : > { %v665_v33 = vmul.f32 0.5, %v664_v32 }
 0x14a   : > { %v666_v34 = vsub.f32 1.5, %v665_v33 }
 0x14c   : > { %v667_v41 = vmul.f32 %v1584_v30, %v666_v34 }
 0x14e   : > { %v671_v39 = vsel %vm670_vm2, %v1584_v30, %v667_v41 }
 0x14f   : > { %v672_v40 = vmul.f32 %v671_v39, %v660_v36 }
 0x151   : > { %v674_v48 = vmul.f32 %v672_v40, %v654_v58  ;;  %v2148_v1 = vperm.slane %v672_v40, 0  ;;  %v690_v40 = vld [vmem:[#allocation2 + $0x70] sm:$0xff] }
 0x153   : > { %v675_v38 = vsub.f32 %v673_v42, %v674_v48  ;;  %v711_v57 = vmul.f32 %v2148_v1, %v676_v49  ;;  %v712_v60 = vmul.f32 %v2148_v1, %v677_v44  ;;  %v713_v62 = vmul.f32 %v2148_v1, %v678_v56  ;;  %v691_v56 = vld [vmem:[#allocation2 + $0x78] sm:$0xff] }
 0x154   : > { %v714_v45 = vmul.f32 %v2148_v1, %v679_v46  ;;  %v715_v2 = vmul.f32 %v2148_v1, %v680_v47  ;;  %v716_v4 = vmul.f32 %v2148_v1, %v681_v50  ;;  %v717_v5 = vmul.f32 %v2148_v1, %v682_v52 }
 0x155   : > { %v2157_v59 = vperm.slane %v675_v38, 0  ;;  %v718_v35 = vmul.f32 %v2148_v1, %v683_v14  ;;  %v719_v61 = vmul.f32 %v2148_v1, %v684_v53  ;;  %v720_v7 = vmul.f32 %v2148_v1, %v685_v54  ;;  %v692_v53 = vld [vmem:[#allocation2 + $0x80] sm:$0xff] }
 0x156   : > { %v721_v8 = vmul.f32 %v2148_v1, %v686_v55  ;;  %v722_v18 = vmul.f32 %v2148_v1, %v687_v37  ;;  %v723_v43 = vmul.f32 %v2148_v1, %v688_v63  ;;  %v724_v9 = vmul.f32 %v2148_v1, %v689_v0 }
 0x157   : > { %v746_v10 = vadd.f32 %v2157_v59, %v711_v57  ;;  %v747_v25 = vadd.f32 %v2157_v59, %v712_v60  ;;  %v748_v11 = vadd.f32 %v2157_v59, %v713_v62  ;;  %v749_v20 = vadd.f32 %v2157_v59, %v714_v45  ;;  %v693_v57 = vld [vmem:[#allocation2 + $0x88] sm:$0xff] }
 0x158   : > { %v750_v12 = vadd.f32 %v2157_v59, %v715_v2  ;;  %v751_v13 = vadd.f32 %v2157_v59, %v716_v4  ;;  %v752_v15 = vadd.f32 %v2157_v59, %v717_v5  ;;  %v753_v16 = vadd.f32 %v2157_v59, %v718_v35 }
 0x159   : > { %v778_v51 = vsub.f32 0.0, %v746_v10  ;;  %v779_v19 = vsub.f32 0.0, %v747_v25  ;;  %v780_v29 = vsub.f32 0.0, %v748_v11  ;;  %v781_v21 = vsub.f32 0.0, %v749_v20  ;;  %v694_v10 = vld [vmem:[#allocation2 + $0x90] sm:$0xff] }
 0x15a   : > { %v782_v22 = vsub.f32 0.0, %v750_v12  ;;  %v783_v23 = vsub.f32 0.0, %v751_v13  ;;  %v784_v6 = vsub.f32 0.0, %v752_v15  ;;  %v785_v24 = vsub.f32 0.0, %v753_v16  ;;  %v695_v13 = vld [vmem:[#allocation2 + $0x98] sm:$0xff] }
 0x15b   : > { %v810_v58 = vmul.f32 1.442695, %v778_v51  ;;  %v812_v26 = vmul.f32 1.442695, %v779_v19  ;;  %v814_v27 = vmul.f32 1.442695, %v780_v29  ;;  %v754_v3 = vadd.f32 %v2157_v59, %v719_v61 }
 0x15c   : > { %v816_v17 = vmul.f32 1.442695, %v781_v21  ;;  %v818_v28 = vmul.f32 1.442695, %v782_v22  ;;  %v820_v30 = vmul.f32 1.442695, %v783_v23  ;;  %v755_v31 = vadd.f32 %v2157_v59, %v720_v7 }
 0x15d   : > { %1585 = vpow2.f32 %v810_v58  ;;  %v822_v32 = vmul.f32 1.442695, %v784_v6  ;;  %v824_v33 = vmul.f32 1.442695, %v785_v24  ;;  %v786_v34 = vsub.f32 0.0, %v754_v3  ;;  %v696_v6 = vld [vmem:[#allocation2 + $0xa0] sm:$0xff] }
 0x15e   : > { %1587 = vpow2.f32 %v812_v26  ;;  %v787_v36 = vsub.f32 0.0, %v755_v31  ;;  %v756_v41 = vadd.f32 %v2157_v59, %v721_v8  ;;  %v757_v39 = vadd.f32 %v2157_v59, %v722_v18  ;;  %v697_v3 = vld [vmem:[#allocation2 + $0xa8] sm:$0xff] }
 0x15f   : > { %1589 = vpow2.f32 %v814_v27  ;;  %v826_v42 = vmul.f32 1.442695, %v786_v34  ;;  %v758_v49 = vadd.f32 %v2157_v59, %v723_v43  ;;  %v759_v44 = vadd.f32 %v2157_v59, %v724_v9 }
 0x160   : > { %1591 = vpow2.f32 %v816_v17  ;;  %v2180_v46 = vmul.f32 1.442695, %v787_v36  ;;  %v788_v47 = vsub.f32 0.0, %v756_v41  ;;  %v789_v48 = vsub.f32 0.0, %v757_v39 }
 0x161   : > { %1593 = vpow2.f32 %v818_v28  ;;  %v790_v50 = vsub.f32 0.0, %v758_v49  ;;  %v791_v52 = vsub.f32 0.0, %v759_v44  ;;  %v725_v14 = vmul.f32 %v2148_v1, %v690_v40 }
 0x162   : > { %1595 = vpow2.f32 %v820_v30  ;;  %v2183_v54 = vmul.f32 1.442695, %v788_v47  ;;  %v2185_v55 = vmul.f32 1.442695, %v789_v48  ;;  %v726_v38 = vmul.f32 %v2148_v1, %v691_v56 }
 0x163   : > { %v1586_v60 = vpop.eup %1585  ;;  %1597 = vpow2.f32 %v822_v32  ;;  %v2188_v62 = vmul.f32 1.442695, %v790_v50  ;;  %v2190_v37 = vmul.f32 1.442695, %v791_v52  ;;  %v760_v63 = vadd.f32 %v2157_v59, %v725_v14 }
 0x164   : > { %v1588_v0 = vpop.eup %1587  ;;  %v874_v45 = vadd.f32 1.0, %v1586_v60  ;;  %1599 = vpow2.f32 %v824_v33  ;;  %v761_v2 = vadd.f32 %v2157_v59, %v726_v38  ;;  %v727_v4 = vmul.f32 %v2148_v1, %v692_v53 }
 0x165   : > { %v1590_v5 = vpop.eup %1589  ;;  %v875_v35 = vadd.f32 1.0, %v1588_v0  ;;  %1601 = vpow2.f32 %v826_v42  ;;  %v792_v61 = vsub.f32 0.0, %v760_v63  ;;  %v728_v7 = vmul.f32 %v2148_v1, %v693_v57 }
 0x166   : > { %v1592_v8 = vpop.eup %1591  ;;  %1603 = vrcp.f32 %v874_v45  ;;  %v876_v18 = vadd.f32 1.0, %v1590_v5  ;;  %v793_v43 = vsub.f32 0.0, %v761_v2  ;;  %v762_v9 = vadd.f32 %v2157_v59, %v727_v4 }
 0x167   : > { %v1594_v25 = vpop.eup %1593  ;;  %1605 = vrcp.f32 %v875_v35  ;;  %v877_v11 = vadd.f32 1.0, %v1592_v8  ;;  %v2197_v20 = vmul.f32 1.442695, %v792_v61  ;;  %v763_v12 = vadd.f32 %v2157_v59, %v728_v7  ;;  %v698_v35 = vld [vmem:[#allocation2 + $0xb0] sm:$0xff] }
 0x168   : > { %v1596_v15 = vpop.eup %1595  ;;  %1607 = vrcp.f32 %v876_v18  ;;  %v878_v16 = vadd.f32 1.0, %v1594_v25  ;;  %v2200_v51 = vmul.f32 1.442695, %v793_v43  ;;  %v794_v19 = vsub.f32 0.0, %v762_v9 }
 0x169   : > { %v1598_v29 = vpop.eup %1597  ;;  %1609 = vrcp.f32 %v877_v11  ;;  %v879_v21 = vadd.f32 1.0, %v1596_v15  ;;  %v795_v22 = vsub.f32 0.0, %v763_v12  ;;  %v729_v23 = vmul.f32 %v2148_v1, %v694_v10  ;;  %v699_v12 = vld [vmem:[#allocation2 + $0xb8] sm:$0xff] }
 0x16a   : > { %v1600_v24 = vpop.eup %1599  ;;  %1611 = vrcp.f32 %v878_v16  ;;  %v880_v58 = vadd.f32 1.0, %v1598_v29  ;;  %v2203_v26 = vmul.f32 1.442695, %v794_v19  ;;  %v730_v27 = vmul.f32 %v2148_v1, %v695_v13  ;;  %v700_v13 = vld [vmem:[#allocation2 + $0xc0] sm:$0xff]  ;;  %v701_v29 = vld [vmem:[#allocation2 + $0xc8] sm:$0xff] }
 0x16b   : > { %v1602_v17 = vpop.eup %1601  ;;  %1613 = vrcp.f32 %v879_v21  ;;  %v881_v28 = vadd.f32 1.0, %v1600_v24  ;;  %v2206_v30 = vmul.f32 1.442695, %v795_v22  ;;  %v764_v31 = vadd.f32 %v2157_v59, %v729_v23 }
 0x16c   : > { %v1604_v32 = vpop.eup %1603  ;;  %1615 = vrcp.f32 %v880_v58  ;;  %v882_v33 = vadd.f32 1.0, %v1602_v17  ;;  %v765_v34 = vadd.f32 %v2157_v59, %v730_v27  ;;  %v731_v36 = vmul.f32 %v2148_v1, %v696_v6 }
 0x16d   : > { %v1606_v41 = vpop.eup %1605  ;;  %v938_v39 = vmax.f32 %v1604_v32, 0.0  ;;  %1617 = vrcp.f32 %v881_v28  ;;  %v796_v40 = vsub.f32 0.0, %v764_v31  ;;  %v732_v42 = vmul.f32 %v2148_v1, %v697_v3 }
 0x16e   : > { %v1608_v49 = vpop.eup %1607  ;;  %v939_v44 = vmax.f32 %v1606_v41, 0.0  ;;  %1619 = vrcp.f32 %v882_v33  ;;  %v797_v56 = vsub.f32 0.0, %v765_v34  ;;  %v766_v47 = vadd.f32 %v2157_v59, %v731_v36  ;;  %v702_v34 = vld [vmem:[#allocation2 + $0xd0] sm:$0xff] }
 0x16f   : > { %v1610_v48 = vpop.eup %1609  ;;  %v970_v50 = vmin.f32 %v938_v39, 1.0  ;;  %v940_v52 = vmax.f32 %v1608_v49, 0.0  ;;  %1621 = vpow2.f32 %v2180_v46  ;;  %v2214_v14 = vmul.f32 1.442695, %v796_v40 }
 0x170   : > { %v1612_v53 = vpop.eup %1611  ;;  %v971_v38 = vmin.f32 %v939_v44, 1.0  ;;  %v941_v57 = vmax.f32 %v1610_v48, 0.0  ;;  %1623 = vpow2.f32 %v2183_v54  ;;  %v2217_v60 = vmul.f32 1.442695, %v797_v56 }
 0x171   : > { %v1614_v63 = vpop.eup %1613  ;;  %1003 = vst.msk [vmem:[%s2586_s5] sm:$0xff] %vm1002_vm3, %v970_v50  ;;  %v972_v0 = vmin.f32 %v940_v52, 1.0  ;;  %v942_v45 = vmax.f32 %v1612_v53, 0.0  ;;  %1625 = vpow2.f32 %v2185_v55  ;;  %v798_v46 = vsub.f32 0.0, %v766_v47  ;;  %v703_v53 = vld [vmem:[#allocation2 + $0xd8] sm:$0xff] }
 0x172   : > { %v1616_v2 = vpop.eup %1615  ;;  %1004 = vst.msk [vmem:[%s2586_s5 + $0x8] sm:$0xff] %vm1002_vm3, %v971_v38  ;;  %v973_v54 = vmin.f32 %v941_v57, 1.0  ;;  %v943_v4 = vmax.f32 %v1614_v63, 0.0  ;;  %1627 = vpow2.f32 %v2188_v62  ;;  %v767_v5 = vadd.f32 %v2157_v59, %v732_v42  ;;  %v704_v38 = vld [vmem:[#allocation2 + $0xe0] sm:$0xff] }
 0x173   : > { %v1618_v61 = vpop.eup %1617  ;;  %1005 = vst.msk [vmem:[%s2586_s5 + $0x10] sm:$0xff] %vm1002_vm3, %v972_v0  ;;  %v974_v55 = vmin.f32 %v942_v45, 1.0  ;;  %v944_v7 = vmax.f32 %v1616_v2, 0.0  ;;  %1629 = vpow2.f32 %v2190_v37  ;;  %v2235_v8 = vmul.f32 1.442695, %v798_v46 }
 0x174   : > { %v1620_v18 = vpop.eup %1619  ;;  %1006 = vst.msk [vmem:[%s2586_s5 + $0x18] sm:$0xff] %vm1002_vm3, %v973_v54  ;;  %v975_v62 = vmin.f32 %v943_v4, 1.0  ;;  %v945_v43 = vmax.f32 %v1618_v61, 0.0  ;;  %1631 = vpow2.f32 %v2197_v20  ;;  %v799_v9 = vsub.f32 0.0, %v767_v5 }
 0x175   : > { %v1622_v10 = vpop.eup %1621  ;;  %1007 = vst.msk [vmem:[%s2586_s5 + $0x20] sm:$0xff] %vm1002_vm3, %v974_v55  ;;  %v976_v37 = vmin.f32 %v944_v7, 1.0  ;;  %v946_v25 = vmax.f32 %v1620_v18, 0.0  ;;  %1633 = vpow2.f32 %v2200_v51  ;;  %v733_v11 = vmul.f32 %v2148_v1, %v698_v35 }
 0x176   : > { %v1624_v15 = vpop.eup %1623  ;;  %1008 = vst.msk [vmem:[%s2586_s5 + $0x28] sm:$0xff] %vm1002_vm3, %v975_v62  ;;  %v977_v20 = vmin.f32 %v945_v43, 1.0  ;;  %v883_v16 = vadd.f32 1.0, %v1622_v10  ;;  %1635 = vpow2.f32 %v2203_v26  ;;  %v2253_v19 = vmul.f32 1.442695, %v799_v9 }
 0x177   : > { %v1626_v21 = vpop.eup %1625  ;;  %1009 = vst.msk [vmem:[%s2586_s5 + $0x30] sm:$0xff] %vm1002_vm3, %v976_v37  ;;  %v978_v51 = vmin.f32 %v946_v25, 1.0  ;;  %v884_v22 = vadd.f32 1.0, %v1624_v15  ;;  %1637 = vpow2.f32 %v2206_v30  ;;  %v768_v23 = vadd.f32 %v2157_v59, %v733_v11 }
 0x178   : > { %v1628_v6 = vpop.eup %1627  ;;  %1010 = vst.msk [vmem:[%s2586_s5 + $0x38] sm:$0xff] %vm1002_vm3, %v977_v20  ;;  %1639 = vrcp.f32 %v883_v16  ;;  %v885_v24 = vadd.f32 1.0, %v1626_v21  ;;  %v734_v58 = vmul.f32 %v2148_v1, %v699_v12  ;;  %v735_v26 = vmul.f32 %v2148_v1, %v700_v13 }
 0x179   : > { %v1630_v27 = vpop.eup %1629  ;;  %1011 = vst.msk [vmem:[%s2586_s5 + $0x40] sm:$0xff] %vm1002_vm3, %v978_v51  ;;  %1641 = vrcp.f32 %v884_v22  ;;  %v886_v3 = vadd.f32 1.0, %v1628_v6  ;;  %v800_v17 = vsub.f32 0.0, %v768_v23  ;;  %v736_v28 = vmul.f32 %v2148_v1, %v701_v29  ;;  %v705_v22 = vld [vmem:[#allocation2 + $0xe8] sm:$0xff] }
 0x17a   : > { %v1632_v30 = vpop.eup %1631  ;;  %1643 = vrcp.f32 %v885_v24  ;;  %v887_v31 = vadd.f32 1.0, %v1630_v27  ;;  %v769_v32 = vadd.f32 %v2157_v59, %v734_v58  ;;  %v770_v33 = vadd.f32 %v2157_v59, %v735_v26 }
 0x17b   : > { %v1634_v36 = vpop.eup %1633  ;;  %1645 = vrcp.f32 %v886_v3  ;;  %v888_v41 = vadd.f32 1.0, %v1632_v30  ;;  %v854_v39 = vmul.f32 1.442695, %v800_v17  ;;  %v771_v40 = vadd.f32 %v2157_v59, %v736_v28  ;;  %v706_v17 = vld [vmem:[#allocation2 + $0xf0] sm:$0xff] }
 0x17c   : > { %v1636_v42 = vpop.eup %1635  ;;  %1647 = vrcp.f32 %v887_v31  ;;  %v889_v49 = vadd.f32 1.0, %v1634_v36  ;;  %v801_v44 = vsub.f32 0.0, %v769_v32  ;;  %v802_v56 = vsub.f32 0.0, %v770_v33  ;;  %v707_v33 = vld [vmem:[#allocation2 + $0xf8] sm:$0xff] }
 0x17d   : > { %v1638_v47 = vpop.eup %1637  ;;  %1649 = vrcp.f32 %v888_v41  ;;  %v890_v48 = vadd.f32 1.0, %v1636_v42  ;;  %v803_v50 = vsub.f32 0.0, %v771_v40  ;;  %v737_v52 = vmul.f32 %v2148_v1, %v702_v34  ;;  %v1036_v34 = vld [vmem:[#allocation2 + $0x100] sm:$0xff] }
 0x17e   : > { %v1640_v57 = vpop.eup %1639  ;;  %1651 = vrcp.f32 %v889_v49  ;;  %v891_v63 = vadd.f32 1.0, %v1638_v47  ;;  %v856_v0 = vmul.f32 1.442695, %v801_v44  ;;  %v858_v45 = vmul.f32 1.442695, %v802_v56 }
 0x17f   : > { %v1642_v46 = vpop.eup %1641  ;;  %v947_v2 = vmax.f32 %v1640_v57, 0.0  ;;  %1653 = vrcp.f32 %v890_v48  ;;  %v860_v54 = vmul.f32 1.442695, %v803_v50  ;;  %v772_v4 = vadd.f32 %v2157_v59, %v737_v52 }
 0x180   : > { %v1644_v5 = vpop.eup %1643  ;;  %v948_v35 = vmax.f32 %v1642_v46, 0.0  ;;  %1655 = vrcp.f32 %v891_v63  ;;  %v738_v61 = vmul.f32 %v2148_v1, %v703_v53  ;;  %v739_v55 = vmul.f32 %v2148_v1, %v704_v38 }
 0x181   : > { %v1646_v7 = vpop.eup %1645  ;;  %v979_v18 = vmin.f32 %v947_v2, 1.0  ;;  %v949_v62 = vmax.f32 %v1644_v5, 0.0  ;;  %1657 = vpow2.f32 %v2214_v14  ;;  %v804_v43 = vsub.f32 0.0, %v772_v4 }
 0x182   : > { %v1648_v9 = vpop.eup %1647  ;;  %v980_v10 = vmin.f32 %v948_v35, 1.0  ;;  %v950_v37 = vmax.f32 %v1646_v7, 0.0  ;;  %1659 = vpow2.f32 %v2217_v60  ;;  %v773_v25 = vadd.f32 %v2157_v59, %v738_v61 }
 0x183   : > { %v1650_v11 = vpop.eup %1649  ;;  %1012 = vst.msk [vmem:[%s2586_s5 + $0x48] sm:$0xff] %vm1002_vm3, %v979_v18  ;;  %v981_v12 = vmin.f32 %v949_v62, 1.0  ;;  %v951_v13 = vmax.f32 %v1648_v9, 0.0  ;;  %1661 = vpow2.f32 %v2235_v8  ;;  %v862_v15 = vmul.f32 1.442695, %v804_v43  ;;  %v1038_v43 = vld [vmem:[#allocation2 + $0x110] sm:$0xff] }
 0x184   : > { %v1652_v14 = vpop.eup %1651  ;;  %1013 = vst.msk [vmem:[%s2586_s5 + $0x50] sm:$0xff] %vm1002_vm3, %v980_v10  ;;  %v982_v60 = vmin.f32 %v950_v37, 1.0  ;;  %v952_v20 = vmax.f32 %v1650_v11, 0.0  ;;  %1663 = vpow2.f32 %v2253_v19  ;;  %v805_v16 = vsub.f32 0.0, %v773_v25  ;;  %v1039_v11 = vld [vmem:[#allocation2 + $0x118] sm:$0xff] }
 0x185   : > { %v1654_v29 = vpop.eup %1653  ;;  %1014 = vst.msk [vmem:[%s2586_s5 + $0x58] sm:$0xff] %vm1002_vm3, %v981_v12  ;;  %v983_v21 = vmin.f32 %v951_v13, 1.0  ;;  %v953_v8 = vmax.f32 %v1652_v14, 0.0  ;;  %1665 = vpow2.f32 %v854_v39  ;;  %v774_v51 = vadd.f32 %v2157_v59, %v739_v55 }
 0x186   : > { %v1656_v23 = vpop.eup %1655  ;;  %1015 = vst.msk [vmem:[%s2586_s5 + $0x60] sm:$0xff] %vm1002_vm3, %v982_v60  ;;  %v984_v19 = vmin.f32 %v952_v20, 1.0  ;;  %v954_v6 = vmax.f32 %v1654_v29, 0.0  ;;  %1667 = vpow2.f32 %v856_v0  ;;  %v2301_v24 = vmul.f32 1.442695, %v805_v16 }
 0x187   : > { %v1658_v58 = vpop.eup %1657  ;;  %1016 = vst.msk [vmem:[%s2586_s5 + $0x68] sm:$0xff] %vm1002_vm3, %v983_v21  ;;  %v985_v26 = vmin.f32 %v953_v8, 1.0  ;;  %v955_v27 = vmax.f32 %v1656_v23, 0.0  ;;  %1669 = vpow2.f32 %v858_v45  ;;  %v806_v3 = vsub.f32 0.0, %v774_v51 }
 0x188   : > { %v1660_v28 = vpop.eup %1659  ;;  %1017 = vst.msk [vmem:[%s2586_s5 + $0x70] sm:$0xff] %vm1002_vm3, %v984_v19  ;;  %v986_v30 = vmin.f32 %v954_v6, 1.0  ;;  %v892_v31 = vadd.f32 1.0, %v1658_v58  ;;  %1671 = vpow2.f32 %v860_v54  ;;  %v740_v32 = vmul.f32 %v2148_v1, %v705_v22  ;;  %v1037_v54 = vld [vmem:[#allocation2 + $0x108] sm:$0xff] }
 0x189   : > { %v1662_v36 = vpop.eup %1661  ;;  %1018 = vst.msk [vmem:[%s2586_s5 + $0x78] sm:$0xff] %vm1002_vm3, %v985_v26  ;;  %v987_v41 = vmin.f32 %v955_v27, 1.0  ;;  %v893_v39 = vadd.f32 1.0, %v1660_v28  ;;  %1673 = vpow2.f32 %v862_v15  ;;  %v866_v40 = vmul.f32 1.442695, %v806_v3 }
 0x18a   : > { %v1664_v42 = vpop.eup %1663  ;;  %1019 = vst.msk [vmem:[%s2586_s5 + $0x80] sm:$0xff] %vm1002_vm3, %v986_v30  ;;  %1675 = vrcp.f32 %v892_v31  ;;  %v894_v49 = vadd.f32 1.0, %v1662_v36  ;;  %v775_v44 = vadd.f32 %v2157_v59, %v740_v32  ;;  %v741_v56 = vmul.f32 %v2148_v1, %v706_v17 }
 0x18b   : > { %v1666_v47 = vpop.eup %1665  ;;  %1020 = vst.msk [vmem:[%s2586_s5 + $0x88] sm:$0xff] %vm1002_vm3, %v987_v41  ;;  %1677 = vrcp.f32 %v893_v39  ;;  %v895_v48 = vadd.f32 1.0, %v1664_v42  ;;  %v742_v50 = vmul.f32 %v2148_v1, %v707_v33  ;;  %v1068_v52 = vmul.f32 %v1036_v34, %v2148_v1  ;;  %v1040_v41 = vld [vmem:[#allocation2 + $0x120] sm:$0xff] }
 0x18c   : > { %v1668_v53 = vpop.eup %1667  ;;  %1679 = vrcp.f32 %v894_v49  ;;  %v896_v38 = vadd.f32 1.0, %v1666_v47  ;;  %v807_v57 = vsub.f32 0.0, %v775_v44  ;;  %v776_v63 = vadd.f32 %v2157_v59, %v741_v56  ;;  %v1041_v44 = vld [vmem:[#allocation2 + $0x128] sm:$0xff] }
 0x18d   : > { %v1670_v0 = vpop.eup %1669  ;;  %1681 = vrcp.f32 %v895_v48  ;;  %v897_v45 = vadd.f32 1.0, %v1668_v53  ;;  %v777_v46 = vadd.f32 %v2157_v59, %v742_v50  ;;  %v1100_v2 = vadd.f32 %v1068_v52, %v2157_v59 }
 0x18e   : > { %v1672_v4 = vpop.eup %1671  ;;  %1683 = vrcp.f32 %v896_v38  ;;  %v898_v5 = vadd.f32 1.0, %v1670_v0  ;;  %v868_v35 = vmul.f32 1.442695, %v807_v57  ;;  %v808_v61 = vsub.f32 0.0, %v776_v63  ;;  %v1042_v0 = vld [vmem:[#allocation2 + $0x130] sm:$0xff] }
 0x18f   : > { %v1674_v55 = vpop.eup %1673  ;;  %1685 = vrcp.f32 %v897_v45  ;;  %v899_v7 = vadd.f32 1.0, %v1672_v4  ;;  %v809_v18 = vsub.f32 0.0, %v777_v46  ;;  %v1132_v62 = vsub.f32 0.0, %v1100_v2  ;;  %v1043_v4 = vld [vmem:[#allocation2 + $0x138] sm:$0xff] }
 0x190   : > { %v1676_v9 = vpop.eup %1675  ;;  %1687 = vrcp.f32 %v898_v5  ;;  %v900_v10 = vadd.f32 1.0, %v1674_v55  ;;  %v870_v37 = vmul.f32 1.442695, %v808_v61  ;;  %v1069_v25 = vmul.f32 %v1037_v54, %v2148_v1 }
 0x191   : > { %v1678_v12 = vpop.eup %1677  ;;  %v956_v13 = vmax.f32 %v1676_v9, 0.0  ;;  %1689 = vrcp.f32 %v899_v7  ;;  %v872_v15 = vmul.f32 1.442695, %v809_v18  ;;  %v1164_v14 = vmul.f32 1.442695, %v1132_v62 }
 0x192   : > { %v1680_v60 = vpop.eup %1679  ;;  %v957_v20 = vmax.f32 %v1678_v12, 0.0  ;;  %1691 = vrcp.f32 %v900_v10  ;;  %v1101_v16 = vadd.f32 %v1069_v25, %v2157_v59  ;;  %v1070_v29 = vmul.f32 %v1038_v43, %v2148_v1 }
 0x193   : > { %v1682_v21 = vpop.eup %1681  ;;  %v988_v8 = vmin.f32 %v956_v13, 1.0  ;;  %v958_v51 = vmax.f32 %v1680_v60, 0.0  ;;  %1693 = vpow2.f32 %v2301_v24  ;;  %v1071_v22 = vmul.f32 %v1039_v11, %v2148_v1  ;;  %v1044_v11 = vld [vmem:[#allocation2 + $0x140] sm:$0xff]  ;;  %v1045_v60 = vld [vmem:[#allocation2 + $0x148] sm:$0xff] }
 0x194   : > { %v1684_v23 = vpop.eup %1683  ;;  %v989_v19 = vmin.f32 %v957_v20, 1.0  ;;  %v959_v6 = vmax.f32 %v1682_v21, 0.0  ;;  %1695 = vpow2.f32 %v866_v40  ;;  %v1133_v58 = vsub.f32 0.0, %v1101_v16 }
 0x195   : > { %v1686_v26 = vpop.eup %1685  ;;  %1021 = vst.msk [vmem:[%s2586_s5 + $0x90] sm:$0xff] %vm1002_vm3, %v988_v8  ;;  %v990_v27 = vmin.f32 %v958_v51, 1.0  ;;  %v960_v3 = vmax.f32 %v1684_v23, 0.0  ;;  %1697 = vpow2.f32 %v868_v35  ;;  %v1102_v17 = vadd.f32 %v1070_v29, %v2157_v59 }
 0x196   : > { %v1688_v28 = vpop.eup %1687  ;;  %1022 = vst.msk [vmem:[%s2586_s5 + $0x98] sm:$0xff] %vm1002_vm3, %v989_v19  ;;  %v991_v24 = vmin.f32 %v959_v6, 1.0  ;;  %v961_v30 = vmax.f32 %v1686_v26, 0.0  ;;  %1699 = vpow2.f32 %v870_v37  ;;  %v1166_v31 = vmul.f32 1.442695, %v1133_v58 }
 0x197   : > { %v1690_v32 = vpop.eup %1689  ;;  %1023 = vst.msk [vmem:[%s2586_s5 + $0xa0] sm:$0xff] %vm1002_vm3, %v990_v27  ;;  %v992_v33 = vmin.f32 %v960_v3, 1.0  ;;  %v962_v34 = vmax.f32 %v1688_v28, 0.0  ;;  %1701 = vpow2.f32 %v872_v15  ;;  %v1134_v36 = vsub.f32 0.0, %v1102_v17 }
 0x198   : > { %v1692_v39 = vpop.eup %1691  ;;  %1024 = vst.msk [vmem:[%s2586_s5 + $0xa8] sm:$0xff] %vm1002_vm3, %v991_v24  ;;  %v993_v40 = vmin.f32 %v961_v30, 1.0  ;;  %v963_v42 = vmax.f32 %v1690_v32, 0.0  ;;  %1703 = vpow2.f32 %v1164_v14  ;;  %v1103_v49 = vadd.f32 %v1071_v22, %v2157_v59 }
 0x199   : > { %v1694_v56 = vpop.eup %1693  ;;  %1025 = vst.msk [vmem:[%s2586_s5 + $0xb0] sm:$0xff] %vm1002_vm3, %v992_v33  ;;  %v994_v47 = vmin.f32 %v962_v34, 1.0  ;;  %v964_v48 = vmax.f32 %v1692_v39, 0.0  ;;  %1705 = vpow2.f32 %v1166_v31  ;;  %v1168_v50 = vmul.f32 1.442695, %v1134_v36 }
 0x19a   : > { %v1696_v52 = vpop.eup %1695  ;;  %1026 = vst.msk [vmem:[%s2586_s5 + $0xb8] sm:$0xff] %vm1002_vm3, %v993_v40  ;;  %v995_v53 = vmin.f32 %v963_v42, 1.0  ;;  %v901_v38 = vadd.f32 1.0, %v1694_v56  ;;  %v1135_v57 = vsub.f32 0.0, %v1103_v49  ;;  %v1072_v63 = vmul.f32 %v1040_v41, %v2148_v1  ;;  %v1046_v49 = vld [vmem:[#allocation2 + $0x150] sm:$0xff] }
 0x19b   : > { %v1698_v45 = vpop.eup %1697  ;;  %1027 = vst.msk [vmem:[%s2586_s5 + $0xc0] sm:$0xff] %vm1002_vm3, %v994_v47  ;;  %v996_v46 = vmin.f32 %v964_v48, 1.0  ;;  %v902_v2 = vadd.f32 1.0, %v1696_v52  ;;  %1707 = vpow2.f32 %v1168_v50  ;;  %v1073_v54 = vmul.f32 %v1041_v44, %v2148_v1  ;;  %v1047_v50 = vld [vmem:[#allocation2 + $0x158] sm:$0xff] }
 0x19c   : > { %v1700_v5 = vpop.eup %1699  ;;  %1028 = vst.msk [vmem:[%s2586_s5 + $0xc8] sm:$0xff] %vm1002_vm3, %v995_v53  ;;  %1709 = vrcp.f32 %v901_v38  ;;  %v903_v35 = vadd.f32 1.0, %v1698_v45  ;;  %v1170_v61 = vmul.f32 1.442695, %v1135_v57  ;;  %v1104_v55 = vadd.f32 %v1072_v63, %v2157_v59  ;;  %v1048_v63 = vld [vmem:[#allocation2 + $0x160] sm:$0xff] }
 0x19d   : > { %v1702_v7 = vpop.eup %1701  ;;  %1029 = vst.msk [vmem:[%s2586_s5 + $0xd0] sm:$0xff] %vm1002_vm3, %v996_v46  ;;  %1711 = vrcp.f32 %v902_v2  ;;  %v904_v18 = vadd.f32 1.0, %v1700_v5  ;;  %v1105_v62 = vadd.f32 %v1073_v54, %v2157_v59  ;;  %v1074_v43 = vmul.f32 %v1042_v0, %v2148_v1  ;;  %v1049_v54 = vld [vmem:[#allocation2 + $0x168] sm:$0xff] }
 0x19e   : > { %v1704_v9 = vpop.eup %1703  ;;  %1713 = vrcp.f32 %v903_v35  ;;  %v905_v10 = vadd.f32 1.0, %v1702_v7  ;;  %v1136_v37 = vsub.f32 0.0, %v1104_v55  ;;  %v1075_v25 = vmul.f32 %v1043_v4, %v2148_v1 }
 0x19f   : > { %v1706_v12 = vpop.eup %1705  ;;  %1715 = vrcp.f32 %v904_v18  ;;  %v1228_v13 = vadd.f32 1.0, %v1704_v9  ;;  %v1137_v15 = vsub.f32 0.0, %v1105_v62  ;;  %v1106_v14 = vadd.f32 %v1074_v43, %v2157_v59 }
 0x1a0   : > { %1717 = vrcp.f32 %v905_v10  ;;  %v1229_v20 = vadd.f32 1.0, %v1706_v12  ;;  %v1172_v16 = vmul.f32 1.442695, %v1136_v37  ;;  %v1107_v29 = vadd.f32 %v1075_v25, %v2157_v59 }
 0x1a1   : > { %v1708_v21 = vpop.eup %1707  ;;  %1719 = vrcp.f32 %v1228_v13  ;;  %v1174_v8 = vmul.f32 1.442695, %v1137_v15  ;;  %v1138_v51 = vsub.f32 0.0, %v1106_v14  ;;  %v1076_v22 = vmul.f32 %v1044_v11, %v2148_v1 }
 0x1a2   : > { %v1710_v23 = vpop.eup %1709  ;;  %1721 = vrcp.f32 %v1229_v20  ;;  %v1230_v19 = vadd.f32 1.0, %v1708_v21  ;;  %v1139_v6 = vsub.f32 0.0, %v1107_v29  ;;  %v1077_v58 = vmul.f32 %v1045_v60, %v2148_v1  ;;  %v1050_v21 = vld [vmem:[#allocation2 + $0x170] sm:$0xff] }
 0x1a3   : > { %v1712_v26 = vpop.eup %1711  ;;  %v965_v27 = vmax.f32 %v1710_v23, 0.0  ;;  %1723 = vpow2.f32 %v1170_v61  ;;  %v1176_v3 = vmul.f32 1.442695, %v1138_v51  ;;  %v1108_v17 = vadd.f32 %v1076_v22, %v2157_v59 }
 0x1a4   : > { %v1714_v28 = vpop.eup %1713  ;;  %v966_v24 = vmax.f32 %v1712_v26, 0.0  ;;  %1725 = vrcp.f32 %v1230_v19  ;;  %v1178_v30 = vmul.f32 1.442695, %v1139_v6  ;;  %v1109_v31 = vadd.f32 %v1077_v58, %v2157_v59  ;;  %v1052_v6 = vld [vmem:[#allocation2 + $0x180] sm:$0xff] }
 0x1a5   : > { %v1716_v32 = vpop.eup %1715  ;;  %v997_v33 = vmin.f32 %v965_v27, 1.0  ;;  %v967_v34 = vmax.f32 %v1714_v28, 0.0  ;;  %1727 = vpow2.f32 %v1172_v16  ;;  %v1140_v36 = vsub.f32 0.0, %v1108_v17  ;;  %v1053_v17 = vld [vmem:[#allocation2 + $0x188] sm:$0xff] }
 0x1a6   : > { %v1718_v41 = vpop.eup %1717  ;;  %v998_v39 = vmin.f32 %v966_v24, 1.0  ;;  %v968_v40 = vmax.f32 %v1716_v32, 0.0  ;;  %1729 = vpow2.f32 %v1174_v8  ;;  %v1141_v42 = vsub.f32 0.0, %v1109_v31  ;;  %v1051_v8 = vld [vmem:[#allocation2 + $0x178] sm:$0xff]  ;;  %v1054_v31 = vld [vmem:[#allocation2 + $0x190] sm:$0xff] }
 0x1a7   : > { %v1720_v44 = vpop.eup %1719  ;;  %1030 = vst.msk [vmem:[%s2586_s5 + $0xd8] sm:$0xff] %vm1002_vm3, %v997_v33  ;;  %v999_v56 = vmin.f32 %v967_v34, 1.0  ;;  %v969_v47 = vmax.f32 %v1718_v41, 0.0  ;;  %1731 = vpow2.f32 %v1176_v3  ;;  %v1180_v48 = vmul.f32 1.442695, %v1140_v36 }
 0x1a8   : > { %v1722_v52 = vpop.eup %1721  ;;  %1031 = vst.msk [vmem:[%s2586_s5 + $0xe0] sm:$0xff] %vm1002_vm3, %v998_v39  ;;  %v1000_v53 = vmin.f32 %v968_v40, 1.0  ;;  %v1292_v38 = vmax.f32 %v1720_v44, 0.0  ;;  %1733 = vpow2.f32 %v1178_v30  ;;  %v1182_v57 = vmul.f32 1.442695, %v1141_v42 }
 0x1a9   : > { %v1724_v0 = vpop.eup %1723  ;;  %1032 = vst.msk [vmem:[%s2586_s5 + $0xe8] sm:$0xff] %vm1002_vm3, %v999_v56  ;;  %v1001_v45 = vmin.f32 %v969_v47, 1.0  ;;  %v1293_v46 = vmax.f32 %v1722_v52, 0.0  ;;  %1735 = vpow2.f32 %v1180_v48  ;;  %v1078_v2 = vmul.f32 %v1046_v49, %v2148_v1 }
 0x1aa   : > { %v1726_v4 = vpop.eup %1725  ;;  %1033 = vst.msk [vmem:[%s2586_s5 + $0xf0] sm:$0xff] %vm1002_vm3, %v1000_v53  ;;  %v1324_v5 = vmin.f32 %v1292_v38, 1.0  ;;  %v1231_v35 = vadd.f32 1.0, %v1724_v0  ;;  %1737 = vpow2.f32 %v1182_v57  ;;  %v1079_v61 = vmul.f32 %v1047_v50, %v2148_v1 }
 0x1ab   : > { %v1728_v55 = vpop.eup %1727  ;;  %1034 = vst.msk [vmem:[%s2586_s5 + $0xf8] sm:$0xff] %vm1002_vm3, %v1001_v45  ;;  %v1325_v7 = vmin.f32 %v1293_v46, 1.0  ;;  %v1294_v18 = vmax.f32 %v1726_v4, 0.0  ;;  %v1110_v62 = vadd.f32 %v1078_v2, %v2157_v59  ;;  %v1080_v43 = vmul.f32 %v1048_v63, %v2148_v1 }
 0x1ac   : > { %v1730_v9 = vpop.eup %1729  ;;  %1356 = vst.msk [vmem:[%s2586_s5 + $0x100] sm:$0xff] %vm1002_vm3, %v1324_v5  ;;  %1739 = vrcp.f32 %v1231_v35  ;;  %v1232_v10 = vadd.f32 1.0, %v1728_v55  ;;  %v1111_v37 = vadd.f32 %v1079_v61, %v2157_v59  ;;  %v1081_v25 = vmul.f32 %v1049_v54, %v2148_v1 }
 0x1ad   : > { %v1732_v11 = vpop.eup %1731  ;;  %1357 = vst.msk [vmem:[%s2586_s5 + $0x108] sm:$0xff] %vm1002_vm3, %v1325_v7  ;;  %v1326_v12 = vmin.f32 %v1294_v18, 1.0  ;;  %v1233_v13 = vadd.f32 1.0, %v1730_v9  ;;  %v1142_v15 = vsub.f32 0.0, %v1110_v62  ;;  %v1112_v14 = vadd.f32 %v1080_v43, %v2157_v59  ;;  %v1055_v43 = vld [vmem:[#allocation2 + $0x198] sm:$0xff] }
 0x1ae   : > { %v1734_v60 = vpop.eup %1733  ;;  %1741 = vrcp.f32 %v1232_v10  ;;  %v1234_v20 = vadd.f32 1.0, %v1732_v11  ;;  %v1143_v16 = vsub.f32 0.0, %v1111_v37  ;;  %v1113_v29 = vadd.f32 %v1081_v25, %v2157_v59  ;;  %v1056_v11 = vld [vmem:[#allocation2 + $0x1a0] sm:$0xff] }
 0x1af   : > { %v1736_v51 = vpop.eup %1735  ;;  %1358 = vst.msk [vmem:[%s2586_s5 + $0x110] sm:$0xff] %vm1002_vm3, %v1326_v12  ;;  %1743 = vrcp.f32 %v1233_v13  ;;  %v1235_v22 = vadd.f32 1.0, %v1734_v60  ;;  %v1184_v23 = vmul.f32 1.442695, %v1142_v15  ;;  %v1144_v19 = vsub.f32 0.0, %v1112_v14 }
 0x1b0   : > { %v1738_v58 = vpop.eup %1737  ;;  %1745 = vrcp.f32 %v1234_v20  ;;  %v1236_v26 = vadd.f32 1.0, %v1736_v51  ;;  %v1186_v27 = vmul.f32 1.442695, %v1143_v16  ;;  %v1145_v3 = vsub.f32 0.0, %v1113_v29  ;;  %v1058_v51 = vld [vmem:[#allocation2 + $0x1b0] sm:$0xff] }
 0x1b1   : > { %1747 = vrcp.f32 %v1235_v22  ;;  %v1237_v28 = vadd.f32 1.0, %v1738_v58  ;;  %v1188_v24 = vmul.f32 1.442695, %v1144_v19  ;;  %v1082_v30 = vmul.f32 %v1050_v21, %v2148_v1  ;;  %v1059_v58 = vld [vmem:[#allocation2 + $0x1b8] sm:$0xff] }
 0x1b2   : > { %v1740_v32 = vpop.eup %1739  ;;  %1749 = vrcp.f32 %v1236_v26  ;;  %v1190_v33 = vmul.f32 1.442695, %v1145_v3  ;;  %v1083_v34 = vmul.f32 %v1051_v8, %v2148_v1  ;;  %v1084_v36 = vmul.f32 %v1052_v6, %v2148_v1  ;;  %v1057_v8 = vld [vmem:[#allocation2 + $0x1a8] sm:$0xff] }
 0x1b3   : > { %v1295_v41 = vmax.f32 %v1740_v32, 0.0  ;;  %1751 = vrcp.f32 %v1237_v28  ;;  %v1114_v39 = vadd.f32 %v1082_v30, %v2157_v59  ;;  %v1085_v40 = vmul.f32 %v1053_v17, %v2148_v1 }
 0x1b4   : > { %v1742_v42 = vpop.eup %1741  ;;  %1753 = vpow2.f32 %v1184_v23  ;;  %v1115_v49 = vadd.f32 %v1083_v34, %v2157_v59  ;;  %v1116_v44 = vadd.f32 %v1084_v36, %v2157_v59  ;;  %v1086_v56 = vmul.f32 %v1054_v31, %v2148_v1 }
 0x1b5   : > { %v1744_v47 = vpop.eup %1743  ;;  %v1327_v48 = vmin.f32 %v1295_v41, 1.0  ;;  %v1296_v50 = vmax.f32 %v1742_v42, 0.0  ;;  %1755 = vpow2.f32 %v1186_v27  ;;  %v1146_v52 = vsub.f32 0.0, %v1114_v39  ;;  %v1060_v42 = vld [vmem:[#allocation2 + $0x1c0] sm:$0xff] }
 0x1b6   : > { %v1746_v53 = vpop.eup %1745  ;;  %v1297_v38 = vmax.f32 %v1744_v47, 0.0  ;;  %1757 = vpow2.f32 %v1188_v24  ;;  %v1147_v57 = vsub.f32 0.0, %v1115_v49  ;;  %v1148_v63 = vsub.f32 0.0, %v1116_v44 }
 0x1b7   : > { %v1748_v0 = vpop.eup %1747  ;;  %1359 = vst.msk [vmem:[%s2586_s5 + $0x118] sm:$0xff] %vm1002_vm3, %v1327_v48  ;;  %v1328_v45 = vmin.f32 %v1296_v50, 1.0  ;;  %v1298_v46 = vmax.f32 %v1746_v53, 0.0  ;;  %1759 = vpow2.f32 %v1190_v33  ;;  %v1192_v2 = vmul.f32 1.442695, %v1146_v52 }
 0x1b8   : > { %v1750_v54 = vpop.eup %1749  ;;  %v1329_v4 = vmin.f32 %v1297_v38, 1.0  ;;  %v1299_v5 = vmax.f32 %v1748_v0, 0.0  ;;  %v1194_v35 = vmul.f32 1.442695, %v1147_v57  ;;  %v1196_v61 = vmul.f32 1.442695, %v1148_v63 }
 0x1b9   : > { %v1752_v55 = vpop.eup %1751  ;;  %1360 = vst.msk [vmem:[%s2586_s5 + $0x120] sm:$0xff] %vm1002_vm3, %v1328_v45  ;;  %v1330_v7 = vmin.f32 %v1298_v46, 1.0  ;;  %v1300_v18 = vmax.f32 %v1750_v54, 0.0  ;;  %1761 = vpow2.f32 %v1192_v2  ;;  %v1117_v62 = vadd.f32 %v1085_v40, %v2157_v59 }
 0x1ba   : > { %v1754_v9 = vpop.eup %1753  ;;  %1361 = vst.msk [vmem:[%s2586_s5 + $0x128] sm:$0xff] %vm1002_vm3, %v1329_v4  ;;  %v1331_v10 = vmin.f32 %v1299_v5, 1.0  ;;  %v1301_v37 = vmax.f32 %v1752_v55, 0.0  ;;  %1763 = vpow2.f32 %v1194_v35  ;;  %v1118_v25 = vadd.f32 %v1086_v56, %v2157_v59 }
 0x1bb   : > { %v1756_v12 = vpop.eup %1755  ;;  %1362 = vst.msk [vmem:[%s2586_s5 + $0x130] sm:$0xff] %vm1002_vm3, %v1330_v7  ;;  %v1332_v13 = vmin.f32 %v1300_v18, 1.0  ;;  %v1238_v15 = vadd.f32 1.0, %v1754_v9  ;;  %1765 = vpow2.f32 %v1196_v61  ;;  %v1149_v14 = vsub.f32 0.0, %v1117_v62  ;;  %v1061_v61 = vld [vmem:[#allocation2 + $0x1c8] sm:$0xff] }
 0x1bc   : > { %v1758_v60 = vpop.eup %1757  ;;  %1363 = vst.msk [vmem:[%s2586_s5 + $0x138] sm:$0xff] %vm1002_vm3, %v1331_v10  ;;  %v1333_v20 = vmin.f32 %v1301_v37, 1.0  ;;  %v1239_v16 = vadd.f32 1.0, %v1756_v12  ;;  %v1150_v29 = vsub.f32 0.0, %v1118_v25  ;;  %v1087_v21 = vmul.f32 %v1055_v43, %v2148_v1  ;;  %v1062_v43 = vld [vmem:[#allocation2 + $0x1d0] sm:$0xff] }
 0x1bd   : > { %v1760_v22 = vpop.eup %1759  ;;  %1364 = vst.msk [vmem:[%s2586_s5 + $0x140] sm:$0xff] %vm1002_vm3, %v1332_v13  ;;  %1767 = vrcp.f32 %v1238_v15  ;;  %v1240_v23 = vadd.f32 1.0, %v1758_v60  ;;  %v1198_v19 = vmul.f32 1.442695, %v1149_v14  ;;  %v1088_v6 = vmul.f32 %v1056_v11, %v2148_v1 }
 0x1be   : > { %1365 = vst.msk [vmem:[%s2586_s5 + $0x148] sm:$0xff] %vm1002_vm3, %v1333_v20  ;;  %1769 = vrcp.f32 %v1239_v16  ;;  %v1241_v26 = vadd.f32 1.0, %v1760_v22  ;;  %v1200_v27 = vmul.f32 1.442695, %v1150_v29  ;;  %v1119_v3 = vadd.f32 %v1087_v21, %v2157_v59  ;;  %v1063_v29 = vld [vmem:[#allocation2 + $0x1d8] sm:$0xff] }
 0x1bf   : > { %v1762_v17 = vpop.eup %1761  ;;  %1771 = vrcp.f32 %v1240_v23  ;;  %v1120_v28 = vadd.f32 %v1088_v6, %v2157_v59  ;;  %v1089_v24 = vmul.f32 %v1057_v8, %v2148_v1  ;;  %v1090_v30 = vmul.f32 %v1058_v51, %v2148_v1  ;;  %v1064_v23 = vld [vmem:[#allocation2 + $0x1e0] sm:$0xff] }
 0x1c0   : > { %v1764_v31 = vpop.eup %1763  ;;  %1773 = vrcp.f32 %v1241_v26  ;;  %v1242_v32 = vadd.f32 1.0, %v1762_v17  ;;  %v1151_v33 = vsub.f32 0.0, %v1119_v3  ;;  %v1091_v34 = vmul.f32 %v1059_v58, %v2148_v1 }
 0x1c1   : > { %v1766_v36 = vpop.eup %1765  ;;  %v1243_v41 = vadd.f32 1.0, %v1764_v31  ;;  %1775 = vpow2.f32 %v1198_v19  ;;  %v1152_v39 = vsub.f32 0.0, %v1120_v28  ;;  %v1121_v40 = vadd.f32 %v1089_v24, %v2157_v59 }
 0x1c2   : > { %1777 = vrcp.f32 %v1242_v32  ;;  %v1244_v49 = vadd.f32 1.0, %v1766_v36  ;;  %v1202_v44 = vmul.f32 1.442695, %v1151_v33  ;;  %v1122_v56 = vadd.f32 %v1090_v30, %v2157_v59  ;;  %v1065_v36 = vld [vmem:[#allocation2 + $0x1e8] sm:$0xff] }
 0x1c3   : > { %v1768_v47 = vpop.eup %1767  ;;  %1779 = vrcp.f32 %v1243_v41  ;;  %v1204_v48 = vmul.f32 1.442695, %v1152_v39  ;;  %v1153_v50 = vsub.f32 0.0, %v1121_v40  ;;  %v1123_v52 = vadd.f32 %v1091_v34, %v2157_v59 }
 0x1c4   : > { %v1770_v53 = vpop.eup %1769  ;;  %v1302_v38 = vmax.f32 %v1768_v47, 0.0  ;;  %1781 = vrcp.f32 %v1244_v49  ;;  %v1154_v57 = vsub.f32 0.0, %v1122_v56  ;;  %v1092_v63 = vmul.f32 %v1060_v42, %v2148_v1  ;;  %v1066_v49 = vld [vmem:[#allocation2 + $0x1f0] sm:$0xff] }
 0x1c5   : > { %v1772_v0 = vpop.eup %1771  ;;  %v1303_v45 = vmax.f32 %v1770_v53, 0.0  ;;  %1783 = vpow2.f32 %v1200_v27  ;;  %v1206_v46 = vmul.f32 1.442695, %v1153_v50  ;;  %v1155_v2 = vsub.f32 0.0, %v1123_v52 }
 0x1c6   : > { %v1774_v54 = vpop.eup %1773  ;;  %v1334_v4 = vmin.f32 %v1302_v38, 1.0  ;;  %v1304_v5 = vmax.f32 %v1772_v0, 0.0  ;;  %1785 = vpow2.f32 %v1202_v44  ;;  %v1208_v35 = vmul.f32 1.442695, %v1154_v57  ;;  %v1067_v57 = vld [vmem:[#allocation2 + $0x1f8] sm:$0xff] }
 0x1c7   : > { %v1776_v55 = vpop.eup %1775  ;;  %v1335_v7 = vmin.f32 %v1303_v45, 1.0  ;;  %v1305_v18 = vmax.f32 %v1774_v54, 0.0  ;;  %1787 = vpow2.f32 %v1204_v48  ;;  %v1210_v62 = vmul.f32 1.442695, %v1155_v2 }
 0x1c8   : > { %v1778_v9 = vpop.eup %1777  ;;  %1366 = vst.msk [vmem:[%s2586_s5 + $0x150] sm:$0xff] %vm1002_vm3, %v1334_v4  ;;  %v1336_v10 = vmin.f32 %v1304_v5, 1.0  ;;  %v1245_v37 = vadd.f32 1.0, %v1776_v55  ;;  %1789 = vpow2.f32 %v1206_v46  ;;  %v1124_v25 = vadd.f32 %v1092_v63, %v2157_v59 }
 0x1c9   : > { %v1780_v11 = vpop.eup %1779  ;;  %1367 = vst.msk [vmem:[%s2586_s5 + $0x158] sm:$0xff] %vm1002_vm3, %v1335_v7  ;;  %v1337_v12 = vmin.f32 %v1305_v18, 1.0  ;;  %v1306_v13 = vmax.f32 %v1778_v9, 0.0  ;;  %1791 = vpow2.f32 %v1208_v35  ;;  %v1093_v15 = vmul.f32 %v1061_v61, %v2148_v1 }
 0x1ca   : > { %v1782_v14 = vpop.eup %1781  ;;  %1368 = vst.msk [vmem:[%s2586_s5 + $0x160] sm:$0xff] %vm1002_vm3, %v1336_v10  ;;  %v1307_v60 = vmax.f32 %v1780_v11, 0.0  ;;  %1793 = vrcp.f32 %v1245_v37  ;;  %v1156_v20 = vsub.f32 0.0, %v1124_v25  ;;  %v1094_v16 = vmul.f32 %v1062_v43, %v2148_v1 }
 0x1cb   : > { %v1784_v21 = vpop.eup %1783  ;;  %1369 = vst.msk [vmem:[%s2586_s5 + $0x168] sm:$0xff] %vm1002_vm3, %v1337_v12  ;;  %v1338_v8 = vmin.f32 %v1306_v13, 1.0  ;;  %v1308_v51 = vmax.f32 %v1782_v14, 0.0  ;;  %1795 = vpow2.f32 %v1210_v62  ;;  %v1125_v22 = vadd.f32 %v1093_v15, %v2157_v59 }
 0x1cc   : > { %v1786_v19 = vpop.eup %1785  ;;  %v1339_v6 = vmin.f32 %v1307_v60, 1.0  ;;  %v1246_v58 = vadd.f32 1.0, %v1784_v21  ;;  %v1212_v26 = vmul.f32 1.442695, %v1156_v20  ;;  %v1126_v27 = vadd.f32 %v1094_v16, %v2157_v59 }
 0x1cd   : > { %v1788_v3 = vpop.eup %1787  ;;  %1370 = vst.msk [vmem:[%s2586_s5 + $0x170] sm:$0xff] %vm1002_vm3, %v1338_v8  ;;  %v1340_v17 = vmin.f32 %v1308_v51, 1.0  ;;  %v1247_v28 = vadd.f32 1.0, %v1786_v19  ;;  %v1157_v24 = vsub.f32 0.0, %v1125_v22  ;;  %v1095_v30 = vmul.f32 %v1063_v29, %v2148_v1 }
 0x1ce   : > { %v1790_v31 = vpop.eup %1789  ;;  %1371 = vst.msk [vmem:[%s2586_s5 + $0x178] sm:$0xff] %vm1002_vm3, %v1339_v6  ;;  %1797 = vrcp.f32 %v1246_v58  ;;  %v1248_v32 = vadd.f32 1.0, %v1788_v3  ;;  %v1158_v33 = vsub.f32 0.0, %v1126_v27  ;;  %v1096_v34 = vmul.f32 %v1064_v23, %v2148_v1 }
 0x1cf   : > { %v1792_v41 = vpop.eup %1791  ;;  %1372 = vst.msk [vmem:[%s2586_s5 + $0x180] sm:$0xff] %vm1002_vm3, %v1340_v17  ;;  %1799 = vrcp.f32 %v1247_v28  ;;  %v1249_v39 = vadd.f32 1.0, %v1790_v31  ;;  %v1214_v40 = vmul.f32 1.442695, %v1157_v24  ;;  %v1127_v42 = vadd.f32 %v1095_v30, %v2157_v59 }
 0x1d0   : > { %v1794_v44 = vpop.eup %1793  ;;  %1801 = vrcp.f32 %v1248_v32  ;;  %v1250_v56 = vadd.f32 1.0, %v1792_v41  ;;  %v1216_v47 = vmul.f32 1.442695, %v1158_v33  ;;  %v1128_v48 = vadd.f32 %v1096_v34, %v2157_v59 }
 0x1d1   : > { %v1796_v50 = vpop.eup %1795  ;;  %v1309_v52 = vmax.f32 %v1794_v44, 0.0  ;;  %1803 = vrcp.f32 %v1249_v39  ;;  %v1159_v53 = vsub.f32 0.0, %v1127_v42  ;;  %v1097_v38 = vmul.f32 %v1065_v36, %v2148_v1 }
 0x1d2   : > { %1805 = vrcp.f32 %v1250_v56  ;;  %v1251_v63 = vadd.f32 1.0, %v1796_v50  ;;  %v1160_v0 = vsub.f32 0.0, %v1128_v48  ;;  %v1098_v45 = vmul.f32 %v1066_v49, %v2148_v1 }
 0x1d3   : > { %v1341_v46 = vmin.f32 %v1309_v52, 1.0  ;;  %1807 = vpow2.f32 %v1212_v26  ;;  %v1218_v2 = vmul.f32 1.442695, %v1159_v53  ;;  %v1129_v54 = vadd.f32 %v1097_v38, %v2157_v59 }
 0x1d4   : > { %v1798_v4 = vpop.eup %1797  ;;  %1809 = vrcp.f32 %v1251_v63  ;;  %v1220_v5 = vmul.f32 1.442695, %v1160_v0  ;;  %v1130_v35 = vadd.f32 %v1098_v45, %v2157_v59  ;;  %v1099_v61 = vmul.f32 %v1067_v57, %v2148_v1 }
 0x1d5   : > { %v1800_v55 = vpop.eup %1799  ;;  %1373 = vst.msk [vmem:[%s2586_s5 + $0x188] sm:$0xff] %vm1002_vm3, %v1341_v46  ;;  %v1310_v7 = vmax.f32 %v1798_v4, 0.0  ;;  %1811 = vpow2.f32 %v1214_v40  ;;  %v1161_v18 = vsub.f32 0.0, %v1129_v54 }
 0x1d6   : > { %v1802_v62 = vpop.eup %1801  ;;  %v1311_v43 = vmax.f32 %v1800_v55, 0.0  ;;  %1813 = vpow2.f32 %v1216_v47  ;;  %v1162_v9 = vsub.f32 0.0, %v1130_v35  ;;  %v1131_v10 = vadd.f32 %v1099_v61, %v2157_v59 }
 0x1d7   : > { %v1804_v37 = vpop.eup %1803  ;;  %v1342_v25 = vmin.f32 %v1310_v7, 1.0  ;;  %v1312_v11 = vmax.f32 %v1802_v62, 0.0  ;;  %1815 = vpow2.f32 %v1218_v2  ;;  %v1222_v1 = vmul.f32 1.442695, %v1161_v18 }
 0x1d8   : > { %v1806_v12 = vpop.eup %1805  ;;  %v1343_v13 = vmin.f32 %v1311_v43, 1.0  ;;  %v1313_v15 = vmax.f32 %v1804_v37, 0.0  ;;  %1817 = vpow2.f32 %v1220_v5  ;;  %v1224_v14 = vmul.f32 1.442695, %v1162_v9 }
 0x1d9   : > { %v1808_v60 = vpop.eup %1807  ;;  %1374 = vst.msk [vmem:[%s2586_s5 + $0x190] sm:$0xff] %vm1002_vm3, %v1342_v25  ;;  %v1344_v20 = vmin.f32 %v1312_v11, 1.0  ;;  %v1314_v16 = vmax.f32 %v1806_v12, 0.0  ;;  %1819 = vpow2.f32 %v1222_v1  ;;  %v1163_v59 = vsub.f32 0.0, %v1131_v10 }
 0x1da   : > { %v1810_v29 = vpop.eup %1809  ;;  %1375 = vst.msk [vmem:[%s2586_s5 + $0x198] sm:$0xff] %vm1002_vm3, %v1343_v13  ;;  %v1345_v21 = vmin.f32 %v1313_v15, 1.0  ;;  %v1252_v8 = vadd.f32 1.0, %v1808_v60  ;;  %1821 = vpow2.f32 %v1224_v14 }
 0x1db   : > { %v1812_v51 = vpop.eup %1811  ;;  %1376 = vst.msk [vmem:[%s2586_s5 + $0x1a0] sm:$0xff] %vm1002_vm3, %v1344_v20  ;;  %v1346_v22 = vmin.f32 %v1314_v16, 1.0  ;;  %v1315_v23 = vmax.f32 %v1810_v29, 0.0  ;;  %v1226_v19 = vmul.f32 1.442695, %v1163_v59 }
 0x1dc   : > { %v1814_v6 = vpop.eup %1813  ;;  %1377 = vst.msk [vmem:[%s2586_s5 + $0x1a8] sm:$0xff] %vm1002_vm3, %v1345_v21  ;;  %1823 = vrcp.f32 %v1252_v8  ;;  %v1253_v58 = vadd.f32 1.0, %v1812_v51 }
 0x1dd   : > { %v1816_v26 = vpop.eup %1815  ;;  %1378 = vst.msk [vmem:[%s2586_s5 + $0x1b0] sm:$0xff] %vm1002_vm3, %v1346_v22  ;;  %v1347_v27 = vmin.f32 %v1315_v23, 1.0  ;;  %v1254_v3 = vadd.f32 1.0, %v1814_v6  ;;  %1825 = vpow2.f32 %v1226_v19 }
 0x1de   : > { %v1818_v17 = vpop.eup %1817  ;;  %1827 = vrcp.f32 %v1253_v58  ;;  %v1255_v28 = vadd.f32 1.0, %v1816_v26 }
 0x1df   : > { %v1820_v24 = vpop.eup %1819  ;;  %1379 = vst.msk [vmem:[%s2586_s5 + $0x1b8] sm:$0xff] %vm1002_vm3, %v1347_v27  ;;  %1829 = vrcp.f32 %v1254_v3  ;;  %v1256_v30 = vadd.f32 1.0, %v1818_v17 }
 0x1e0   : > { %v1822_v31 = vpop.eup %1821  ;;  %1831 = vrcp.f32 %v1255_v28  ;;  %v1257_v32 = vadd.f32 1.0, %v1820_v24 }
 0x1e1   : > { %1833 = vrcp.f32 %v1256_v30  ;;  %v1258_v33 = vadd.f32 1.0, %v1822_v31 }
 0x1e2   : > { %v1824_v34 = vpop.eup %1823  ;;  %1835 = vrcp.f32 %v1257_v32 }
 0x1e3   : > { %v1826_v36 = vpop.eup %1825  ;;  %v1316_v41 = vmax.f32 %v1824_v34, 0.0  ;;  %1837 = vrcp.f32 %v1258_v33 }
 0x1e4   : > { %v1828_v39 = vpop.eup %1827  ;;  %v1259_v40 = vadd.f32 1.0, %v1826_v36 }
 0x1e5   : > { %v1830_v42 = vpop.eup %1829  ;;  %v1348_v49 = vmin.f32 %v1316_v41, 1.0  ;;  %v1317_v44 = vmax.f32 %v1828_v39, 0.0 }
 0x1e6   : > { %v1832_v56 = vpop.eup %1831  ;;  %v1318_v47 = vmax.f32 %v1830_v42, 0.0  ;;  %1839 = vrcp.f32 %v1259_v40 }
 0x1e7   : > { %v1834_v48 = vpop.eup %1833  ;;  %1380 = vst.msk [vmem:[%s2586_s5 + $0x1c0] sm:$0xff] %vm1002_vm3, %v1348_v49  ;;  %v1349_v50 = vmin.f32 %v1317_v44, 1.0  ;;  %v1319_v52 = vmax.f32 %v1832_v56, 0.0 }
 0x1e8   : > { %v1836_v53 = vpop.eup %1835  ;;  %v1350_v38 = vmin.f32 %v1318_v47, 1.0  ;;  %v1320_v57 = vmax.f32 %v1834_v48, 0.0 }
 0x1e9   : > { %v1838_v63 = vpop.eup %1837  ;;  %1381 = vst.msk [vmem:[%s2586_s5 + $0x1c8] sm:$0xff] %vm1002_vm3, %v1349_v50  ;;  %v1351_v0 = vmin.f32 %v1319_v52, 1.0  ;;  %v1321_v45 = vmax.f32 %v1836_v53, 0.0 }
 0x1ea   : > { %1382 = vst.msk [vmem:[%s2586_s5 + $0x1d0] sm:$0xff] %vm1002_vm3, %v1350_v38  ;;  %v1352_v46 = vmin.f32 %v1320_v57, 1.0  ;;  %v1322_v2 = vmax.f32 %v1838_v63, 0.0 }
 0x1eb   : > { %1383 = vst.msk [vmem:[%s2586_s5 + $0x1d8] sm:$0xff] %vm1002_vm3, %v1351_v0  ;;  %v1353_v54 = vmin.f32 %v1321_v45, 1.0 }
 0x1ec   : > { %v1840_v4 = vpop.eup %1839  ;;  %1384 = vst.msk [vmem:[%s2586_s5 + $0x1e0] sm:$0xff] %vm1002_vm3, %v1352_v46  ;;  %v1354_v5 = vmin.f32 %v1322_v2, 1.0 }
 0x1ed   : > { %1385 = vst.msk [vmem:[%s2586_s5 + $0x1e8] sm:$0xff] %vm1002_vm3, %v1353_v54  ;;  %v1323_v35 = vmax.f32 %v1840_v4, 0.0 }
 0x1ee   : > { %1386 = vst.msk [vmem:[%s2586_s5 + $0x1f0] sm:$0xff] %vm1002_vm3, %v1354_v5 }
 0x1ef   : > { %v1355_v61 = vmin.f32 %v1323_v35, 1.0 }
 0x1f1   : > { %1387 = vst.msk [vmem:[%s2586_s5 + $0x1f8] sm:$0xff] %vm1002_vm3, %v1355_v61 }
 0x1f2 PF: > { %s15_s18 = sadd.s32 1, %s1847_s18  }
 0x1f3   : > { %p12_p6 = scmp.ge.s32.totalorder %s15_s18, 4  }
 0x1f5   :  { %14 = sbr.rel (!%p12_p6) target bundleno = 1 (0x1), region = 76 }

</bundles_post_ra>
